<compile_context>
chip_gen: v7x
topology: tpu7x:2x2x1
jax: 0.10.0
libtpu: 0.0.40
codegen_flags: <defaults>
</compile_context>

<pallas_src>
import functools

import jax
import jax.numpy as jnp
from jax.experimental import pallas as pl
from jax.experimental.pallas import tpu as pltpu

_TILE_N = 32  # matched-query rows per grid step (multiple of 8 for sublanes)


# --------------------------------------------------------------------------
# Fused Pallas kernel
# --------------------------------------------------------------------------

def _fused_loss_kernel(nvalid_ref,                       # scalar prefetch (SMEM)
                       logits_ref, tgt_ref, wcol_ref, sbox_ref, tbox_ref,
                       smask_ref, tmask_ref, fx_ref, fy_ref,
                       out_ref, ce_acc, dice_acc, pack_sc):
    step = pl.program_id(0)

    @pl.when(step == 0)
    def _init():
        ce_acc[...] = jnp.zeros_like(ce_acc)
        dice_acc[...] = jnp.zeros_like(dice_acc)

    # ---- mask loss for this N-tile: bilinear sampling fused in (no gathers) ----
    fx = fx_ref[...]                          # (TILE_N, P) pixel-space x coords
    fy = fy_ref[...]                          # (TILE_N, P) pixel-space y coords
    tile_n, p_pts = fx.shape
    h_dim = smask_ref.shape[1]                # masks kept in natural (N, H, W) order
    w_dim = smask_ref.shape[2]

    ih = jax.lax.broadcasted_iota(jnp.int32, (tile_n, p_pts, h_dim), 2).astype(jnp.float32)
    iw = jax.lax.broadcasted_iota(jnp.int32, (tile_n, p_pts, w_dim), 2).astype(jnp.float32)
    wy = jnp.maximum(0.0, 1.0 - jnp.abs(fy[..., None] - ih))   # (TILE_N, P, H)
    wx = jnp.maximum(0.0, 1.0 - jnp.abs(fx[..., None] - iw))   # (TILE_N, P, W)

    # zero-padded bilinear grid_sample (align_corners=False):
    #   val[n, p] = sum_{h, w} wy[n,p,h] * wx[n,p,w] * mask[n,h,w]
    # one MXU call for both src and tgt masks (concatenated along W), bf16 in,
    # f32 accumulation.
    both = jnp.concatenate([smask_ref[...], tmask_ref[...]], axis=-1)   # (TILE_N, H, 2W)
    tmp = jnp.einsum('nph,nhw->npw',
                     wy.astype(jnp.bfloat16), both.astype(jnp.bfloat16),
                     preferred_element_type=jnp.float32)                # (TILE_N, P, 2W)
    logit = jnp.sum(tmp[..., :w_dim] * wx, axis=-1)           # (TILE_N, P)
    label = jnp.sum(tmp[..., w_dim:] * wx, axis=-1)           # (TILE_N, P)

    # shared exp(-|x|) drives both BCE-with-logits and the sigmoid
    e = jnp.exp(-jnp.abs(logit))
    r = 1.0 / (1.0 + e)
    bce = jnp.maximum(logit, 0.0) - logit * label + jnp.log(1.0 + e)
    prob = jnp.where(logit >= 0.0, r, e * r)

    # validity mask from the scalar-prefetched valid-row count (no VMEM input)
    row = step * tile_n + jax.lax.broadcasted_iota(jnp.int32, (tile_n, 1), 0)
    valid = (row < nvalid_ref[0]).astype(jnp.float32)         # (TILE_N, 1)

    ce_rows = jnp.mean(bce, axis=1, keepdims=True) * valid    # (TILE_N, 1)
    numer = 2.0 * jnp.sum(prob * label, axis=1, keepdims=True)
    denom = jnp.sum(prob + label, axis=1, keepdims=True)      # one lane reduce
    dice_rows = (1.0 - (numer + 1.0) / (denom + 1.0)) * valid

    # row-wise partial sums; cross-sublane reduce deferred to the last step
    ce_acc[...] += ce_rows
    dice_acc[...] += dice_rows

    # ---- step 0: weighted CE + box losses (hidden under mask-tile prefetch) ----
    @pl.when(step == 0)
    def _side_losses():
        # weighted cross-entropy, lane-dense layout (classes on sublanes)
        logits = logits_ref[...]              # (C1, B*Q)
        tgt = tgt_ref[...]                    # (1, B*Q) int32
        wcol = wcol_ref[...]                  # (C1, 1)
        c1, bq = logits.shape
        cls = jax.lax.broadcasted_iota(jnp.int32, (c1, bq), 0)
        onehot = (cls == tgt).astype(jnp.float32)
        m = jnp.max(logits, axis=0, keepdims=True)
        lse = m + jnp.log(jnp.sum(jnp.exp(logits - m), axis=0, keepdims=True))
        tgt_logit = jnp.sum(onehot * logits, axis=0, keepdims=True)
        wrow = jnp.sum(onehot * wcol, axis=0, keepdims=True)
        ce_num = jnp.sum(wrow * (lse - tgt_logit), keepdims=True)   # (1, 1)
        ce_den = jnp.sum(wrow, keepdims=True)                       # (1, 1)

        # L1 + 3D GIoU, boxes on lanes, coords on sublanes (rows 0..5 used)
        sb = sbox_ref[...]                    # (8, N)
        tb = tbox_ref[...]
        l1 = jnp.sum(jnp.abs(sb[0:6, :] - tb[0:6, :]), keepdims=True)

        smin = sb[0:3, :] - 0.5 * sb[3:6, :]
        smax = sb[0:3, :] + 0.5 * sb[3:6, :]
        tmin = tb[0:3, :] - 0.5 * tb[3:6, :]
        tmax = tb[0:3, :] + 0.5 * tb[3:6, :]

        def vol(lo, hi):
            d = jnp.maximum(hi - lo, 0.0)
            return d[0:1, :] * d[1:2, :] * d[2:3, :]               # (1, N)

        vs = vol(smin, smax)
        vt = vol(tmin, tmax)
        inter = vol(jnp.maximum(smin, tmin), jnp.minimum(smax, tmax))
        union = vs + vt - inter
        enc = vol(jnp.minimum(smin, tmin), jnp.maximum(smax, tmax))
        eps = 1e-7
        # NOTE: eps-clamped denominators (reference divides unclamped);
        # differs only for degenerate zero-volume boxes.
        iou = inter / jnp.maximum(union, eps)
        giou = iou - (enc - union) / jnp.maximum(enc, eps)
        giou_sum = jnp.sum(1.0 - giou, keepdims=True)              # (1, 1)

        lane = jax.lax.broadcasted_iota(jnp.int32, pack_sc.shape, 1)
        pack_sc[...] = (jnp.where(lane == 0, ce_num, 0.0)
                        + jnp.where(lane == 1, ce_den, 0.0)
                        + jnp.where(lane == 4, l1, 0.0)
                        + jnp.where(lane == 5, giou_sum, 0.0))

    # ---- last step: only the final cross-sublane reduce + packed output ----
    @pl.when(step == pl.num_programs(0) - 1)
    def _pack():
        ce_sum = jnp.sum(ce_acc[...], keepdims=True)               # (1, 1)
        dice_sum = jnp.sum(dice_acc[...], keepdims=True)           # (1, 1)
        lane = jax.lax.broadcasted_iota(jnp.int32, out_ref.shape, 1)
        out_ref[...] = (pack_sc[...]
                        + jnp.where(lane == 2, ce_sum, 0.0)
                        + jnp.where(lane == 3, dice_sum, 0.0))


def _fused_loss_call(nvalid, logits_t, tgt_row, w_col, sbox_t, tbox_t,
                     smask_p, tmask_p, fx, fy):
    c1, bq = logits_t.shape
    nbox = sbox_t.shape[1]
    n_pad, h_dim, w_dim = smask_p.shape
    p_pts = fx.shape[1]
    n_tiles = n_pad // _TILE_N

    const = lambda i, nv: (0, 0)
    tile2 = lambda i, nv: (i, 0)
    tile3 = lambda i, nv: (i, 0, 0)

    return pl.pallas_call(
        _fused_loss_kernel,
        grid_spec=pltpu.PrefetchScalarGridSpec(
            num_scalar_prefetch=1,
            grid=(n_tiles,),
            in_specs=[
                pl.BlockSpec((c1, bq), const),              # CE logits (C1, B*Q)
                pl.BlockSpec((1, bq), const),               # target classes
                pl.BlockSpec((c1, 1), const),               # class weights
                pl.BlockSpec((8, nbox), const),             # src boxes (8, N)
                pl.BlockSpec((8, nbox), const),             # tgt boxes (8, N)
                pl.BlockSpec((_TILE_N, h_dim, w_dim), tile3),   # src masks (N, H, W)
                pl.BlockSpec((_TILE_N, h_dim, w_dim), tile3),   # tgt masks (N, H, W)
                pl.BlockSpec((_TILE_N, p_pts), tile2),      # fx
                pl.BlockSpec((_TILE_N, p_pts), tile2),      # fy
            ],
            out_specs=pl.BlockSpec((1, 128), const),
            scratch_shapes=[pltpu.VMEM((_TILE_N, 1), jnp.float32),   # ce row-partials
                            pltpu.VMEM((_TILE_N, 1), jnp.float32),   # dice row-partials
                            pltpu.VMEM((1, 128), jnp.float32)]),     # packed side losses
        out_shape=jax.ShapeDtypeStruct((1, 128), jnp.float32),
        compiler_params=pltpu.CompilerParams(
            dimension_semantics=("arbitrary",),
            vmem_limit_bytes=32 * 1024 * 1024),
    )(nvalid, logits_t, tgt_row, w_col, sbox_t, tbox_t, smask_p, tmask_p, fx, fy)


# --------------------------------------------------------------------------
# Plain-JAX glue: uncertainty-based point selection (dense, gather-free sample)
# --------------------------------------------------------------------------

def _point_sample_dense(masks, coords):
    """Bilinear grid_sample (align_corners=False, zeros padding) via hat weights.

    masks: (N, H, W) f32; coords: (N, S, 2) in [0, 1], (x, y) order -> (N, S)."""
    _, H, W = masks.shape
    fx = coords[..., 0] * W - 0.5
    fy = coords[..., 1] * H - 0.5
    wy = jnp.maximum(0.0, 1.0 - jnp.abs(fy[..., None] - jnp.arange(H, dtype=jnp.float32)))
    wx = jnp.maximum(0.0, 1.0 - jnp.abs(fx[..., None] - jnp.arange(W, dtype=jnp.float32)))
    tmp = jnp.einsum('nsh,nhw->nsw', wy, masks)
    return jnp.sum(tmp * wx, axis=-1)


def get_uncertain_point_coords_with_randomness(masks, num_points, oversample_ratio,
                                               importance_sample_ratio, key):
    # TODO(synk): top_k-based importance sampling has no clean Pallas equivalent;
    # it stays in plain JAX (small: N x num_points work).
    n = masks.shape[0]
    num_sampled = int(num_points * oversample_ratio)
    k1, k2 = jax.random.split(key)
    point_coords = jax.random.uniform(k1, (n, num_sampled, 2), dtype=jnp.float32)
    point_logits = _point_sample_dense(masks, point_coords)          # (N, S)
    uncert = -jnp.abs(point_logits)                                   # calculate_uncertainty
    num_uncertain = int(importance_sample_ratio * num_points)
    num_random = num_points - num_uncertain
    idx = jax.lax.top_k(uncert, num_uncertain)[1]                     # (N, k)
    sel = jnp.take_along_axis(point_coords, idx[:, :, None], axis=1)  # (N, k, 2)
    if num_random > 0:
        rnd = jax.random.uniform(k2, (n, num_random, 2), dtype=jnp.float32)
        sel = jnp.concatenate([sel, rnd], axis=1)
    return sel


# --------------------------------------------------------------------------
# DETR set loss forward (single output head, no aux / denoise)
# --------------------------------------------------------------------------

def detr_set_loss(pred_logits, pred_boxes, pred_masks,
                  batch_idx, src_idx, matched_labels,
                  matched_tgt_boxes, matched_tgt_masks,
                  num_classes, no_object_loss_weight,
                  num_points, oversample_ratio, importance_sample_ratio,
                  num_masks, key):
    B, Q, C1 = pred_logits.shape
    H, W = pred_masks.shape[-2], pred_masks.shape[-1]
    N = batch_idx.shape[0]

    # ---- loss_labels_ce inputs (classes on sublanes, rows on lanes) ----
    target_classes = jnp.full((B, Q), num_classes, dtype=jnp.int32)
    target_classes = target_classes.at[batch_idx, src_idx].set(
        matched_labels.astype(jnp.int32))
    logits_t = pred_logits.astype(jnp.float32).reshape(B * Q, C1).T      # (C1, B*Q)
    tgt_row = target_classes.reshape(1, B * Q)
    empty_weight = jnp.ones((C1,), jnp.float32).at[-1].set(no_object_loss_weight)
    w_col = empty_weight.reshape(C1, 1)

    # ---- loss_boxes inputs ((8, N): coords on sublanes, boxes on lanes) ----
    src_boxes = pred_boxes[batch_idx, src_idx].astype(jnp.float32)       # (N, 6)
    tgt_boxes = matched_tgt_boxes.astype(jnp.float32)
    sbox_t = jnp.zeros((8, N), jnp.float32).at[0:6, :].set(src_boxes.T)
    tbox_t = jnp.zeros((8, N), jnp.float32).at[0:6, :].set(tgt_boxes.T)

    # ---- loss_masks inputs (masks kept in natural (N, H, W) layout) ----
    src_masks = pred_masks[batch_idx, src_idx].astype(jnp.float32)       # (N, H, W)
    tgt_masks = matched_tgt_masks.astype(jnp.float32)                    # (N, H, W)
    coords = get_uncertain_point_coords_with_randomness(
        src_masks, num_points, oversample_ratio, importance_sample_ratio, key)
    fx = coords[..., 0] * W - 0.5     # align_corners=False pixel coordinates
    fy = coords[..., 1] * H - 0.5

    n_pad = ((N + _TILE_N - 1) // _TILE_N) * _TILE_N
    pad = n_pad - N
    smask_p = jnp.pad(src_masks, ((0, pad), (0, 0), (0, 0)))
    tmask_p = jnp.pad(tgt_masks, ((0, pad), (0, 0), (0, 0)))
    fx_p = jnp.pad(fx, ((0, pad), (0, 0)))
    fy_p = jnp.pad(fy, ((0, pad), (0, 0)))
    nvalid = jnp.array([N], dtype=jnp.int32)      # scalar-prefetched valid-row count

    packed = _fused_loss_call(nvalid, logits_t, tgt_row, w_col, sbox_t, tbox_t,
                              smask_p, tmask_p, fx_p, fy_p)

    loss_ce = packed[0, 0] / packed[0, 1]
    loss_mask = packed[0, 2] / num_masks
    loss_dice = packed[0, 3] / num_masks
    loss_bbox = packed[0, 4] / num_masks
    loss_giou = packed[0, 5] / num_masks
    return {"loss_ce": loss_ce, "loss_mask": loss_mask, "loss_dice": loss_dice,
            "loss_bbox": loss_bbox, "loss_giou": loss_giou}


# --------------------------------------------------------------------------
# Example run
# --------------------------------------------------------------------------

if __name__ == "__main__":
    key = jax.random.PRNGKey(0)
    B, Q, num_classes, H, W = 2, 8, 4, 16, 16
    C1 = num_classes + 1
    num_points, oversample_ratio, importance_sample_ratio = 16, 3, 0.75
    no_object_loss_weight = 0.1

    ks = jax.random.split(key, 8)
    pred_logits = jax.random.normal(ks[0], (B, Q, C1), jnp.float32)
    pred_masks = jax.random.normal(ks[1], (B, Q, H, W), jnp.float32)
    p_centers = jax.random.uniform(ks[2], (B, Q, 3), minval=0.3, maxval=0.7)
    p_sizes = jax.random.uniform(ks[3], (B, Q, 3), minval=0.1, maxval=0.3)
    pred_boxes = jnp.concatenate([p_centers, p_sizes], axis=-1)

    # targets: batch 0 -> 3 objects, batch 1 -> 2 objects
    labels_per_b = [jnp.array([0, 2, 1], jnp.int32), jnp.array([3, 1], jnp.int32)]
    t_centers = jax.random.uniform(ks[4], (5, 3), minval=0.3, maxval=0.7)
    t_sizes = jax.random.uniform(ks[5], (5, 3), minval=0.1, maxval=0.3)
    t_boxes = jnp.concatenate([t_centers, t_sizes], axis=-1)
    t_masks = (jax.random.uniform(ks[6], (5, H, W)) > 0.5).astype(jnp.float32)
    boxes_per_b = [t_boxes[:3], t_boxes[3:]]
    masks_per_b = [t_masks[:3], t_masks[3:]]

    # TODO(synk): Hungarian matcher (scipy linear_sum_assignment) has no clean
    # Pallas equivalent; a fixed deterministic matching is provided here.
    indices = [(jnp.array([0, 2, 4], jnp.int32), jnp.array([0, 1, 2], jnp.int32)),
               (jnp.array([1, 3], jnp.int32), jnp.array([0, 1], jnp.int32))]

    batch_idx = jnp.concatenate([jnp.full_like(s, i) for i, (s, _) in enumerate(indices)])
    src_idx = jnp.concatenate([s for s, _ in indices])
    matched_labels = jnp.concatenate(
        [labels_per_b[i][t] for i, (_, t) in enumerate(indices)])
    matched_tgt_boxes = jnp.concatenate(
        [boxes_per_b[i][t] for i, (_, t) in enumerate(indices)], axis=0)
    matched_tgt_masks = jnp.concatenate(
        [masks_per_b[i][t] for i, (_, t) in enumerate(indices)], axis=0)

    # TODO(synk): torch.distributed all_reduce of num_masks omitted (world_size=1).
    num_masks = float(max(sum(len(l) for l in labels_per_b), 1))

    loss_fn = jax.jit(functools.partial(
        detr_set_loss,
        num_classes=num_classes,
        no_object_loss_weight=no_object_loss_weight,
        num_points=num_points,
        oversample_ratio=oversample_ratio,
        importance_sample_ratio=importance_sample_ratio,
        num_masks=num_masks))

    losses = loss_fn(pred_logits, pred_boxes, pred_masks,
                     batch_idx, src_idx, matched_labels,
                     matched_tgt_boxes, matched_tgt_masks, key=ks[7])
    jax.block_until_ready(losses)
    print("KERNEL_OK")
</pallas_src>

<mosaic_0001>
module attributes {stable_mosaic.version = 11 : i64} {
  func.func @_fused_loss_kernel(%arg0: i32, %arg1: memref<1xi32, #tpu.memory_space<smem>>, %arg2: memref<5x16xf32, #tpu.memory_space<vmem>>, %arg3: memref<1x16xi32, #tpu.memory_space<vmem>>, %arg4: memref<5x1xf32, #tpu.memory_space<vmem>>, %arg5: memref<8x5xf32, #tpu.memory_space<vmem>>, %arg6: memref<8x5xf32, #tpu.memory_space<vmem>>, %arg7: memref<32x16x16xf32, #tpu.memory_space<vmem>>, %arg8: memref<32x16x16xf32, #tpu.memory_space<vmem>>, %arg9: memref<32x16xf32, #tpu.memory_space<vmem>>, %arg10: memref<32x16xf32, #tpu.memory_space<vmem>>, %arg11: memref<1x128xf32, #tpu.memory_space<vmem>>, %arg12: memref<32x1xf32, #tpu.memory_space<vmem>>, %arg13: memref<32x1xf32, #tpu.memory_space<vmem>>, %arg14: memref<1x128xf32, #tpu.memory_space<vmem>>) attributes {dimension_semantics = [#tpu.dimension_semantics<arbitrary>], iteration_bounds = array<i64: 1>, scalar_prefetch = 1 : i64, scratch_operands = 3 : i64, tpu.core_type = #tpu.core_type<tc>, window_params = [{pipeline_mode = #tpu.pipeline_mode<synchronous>, transform_indices = @transform_0, window_bounds = array<i64: 5, 16>}, {pipeline_mode = #tpu.pipeline_mode<synchronous>, transform_indices = @transform_1, window_bounds = array<i64: 1, 16>}, {pipeline_mode = #tpu.pipeline_mode<synchronous>, transform_indices = @transform_2, window_bounds = array<i64: 5, 1>}, {pipeline_mode = #tpu.pipeline_mode<synchronous>, transform_indices = @transform_3, window_bounds = array<i64: 8, 5>}, {pipeline_mode = #tpu.pipeline_mode<synchronous>, transform_indices = @transform_4, window_bounds = array<i64: 8, 5>}, {transform_indices = @transform_5, window_bounds = array<i64: 32, 16, 16>}, {transform_indices = @transform_6, window_bounds = array<i64: 32, 16, 16>}, {transform_indices = @transform_7, window_bounds = array<i64: 32, 16>}, {transform_indices = @transform_8, window_bounds = array<i64: 32, 16>}, {pipeline_mode = #tpu.pipeline_mode<synchronous>, transform_indices = @transform_9, window_bounds = array<i64: 1, 128>}]} {
    %c0_i32 = arith.constant 0 : i32
    %0 = arith.cmpi eq, %arg0, %c0_i32 : i32
    %1 = arith.extui %0 : i1 to i32
    %c0_i32_0 = arith.constant 0 : i32
    %2 = arith.cmpi ne, %1, %c0_i32_0 : i32
    scf.if %2 {
      %cst_43 = arith.constant 0.000000e+00 : f32
      %99 = vector.broadcast %cst_43 : f32 to vector<32x1xf32>
      %c0_44 = arith.constant 0 : index
      %c0_45 = arith.constant 0 : index
      %100 = vector.load %arg12[%c0_44, %c0_45] : memref<32x1xf32, #tpu.memory_space<vmem>>, vector<32x1xf32>
      tpu.vector_store %arg12[%c0_44, %c0_45], %99 {strides = array<i32>} : memref<32x1xf32, #tpu.memory_space<vmem>>, vector<32x1xf32>,
      %cst_46 = arith.constant 0.000000e+00 : f32
      %101 = vector.broadcast %cst_46 : f32 to vector<32x1xf32>
      %c0_47 = arith.constant 0 : index
      %c0_48 = arith.constant 0 : index
      %102 = vector.load %arg13[%c0_47, %c0_48] : memref<32x1xf32, #tpu.memory_space<vmem>>, vector<32x1xf32>
      tpu.vector_store %arg13[%c0_47, %c0_48], %101 {strides = array<i32>} : memref<32x1xf32, #tpu.memory_space<vmem>>, vector<32x1xf32>,
    } else {
    }
    %c0 = arith.constant 0 : index
    %c0_1 = arith.constant 0 : index
    %3 = vector.load %arg9[%c0, %c0_1] : memref<32x16xf32, #tpu.memory_space<vmem>>, vector<32x16xf32>
    %c0_2 = arith.constant 0 : index
    %c0_3 = arith.constant 0 : index
    %4 = vector.load %arg10[%c0_2, %c0_3] : memref<32x16xf32, #tpu.memory_space<vmem>>, vector<32x16xf32>
    %5 = tpu.iota {dimensions = array<i32: 2>} : vector<32x16x16xi32>
    %6 = arith.sitofp %5 : vector<32x16x16xi32> to vector<32x16x16xf32>
    %7 = tpu.iota {dimensions = array<i32: 2>} : vector<32x16x16xi32>
    %8 = arith.sitofp %7 : vector<32x16x16xi32> to vector<32x16x16xf32>
    %9 = vector.shape_cast %4 : vector<32x16xf32> to vector<32x16x1xf32>
    %10 = vector.broadcast %9 : vector<32x16x1xf32> to vector<32x16x16xf32>
    %11 = arith.subf %10, %6 : vector<32x16x16xf32>
    %12 = math.absf %11 : vector<32x16x16xf32>
    %cst = arith.constant 1.000000e+00 : f32
    %13 = vector.broadcast %cst : f32 to vector<32x16x16xf32>
    %14 = arith.subf %13, %12 : vector<32x16x16xf32>
    %cst_4 = arith.constant 0.000000e+00 : f32
    %15 = vector.broadcast %cst_4 : f32 to vector<32x16x16xf32>
    %16 = arith.maximumf %15, %14 : vector<32x16x16xf32>
    %17 = vector.shape_cast %3 : vector<32x16xf32> to vector<32x16x1xf32>
    %18 = vector.broadcast %17 : vector<32x16x1xf32> to vector<32x16x16xf32>
    %19 = arith.subf %18, %8 : vector<32x16x16xf32>
    %20 = math.absf %19 : vector<32x16x16xf32>
    %cst_5 = arith.constant 1.000000e+00 : f32
    %21 = vector.broadcast %cst_5 : f32 to vector<32x16x16xf32>
    %22 = arith.subf %21, %20 : vector<32x16x16xf32>
    %cst_6 = arith.constant 0.000000e+00 : f32
    %23 = vector.broadcast %cst_6 : f32 to vector<32x16x16xf32>
    %24 = arith.maximumf %23, %22 : vector<32x16x16xf32>
    %c0_7 = arith.constant 0 : index
    %c0_8 = arith.constant 0 : index
    %c0_9 = arith.constant 0 : index
    %25 = vector.load %arg7[%c0_7, %c0_8, %c0_9] : memref<32x16x16xf32, #tpu.memory_space<vmem>>, vector<32x16x16xf32>
    %c0_10 = arith.constant 0 : index
    %c0_11 = arith.constant 0 : index
    %c0_12 = arith.constant 0 : index
    %26 = vector.load %arg8[%c0_10, %c0_11, %c0_12] : memref<32x16x16xf32, #tpu.memory_space<vmem>>, vector<32x16x16xf32>
    %27 = tpu.concatenate %25, %26 in 2 : vector<32x16x16xf32>, vector<32x16x16xf32> -> vector<32x16x32xf32>
    %28 = arith.truncf %16 : vector<32x16x16xf32> to vector<32x16x16xbf16>
    %29 = arith.truncf %27 : vector<32x16x32xf32> to vector<32x16x32xbf16>
    "tpu.trace_start"() <{level = 10 : i32, message = "nph,nhw->npw"}> : () -> ()
    %cst_13 = arith.constant dense<0.000000e+00> : vector<32x16x32xf32>
    %30 = tpu.matmul %28, %29, %cst_13 {dimension_numbers = #tpu.dot_dimension_numbers<[2], [1], [1], [2], [0, 0, 0, 1, 1, 2], [0], [0]>} : vector<32x16x16xbf16>, vector<32x16x32xbf16>, vector<32x16x32xf32> -> vector<32x16x32xf32>
    "tpu.trace_stop"() : () -> ()
    %31 = vector.extract_strided_slice %30 {offsets = [0, 0, 0], sizes = [32, 16, 16], strides = [1, 1, 1]} : vector<32x16x32xf32> to vector<32x16x16xf32>
    %32 = arith.mulf %31, %24 : vector<32x16x16xf32>
    %cst_14 = arith.constant dense<0.000000e+00> : vector<32x16xf32>
    %33 = vector.multi_reduction <add>, %32, %cst_14 [2] : vector<32x16x16xf32> to vector<32x16xf32>
    %34 = vector.extract_strided_slice %30 {offsets = [0, 0, 16], sizes = [32, 16, 16], strides = [1, 1, 1]} : vector<32x16x32xf32> to vector<32x16x16xf32>
    %35 = arith.mulf %34, %24 : vector<32x16x16xf32>
    %cst_15 = arith.constant dense<0.000000e+00> : vector<32x16xf32>
    %36 = vector.multi_reduction <add>, %35, %cst_15 [2] : vector<32x16x16xf32> to vector<32x16xf32>
    %37 = math.absf %33 : vector<32x16xf32>
    %cst_16 = arith.constant 0.000000e+00 : f32
    %38 = vector.broadcast %cst_16 : f32 to vector<32x16xf32>
    %39 = arith.subf %38, %37 : vector<32x16xf32>
    %40 = math.exp %39 : vector<32x16xf32>
    %cst_17 = arith.constant 1.000000e+00 : f32
    %41 = vector.broadcast %cst_17 : f32 to vector<32x16xf32>
    %42 = arith.addf %41, %40 : vector<32x16xf32>
    %cst_18 = arith.constant 1.000000e+00 : f32
    %43 = vector.broadcast %cst_18 : f32 to vector<32x16xf32>
    %44 = arith.divf %43, %42 : vector<32x16xf32>
    %cst_19 = arith.constant 0.000000e+00 : f32
    %45 = vector.broadcast %cst_19 : f32 to vector<32x16xf32>
    %46 = arith.maximumf %33, %45 : vector<32x16xf32>
    %47 = arith.mulf %33, %36 : vector<32x16xf32>
    %48 = arith.subf %46, %47 : vector<32x16xf32>
    %cst_20 = arith.constant 1.000000e+00 : f32
    %49 = vector.broadcast %cst_20 : f32 to vector<32x16xf32>
    %50 = arith.addf %49, %40 : vector<32x16xf32>
    %51 = math.log %50 : vector<32x16xf32>
    %52 = arith.addf %48, %51 : vector<32x16xf32>
    %cst_21 = arith.constant 0.000000e+00 : f32
    %53 = vector.broadcast %cst_21 : f32 to vector<32x16xf32>
    %54 = arith.cmpf oge, %33, %53 : vector<32x16xf32>
    %55 = arith.mulf %40, %44 : vector<32x16xf32>
    %56 = arith.select %54, %44, %55 : vector<32x16xi1>, vector<32x16xf32>
    %c32_i32 = arith.constant 32 : i32
    %57 = arith.muli %arg0, %c32_i32 : i32
    %58 = tpu.iota {dimensions = array<i32: 0>} : vector<32x1xi32>
    %59 = vector.broadcast %57 : i32 to vector<32x1xi32>
    %60 = arith.addi %59, %58 : vector<32x1xi32>
    %c0_22 = arith.constant 0 : index
    %61 = memref.load %arg1[%c0_22] : memref<1xi32, #tpu.memory_space<smem>>
    %62 = vector.broadcast %61 : i32 to vector<32x1xi32>
    %63 = arith.cmpi slt, %60, %62 : vector<32x1xi32>
    %64 = arith.extui %63 : vector<32x1xi1> to vector<32x1xi32>
    %65 = arith.sitofp %64 : vector<32x1xi32> to vector<32x1xf32>
    %cst_23 = arith.constant dense<0.000000e+00> : vector<32xf32>
    %66 = vector.multi_reduction <add>, %52, %cst_23 [1] : vector<32x16xf32> to vector<32xf32>
    %67 = vector.shape_cast %66 : vector<32xf32> to vector<32x1xf32>
    %cst_24 = arith.constant 1.600000e+01 : f32
    %68 = vector.broadcast %cst_24 : f32 to vector<32x1xf32>
    %69 = arith.divf %67, %68 : vector<32x1xf32>
    %70 = arith.mulf %69, %65 : vector<32x1xf32>
    %71 = arith.mulf %56, %36 : vector<32x16xf32>
    %cst_25 = arith.constant dense<0.000000e+00> : vector<32xf32>
    %72 = vector.multi_reduction <add>, %71, %cst_25 [1] : vector<32x16xf32> to vector<32xf32>
    %73 = vector.shape_cast %72 : vector<32xf32> to vector<32x1xf32>
    %cst_26 = arith.constant 2.000000e+00 : f32
    %74 = vector.broadcast %cst_26 : f32 to vector<32x1xf32>
    %75 = arith.mulf %74, %73 : vector<32x1xf32>
    %76 = arith.addf %56, %36 : vector<32x16xf32>
    %cst_27 = arith.constant dense<0.000000e+00> : vector<32xf32>
    %77 = vector.multi_reduction <add>, %76, %cst_27 [1] : vector<32x16xf32> to vector<32xf32>
    %78 = vector.shape_cast %77 : vector<32xf32> to vector<32x1xf32>
    %cst_28 = arith.constant 1.000000e+00 : f32
    %79 = vector.broadcast %cst_28 : f32 to vector<32x1xf32>
    %80 = arith.addf %75, %79 : vector<32x1xf32>
    %cst_29 = arith.constant 1.000000e+00 : f32
    %81 = vector.broadcast %cst_29 : f32 to vector<32x1xf32>
    %82 = arith.addf %78, %81 : vector<32x1xf32>
    %83 = arith.divf %80, %82 : vector<32x1xf32>
    %cst_30 = arith.constant 1.000000e+00 : f32
    %84 = vector.broadcast %cst_30 : f32 to vector<32x1xf32>
    %85 = arith.subf %84, %83 : vector<32x1xf32>
    %86 = arith.mulf %85, %65 : vector<32x1xf32>
    %c0_31 = arith.constant 0 : index
    %c0_32 = arith.constant 0 : index
    %87 = vector.load %arg12[%c0_31, %c0_32] : memref<32x1xf32, #tpu.memory_space<vmem>>, vector<32x1xf32>
    %88 = arith.addf %87, %70 : vector<32x1xf32>
    %c0_33 = arith.constant 0 : index
    %c0_34 = arith.constant 0 : index
    %89 = vector.load %arg12[%c0_33, %c0_34] : memref<32x1xf32, #tpu.memory_space<vmem>>, vector<32x1xf32>
    tpu.vector_store %arg12[%c0_33, %c0_34], %88 {strides = array<i32>} : memref<32x1xf32, #tpu.memory_space<vmem>>, vector<32x1xf32>,
    %c0_35 = arith.constant 0 : index
    %c0_36 = arith.constant 0 : index
    %90 = vector.load %arg13[%c0_35, %c0_36] : memref<32x1xf32, #tpu.memory_space<vmem>>, vector<32x1xf32>
    %91 = arith.addf %90, %86 : vector<32x1xf32>
    %c0_37 = arith.constant 0 : index
    %c0_38 = arith.constant 0 : index
    %92 = vector.load %arg13[%c0_37, %c0_38] : memref<32x1xf32, #tpu.memory_space<vmem>>, vector<32x1xf32>
    tpu.vector_store %arg13[%c0_37, %c0_38], %91 {strides = array<i32>} : memref<32x1xf32, #tpu.memory_space<vmem>>, vector<32x1xf32>,
    %c0_i32_39 = arith.constant 0 : i32
    %93 = arith.cmpi eq, %arg0, %c0_i32_39 : i32
    %94 = arith.extui %93 : i1 to i32
    %c0_i32_40 = arith.constant 0 : i32
    %95 = arith.cmpi ne, %94, %c0_i32_40 : i32
    scf.if %95 {
      %c0_43 = arith.constant 0 : index
      %c0_44 = arith.constant 0 : index
      %99 = vector.load %arg2[%c0_43, %c0_44] : memref<5x16xf32, #tpu.memory_space<vmem>>, vector<5x16xf32>
      %c0_45 = arith.constant 0 : index
      %c0_46 = arith.constant 0 : index
      %100 = vector.load %arg3[%c0_45, %c0_46] : memref<1x16xi32, #tpu.memory_space<vmem>>, vector<1x16xi32>
      %c0_47 = arith.constant 0 : index
      %c0_48 = arith.constant 0 : index
      %101 = vector.load %arg4[%c0_47, %c0_48] : memref<5x1xf32, #tpu.memory_space<vmem>>, vector<5x1xf32>
      %102 = tpu.iota {dimensions = array<i32: 0>} : vector<5x16xi32>
      %103 = vector.broadcast %100 : vector<1x16xi32> to vector<5x16xi32>
      %104 = arith.cmpi eq, %102, %103 : vector<5x16xi32>
      %105 = arith.extui %104 : vector<5x16xi1> to vector<5x16xi32>
      %106 = arith.sitofp %105 : vector<5x16xi32> to vector<5x16xf32>
      %cst_49 = arith.constant dense<0xFF800000> : vector<16xf32>
      %107 = vector.multi_reduction <maximumf>, %99, %cst_49 [0] : vector<5x16xf32> to vector<16xf32>
      %108 = vector.shape_cast %107 : vector<16xf32> to vector<1x16xf32>
      %109 = vector.broadcast %108 : vector<1x16xf32> to vector<5x16xf32>
      %110 = arith.subf %99, %109 : vector<5x16xf32>
      %111 = math.exp %110 : vector<5x16xf32>
      %cst_50 = arith.constant dense<0.000000e+00> : vector<16xf32>
      %112 = vector.multi_reduction <add>, %111, %cst_50 [0] : vector<5x16xf32> to vector<16xf32>
      %113 = vector.shape_cast %112 : vector<16xf32> to vector<1x16xf32>
      %114 = math.log %113 : vector<1x16xf32>
      %115 = arith.addf %108, %114 : vector<1x16xf32>
      %116 = arith.mulf %106, %99 : vector<5x16xf32>
      %cst_51 = arith.constant dense<0.000000e+00> : vector<16xf32>
      %117 = vector.multi_reduction <add>, %116, %cst_51 [0] : vector<5x16xf32> to vector<16xf32>
      %118 = vector.shape_cast %117 : vector<16xf32> to vector<1x16xf32>
      %119 = vector.broadcast %101 : vector<5x1xf32> to vector<5x16xf32>
      %120 = arith.mulf %106, %119 : vector<5x16xf32>
      %cst_52 = arith.constant dense<0.000000e+00> : vector<16xf32>
      %121 = vector.multi_reduction <add>, %120, %cst_52 [0] : vector<5x16xf32> to vector<16xf32>
      %122 = vector.shape_cast %121 : vector<16xf32> to vector<1x16xf32>
      %123 = arith.subf %115, %118 : vector<1x16xf32>
      %124 = arith.mulf %122, %123 : vector<1x16xf32>
      %125 = vector.shape_cast %124 : vector<1x16xf32> to vector<1x1x16xf32>
      %cst_53 = arith.constant dense<0.000000e+00> : vector<1xf32>
      %126 = vector.multi_reduction <add>, %125, %cst_53 [1, 2] : vector<1x1x16xf32> to vector<1xf32>
      %127 = vector.shape_cast %126 : vector<1xf32> to vector<1x1x1xf32>
      %128 = vector.extract %127[0, 0, 0] : f32 from vector<1x1x1xf32>
      %129 = vector.broadcast %128 : f32 to vector<1x1xf32>
      %130 = vector.shape_cast %122 : vector<1x16xf32> to vector<1x1x16xf32>
      %cst_54 = arith.constant dense<0.000000e+00> : vector<1xf32>
      %131 = vector.multi_reduction <add>, %130, %cst_54 [1, 2] : vector<1x1x16xf32> to vector<1xf32>
      %132 = vector.shape_cast %131 : vector<1xf32> to vector<1x1x1xf32>
      %133 = vector.extract %132[0, 0, 0] : f32 from vector<1x1x1xf32>
      %134 = vector.broadcast %133 : f32 to vector<1x1xf32>
      %c0_55 = arith.constant 0 : index
      %c0_56 = arith.constant 0 : index
      %135 = vector.load %arg5[%c0_55, %c0_56] : memref<8x5xf32, #tpu.memory_space<vmem>>, vector<8x5xf32>
      %c0_57 = arith.constant 0 : index
      %c0_58 = arith.constant 0 : index
      %136 = vector.load %arg6[%c0_57, %c0_58] : memref<8x5xf32, #tpu.memory_space<vmem>>, vector<8x5xf32>
      %137 = vector.extract_strided_slice %135 {offsets = [0, 0], sizes = [6, 5], strides = [1, 1]} : vector<8x5xf32> to vector<6x5xf32>
      %138 = vector.extract_strided_slice %136 {offsets = [0, 0], sizes = [6, 5], strides = [1, 1]} : vector<8x5xf32> to vector<6x5xf32>
      %139 = arith.subf %137, %138 : vector<6x5xf32>
      %140 = math.absf %139 : vector<6x5xf32>
      %141 = vector.shape_cast %140 : vector<6x5xf32> to vector<1x6x5xf32>
      %cst_59 = arith.constant dense<0.000000e+00> : vector<1xf32>
      %142 = vector.multi_reduction <add>, %141, %cst_59 [1, 2] : vector<1x6x5xf32> to vector<1xf32>
      %143 = vector.shape_cast %142 : vector<1xf32> to vector<1x1x1xf32>
      %144 = vector.extract %143[0, 0, 0] : f32 from vector<1x1x1xf32>
      %145 = vector.broadcast %144 : f32 to vector<1x1xf32>
      %146 = vector.extract_strided_slice %135 {offsets = [0, 0], sizes = [3, 5], strides = [1, 1]} : vector<8x5xf32> to vector<3x5xf32>
      %147 = vector.extract_strided_slice %135 {offsets = [3, 0], sizes = [3, 5], strides = [1, 1]} : vector<8x5xf32> to vector<3x5xf32>
      %cst_60 = arith.constant 5.000000e-01 : f32
      %148 = vector.broadcast %cst_60 : f32 to vector<3x5xf32>
      %149 = arith.mulf %148, %147 : vector<3x5xf32>
      %150 = arith.subf %146, %149 : vector<3x5xf32>
      %151 = vector.extract_strided_slice %135 {offsets = [0, 0], sizes = [3, 5], strides = [1, 1]} : vector<8x5xf32> to vector<3x5xf32>
      %152 = vector.extract_strided_slice %135 {offsets = [3, 0], sizes = [3, 5], strides = [1, 1]} : vector<8x5xf32> to vector<3x5xf32>
      %cst_61 = arith.constant 5.000000e-01 : f32
      %153 = vector.broadcast %cst_61 : f32 to vector<3x5xf32>
      %154 = arith.mulf %153, %152 : vector<3x5xf32>
      %155 = arith.addf %151, %154 : vector<3x5xf32>
      %156 = vector.extract_strided_slice %136 {offsets = [0, 0], sizes = [3, 5], strides = [1, 1]} : vector<8x5xf32> to vector<3x5xf32>
      %157 = vector.extract_strided_slice %136 {offsets = [3, 0], sizes = [3, 5], strides = [1, 1]} : vector<8x5xf32> to vector<3x5xf32>
      %cst_62 = arith.constant 5.000000e-01 : f32
      %158 = vector.broadcast %cst_62 : f32 to vector<3x5xf32>
      %159 = arith.mulf %158, %157 : vector<3x5xf32>
      %160 = arith.subf %156, %159 : vector<3x5xf32>
      %161 = vector.extract_strided_slice %136 {offsets = [0, 0], sizes = [3, 5], strides = [1, 1]} : vector<8x5xf32> to vector<3x5xf32>
      %162 = vector.extract_strided_slice %136 {offsets = [3, 0], sizes = [3, 5], strides = [1, 1]} : vector<8x5xf32> to vector<3x5xf32>
      %cst_63 = arith.constant 5.000000e-01 : f32
      %163 = vector.broadcast %cst_63 : f32 to vector<3x5xf32>
      %164 = arith.mulf %163, %162 : vector<3x5xf32>
      %165 = arith.addf %161, %164 : vector<3x5xf32>
      %166 = arith.subf %155, %150 : vector<3x5xf32>
      %cst_64 = arith.constant 0.000000e+00 : f32
      %167 = vector.broadcast %cst_64 : f32 to vector<3x5xf32>
      %168 = arith.maximumf %166, %167 : vector<3x5xf32>
      %169 = vector.extract_strided_slice %168 {offsets = [0, 0], sizes = [1, 5], strides = [1, 1]} : vector<3x5xf32> to vector<1x5xf32>
      %170 = vector.extract_strided_slice %168 {offsets = [1, 0], sizes = [1, 5], strides = [1, 1]} : vector<3x5xf32> to vector<1x5xf32>
      %171 = arith.mulf %169, %170 : vector<1x5xf32>
      %172 = vector.extract_strided_slice %168 {offsets = [2, 0], sizes = [1, 5], strides = [1, 1]} : vector<3x5xf32> to vector<1x5xf32>
      %173 = arith.mulf %171, %172 : vector<1x5xf32>
      %174 = arith.subf %165, %160 : vector<3x5xf32>
      %cst_65 = arith.constant 0.000000e+00 : f32
      %175 = vector.broadcast %cst_65 : f32 to vector<3x5xf32>
      %176 = arith.maximumf %174, %175 : vector<3x5xf32>
      %177 = vector.extract_strided_slice %176 {offsets = [0, 0], sizes = [1, 5], strides = [1, 1]} : vector<3x5xf32> to vector<1x5xf32>
      %178 = vector.extract_strided_slice %176 {offsets = [1, 0], sizes = [1, 5], strides = [1, 1]} : vector<3x5xf32> to vector<1x5xf32>
      %179 = arith.mulf %177, %178 : vector<1x5xf32>
      %180 = vector.extract_strided_slice %176 {offsets = [2, 0], sizes = [1, 5], strides = [1, 1]} : vector<3x5xf32> to vector<1x5xf32>
      %181 = arith.mulf %179, %180 : vector<1x5xf32>
      %182 = arith.maximumf %150, %160 : vector<3x5xf32>
      %183 = arith.minimumf %155, %165 : vector<3x5xf32>
      %184 = arith.subf %183, %182 : vector<3x5xf32>
      %cst_66 = arith.constant 0.000000e+00 : f32
      %185 = vector.broadcast %cst_66 : f32 to vector<3x5xf32>
      %186 = arith.maximumf %184, %185 : vector<3x5xf32>
      %187 = vector.extract_strided_slice %186 {offsets = [0, 0], sizes = [1, 5], strides = [1, 1]} : vector<3x5xf32> to vector<1x5xf32>
      %188 = vector.extract_strided_slice %186 {offsets = [1, 0], sizes = [1, 5], strides = [1, 1]} : vector<3x5xf32> to vector<1x5xf32>
      %189 = arith.mulf %187, %188 : vector<1x5xf32>
      %190 = vector.extract_strided_slice %186 {offsets = [2, 0], sizes = [1, 5], strides = [1, 1]} : vector<3x5xf32> to vector<1x5xf32>
      %191 = arith.mulf %189, %190 : vector<1x5xf32>
      %192 = arith.addf %173, %181 : vector<1x5xf32>
      %193 = arith.subf %192, %191 : vector<1x5xf32>
      %194 = arith.minimumf %150, %160 : vector<3x5xf32>
      %195 = arith.maximumf %155, %165 : vector<3x5xf32>
      %196 = arith.subf %195, %194 : vector<3x5xf32>
      %cst_67 = arith.constant 0.000000e+00 : f32
      %197 = vector.broadcast %cst_67 : f32 to vector<3x5xf32>
      %198 = arith.maximumf %196, %197 : vector<3x5xf32>
      %199 = vector.extract_strided_slice %198 {offsets = [0, 0], sizes = [1, 5], strides = [1, 1]} : vector<3x5xf32> to vector<1x5xf32>
      %200 = vector.extract_strided_slice %198 {offsets = [1, 0], sizes = [1, 5], strides = [1, 1]} : vector<3x5xf32> to vector<1x5xf32>
      %201 = arith.mulf %199, %200 : vector<1x5xf32>
      %202 = vector.extract_strided_slice %198 {offsets = [2, 0], sizes = [1, 5], strides = [1, 1]} : vector<3x5xf32> to vector<1x5xf32>
      %203 = arith.mulf %201, %202 : vector<1x5xf32>
      %cst_68 = arith.constant 1.000000e-07 : f32
      %204 = vector.broadcast %cst_68 : f32 to vector<1x5xf32>
      %205 = arith.maximumf %193, %204 : vector<1x5xf32>
      %206 = arith.divf %191, %205 : vector<1x5xf32>
      %207 = arith.subf %203, %193 : vector<1x5xf32>
      %cst_69 = arith.constant 1.000000e-07 : f32
      %208 = vector.broadcast %cst_69 : f32 to vector<1x5xf32>
      %209 = arith.maximumf %203, %208 : vector<1x5xf32>
      %210 = arith.divf %207, %209 : vector<1x5xf32>
      %211 = arith.subf %206, %210 : vector<1x5xf32>
      %cst_70 = arith.constant 1.000000e+00 : f32
      %212 = vector.broadcast %cst_70 : f32 to vector<1x5xf32>
      %213 = arith.subf %212, %211 : vector<1x5xf32>
      %214 = vector.shape_cast %213 : vector<1x5xf32> to vector<1x1x5xf32>
      %cst_71 = arith.constant dense<0.000000e+00> : vector<1xf32>
      %215 = vector.multi_reduction <add>, %214, %cst_71 [1, 2] : vector<1x1x5xf32> to vector<1xf32>
      %216 = vector.shape_cast %215 : vector<1xf32> to vector<1x1x1xf32>
      %217 = vector.extract %216[0, 0, 0] : f32 from vector<1x1x1xf32>
      %218 = vector.broadcast %217 : f32 to vector<1x1xf32>
      %219 = tpu.iota {dimensions = array<i32: 1>} : vector<1x128xi32>
      %c0_i32_72 = arith.constant 0 : i32
      %220 = vector.broadcast %c0_i32_72 : i32 to vector<1x128xi32>
      %221 = arith.cmpi eq, %219, %220 : vector<1x128xi32>
      %cst_73 = arith.constant 0.000000e+00 : f32
      %222 = vector.shape_cast %129 : vector<1x1xf32> to vector<1x1xf32>
      %223 = vector.broadcast %222 : vector<1x1xf32> to vector<1x128xf32>
      %224 = vector.broadcast %cst_73 : f32 to vector<1x128xf32>
      %225 = arith.select %221, %223, %224 : vector<1x128xi1>, vector<1x128xf32>
      %c1_i32 = arith.constant 1 : i32
      %226 = vector.broadcast %c1_i32 : i32 to vector<1x128xi32>
      %227 = arith.cmpi eq, %219, %226 : vector<1x128xi32>
      %cst_74 = arith.constant 0.000000e+00 : f32
      %228 = vector.shape_cast %134 : vector<1x1xf32> to vector<1x1xf32>
      %229 = vector.broadcast %228 : vector<1x1xf32> to vector<1x128xf32>
      %230 = vector.broadcast %cst_74 : f32 to vector<1x128xf32>
      %231 = arith.select %227, %229, %230 : vector<1x128xi1>, vector<1x128xf32>
      %232 = arith.addf %225, %231 : vector<1x128xf32>
      %c4_i32 = arith.constant 4 : i32
      %233 = vector.broadcast %c4_i32 : i32 to vector<1x128xi32>
      %234 = arith.cmpi eq, %219, %233 : vector<1x128xi32>
      %cst_75 = arith.constant 0.000000e+00 : f32
      %235 = vector.shape_cast %145 : vector<1x1xf32> to vector<1x1xf32>
      %236 = vector.broadcast %235 : vector<1x1xf32> to vector<1x128xf32>
      %237 = vector.broadcast %cst_75 : f32 to vector<1x128xf32>
      %238 = arith.select %234, %236, %237 : vector<1x128xi1>, vector<1x128xf32>
      %239 = arith.addf %232, %238 : vector<1x128xf32>
      %c5_i32 = arith.constant 5 : i32
      %240 = vector.broadcast %c5_i32 : i32 to vector<1x128xi32>
      %241 = arith.cmpi eq, %219, %240 : vector<1x128xi32>
      %cst_76 = arith.constant 0.000000e+00 : f32
      %242 = vector.shape_cast %218 : vector<1x1xf32> to vector<1x1xf32>
      %243 = vector.broadcast %242 : vector<1x1xf32> to vector<1x128xf32>
      %244 = vector.broadcast %cst_76 : f32 to vector<1x128xf32>
      %245 = arith.select %241, %243, %244 : vector<1x128xi1>, vector<1x128xf32>
      %246 = arith.addf %239, %245 : vector<1x128xf32>
      %c0_77 = arith.constant 0 : index
      %c0_78 = arith.constant 0 : index
      %247 = vector.load %arg14[%c0_77, %c0_78] : memref<1x128xf32, #tpu.memory_space<vmem>>, vector<1x128xf32>
      tpu.vector_store %arg14[%c0_77, %c0_78], %246 {strides = array<i32>} : memref<1x128xf32, #tpu.memory_space<vmem>>, vector<1x128xf32>,
    } else {
    }
    %c0_i32_41 = arith.constant 0 : i32
    %96 = arith.cmpi eq, %arg0, %c0_i32_41 : i32
    %97 = arith.extui %96 : i1 to i32
    %c0_i32_42 = arith.constant 0 : i32
    %98 = arith.cmpi ne, %97, %c0_i32_42 : i32
    scf.if %98 {
      %c0_43 = arith.constant 0 : index
      %c0_44 = arith.constant 0 : index
      %99 = vector.load %arg12[%c0_43, %c0_44] : memref<32x1xf32, #tpu.memory_space<vmem>>, vector<32x1xf32>
      %100 = vector.shape_cast %99 : vector<32x1xf32> to vector<1x32x1xf32>
      %cst_45 = arith.constant dense<0.000000e+00> : vector<1xf32>
      %101 = vector.multi_reduction <add>, %100, %cst_45 [1, 2] : vector<1x32x1xf32> to vector<1xf32>
      %102 = vector.shape_cast %101 : vector<1xf32> to vector<1x1x1xf32>
      %103 = vector.extract %102[0, 0, 0] : f32 from vector<1x1x1xf32>
      %104 = vector.broadcast %103 : f32 to vector<1x1xf32>
      %c0_46 = arith.constant 0 : index
      %c0_47 = arith.constant 0 : index
      %105 = vector.load %arg13[%c0_46, %c0_47] : memref<32x1xf32, #tpu.memory_space<vmem>>, vector<32x1xf32>
      %106 = vector.shape_cast %105 : vector<32x1xf32> to vector<1x32x1xf32>
      %cst_48 = arith.constant dense<0.000000e+00> : vector<1xf32>
      %107 = vector.multi_reduction <add>, %106, %cst_48 [1, 2] : vector<1x32x1xf32> to vector<1xf32>
      %108 = vector.shape_cast %107 : vector<1xf32> to vector<1x1x1xf32>
      %109 = vector.extract %108[0, 0, 0] : f32 from vector<1x1x1xf32>
      %110 = vector.broadcast %109 : f32 to vector<1x1xf32>
      %111 = tpu.iota {dimensions = array<i32: 1>} : vector<1x128xi32>
      %c0_49 = arith.constant 0 : index
      %c0_50 = arith.constant 0 : index
      %112 = vector.load %arg14[%c0_49, %c0_50] : memref<1x128xf32, #tpu.memory_space<vmem>>, vector<1x128xf32>
      %c2_i32 = arith.constant 2 : i32
      %113 = vector.broadcast %c2_i32 : i32 to vector<1x128xi32>
      %114 = arith.cmpi eq, %111, %113 : vector<1x128xi32>
      %cst_51 = arith.constant 0.000000e+00 : f32
      %115 = vector.shape_cast %104 : vector<1x1xf32> to vector<1x1xf32>
      %116 = vector.broadcast %115 : vector<1x1xf32> to vector<1x128xf32>
      %117 = vector.broadcast %cst_51 : f32 to vector<1x128xf32>
      %118 = arith.select %114, %116, %117 : vector<1x128xi1>, vector<1x128xf32>
      %119 = arith.addf %112, %118 : vector<1x128xf32>
      %c3_i32 = arith.constant 3 : i32
      %120 = vector.broadcast %c3_i32 : i32 to vector<1x128xi32>
      %121 = arith.cmpi eq, %111, %120 : vector<1x128xi32>
      %cst_52 = arith.constant 0.000000e+00 : f32
      %122 = vector.shape_cast %110 : vector<1x1xf32> to vector<1x1xf32>
      %123 = vector.broadcast %122 : vector<1x1xf32> to vector<1x128xf32>
      %124 = vector.broadcast %cst_52 : f32 to vector<1x128xf32>
      %125 = arith.select %121, %123, %124 : vector<1x128xi1>, vector<1x128xf32>
      %126 = arith.addf %119, %125 : vector<1x128xf32>
      %c0_53 = arith.constant 0 : index
      %c0_54 = arith.constant 0 : index
      %127 = vector.load %arg11[%c0_53, %c0_54] : memref<1x128xf32, #tpu.memory_space<vmem>>, vector<1x128xf32>
      tpu.vector_store %arg11[%c0_53, %c0_54], %126 {strides = array<i32>} : memref<1x128xf32, #tpu.memory_space<vmem>>, vector<1x128xf32>,
    } else {
    }
    return
  }
  func.func @transform_0(%arg0: i32, %arg1: memref<1xi32, #tpu.memory_space<smem>>) -> (i32, i32) {
    %c0_i32 = arith.constant 0 : i32
    %c0_i32_0 = arith.constant 0 : i32
    %c0_i32_1 = arith.constant 0 : i32
    return %c0_i32, %c0_i32_0 : i32, i32
  }
  func.func @transform_1(%arg0: i32, %arg1: memref<1xi32, #tpu.memory_space<smem>>) -> (i32, i32) {
    %c0_i32 = arith.constant 0 : i32
    %c0_i32_0 = arith.constant 0 : i32
    %c0_i32_1 = arith.constant 0 : i32
    return %c0_i32, %c0_i32_0 : i32, i32
  }
  func.func @transform_2(%arg0: i32, %arg1: memref<1xi32, #tpu.memory_space<smem>>) -> (i32, i32) {
    %c0_i32 = arith.constant 0 : i32
    %c0_i32_0 = arith.constant 0 : i32
    %c0_i32_1 = arith.constant 0 : i32
    return %c0_i32, %c0_i32_0 : i32, i32
  }
  func.func @transform_3(%arg0: i32, %arg1: memref<1xi32, #tpu.memory_space<smem>>) -> (i32, i32) {
    %c0_i32 = arith.constant 0 : i32
    %c0_i32_0 = arith.constant 0 : i32
    %c0_i32_1 = arith.constant 0 : i32
    return %c0_i32, %c0_i32_0 : i32, i32
  }
  func.func @transform_4(%arg0: i32, %arg1: memref<1xi32, #tpu.memory_space<smem>>) -> (i32, i32) {
    %c0_i32 = arith.constant 0 : i32
    %c0_i32_0 = arith.constant 0 : i32
    %c0_i32_1 = arith.constant 0 : i32
    return %c0_i32, %c0_i32_0 : i32, i32
  }
  func.func @transform_5(%arg0: i32, %arg1: memref<1xi32, #tpu.memory_space<smem>>) -> (i32, i32, i32) {
    %c0_i32 = arith.constant 0 : i32
    %c0_i32_0 = arith.constant 0 : i32
    %c0_i32_1 = arith.constant 0 : i32
    return %arg0, %c0_i32, %c0_i32_0 : i32, i32, i32
  }
  func.func @transform_6(%arg0: i32, %arg1: memref<1xi32, #tpu.memory_space<smem>>) -> (i32, i32, i32) {
    %c0_i32 = arith.constant 0 : i32
    %c0_i32_0 = arith.constant 0 : i32
    %c0_i32_1 = arith.constant 0 : i32
    return %arg0, %c0_i32, %c0_i32_0 : i32, i32, i32
  }
  func.func @transform_7(%arg0: i32, %arg1: memref<1xi32, #tpu.memory_space<smem>>) -> (i32, i32) {
    %c0_i32 = arith.constant 0 : i32
    %c0_i32_0 = arith.constant 0 : i32
    return %arg0, %c0_i32 : i32, i32
  }
  func.func @transform_8(%arg0: i32, %arg1: memref<1xi32, #tpu.memory_space<smem>>) -> (i32, i32) {
    %c0_i32 = arith.constant 0 : i32
    %c0_i32_0 = arith.constant 0 : i32
    return %arg0, %c0_i32 : i32, i32
  }
  func.func @transform_9(%arg0: i32, %arg1: memref<1xi32, #tpu.memory_space<smem>>) -> (i32, i32) {
    %c0_i32 = arith.constant 0 : i32
    %c0_i32_0 = arith.constant 0 : i32
    %c0_i32_1 = arith.constant 0 : i32
    return %c0_i32, %c0_i32_0 : i32, i32
  }
}

</mosaic_0001>

<bundles_post_ra>
// kernel: detr_set_loss.1
= control target key start
LH: loop header
LB: loop body
LE: loop exit
PB: predicated region body
PF: predicated region fallthrough
CT: control target
= control target key end

     0   :  { %v13053_v0 = vlaneseq  ;;  %vm7767_vm0 = vmmov 0   ;;  %s7768_s21 = smov 16   ;;  %vm1659_vm1 = vcmask 130048   ;;  %s13042_s9 = inlined_call_operand.vmem [shape: f32[32,16], index: 9, kind: input, shape index: {}]   ;;  %s13043_s8 = inlined_call_operand.vmem [shape: f32[32,16], index: 8, kind: input, shape index: {}]   ;;  %s13044_s7 = inlined_call_operand.vmem [shape: f32[32,16,16], index: 7, kind: input, shape index: {}]   ;;  %s13045_s6 = inlined_call_operand.vmem [shape: f32[32,16,16], index: 6, kind: input, shape index: {}]   ;;  %s13046_s3 = inlined_call_operand.vmem [shape: f32[5,1], index: 3, kind: input, shape index: {}]   ;;  %s13047_s1 = inlined_call_operand.vmem [shape: f32[5,16], index: 1, kind: input, shape index: {}]   ;;  %s13048_s4 = inlined_call_operand.vmem [shape: f32[8,5], index: 4, kind: input, shape index: {}]   ;;  %s13049_s5 = inlined_call_operand.vmem [shape: f32[8,5], index: 5, kind: input, shape index: {}]   ;;  %s13050_s2 = inlined_call_operand.vmem [shape: s32[1,16], index: 2, kind: input, shape index: {}]   ;;  %s13051_s0 = inlined_call_operand.<no memory space> [shape: s32[1], index: 0, kind: input, shape index: {}]   ;;  %s13052_s10 = inlined_call_operand.vmem [shape: f32[1,128], index: 10, kind: output, shape index: {}]  }
   0x1   :  { %v52_v2 = vld [vmem:[%s13042_s9] sm:$0xff]  ;;  %v53_v19 = vld [vmem:[%s13042_s9 + $0x8] sm:$0xff]  ;;  %v54_v28 = vld [vmem:[%s13042_s9 + $0x10] sm:$0xff] }
   0x2   :  { %v7827_v1 = vshrl.u32 %v13053_v0, 7  ;;  %v55_v37 = vld [vmem:[%s13042_s9 + $0x18] sm:$0xff]  ;;  %v48_v50 = vld [vmem:[%s13043_s8] sm:$0xff] }
   0x4   :  { %13442 = vst [vmem:[#allocation7_spill] sm:$0xff] %v7827_v1  ;;  %v7833_v3 = vsub.s32 1, %v7827_v1  ;;  %v7836_v4 = vsub.s32 0, %v7827_v1  ;;  %v7841_v7 = vsub.s32 2, %v7827_v1  ;;  %v7845_v9 = vsub.s32 3, %v7827_v1 }
   0x5   :  { %v7849_v11 = vsub.s32 4, %v7827_v1  ;;  %v7853_v13 = vsub.s32 5, %v7827_v1  ;;  %v7857_v15 = vsub.s32 6, %v7827_v1  ;;  %v7861_v17 = vsub.s32 7, %v7827_v1 }
   0x6   :  { %v73_v5 = vrot.slane %v52_v2, %v7833_v3  ;;  %v62_v6 = vrot.slane %v52_v2, %v7836_v4  ;;  %v84_v8 = vrot.slane %v52_v2, %v7841_v7  ;;  %v95_v10 = vrot.slane %v52_v2, %v7845_v9 }
   0x7   :  { %v106_v12 = vrot.slane %v52_v2, %v7849_v11  ;;  %v117_v14 = vrot.slane %v52_v2, %v7853_v13  ;;  %v128_v16 = vrot.slane %v52_v2, %v7857_v15  ;;  %v139_v18 = vrot.slane %v52_v2, %v7861_v17 }
   0x8   :  { %75 = vbcast.lane.b32.xlu1 %v73_v5, 256  ;;  %64 = vbcast.lane.b32.xlu0 %v62_v6, 256  ;;  %v150_v20 = vrot.slane %v53_v19, %v7836_v4  ;;  %v161_v21 = vrot.slane %v53_v19, %v7833_v3  ;;  %v172_v22 = vrot.slane %v53_v19, %v7841_v7 }
   0x9   :  { %v183_v23 = vrot.slane %v53_v19, %v7845_v9  ;;  %v194_v24 = vrot.slane %v53_v19, %v7849_v11  ;;  %v205_v25 = vrot.slane %v53_v19, %v7853_v13  ;;  %v216_v26 = vrot.slane %v53_v19, %v7857_v15 }
   0xa   :  { %v227_v27 = vrot.slane %v53_v19, %v7861_v17  ;;  %v238_v29 = vrot.slane %v54_v28, %v7836_v4  ;;  %v249_v30 = vrot.slane %v54_v28, %v7833_v3  ;;  %v260_v31 = vrot.slane %v54_v28, %v7841_v7 }
   0xb   :  { %v271_v32 = vrot.slane %v54_v28, %v7845_v9  ;;  %v282_v33 = vrot.slane %v54_v28, %v7849_v11  ;;  %v293_v34 = vrot.slane %v54_v28, %v7853_v13  ;;  %v304_v35 = vrot.slane %v54_v28, %v7857_v15 }
   0xc   :  { %79 = vbcast.lane.b32.xlu1 %v73_v5, 264  ;;  %68 = vbcast.lane.b32.xlu0 %v62_v6, 264  ;;  %v315_v36 = vrot.slane %v54_v28, %v7861_v17  ;;  %v326_v38 = vrot.slane %v55_v37, %v7836_v4  ;;  %v337_v39 = vrot.slane %v55_v37, %v7833_v3 }
   0xd   :  { %v348_v40 = vrot.slane %v55_v37, %v7841_v7  ;;  %v359_v41 = vrot.slane %v55_v37, %v7845_v9  ;;  %v370_v42 = vrot.slane %v55_v37, %v7849_v11  ;;  %v381_v43 = vrot.slane %v55_v37, %v7853_v13 }
   0xe   :  { %v392_v46 = vrot.slane %v55_v37, %v7857_v15  ;;  %v403_v49 = vrot.slane %v55_v37, %v7861_v17  ;;  %v670_v53 = vrot.slane %v48_v50, %v7836_v4  ;;  %v681_v56 = vrot.slane %v48_v50, %v7833_v3 }
   0xf   :  { %v692_v59 = vrot.slane %v48_v50, %v7841_v7  ;;  %v703_v62 = vrot.slane %v48_v50, %v7845_v9  ;;  %v714_v5 = vrot.slane %v48_v50, %v7849_v11 }
  0x10   :  { %90 = vbcast.lane.b32.xlu1 %v84_v8, 264  ;;  %86 = vbcast.lane.b32.xlu0 %v84_v8, 256 }
  0x14   :  { %101 = vbcast.lane.b32.xlu1 %v95_v10, 264  ;;  %97 = vbcast.lane.b32.xlu0 %v95_v10, 256  ;;  %v725_v10 = vrot.slane %v48_v50, %v7853_v13 }
  0x18   :  { %112 = vbcast.lane.b32.xlu1 %v106_v12, 264  ;;  %108 = vbcast.lane.b32.xlu0 %v106_v12, 256 }
  0x1c   :  { %123 = vbcast.lane.b32.xlu1 %v117_v14, 264  ;;  %119 = vbcast.lane.b32.xlu0 %v117_v14, 256 }
  0x20   :  { %134 = vbcast.lane.b32.xlu1 %v128_v16, 264  ;;  %130 = vbcast.lane.b32.xlu0 %v128_v16, 256  ;;  %v736_v16 = vrot.slane %v48_v50, %v7857_v15 }
  0x24   :  { %145 = vbcast.lane.b32.xlu1 %v139_v18, 264  ;;  %141 = vbcast.lane.b32.xlu0 %v139_v18, 256 }
  0x28   :  { %156 = vbcast.lane.b32.xlu1 %v150_v20, 264  ;;  %152 = vbcast.lane.b32.xlu0 %v150_v20, 256  ;;  %v747_v20 = vrot.slane %v48_v50, %v7861_v17  ;;  %v50_v50 = vld [vmem:[%s13043_s8 + $0x10] sm:$0xff] }
  0x2c   :  { %167 = vbcast.lane.b32.xlu1 %v161_v21, 264  ;;  %163 = vbcast.lane.b32.xlu0 %v161_v21, 256  ;;  %v49_v21 = vld [vmem:[%s13043_s8 + $0x8] sm:$0xff] }
  0x30   :  { %178 = vbcast.lane.b32.xlu1 %v172_v22, 264  ;;  %174 = vbcast.lane.b32.xlu0 %v172_v22, 256 }
  0x34   :  { %189 = vbcast.lane.b32.xlu1 %v183_v23, 264  ;;  %185 = vbcast.lane.b32.xlu0 %v183_v23, 256 }
  0x38   :  { %200 = vbcast.lane.b32.xlu1 %v194_v24, 264  ;;  %196 = vbcast.lane.b32.xlu0 %v194_v24, 256  ;;  %v758_v24 = vrot.slane %v49_v21, %v7836_v4 }
  0x3c   :  { %211 = vbcast.lane.b32.xlu1 %v205_v25, 264  ;;  %207 = vbcast.lane.b32.xlu0 %v205_v25, 256 }
  0x40   :  { %222 = vbcast.lane.b32.xlu1 %v216_v26, 264  ;;  %218 = vbcast.lane.b32.xlu0 %v216_v26, 256 }
  0x44   :  { %233 = vbcast.lane.b32.xlu1 %v227_v27, 264  ;;  %229 = vbcast.lane.b32.xlu0 %v227_v27, 256  ;;  %v769_v27 = vrot.slane %v49_v21, %v7833_v3 }
  0x48   :  { %244 = vbcast.lane.b32.xlu1 %v238_v29, 264  ;;  %240 = vbcast.lane.b32.xlu0 %v238_v29, 256 }
  0x4c   :  { %255 = vbcast.lane.b32.xlu1 %v249_v30, 264  ;;  %251 = vbcast.lane.b32.xlu0 %v249_v30, 256  ;;  %v780_v30 = vrot.slane %v49_v21, %v7841_v7 }
  0x50   :  { %266 = vbcast.lane.b32.xlu1 %v260_v31, 264  ;;  %262 = vbcast.lane.b32.xlu0 %v260_v31, 256 }
  0x54   :  { %277 = vbcast.lane.b32.xlu1 %v271_v32, 264  ;;  %273 = vbcast.lane.b32.xlu0 %v271_v32, 256 }
  0x58   :  { %288 = vbcast.lane.b32.xlu1 %v282_v33, 264  ;;  %284 = vbcast.lane.b32.xlu0 %v282_v33, 256  ;;  %v791_v33 = vrot.slane %v49_v21, %v7845_v9 }
  0x5c   :  { %299 = vbcast.lane.b32.xlu1 %v293_v34, 264  ;;  %295 = vbcast.lane.b32.xlu0 %v293_v34, 256 }
  0x60   :  { %310 = vbcast.lane.b32.xlu1 %v304_v35, 264  ;;  %306 = vbcast.lane.b32.xlu0 %v304_v35, 256 }
  0x64   :  { %321 = vbcast.lane.b32.xlu1 %v315_v36, 264  ;;  %317 = vbcast.lane.b32.xlu0 %v315_v36, 256  ;;  %v802_v36 = vrot.slane %v49_v21, %v7849_v11 }
  0x68   :  { %332 = vbcast.lane.b32.xlu1 %v326_v38, 264  ;;  %328 = vbcast.lane.b32.xlu0 %v326_v38, 256 }
  0x6c   :  { %343 = vbcast.lane.b32.xlu1 %v337_v39, 264  ;;  %339 = vbcast.lane.b32.xlu0 %v337_v39, 256  ;;  %v813_v39 = vrot.slane %v49_v21, %v7853_v13 }
  0x70   :  { %354 = vbcast.lane.b32.xlu1 %v348_v40, 264  ;;  %350 = vbcast.lane.b32.xlu0 %v348_v40, 256 }
  0x74   :  { %365 = vbcast.lane.b32.xlu1 %v359_v41, 264  ;;  %361 = vbcast.lane.b32.xlu0 %v359_v41, 256 }
  0x78   :  { %376 = vbcast.lane.b32.xlu1 %v370_v42, 264  ;;  %372 = vbcast.lane.b32.xlu0 %v370_v42, 256  ;;  %v824_v42 = vrot.slane %v49_v21, %v7857_v15 }
  0x7a   :  { %v7895_v44 = vpop.permute.xlu1 %75  ;;  %v7897_v45 = vpop.permute.xlu0 %64 }
  0x7c   :  { %387 = vbcast.lane.b32.xlu1 %v381_v43, 264  ;;  %383 = vbcast.lane.b32.xlu0 %v381_v43, 256 }
  0x7e   :  { %v7900_v47 = vpop.permute.xlu1 %79  ;;  %v7902_v48 = vpop.permute.xlu0 %68 }
  0x80   :  { %398 = vbcast.lane.b32.xlu1 %v392_v46, 264  ;;  %394 = vbcast.lane.b32.xlu0 %v392_v46, 256 }
  0x82   :  { %v7908_v51 = vpop.permute.xlu1 %90  ;;  %v7910_v52 = vpop.permute.xlu0 %86 }
  0x84   :  { %409 = vbcast.lane.b32.xlu1 %v403_v49, 264  ;;  %405 = vbcast.lane.b32.xlu0 %v403_v49, 256  ;;  %v835_v49 = vrot.slane %v49_v21, %v7861_v17  ;;  %v868_v21 = vrot.slane %v50_v50, %v7841_v7 }
  0x86   :  { %v7913_v54 = vpop.permute.xlu1 %101  ;;  %v7915_v55 = vpop.permute.xlu0 %97 }
  0x88   :  { %676 = vbcast.lane.b32.xlu1 %v670_v53, 264  ;;  %672 = vbcast.lane.b32.xlu0 %v670_v53, 256 }
  0x8a   :  { %v7918_v57 = vpop.permute.xlu1 %112  ;;  %v7920_v58 = vpop.permute.xlu0 %108 }
  0x8c   :  { %687 = vbcast.lane.b32.xlu1 %v681_v56, 264  ;;  %683 = vbcast.lane.b32.xlu0 %v681_v56, 256 }
  0x8e   :  { %v7923_v60 = vpop.permute.xlu1 %123  ;;  %v7925_v61 = vpop.permute.xlu0 %119 }
  0x90   :  { %698 = vbcast.lane.b32.xlu1 %v692_v59, 264  ;;  %694 = vbcast.lane.b32.xlu0 %v692_v59, 256  ;;  %v846_v59 = vrot.slane %v50_v50, %v7836_v4 }
  0x92   :  { %v7928_v63 = vpop.permute.xlu1 %134  ;;  %v7930_v2 = vpop.permute.xlu0 %130 }
  0x94   :  { %709 = vbcast.lane.b32.xlu1 %v703_v62, 264  ;;  %705 = vbcast.lane.b32.xlu0 %v703_v62, 256 }
  0x96   :  { %v7933_v6 = vpop.permute.xlu1 %145  ;;  %v7935_v8 = vpop.permute.xlu0 %141 }
  0x98   :  { %720 = vbcast.lane.b32.xlu1 %v714_v5, 264  ;;  %716 = vbcast.lane.b32.xlu0 %v714_v5, 256 }
  0x9a   :  { %v7938_v12 = vpop.permute.xlu1 %156  ;;  %v7940_v14 = vpop.permute.xlu0 %152 }
  0x9c   :  { %731 = vbcast.lane.b32.xlu1 %v725_v10, 264  ;;  %727 = vbcast.lane.b32.xlu0 %v725_v10, 256  ;;  %v857_v10 = vrot.slane %v50_v50, %v7833_v3 }
  0x9e   :  { %v7943_v18 = vpop.permute.xlu1 %167  ;;  %v7945_v19 = vpop.permute.xlu0 %163 }
  0xa0   :  { %742 = vbcast.lane.b32.xlu1 %v736_v16, 264  ;;  %738 = vbcast.lane.b32.xlu0 %v736_v16, 256 }
  0xa2   :  { %v7951_v22 = vpop.permute.xlu1 %178  ;;  %v7953_v23 = vpop.permute.xlu0 %174 }
  0xa4   :  { %753 = vbcast.lane.b32.xlu1 %v747_v20, 264  ;;  %749 = vbcast.lane.b32.xlu0 %v747_v20, 256 }
  0xa6   :  { %v7956_v25 = vpop.permute.xlu1 %189  ;;  %v7958_v26 = vpop.permute.xlu0 %185 }
  0xa8   :  { %764 = vbcast.lane.b32.xlu1 %v758_v24, 264  ;;  %760 = vbcast.lane.b32.xlu0 %v758_v24, 256 }
  0xaa   :  { %v7961_v28 = vpop.permute.xlu1 %200  ;;  %v7963_v29 = vpop.permute.xlu0 %196 }
  0xac   :  { %775 = vbcast.lane.b32.xlu1 %v769_v27, 264  ;;  %771 = vbcast.lane.b32.xlu0 %v769_v27, 256 }
  0xae   :  { %v7966_v31 = vpop.permute.xlu1 %211  ;;  %v7968_v32 = vpop.permute.xlu0 %207 }
  0xb0   :  { %786 = vbcast.lane.b32.xlu1 %v780_v30, 264  ;;  %782 = vbcast.lane.b32.xlu0 %v780_v30, 256  ;;  %v879_v30 = vrot.slane %v50_v50, %v7845_v9 }
  0xb2   :  { %v7971_v34 = vpop.permute.xlu1 %222  ;;  %v7973_v35 = vpop.permute.xlu0 %218 }
  0xb4   :  { %797 = vbcast.lane.b32.xlu1 %v791_v33, 264  ;;  %793 = vbcast.lane.b32.xlu0 %v791_v33, 256 }
  0xb6   :  { %v7976_v37 = vpop.permute.xlu1 %233  ;;  %v7978_v38 = vpop.permute.xlu0 %229 }
  0xb8   :  { %808 = vbcast.lane.b32.xlu1 %v802_v36, 264  ;;  %804 = vbcast.lane.b32.xlu0 %v802_v36, 256 }
  0xba   :  { %v7981_v40 = vpop.permute.xlu1 %244  ;;  %v7983_v41 = vpop.permute.xlu0 %240 }
  0xbc   :  { %819 = vbcast.lane.b32.xlu1 %v813_v39, 264  ;;  %815 = vbcast.lane.b32.xlu0 %v813_v39, 256  ;;  %v890_v39 = vrot.slane %v50_v50, %v7849_v11 }
  0xbe   :  { %v7986_v43 = vpop.permute.xlu1 %255  ;;  %v7988_v46 = vpop.permute.xlu0 %251 }
  0xc0   :  { %830 = vbcast.lane.b32.xlu1 %v824_v42, 264  ;;  %826 = vbcast.lane.b32.xlu0 %v824_v42, 256 }
  0xc2   :  { %v7994_v53 = vpop.permute.xlu1 %266  ;;  %v7996_v56 = vpop.permute.xlu0 %262 }
  0xc3   :  { %13443 = vst [vmem:[#allocation8_spill] sm:$0xff] %v7994_v53  ;;  %13444 = vst [vmem:[#allocation9_spill] sm:$0xff] %v7996_v56 }
  0xc4   :  { %841 = vbcast.lane.b32.xlu1 %v835_v49, 264  ;;  %837 = vbcast.lane.b32.xlu0 %v835_v49, 256 }
  0xc6   :  { %v7999_v62 = vpop.permute.xlu1 %277  ;;  %v8001_v5 = vpop.permute.xlu0 %273 }
  0xc7   :  { %13445 = vst [vmem:[#allocation10_spill] sm:$0xff] %v7999_v62  ;;  %13446 = vst [vmem:[#allocation11_spill] sm:$0xff] %v8001_v5 }
  0xc8   :  { %852 = vbcast.lane.b32.xlu1 %v846_v59, 264  ;;  %848 = vbcast.lane.b32.xlu0 %v846_v59, 256  ;;  %v901_v59 = vrot.slane %v50_v50, %v7853_v13 }
  0xca   :  { %v8004_v16 = vpop.permute.xlu1 %288  ;;  %v8006_v20 = vpop.permute.xlu0 %284 }
  0xcb   :  { %13447 = vst [vmem:[#allocation12_spill] sm:$0xff] %v8004_v16  ;;  %13448 = vst [vmem:[#allocation13_spill] sm:$0xff] %v8006_v20 }
  0xcc   :  { %863 = vbcast.lane.b32.xlu1 %v857_v10, 264  ;;  %859 = vbcast.lane.b32.xlu0 %v857_v10, 256 }
  0xce   :  { %v8009_v24 = vpop.permute.xlu1 %299  ;;  %v8011_v27 = vpop.permute.xlu0 %295 }
  0xcf   :  { %13449 = vst [vmem:[#allocation14_spill] sm:$0xff] %v8009_v24  ;;  %13450 = vst [vmem:[#allocation15_spill] sm:$0xff] %v8011_v27 }
  0xd0   :  { %874 = vbcast.lane.b32.xlu1 %v868_v21, 264  ;;  %870 = vbcast.lane.b32.xlu0 %v868_v21, 256  ;;  %v912_v21 = vrot.slane %v50_v50, %v7857_v15 }
  0xd2   :  { %v8014_v33 = vpop.permute.xlu1 %310  ;;  %v8016_v36 = vpop.permute.xlu0 %306 }
  0xd3   :  { %13451 = vst [vmem:[#allocation16_spill] sm:$0xff] %v8014_v33  ;;  %13452 = vst [vmem:[#allocation17_spill] sm:$0xff] %v8016_v36  ;;  %v1343_v33 = vld [vmem:[%s13044_s7 + $0x20] sm:$0xff] }
  0xd4   :  { %885 = vbcast.lane.b32.xlu1 %v879_v30, 264  ;;  %881 = vbcast.lane.b32.xlu0 %v879_v30, 256  ;;  %v923_v30 = vrot.slane %v50_v50, %v7861_v17  ;;  %v1339_v50 = vld [vmem:[%s13044_s7] sm:$0xff] }
  0xd6   :  { %v8019_v42 = vpop.permute.xlu1 %321  ;;  %v8021_v49 = vpop.permute.xlu0 %317 }
  0xd7   :  { %13453 = vst [vmem:[#allocation18_spill] sm:$0xff] %v8019_v42  ;;  %13454 = vst [vmem:[#allocation19_spill] sm:$0xff] %v8021_v49  ;;  %v13056_v49 = vmov 0.0   ;;  %v1346_v42 = vld [vmem:[%s13044_s7 + $0x38] sm:$0xff] }
  0xd8   :  { %896 = vbcast.lane.b32.xlu1 %v890_v39, 264  ;;  %892 = vbcast.lane.b32.xlu0 %v890_v39, 256  ;;  %v1341_v39 = vld [vmem:[%s13044_s7 + $0x10] sm:$0xff] }
  0xd9   :  { %6995 = vmatprep.subr.bf16.mxu0 %v13056_v49  ;;  %7001 = vmatprep.subr.bf16.mxu1 %v13056_v49 }
  0xda   :  { %v8024_v10 = vpop.permute.xlu1 %332  ;;  %v8026_v0 = vpop.permute.xlu0 %328  ;;  %6997 = vmatprep.mubr.msk.bf16.mxu0 %vm7767_vm0, %v13056_v49  ;;  %7003 = vmatprep.mubr.msk.bf16.mxu1 %vm7767_vm0, %v13056_v49  ;;  %v1350_v49 = vld [vmem:[%s13044_s7 + $0x58] sm:$0xff] }
  0xdb   :  { %13455 = vst [vmem:[#allocation20_spill] sm:$0xff] %v8024_v10  ;;  %13456 = vst [vmem:[#allocation21_spill] sm:$0xff] %v8026_v0  ;;  %v1342_v0 = vld [vmem:[%s13044_s7 + $0x18] sm:$0xff]  ;;  %v1345_v10 = vld [vmem:[%s13044_s7 + $0x30] sm:$0xff] }
  0xdc   :  { %907 = vbcast.lane.b32.xlu1 %v901_v59, 264  ;;  %903 = vbcast.lane.b32.xlu0 %v901_v59, 256 }
  0xde   :  { %v8029_v1 = vpop.permute.xlu1 %343  ;;  %v8031_v36 = vpop.permute.xlu0 %339 }
  0xdf   :  { %13457 = vst [vmem:[#allocation22_spill] sm:$0xff] %v8029_v1  ;;  %13458 = vst [vmem:[#allocation23_spill] sm:$0xff] %v8031_v36  ;;  %v7209_v1 = vpack.i.bf16 %v1342_v0, %v1341_v39  ;;  %v1344_v0 = vld [vmem:[%s13044_s7 + $0x28] sm:$0xff]  ;;  %v7219_v39 = vpack.i.bf16 %v1346_v42, %v1345_v10 }
  0xe0   :  { %918 = vbcast.lane.b32.xlu1 %v912_v21, 264  ;;  %914 = vbcast.lane.b32.xlu0 %v912_v21, 256  ;;  %v1340_v21 = vld [vmem:[%s13044_s7 + $0x8] sm:$0xff] }
  0xe2   :  { %v8042_v59 = vpop.permute.xlu1 %354  ;;  %v8050_v36 = vpop.permute.xlu0 %350 }
  0xe3   :  { %13459 = vst [vmem:[#allocation24_spill] sm:$0xff] %v8042_v59  ;;  %13460 = vst [vmem:[#allocation25_spill] sm:$0xff] %v8050_v36  ;;  %v7204_v59 = vpack.i.bf16 %v1340_v21, %v1339_v50  ;;  %v7214_v50 = vpack.i.bf16 %v1344_v0, %v1343_v33  ;;  %v1349_v21 = vld [vmem:[%s13044_s7 + $0x50] sm:$0xff]  ;;  %v1354_v0 = vld [vmem:[%s13044_s7 + $0x78] sm:$0xff] }
  0xe4   :  { %929 = vbcast.lane.b32.xlu1 %v923_v30, 264  ;;  %925 = vbcast.lane.b32.xlu0 %v923_v30, 256  ;;  %v7229_v33 = vpack.i.bf16 %v1350_v49, %v1349_v21  ;;  %v1352_v49 = vld [vmem:[%s13044_s7 + $0x68] sm:$0xff]  ;;  %v1357_v21 = vld [vmem:[%s13044_s7 + $0x90] sm:$0xff] }
  0xe6   :  { %v8062_v36 = vpop.permute.xlu1 %365  ;;  %v8070_v30 = vpop.permute.xlu0 %361 }
  0xe7   :  { %13461 = vst [vmem:[#allocation26_spill] sm:$0xff] %v8062_v36  ;;  %13462 = vst [vmem:[#allocation27_spill] sm:$0xff] %v8070_v30  ;;  %v1347_v30 = vld [vmem:[%s13044_s7 + $0x40] sm:$0xff] }
  0xe8   :  { %7210 = vrot.lane.b32.xlu1 %v7209_v1, %s7768_s21  ;;  %7205 = vrot.lane.b32.xlu0 %v7204_v59, %s7768_s21  ;;  %v1348_v1 = vld [vmem:[%s13044_s7 + $0x48] sm:$0xff]  ;;  %v1353_v59 = vld [vmem:[%s13044_s7 + $0x70] sm:$0xff] }
  0xe9   :  { %v7224_v10 = vpack.i.bf16 %v1348_v1, %v1347_v30  ;;  %v7239_v30 = vpack.i.bf16 %v1354_v0, %v1353_v59  ;;  %v1358_v1 = vld [vmem:[%s13044_s7 + $0x98] sm:$0xff]  ;;  %v1361_v0 = vld [vmem:[%s13044_s7 + $0xb0] sm:$0xff] }
  0xea   :  { %v8080_v36 = vpop.permute.xlu1 %376  ;;  %v8088_v42 = vpop.permute.xlu0 %372 }
  0xeb   :  { %13463 = vst [vmem:[#allocation28_spill] sm:$0xff] %v8080_v36  ;;  %13464 = vst [vmem:[#allocation29_spill] sm:$0xff] %v8088_v42  ;;  %v1351_v42 = vld [vmem:[%s13044_s7 + $0x60] sm:$0xff] }
  0xec   :  { %7220 = vrot.lane.b32.xlu1 %v7219_v39, %s7768_s21  ;;  %7215 = vrot.lane.b32.xlu0 %v7214_v50, %s7768_s21  ;;  %v7234_v50 = vpack.i.bf16 %v1352_v49, %v1351_v42  ;;  %v7249_v42 = vpack.i.bf16 %v1358_v1, %v1357_v21  ;;  %v1362_v49 = vld [vmem:[%s13044_s7 + $0xb8] sm:$0xff]  ;;  %v1365_v1 = vld [vmem:[%s13044_s7 + $0xd0] sm:$0xff] }
  0xee   :  { %v8098_v36 = vpop.permute.xlu1 %387  ;;  %v8106_v39 = vpop.permute.xlu0 %383 }
  0xef   :  { %13465 = vst [vmem:[#allocation30_spill] sm:$0xff] %v8098_v36  ;;  %13466 = vst [vmem:[#allocation31_spill] sm:$0xff] %v8106_v39  ;;  %v1355_v39 = vld [vmem:[%s13044_s7 + $0x80] sm:$0xff] }
  0xf0   :  { %7230 = vrot.lane.b32.xlu1 %v7229_v33, %s7768_s21  ;;  %7225 = vrot.lane.b32.xlu0 %v7224_v10, %s7768_s21  ;;  %v1356_v33 = vld [vmem:[%s13044_s7 + $0x88] sm:$0xff] }
  0xf1   :  { %v7244_v59 = vpack.i.bf16 %v1356_v33, %v1355_v39  ;;  %v7259_v39 = vpack.i.bf16 %v1362_v49, %v1361_v0  ;;  %v1366_v33 = vld [vmem:[%s13044_s7 + $0xd8] sm:$0xff]  ;;  %v1369_v49 = vld [vmem:[%s13044_s7 + $0xf0] sm:$0xff] }
  0xf2   :  { %v8116_v36 = vpop.permute.xlu1 %398  ;;  %v8124_v10 = vpop.permute.xlu0 %394 }
  0xf3   :  { %13467 = vst [vmem:[#allocation32_spill] sm:$0xff] %v8116_v36  ;;  %13468 = vst [vmem:[#allocation33_spill] sm:$0xff] %v8124_v10  ;;  %v1359_v10 = vld [vmem:[%s13044_s7 + $0xa0] sm:$0xff] }
  0xf4   :  { %7240 = vrot.lane.b32.xlu1 %v7239_v30, %s7768_s21  ;;  %7235 = vrot.lane.b32.xlu0 %v7234_v50, %s7768_s21  ;;  %v1360_v30 = vld [vmem:[%s13044_s7 + $0xa8] sm:$0xff] }
  0xf5   :  { %v7254_v21 = vpack.i.bf16 %v1360_v30, %v1359_v10  ;;  %v7269_v10 = vpack.i.bf16 %v1366_v33, %v1365_v1  ;;  %v1370_v30 = vld [vmem:[%s13044_s7 + $0xf8] sm:$0xff]  ;;  %v1373_v33 = vld [vmem:[%s13044_s7 + $0x110] sm:$0xff] }
  0xf6   :  { %v8134_v36 = vpop.permute.xlu1 %409  ;;  %v8142_v50 = vpop.permute.xlu0 %405 }
  0xf7   :  { %13469 = vst [vmem:[#allocation34_spill] sm:$0xff] %v8134_v36  ;;  %13470 = vst [vmem:[#allocation35_spill] sm:$0xff] %v8142_v50  ;;  %v1363_v50 = vld [vmem:[%s13044_s7 + $0xc0] sm:$0xff] }
  0xf8   :  { %7250 = vrot.lane.b32.xlu1 %v7249_v42, %s7768_s21  ;;  %7245 = vrot.lane.b32.xlu0 %v7244_v59, %s7768_s21  ;;  %v1364_v42 = vld [vmem:[%s13044_s7 + $0xc8] sm:$0xff] }
  0xf9   :  { %v7264_v0 = vpack.i.bf16 %v1364_v42, %v1363_v50  ;;  %v7279_v50 = vpack.i.bf16 %v1370_v30, %v1369_v49  ;;  %v1374_v42 = vld [vmem:[%s13044_s7 + $0x118] sm:$0xff]  ;;  %v1377_v30 = vld [vmem:[%s13044_s7 + $0x130] sm:$0xff] }
  0xfa   :  { %v8152_v36 = vpop.permute.xlu1 %676  ;;  %v8160_v59 = vpop.permute.xlu0 %672 }
  0xfb   :  { %13471 = vst [vmem:[#allocation36_spill] sm:$0xff] %v8152_v36  ;;  %13472 = vst [vmem:[#allocation37_spill] sm:$0xff] %v8160_v59  ;;  %v1367_v59 = vld [vmem:[%s13044_s7 + $0xe0] sm:$0xff] }
  0xfc   :  { %7260 = vrot.lane.b32.xlu1 %v7259_v39, %s7768_s21  ;;  %7255 = vrot.lane.b32.xlu0 %v7254_v21, %s7768_s21  ;;  %v1368_v39 = vld [vmem:[%s13044_s7 + $0xe8] sm:$0xff] }
  0xfd   :  { %v7274_v1 = vpack.i.bf16 %v1368_v39, %v1367_v59  ;;  %v7289_v59 = vpack.i.bf16 %v1374_v42, %v1373_v33  ;;  %v1378_v39 = vld [vmem:[%s13044_s7 + $0x138] sm:$0xff]  ;;  %v1381_v42 = vld [vmem:[%s13044_s7 + $0x150] sm:$0xff] }
  0xfe   :  { %v8170_v36 = vpop.permute.xlu1 %687  ;;  %v8178_v21 = vpop.permute.xlu0 %683 }
  0xff   :  { %13473 = vst [vmem:[#allocation38_spill] sm:$0xff] %v8170_v36  ;;  %13474 = vst [vmem:[#allocation39_spill] sm:$0xff] %v8178_v21  ;;  %v1371_v21 = vld [vmem:[%s13044_s7 + $0x100] sm:$0xff] }
 0x100   :  { %7270 = vrot.lane.b32.xlu1 %v7269_v10, %s7768_s21  ;;  %7265 = vrot.lane.b32.xlu0 %v7264_v0, %s7768_s21  ;;  %v1372_v10 = vld [vmem:[%s13044_s7 + $0x108] sm:$0xff] }
 0x101   :  { %v7284_v49 = vpack.i.bf16 %v1372_v10, %v1371_v21  ;;  %v7299_v21 = vpack.i.bf16 %v1378_v39, %v1377_v30  ;;  %v1382_v10 = vld [vmem:[%s13044_s7 + $0x158] sm:$0xff]  ;;  %v1385_v39 = vld [vmem:[%s13044_s7 + $0x170] sm:$0xff] }
 0x102   :  { %v8188_v36 = vpop.permute.xlu1 %698  ;;  %v8196_v0 = vpop.permute.xlu0 %694 }
 0x103   :  { %13475 = vst [vmem:[#allocation40_spill] sm:$0xff] %v8188_v36  ;;  %13476 = vst [vmem:[#allocation41_spill] sm:$0xff] %v8196_v0  ;;  %v1375_v0 = vld [vmem:[%s13044_s7 + $0x120] sm:$0xff] }
 0x104   :  { %7280 = vrot.lane.b32.xlu1 %v7279_v50, %s7768_s21  ;;  %7275 = vrot.lane.b32.xlu0 %v7274_v1, %s7768_s21  ;;  %v1376_v50 = vld [vmem:[%s13044_s7 + $0x128] sm:$0xff] }
 0x105   :  { %v7294_v33 = vpack.i.bf16 %v1376_v50, %v1375_v0  ;;  %v7309_v0 = vpack.i.bf16 %v1382_v10, %v1381_v42  ;;  %v1386_v50 = vld [vmem:[%s13044_s7 + $0x178] sm:$0xff]  ;;  %v1389_v10 = vld [vmem:[%s13044_s7 + $0x190] sm:$0xff] }
 0x106   :  { %v8206_v36 = vpop.permute.xlu1 %709  ;;  %v8214_v1 = vpop.permute.xlu0 %705 }
 0x107   :  { %13477 = vst [vmem:[#allocation42_spill] sm:$0xff] %v8206_v36  ;;  %13478 = vst [vmem:[#allocation43_spill] sm:$0xff] %v8214_v1  ;;  %v1379_v1 = vld [vmem:[%s13044_s7 + $0x140] sm:$0xff] }
 0x108   :  { %7290 = vrot.lane.b32.xlu1 %v7289_v59, %s7768_s21  ;;  %7285 = vrot.lane.b32.xlu0 %v7284_v49, %s7768_s21  ;;  %v1380_v59 = vld [vmem:[%s13044_s7 + $0x148] sm:$0xff] }
 0x109   :  { %v7304_v30 = vpack.i.bf16 %v1380_v59, %v1379_v1  ;;  %v7319_v1 = vpack.i.bf16 %v1386_v50, %v1385_v39  ;;  %v1390_v59 = vld [vmem:[%s13044_s7 + $0x198] sm:$0xff]  ;;  %v1393_v50 = vld [vmem:[%s13044_s7 + $0x1b0] sm:$0xff] }
 0x10a   :  { %v8224_v36 = vpop.permute.xlu1 %720  ;;  %v8232_v49 = vpop.permute.xlu0 %716 }
 0x10b   :  { %13479 = vst [vmem:[#allocation44_spill] sm:$0xff] %v8224_v36  ;;  %13480 = vst [vmem:[#allocation45_spill] sm:$0xff] %v8232_v49  ;;  %v1383_v49 = vld [vmem:[%s13044_s7 + $0x160] sm:$0xff] }
 0x10c   :  { %7300 = vrot.lane.b32.xlu1 %v7299_v21, %s7768_s21  ;;  %7295 = vrot.lane.b32.xlu0 %v7294_v33, %s7768_s21  ;;  %v1384_v21 = vld [vmem:[%s13044_s7 + $0x168] sm:$0xff] }
 0x10d   :  { %v7314_v42 = vpack.i.bf16 %v1384_v21, %v1383_v49  ;;  %v7329_v49 = vpack.i.bf16 %v1390_v59, %v1389_v10  ;;  %v1394_v21 = vld [vmem:[%s13044_s7 + $0x1b8] sm:$0xff]  ;;  %v1397_v59 = vld [vmem:[%s13044_s7 + $0x1d0] sm:$0xff] }
 0x10e   :  { %v8242_v36 = vpop.permute.xlu1 %731  ;;  %v8250_v33 = vpop.permute.xlu0 %727 }
 0x10f   :  { %13481 = vst [vmem:[#allocation46_spill] sm:$0xff] %v8242_v36  ;;  %13482 = vst [vmem:[#allocation47_spill] sm:$0xff] %v8250_v33  ;;  %v1387_v33 = vld [vmem:[%s13044_s7 + $0x180] sm:$0xff] }
 0x110   :  { %7310 = vrot.lane.b32.xlu1 %v7309_v0, %s7768_s21  ;;  %7305 = vrot.lane.b32.xlu0 %v7304_v30, %s7768_s21  ;;  %v1388_v0 = vld [vmem:[%s13044_s7 + $0x188] sm:$0xff] }
 0x111   :  { %v7324_v39 = vpack.i.bf16 %v1388_v0, %v1387_v33  ;;  %v7339_v33 = vpack.i.bf16 %v1394_v21, %v1393_v50  ;;  %v1398_v0 = vld [vmem:[%s13044_s7 + $0x1d8] sm:$0xff]  ;;  %v1401_v21 = vld [vmem:[%s13044_s7 + $0x1f0] sm:$0xff] }
 0x112   :  { %v8260_v36 = vpop.permute.xlu1 %742  ;;  %v8268_v30 = vpop.permute.xlu0 %738 }
 0x113   :  { %13483 = vst [vmem:[#allocation48_spill] sm:$0xff] %v8260_v36  ;;  %13484 = vst [vmem:[#allocation49_spill] sm:$0xff] %v8268_v30  ;;  %v1391_v30 = vld [vmem:[%s13044_s7 + $0x1a0] sm:$0xff] }
 0x114   :  { %7320 = vrot.lane.b32.xlu1 %v7319_v1, %s7768_s21  ;;  %7315 = vrot.lane.b32.xlu0 %v7314_v42, %s7768_s21  ;;  %v1392_v1 = vld [vmem:[%s13044_s7 + $0x1a8] sm:$0xff] }
 0x115   :  { %v7334_v10 = vpack.i.bf16 %v1392_v1, %v1391_v30  ;;  %v7349_v30 = vpack.i.bf16 %v1398_v0, %v1397_v59  ;;  %v1402_v1 = vld [vmem:[%s13044_s7 + $0x1f8] sm:$0xff] }
 0x116   :  { %v8278_v36 = vpop.permute.xlu1 %753  ;;  %v8286_v42 = vpop.permute.xlu0 %749 }
 0x117   :  { %13485 = vst [vmem:[#allocation50_spill] sm:$0xff] %v8278_v36  ;;  %13486 = vst [vmem:[#allocation51_spill] sm:$0xff] %v8286_v42  ;;  %v1395_v42 = vld [vmem:[%s13044_s7 + $0x1c0] sm:$0xff] }
 0x118   :  { %7330 = vrot.lane.b32.xlu1 %v7329_v49, %s7768_s21  ;;  %7325 = vrot.lane.b32.xlu0 %v7324_v39, %s7768_s21  ;;  %v1396_v49 = vld [vmem:[%s13044_s7 + $0x1c8] sm:$0xff] }
 0x119   :  { %v7344_v50 = vpack.i.bf16 %v1396_v49, %v1395_v42  ;;  %v7359_v42 = vpack.i.bf16 %v1402_v1, %v1401_v21 }
 0x11a   :  { %v8296_v36 = vpop.permute.xlu1 %764  ;;  %v8304_v39 = vpop.permute.xlu0 %760 }
 0x11b   :  { %13487 = vst [vmem:[#allocation52_spill] sm:$0xff] %v8296_v36  ;;  %13488 = vst [vmem:[#allocation53_spill] sm:$0xff] %v8304_v39  ;;  %v1399_v39 = vld [vmem:[%s13044_s7 + $0x1e0] sm:$0xff] }
 0x11c   :  { %7340 = vrot.lane.b32.xlu1 %v7339_v33, %s7768_s21  ;;  %7335 = vrot.lane.b32.xlu0 %v7334_v10, %s7768_s21  ;;  %v1400_v33 = vld [vmem:[%s13044_s7 + $0x1e8] sm:$0xff] }
 0x11d   :  { %v7354_v59 = vpack.i.bf16 %v1400_v33, %v1399_v39 }
 0x11e   :  { %v8314_v36 = vpop.permute.xlu1 %775  ;;  %v8322_v10 = vpop.permute.xlu0 %771 }
 0x11f   :  { %13489 = vst [vmem:[#allocation54_spill] sm:$0xff] %v8314_v36  ;;  %13490 = vst [vmem:[#allocation55_spill] sm:$0xff] %v8322_v10 }
 0x120   :  { %7350 = vrot.lane.b32.xlu1 %v7349_v30, %s7768_s21  ;;  %7345 = vrot.lane.b32.xlu0 %v7344_v50, %s7768_s21 }
 0x122   :  { %v8326_v0 = vpop.permute.xlu1 %786  ;;  %v8328_v49 = vpop.permute.xlu0 %782 }
 0x123   :  { %13491 = vst [vmem:[#allocation56_spill] sm:$0xff] %v8326_v0  ;;  %13492 = vst [vmem:[#allocation57_spill] sm:$0xff] %v8328_v49 }
 0x124   :  { %7360 = vrot.lane.b32.xlu1 %v7359_v42, %s7768_s21  ;;  %7355 = vrot.lane.b32.xlu0 %v7354_v59, %s7768_s21 }
 0x126   :  { %v8332_v36 = vpop.permute.xlu1 %797  ;;  %v8334_v27 = vpop.permute.xlu0 %793 }
 0x127   :  { %13493 = vst [vmem:[#allocation58_spill] sm:$0xff] %v8332_v36  ;;  %13494 = vst [vmem:[#allocation59_spill] sm:$0xff] %v8334_v27 }
 0x12a   :  { %v8336_v24 = vpop.permute.xlu1 %808  ;;  %v8338_v10 = vpop.permute.xlu0 %804 }
 0x12b   :  { %13495 = vst [vmem:[#allocation60_spill] sm:$0xff] %v8336_v24  ;;  %13496 = vst [vmem:[#allocation61_spill] sm:$0xff] %v8338_v10 }
 0x12e   :  { %v8340_v30 = vpop.permute.xlu1 %819  ;;  %v8342_v50 = vpop.permute.xlu0 %815 }
 0x12f   :  { %13497 = vst [vmem:[#allocation62_spill] sm:$0xff] %v8340_v30  ;;  %13498 = vst [vmem:[#allocation63_spill] sm:$0xff] %v8342_v50  ;;  %v13509_v50 = vlaneseq }
 0x132   :  { %v8344_v39 = vpop.permute.xlu1 %830  ;;  %v8346_v21 = vpop.permute.xlu0 %826 }
 0x133   :  { %13499 = vst [vmem:[#allocation64_spill] sm:$0xff] %v8344_v39  ;;  %13500 = vst [vmem:[#allocation65_spill] sm:$0xff] %v8346_v21  ;;  %v8365_v39 = vand.u32 127, %v13509_v50 }
 0x135   :  { %13510 = vst [vmem:[#allocation74_spill] sm:$0xff] %v8365_v39 }
 0x136   :  { %v8348_v1 = vpop.permute.xlu1 %841  ;;  %v8350_v33 = vpop.permute.xlu0 %837 }
 0x137   :  { %13501 = vst [vmem:[#allocation66_spill] sm:$0xff] %v8348_v1  ;;  %13502 = vst [vmem:[#allocation67_spill] sm:$0xff] %v8350_v33  ;;  %v8372_v33 = vcvt.s32.f32 %v8365_v39 }
 0x13a   :  { %v8352_v42 = vpop.permute.xlu1 %852  ;;  %v8354_v59 = vpop.permute.xlu0 %848 }
 0x13b   :  { %13503 = vst [vmem:[#allocation68_spill] sm:$0xff] %v8352_v42  ;;  %13504 = vst [vmem:[#allocation69_spill] sm:$0xff] %v8354_v59  ;;  %v413_v42 = vsub.f32 %v7895_v44, %v8372_v33 }
 0x13e   :  { %v8356_v36 = vpop.permute.xlu1 %863  ;;  %v8358_v24 = vpop.permute.xlu0 %859 }
 0x13f   :  { %13505 = vst [vmem:[#allocation70_spill] sm:$0xff] %v8356_v36  ;;  %13506 = vst [vmem:[#allocation71_spill] sm:$0xff] %v8358_v24  ;;  %v414_v36 = vsub.f32 %v7900_v47, %v8372_v33 }
 0x141   :  { %v478_v24 = vand.u32 2147483647, %v414_v36 }
 0x142   :  { %v8360_v10 = vpop.permute.xlu1 %874  ;;  %v8362_v30 = vpop.permute.xlu0 %870 }
 0x143   :  { %13507 = vst [vmem:[#allocation72_spill] sm:$0xff] %v8360_v10  ;;  %13508 = vst [vmem:[#allocation73_spill] sm:$0xff] %v8362_v30  ;;  %v412_v10 = vsub.f32 %v7902_v48, %v8372_v33  ;;  %v542_v47 = vsub.f32 1.0, %v478_v24  ;;  %v416_v48 = vsub.f32 %v7908_v51, %v8372_v33 }
 0x145   :  { %v476_v39 = vand.u32 2147483647, %v412_v10  ;;  %v8404_v24 = vmax.f32 %v542_v47, 0.0  ;;  %v8408_v51 = vand.u32 2147483647, %v416_v48  ;;  %v1276_v47 = vld [vmem:[%s13045_s6 + $0x8] sm:$0xff] }
 0x146   :  { %v8367_v21 = vpop.permute.xlu1 %885  ;;  %v8369_v1 = vpop.permute.xlu0 %881 }
 0x147   :  { %13511 = vst [vmem:[#allocation75_spill] sm:$0xff] %v8367_v21  ;;  %13512 = vst [vmem:[#allocation76_spill] sm:$0xff] %v8369_v1  ;;  %v411_v21 = vsub.f32 %v7897_v45, %v8372_v33  ;;  %v477_v1 = vand.u32 2147483647, %v413_v42  ;;  %v540_v49 = vsub.f32 1.0, %v476_v39  ;;  %v418_v45 = vsub.f32 %v7913_v54, %v8372_v33 }
 0x149   :  { %v475_v44 = vand.u32 2147483647, %v411_v21  ;;  %v541_v0 = vsub.f32 1.0, %v477_v1  ;;  %v417_v21 = vsub.f32 %v7915_v55, %v8372_v33  ;;  %v8406_v39 = vmax.f32 %v540_v49, 0.0 }
 0x14a   :  { %v8380_v30 = vpop.permute.xlu1 %896  ;;  %v8382_v50 = vpop.permute.xlu0 %892  ;;  %v420_v55 = vsub.f32 %v7918_v57, %v8372_v33  ;;  %v1278_v57 = vld [vmem:[%s13045_s6 + $0x18] sm:$0xff] }
 0x14b   :  { %13513 = vst [vmem:[#allocation77_spill] sm:$0xff] %v8380_v30  ;;  %13514 = vst [vmem:[#allocation78_spill] sm:$0xff] %v8382_v50  ;;  %v415_v50 = vsub.f32 %v7910_v52, %v8372_v33  ;;  %v539_v10 = vsub.f32 1.0, %v475_v44  ;;  %v8402_v1 = vmax.f32 %v541_v0, 0.0  ;;  %v481_v44 = vand.u32 2147483647, %v417_v21 }
 0x14c   :  { %v419_v0 = vsub.f32 %v7920_v58, %v8372_v33 }
 0x14d   :  { %v8412_v52 = vand.u32 2147483647, %v415_v50  ;;  %v1725_v49 = vpack.c.bf16 %v8404_v24, %v8402_v1  ;;  %v1275_v50 = vld [vmem:[%s13045_s6] sm:$0xff] }
 0x14e   :  { %v8386_v59 = vpop.permute.xlu1 %907  ;;  %v8388_v27 = vpop.permute.xlu0 %903 }
 0x14f   :  { %13515 = vst [vmem:[#allocation79_spill] sm:$0xff] %v8386_v59  ;;  %13516 = vst [vmem:[#allocation80_spill] sm:$0xff] %v8388_v27 }
 0x152   :  { %v8392_v30 = vpop.permute.xlu1 %918  ;;  %v8398_v36 = vpop.permute.xlu0 %914 }
 0x153   :  { %13517 = vst [vmem:[#allocation81_spill] sm:$0xff] %v8392_v30  ;;  %13518 = vst [vmem:[#allocation82_spill] sm:$0xff] %v8398_v36  ;;  %v482_v30 = vand.u32 2147483647, %v418_v45  ;;  %v8416_v36 = vmax.f32 %v539_v10, 0.0  ;;  %v1277_v45 = vld [vmem:[%s13045_s6 + $0x10] sm:$0xff] }
 0x155   :  { %v546_v10 = vsub.f32 1.0, %v482_v30  ;;  %v8445_v30 = vld [vmem:[%s13043_s8 + $0x18] sm:$0xff] }
 0x156   :  { %v8410_v42 = vpop.permute.xlu1 %929  ;;  %v8414_v54 = vpop.permute.xlu0 %925  ;;  %v934_v16 = vrot.slane %v8445_v30, %v7836_v4  ;;  %v1279_v4 = vld [vmem:[%s13045_s6 + $0x20] sm:$0xff] }
 0x157   :  { %13519 = vst [vmem:[#allocation83_spill] sm:$0xff] %v8410_v42  ;;  %13520 = vst [vmem:[#allocation84_spill] sm:$0xff] %v8414_v54  ;;  %v545_v42 = vsub.f32 1.0, %v481_v44  ;;  %v8440_v54 = vand.u32 2147483647, %v420_v55  ;;  %v422_v44 = vsub.f32 %v7923_v60, %v8372_v33  ;;  %v1280_v60 = vld [vmem:[%s13045_s6 + $0x28] sm:$0xff] }
 0x158   :  { %940 = vbcast.lane.b32.xlu1 %v934_v16, 264  ;;  %936 = vbcast.lane.b32.xlu0 %v934_v16, 256 }
 0x159   :  { %v8475_v56 = vmax.f32 %v545_v42, 0.0  ;;  %v548_v53 = vsub.f32 1.0, %v8440_v54  ;;  %v1285_v54 = vld [vmem:[%s13045_s6 + $0x50] sm:$0xff] }
 0x15a   :  { %v7211_v48 = vpop.permute.xlu1 %7210  ;;  %v7206_v24 = vpop.permute.xlu0 %7205 }
 0x15b   :  { %v7213_v21 = vunpack.i.h.bf16 %v7211_v48  ;;  %v7212_v1 = vunpack.i.l.bf16 %v7211_v48  ;;  %v7208_v59 = vunpack.i.h.bf16 %v7206_v24  ;;  %v7207_v27 = vunpack.i.l.bf16 %v7206_v24 }
 0x15c   :  { %v8447_v48 = vand.u32 2147483647, %v419_v0  ;;  %v1281_v0 = vld [vmem:[%s13045_s6 + $0x30] sm:$0xff] }
 0x15d   :  { %v1662_v58 = vsel %vm1659_vm1, %v1277_v45, %v7212_v1  ;;  %v1663_v20 = vsel %vm1659_vm1, %v1278_v57, %v7213_v21  ;;  %v1660_v55 = vsel %vm1659_vm1, %v1275_v50, %v7207_v27  ;;  %v1661_v24 = vsel %vm1659_vm1, %v1276_v47, %v7208_v59  ;;  %v1282_v45 = vld [vmem:[%s13045_s6 + $0x38] sm:$0xff] }
 0x15e   :  { %v1757_v5 = vpack.c.bf16 %v1663_v20, %v1662_v58  ;;  %v7221_v62 = vpop.permute.xlu1 %7220  ;;  %v7216_v57 = vpop.permute.xlu0 %7215  ;;  %v1756_v27 = vpack.c.bf16 %v1661_v24, %v1660_v55  ;;  %v945_v47 = vrot.slane %v8445_v30, %v7833_v3  ;;  %v8471_v50 = vmax.f32 %v546_v10, 0.0  ;;  %v1286_v24 = vld [vmem:[%s13045_s6 + $0x58] sm:$0xff] }
 0x15f   :  { %v7223_v20 = vunpack.i.h.bf16 %v7221_v62  ;;  %v7222_v59 = vunpack.i.l.bf16 %v7221_v62  ;;  %v421_v58 = vsub.f32 %v7925_v61, %v8372_v33  ;;  %v7218_v21 = vunpack.i.h.bf16 %v7216_v57 }
 0x160   :  { %v7217_v1 = vunpack.i.l.bf16 %v7216_v57  ;;  %7002 = vmatpush3.bf16.msra.mxu1 %v1757_v5  ;;  %6996 = vmatpush3.bf16.msra.mxu0 %v1756_v27  ;;  %v13521_v55 = vmov 0.0   ;;  %v547_v3 = vsub.f32 1.0, %v8447_v48  ;;  %v1283_v57 = vld [vmem:[%s13045_s6 + $0x40] sm:$0xff] }
 0x161   :  { %v1666_v62 = vsel %vm1659_vm1, %v1281_v0, %v7222_v59  ;;  %v1667_v16 = vsel %vm1659_vm1, %v1282_v45, %v7223_v20  ;;  %7013 = vmatprep.subr.bf16.mxu1 %v13521_v55  ;;  %v1665_v61 = vsel %vm1659_vm1, %v1280_v60, %v7218_v21  ;;  %7007 = vmatprep.subr.bf16.mxu0 %v13521_v55  ;;  %v486_v0 = vand.u32 2147483647, %v422_v44 }
 0x162   :  { %v1664_v10 = vsel %vm1659_vm1, %v1279_v4, %v7217_v1  ;;  %v1759_v5 = vpack.c.bf16 %v1667_v16, %v1666_v62  ;;  %v7231_v42 = vpop.permute.xlu1 %7230  ;;  %v7226_v45 = vpop.permute.xlu0 %7225  ;;  %v1284_v4 = vld [vmem:[%s13045_s6 + $0x48] sm:$0xff]  ;;  %951 = vbcast.lane.b32.xlu1 %v945_v47, 264  ;;  %v485_v20 = vand.u32 2147483647, %v421_v58  ;;  %v13522_v59 = vpack.c.bf16 %v8406_v39, %v8416_v36  ;;  %947 = vbcast.lane.b32.xlu0 %v945_v47, 256  ;;  %v1290_v47 = vld [vmem:[%s13045_s6 + $0x78] sm:$0xff] }
 0x163   :  { %7004 = vmatmul.mubr.msk.bf16.vlgmr.msra.gmra.mrb[0].mxu1 %vm1659_vm1, %v1725_v49  ;;  %v1758_v48 = vpack.c.bf16 %v1665_v61, %v1664_v10  ;;  %v7233_v60 = vunpack.i.h.bf16 %v7231_v42  ;;  %v7232_v27 = vunpack.i.l.bf16 %v7231_v42  ;;  %v7228_v49 = vunpack.i.h.bf16 %v7226_v45 }
 0x164   :  { %6998 = vmatmul.mubr.msk.bf16.vlgmr.msra.gmra.mrb[0].mxu0 %vm1659_vm1, %v13522_v59  ;;  %v7227_v44 = vunpack.i.l.bf16 %v7226_v45  ;;  %7014 = vmatpush3.bf16.msra.mxu1 %v1759_v5  ;;  %v956_v21 = vrot.slane %v8445_v30, %v7841_v7  ;;  %v13523_v1 = vsub.f32 1.0, %v8408_v51  ;;  %v426_v16 = vsub.f32 %v7933_v6, %v8372_v33 }
 0x165   :  { %7008 = vmatpush3.bf16.msra.mxu0 %v1758_v48  ;;  %v1670_v58 = vsel %vm1659_vm1, %v1285_v54, %v7232_v27  ;;  %v1671_v10 = vsel %vm1659_vm1, %v1286_v24, %v7233_v60  ;;  %7009 = vmatprep.mubr.msk.bf16.mxu0 %vm7767_vm0, %v13521_v55  ;;  %v13524_v36 = vsub.f32 1.0, %v8412_v52  ;;  %v425_v7 = vsub.f32 %v7935_v8, %v8372_v33 }
 0x166   :  { %v608_v62 = vmax.f32 %v13523_v1, 0.0  ;;  %v1668_v51 = vsel %vm1659_vm1, %v1283_v57, %v7227_v44  ;;  %v1669_v61 = vsel %vm1659_vm1, %v1284_v4, %v7228_v49  ;;  %7015 = vmatprep.mubr.msk.bf16.mxu1 %vm7767_vm0, %v13521_v55  ;;  %7019 = vmatprep.subr.bf16.mxu0 %v13521_v55  ;;  %v7241_v6 = vpop.permute.xlu1 %7240  ;;  %v1727_v5 = vpack.c.bf16 %v8471_v50, %v8475_v56  ;;  %v7236_v54 = vpop.permute.xlu0 %7235  ;;  %v1288_v49 = vld [vmem:[%s13045_s6 + $0x68] sm:$0xff] }
 0x167   :  { %v607_v39 = vmax.f32 %v13524_v36, 0.0  ;;  %v8523_v42 = vmax.f32 %v548_v53, 0.0  ;;  %v8525_v52 = vmax.f32 %v547_v3, 0.0  ;;  %v424_v8 = vsub.f32 %v7928_v63, %v8372_v33  ;;  %7025 = vmatprep.subr.bf16.mxu1 %v13521_v55  ;;  %962 = vbcast.lane.b32.xlu1 %v956_v21, 264  ;;  %v1289_v63 = vld [vmem:[%s13045_s6 + $0x70] sm:$0xff] }
 0x168   :  { %v550_v24 = vsub.f32 1.0, %v486_v0  ;;  %v549_v48 = vsub.f32 1.0, %v485_v20  ;;  %v423_v45 = vsub.f32 %v7930_v2, %v8372_v33  ;;  %v1761_v57 = vpack.c.bf16 %v1671_v10, %v1670_v58  ;;  %v1287_v20 = vld [vmem:[%s13045_s6 + $0x60] sm:$0xff]  ;;  %958 = vbcast.lane.b32.xlu0 %v956_v21, 256 }
 0x169   :  { %v490_v4 = vand.u32 2147483647, %v426_v16  ;;  %v1760_v56 = vpack.c.bf16 %v1669_v61, %v1668_v51  ;;  %v7243_v53 = vunpack.i.h.bf16 %v7241_v6  ;;  %v7242_v50 = vunpack.i.l.bf16 %v7241_v6 }
 0x16a   :  { %v1726_v3 = vpack.c.bf16 %v608_v62, %v607_v39  ;;  %v489_v60 = vand.u32 2147483647, %v425_v7  ;;  %v7238_v27 = vunpack.i.h.bf16 %v7236_v54  ;;  %v7237_v59 = vunpack.i.l.bf16 %v7236_v54  ;;  %v7251_v51 = vpop.permute.xlu1 %7250 }
 0x16b   :  { %v488_v0 = vand.u32 2147483647, %v424_v8  ;;  %v428_v2 = vsub.f32 %v7938_v12, %v8372_v33  ;;  %7016 = vmatmul.mubr.msk.bf16.vlgmr.msra.gmra.mrb[4].mxu1 %vm1659_vm1, %v1727_v5  ;;  %v967_v44 = vrot.slane %v8445_v30, %v7845_v9  ;;  %v614_v1 = vmax.f32 %v550_v24, 0.0 }
 0x16c   :  { %v613_v62 = vmax.f32 %v549_v48, 0.0  ;;  %v487_v16 = vand.u32 2147483647, %v423_v45  ;;  %v427_v12 = vsub.f32 %v7940_v14, %v8372_v33  ;;  %7010 = vmatmul.mubr.msk.bf16.vlgmr.msra.gmra.mrb[4].mxu0 %vm1659_vm1, %v1726_v3  ;;  %7026 = vmatpush3.bf16.msra.mxu1 %v1761_v57  ;;  %v1728_v58 = vpack.c.bf16 %v8523_v42, %v8525_v52  ;;  %v7246_v42 = vpop.permute.xlu0 %7245  ;;  %v1293_v3 = vld [vmem:[%s13045_s6 + $0x90] sm:$0xff] }
 0x16d   :  { %v554_v10 = vsub.f32 1.0, %v490_v4  ;;  %7020 = vmatpush3.bf16.msra.mxu0 %v1760_v56  ;;  %v1674_v36 = vsel %vm1659_vm1, %v1289_v63, %v7242_v50  ;;  %v1675_v21 = vsel %vm1659_vm1, %v1290_v47, %v7243_v53  ;;  %7021 = vmatprep.mubr.msk.bf16.mxu0 %vm7767_vm0, %v13521_v55  ;;  %v553_v9 = vsub.f32 1.0, %v489_v60  ;;  %v1292_v63 = vld [vmem:[%s13045_s6 + $0x88] sm:$0xff] }
 0x16e   :  { %v430_v39 = vsub.f32 %v7943_v18, %v8372_v33  ;;  %v1672_v14 = vsel %vm1659_vm1, %v1287_v20, %v7237_v59  ;;  %v1673_v7 = vsel %vm1659_vm1, %v1288_v49, %v7238_v27  ;;  %7027 = vmatprep.mubr.msk.bf16.mxu1 %vm7767_vm0, %v13521_v55  ;;  %7031 = vmatprep.subr.bf16.mxu0 %v13521_v55  ;;  %v552_v61 = vsub.f32 1.0, %v488_v0  ;;  %v1291_v59 = vld [vmem:[%s13045_s6 + $0x80] sm:$0xff] }
 0x16f   :  { %v492_v6 = vand.u32 2147483647, %v428_v2  ;;  %v429_v5 = vsub.f32 %v7945_v19, %v8372_v33  ;;  %7037 = vmatprep.subr.bf16.mxu1 %v13521_v55  ;;  %973 = vbcast.lane.b32.xlu1 %v967_v44, 264  ;;  %v978_v18 = vrot.slane %v8445_v30, %v7849_v11  ;;  %v1729_v52 = vpack.c.bf16 %v614_v1, %v613_v62  ;;  %v1294_v11 = vld [vmem:[%s13045_s6 + $0x98] sm:$0xff] }
 0x170   :  { %v551_v8 = vsub.f32 1.0, %v487_v16  ;;  %v491_v54 = vand.u32 2147483647, %v427_v12  ;;  %v1763_v24 = vpack.c.bf16 %v1675_v21, %v1674_v36  ;;  %969 = vbcast.lane.b32.xlu0 %v967_v44, 256  ;;  %v618_v48 = vmax.f32 %v554_v10, 0.0  ;;  %v7256_v21 = vpop.permute.xlu0 %7255 }
 0x171   :  { %v1762_v45 = vpack.c.bf16 %v1673_v7, %v1672_v14  ;;  %v7253_v57 = vunpack.i.h.bf16 %v7251_v51  ;;  %v7252_v4 = vunpack.i.l.bf16 %v7251_v51  ;;  %v617_v56 = vmax.f32 %v553_v9, 0.0 }
 0x172   :  { %v494_v53 = vand.u32 2147483647, %v430_v39  ;;  %v7248_v50 = vunpack.i.h.bf16 %v7246_v42  ;;  %v7247_v19 = vunpack.i.l.bf16 %v7246_v42  ;;  %v556_v60 = vsub.f32 1.0, %v492_v6 }
 0x173   :  { %v493_v27 = vand.u32 2147483647, %v429_v5  ;;  %7028 = vmatmul.mubr.msk.bf16.vlgmr.msra.gmra.mrb[8].mxu1 %vm1659_vm1, %v1729_v52  ;;  %984 = vbcast.lane.b32.xlu1 %v978_v18, 264  ;;  %v555_v47 = vsub.f32 1.0, %v491_v54  ;;  %v432_v0 = vsub.f32 %v7951_v22, %v8372_v33  ;;  %v989_v2 = vrot.slane %v8445_v30, %v7853_v13  ;;  %v7261_v13 = vpop.permute.xlu1 %7260 }
 0x174   :  { %7022 = vmatmul.mubr.msk.bf16.vlgmr.msra.gmra.mrb[8].mxu0 %vm1659_vm1, %v1728_v58  ;;  %7038 = vmatpush3.bf16.msra.mxu1 %v1763_v24  ;;  %v616_v20 = vmax.f32 %v552_v61, 0.0  ;;  %v1678_v49 = vsel %vm1659_vm1, %v1293_v3, %v7252_v4  ;;  %v1679_v44 = vsel %vm1659_vm1, %v1294_v11, %v7253_v57  ;;  %v615_v1 = vmax.f32 %v551_v8, 0.0 }
 0x175   :  { %7032 = vmatpush3.bf16.msra.mxu0 %v1762_v45  ;;  %7033 = vmatprep.mubr.msk.bf16.mxu0 %vm7767_vm0, %v13521_v55  ;;  %v558_v62 = vsub.f32 1.0, %v494_v53  ;;  %v1676_v16 = vsel %vm1659_vm1, %v1291_v59, %v7247_v19  ;;  %v1677_v22 = vsel %vm1659_vm1, %v1292_v63, %v7248_v50  ;;  %v1731_v12 = vpack.c.bf16 %v618_v48, %v617_v56  ;;  %v1296_v48 = vld [vmem:[%s13045_s6 + $0xa8] sm:$0xff] }
 0x176   :  { %7039 = vmatprep.mubr.msk.bf16.mxu1 %vm7767_vm0, %v13521_v55  ;;  %7043 = vmatprep.subr.bf16.mxu0 %v13521_v55  ;;  %v8597_v58 = vmax.f32 %v556_v60, 0.0  ;;  %v557_v10 = vsub.f32 1.0, %v493_v27  ;;  %v431_v36 = vsub.f32 %v7953_v23, %v8372_v33  ;;  %v8602_v9 = vmax.f32 %v555_v47, 0.0  ;;  %v7266_v47 = vpop.permute.xlu0 %7265 }
 0x177   :  { %7049 = vmatprep.subr.bf16.mxu1 %v13521_v55  ;;  %980 = vbcast.lane.b32.xlu0 %v978_v18, 256  ;;  %v496_v39 = vand.u32 2147483647, %v432_v0  ;;  %v434_v14 = vsub.f32 %v7956_v25, %v8372_v33  ;;  %v1765_v7 = vpack.c.bf16 %v1679_v44, %v1678_v49  ;;  %v433_v51 = vsub.f32 %v7958_v26, %v8372_v33  ;;  %v1297_v18 = vld [vmem:[%s13045_s6 + $0xb0] sm:$0xff]  ;;  %v1298_v25 = vld [vmem:[%s13045_s6 + $0xb8] sm:$0xff]  ;;  %v1295_v26 = vld [vmem:[%s13045_s6 + $0xa0] sm:$0xff]  ;;  %v7271_v60 = vpop.permute.xlu1 %7270 }
 0x178   :  { %995 = vbcast.lane.b32.xlu1 %v989_v2, 264  ;;  %v1764_v61 = vpack.c.bf16 %v1677_v22, %v1676_v16  ;;  %v7263_v6 = vunpack.i.h.bf16 %v7261_v13  ;;  %v7262_v5 = vunpack.i.l.bf16 %v7261_v13  ;;  %v1730_v42 = vpack.c.bf16 %v616_v20, %v615_v1 }
 0x179   :  { %v622_v23 = vmax.f32 %v558_v62, 0.0  ;;  %v7258_v52 = vunpack.i.h.bf16 %v7256_v21  ;;  %v7257_v8 = vunpack.i.l.bf16 %v7256_v21  ;;  %v621_v54 = vmax.f32 %v557_v10, 0.0  ;;  %v1299_v10 = vld [vmem:[%s13045_s6 + $0xc0] sm:$0xff] }
 0x17a   :  { %v495_v24 = vand.u32 2147483647, %v431_v36  ;;  %v1000_v45 = vrot.slane %v8445_v30, %v7857_v15  ;;  %v560_v57 = vsub.f32 1.0, %v496_v39  ;;  %v498_v4 = vand.u32 2147483647, %v434_v14 }
 0x17b   :  { %7040 = vmatmul.mubr.msk.bf16.vlgmr.msra.gmra.mrb[12].mxu1 %vm1659_vm1, %v1731_v12  ;;  %991 = vbcast.lane.b32.xlu0 %v989_v2, 256  ;;  %v1732_v56 = vpack.c.bf16 %v8597_v58, %v8602_v9  ;;  %v497_v53 = vand.u32 2147483647, %v433_v51  ;;  %v1682_v50 = vsel %vm1659_vm1, %v1297_v18, %v7262_v5  ;;  %v1683_v19 = vsel %vm1659_vm1, %v1298_v25, %v7263_v6  ;;  %v7281_v5 = vpop.permute.xlu1 %7280  ;;  %v7276_v18 = vpop.permute.xlu0 %7275 }
 0x17c   :  { %7034 = vmatmul.mubr.msk.bf16.vlgmr.msra.gmra.mrb[12].mxu0 %vm1659_vm1, %v1730_v42  ;;  %7050 = vmatpush3.bf16.msra.mxu1 %v1765_v7  ;;  %v438_v15 = vsub.f32 %v7966_v31, %v8372_v33  ;;  %v1680_v3 = vsel %vm1659_vm1, %v1295_v26, %v7257_v8  ;;  %v1681_v11 = vsel %vm1659_vm1, %v1296_v48, %v7258_v52  ;;  %v559_v59 = vsub.f32 1.0, %v495_v24 }
 0x17d   :  { %7044 = vmatpush3.bf16.msra.mxu0 %v1764_v61  ;;  %7045 = vmatprep.mubr.msk.bf16.mxu0 %vm7767_vm0, %v13521_v55  ;;  %v1733_v27 = vpack.c.bf16 %v622_v23, %v621_v54  ;;  %v437_v63 = vsub.f32 %v7968_v32, %v8372_v33  ;;  %v1011_v31 = vrot.slane %v8445_v30, %v7861_v17  ;;  %v8642_v0 = vmax.f32 %v560_v57, 0.0  ;;  %v1301_v17 = vld [vmem:[%s13045_s6 + $0xd0] sm:$0xff] }
 0x17e   :  { %7051 = vmatprep.mubr.msk.bf16.mxu1 %vm7767_vm0, %v13521_v55  ;;  %7055 = vmatprep.subr.bf16.mxu0 %v13521_v55  ;;  %v562_v2 = vsub.f32 1.0, %v498_v4  ;;  %v436_v20 = vsub.f32 %v7961_v28, %v8372_v33  ;;  %v1767_v49 = vpack.c.bf16 %v1683_v19, %v1682_v50  ;;  %v561_v44 = vsub.f32 1.0, %v497_v53  ;;  %v1302_v28 = vld [vmem:[%s13045_s6 + $0xd8] sm:$0xff]  ;;  %v1305_v50 = vld [vmem:[%s13045_s6 + $0xf0] sm:$0xff] }
 0x17f   :  { %7061 = vmatprep.subr.bf16.mxu1 %v13521_v55  ;;  %1006 = vbcast.lane.b32.xlu1 %v1000_v45, 264  ;;  %v1766_v1 = vpack.c.bf16 %v1681_v11, %v1680_v3  ;;  %v7273_v62 = vunpack.i.h.bf16 %v7271_v60  ;;  %v7272_v16 = vunpack.i.l.bf16 %v7271_v60  ;;  %v435_v32 = vsub.f32 %v7963_v29, %v8372_v33  ;;  %v1300_v29 = vld [vmem:[%s13045_s6 + $0xc8] sm:$0xff]  ;;  %v1303_v3 = vld [vmem:[%s13045_s6 + $0xe0] sm:$0xff] }
 0x180   :  { %1002 = vbcast.lane.b32.xlu0 %v1000_v45, 256  ;;  %v502_v22 = vand.u32 2147483647, %v438_v15  ;;  %v7268_v13 = vunpack.i.h.bf16 %v7266_v47  ;;  %v7267_v12 = vunpack.i.l.bf16 %v7266_v47  ;;  %v623_v30 = vmax.f32 %v559_v59, 0.0  ;;  %v1304_v11 = vld [vmem:[%s13045_s6 + $0xe8] sm:$0xff] }
 0x181   :  { %v501_v58 = vand.u32 2147483647, %v437_v63  ;;  %v500_v36 = vand.u32 2147483647, %v436_v20  ;;  %v626_v21 = vmax.f32 %v562_v2, 0.0  ;;  %v625_v9 = vmax.f32 %v561_v44, 0.0 }
 0x182   :  { %v1686_v39 = vsel %vm1659_vm1, %v1301_v17, %v7272_v16  ;;  %v1687_v14 = vsel %vm1659_vm1, %v1302_v28, %v7273_v62  ;;  %v499_v7 = vand.u32 2147483647, %v435_v32  ;;  %v440_v51 = vsub.f32 %v7971_v34, %v8372_v33  ;;  %v7286_v32 = vpop.permute.xlu0 %7285 }
 0x183   :  { %7052 = vmatmul.mubr.msk.bf16.vlgmr.msra.gmra.mrb[16].mxu1 %vm1659_vm1, %v1733_v27  ;;  %1017 = vbcast.lane.b32.xlu1 %v1011_v31, 264  ;;  %v1684_v61 = vsel %vm1659_vm1, %v1299_v10, %v7267_v12  ;;  %v1685_v6 = vsel %vm1659_vm1, %v1300_v29, %v7268_v13  ;;  %v1734_v42 = vpack.c.bf16 %v8642_v0, %v623_v30  ;;  %v566_v23 = vsub.f32 1.0, %v502_v22 }
 0x184   :  { %7046 = vmatmul.mubr.msk.bf16.vlgmr.msra.gmra.mrb[16].mxu0 %vm1659_vm1, %v1732_v56  ;;  %7062 = vmatpush3.bf16.msra.mxu1 %v1767_v49  ;;  %v565_v52 = vsub.f32 1.0, %v501_v58  ;;  %v439_v8 = vsub.f32 %v7973_v35, %v8372_v33  ;;  %v564_v34 = vsub.f32 1.0, %v500_v36  ;;  %v442_v25 = vsub.f32 %v7976_v37, %v8372_v33  ;;  %v1306_v37 = vld [vmem:[%s13045_s6 + $0xf8] sm:$0xff] }
 0x185   :  { %7056 = vmatpush3.bf16.msra.mxu0 %v1766_v1  ;;  %7057 = vmatprep.mubr.msk.bf16.mxu0 %vm7767_vm0, %v13521_v55  ;;  %v441_v54 = vsub.f32 %v7978_v38, %v8372_v33  ;;  %v1769_v24 = vpack.c.bf16 %v1687_v14, %v1686_v39  ;;  %v1735_v26 = vpack.c.bf16 %v626_v21, %v625_v9  ;;  %v7283_v45 = vunpack.i.h.bf16 %v7281_v5  ;;  %v1310_v9 = vld [vmem:[%s13045_s6 + $0x118] sm:$0xff] }
 0x186   :  { %7063 = vmatprep.mubr.msk.bf16.mxu1 %vm7767_vm0, %v13521_v55  ;;  %7067 = vmatprep.subr.bf16.mxu0 %v13521_v55  ;;  %v1768_v48 = vpack.c.bf16 %v1685_v6, %v1684_v61  ;;  %v7282_v57 = vunpack.i.l.bf16 %v7281_v5  ;;  %v563_v4 = vsub.f32 1.0, %v499_v7  ;;  %v504_v56 = vand.u32 2147483647, %v440_v51  ;;  %v1307_v7 = vld [vmem:[%s13045_s6 + $0x100] sm:$0xff]  ;;  %v1308_v51 = vld [vmem:[%s13045_s6 + $0x108] sm:$0xff] }
 0x187   :  { %7073 = vmatprep.subr.bf16.mxu1 %v13521_v55  ;;  %1013 = vbcast.lane.b32.xlu0 %v1011_v31, 256  ;;  %v7278_v53 = vunpack.i.h.bf16 %v7276_v18  ;;  %v7277_v35 = vunpack.i.l.bf16 %v7276_v18  ;;  %v630_v19 = vmax.f32 %v566_v23, 0.0  ;;  %v629_v15 = vmax.f32 %v565_v52, 0.0  ;;  %v13525_v18 = vld [vmem:[#allocation8_spill] sm:$0xff] }
 0x188   :  { %v503_v38 = vand.u32 2147483647, %v439_v8  ;;  %v506_v60 = vand.u32 2147483647, %v442_v25  ;;  %v505_v27 = vand.u32 2147483647, %v441_v54  ;;  %v446_v63 = vsub.f32 %v7986_v43, %v8372_v33  ;;  %v7291_v43 = vpop.permute.xlu1 %7290 }
 0x189   :  { %v628_v59 = vmax.f32 %v564_v34, 0.0  ;;  %v1690_v47 = vsel %vm1659_vm1, %v1305_v50, %v7282_v57  ;;  %v1691_v31 = vsel %vm1659_vm1, %v1306_v37, %v7283_v45  ;;  %v627_v0 = vmax.f32 %v563_v4, 0.0  ;;  %v13526_v45 = vld [vmem:[#allocation9_spill] sm:$0xff]  ;;  %v13527_v4 = vld [vmem:[#allocation10_spill] sm:$0xff]  ;;  %v13528_v37 = vld [vmem:[#allocation11_spill] sm:$0xff] }
 0x18a   :  { %v445_v2 = vsub.f32 %v7988_v46, %v8372_v33  ;;  %v1688_v20 = vsel %vm1659_vm1, %v1303_v3, %v7277_v35  ;;  %v1689_v49 = vsel %vm1659_vm1, %v1304_v11, %v7278_v53  ;;  %v1737_v44 = vpack.c.bf16 %v630_v19, %v629_v15  ;;  %v7296_v53 = vpop.permute.xlu0 %7295 }
 0x18b   :  { %7064 = vmatmul.mubr.msk.bf16.vlgmr.msra.gmra.mrb[20].mxu1 %vm1659_vm1, %v1735_v26  ;;  %v568_v1 = vsub.f32 1.0, %v504_v56  ;;  %v567_v62 = vsub.f32 1.0, %v503_v38  ;;  %v444_v16 = vsub.f32 %v7981_v40, %v8372_v33  ;;  %v570_v46 = vsub.f32 1.0, %v506_v60  ;;  %v1309_v40 = vld [vmem:[%s13045_s6 + $0x110] sm:$0xff] }
 0x18c   :  { %7058 = vmatmul.mubr.msk.bf16.vlgmr.msra.gmra.mrb[20].mxu0 %vm1659_vm1, %v1734_v42  ;;  %7074 = vmatpush3.bf16.msra.mxu1 %v1769_v24  ;;  %v569_v22 = vsub.f32 1.0, %v505_v27  ;;  %v443_v13 = vsub.f32 %v7983_v41, %v8372_v33  ;;  %v1771_v12 = vpack.c.bf16 %v1691_v31, %v1690_v47  ;;  %v510_v17 = vand.u32 2147483647, %v446_v63  ;;  %v7301_v24 = vpop.permute.xlu1 %7300  ;;  %v1313_v31 = vld [vmem:[%s13045_s6 + $0x130] sm:$0xff] }
 0x18d   :  { %7068 = vmatpush3.bf16.msra.mxu0 %v1768_v48  ;;  %7069 = vmatprep.mubr.msk.bf16.mxu0 %vm7767_vm0, %v13521_v55  ;;  %v1770_v28 = vpack.c.bf16 %v1689_v49, %v1688_v20  ;;  %v7293_v30 = vunpack.i.h.bf16 %v7291_v43  ;;  %v7292_v58 = vunpack.i.l.bf16 %v7291_v43  ;;  %v1736_v10 = vpack.c.bf16 %v628_v59, %v627_v0  ;;  %v1314_v0 = vld [vmem:[%s13045_s6 + $0x138] sm:$0xff]  ;;  %v1311_v49 = vld [vmem:[%s13045_s6 + $0x120] sm:$0xff]  ;;  %v1312_v43 = vld [vmem:[%s13045_s6 + $0x128] sm:$0xff] }
 0x18e   :  { %7075 = vmatprep.mubr.msk.bf16.mxu1 %vm7767_vm0, %v13521_v55  ;;  %7079 = vmatprep.subr.bf16.mxu0 %v13521_v55  ;;  %v509_v29 = vand.u32 2147483647, %v445_v2  ;;  %v7288_v36 = vunpack.i.h.bf16 %v7286_v32  ;;  %v7287_v21 = vunpack.i.l.bf16 %v7286_v32  ;;  %v632_v39 = vmax.f32 %v568_v1, 0.0 }
 0x18f   :  { %7085 = vmatprep.subr.bf16.mxu1 %v13521_v55  ;;  %v631_v14 = vmax.f32 %v567_v62, 0.0  ;;  %v508_v41 = vand.u32 2147483647, %v444_v16  ;;  %v634_v61 = vmax.f32 %v570_v46, 0.0  ;;  %v633_v6 = vmax.f32 %v569_v22, 0.0 }
 0x190   :  { %v507_v5 = vand.u32 2147483647, %v443_v13  ;;  %v574_v42 = vsub.f32 1.0, %v510_v17  ;;  %v1694_v23 = vsel %vm1659_vm1, %v1309_v40, %v7292_v58  ;;  %v1695_v52 = vsel %vm1659_vm1, %v1310_v9, %v7293_v30  ;;  %v13529_v58 = vld [vmem:[#allocation12_spill] sm:$0xff]  ;;  %v13531_v9 = vld [vmem:[#allocation14_spill] sm:$0xff] }
 0x191   :  { %v573_v8 = vsub.f32 1.0, %v509_v29  ;;  %v448_v34 = vsub.f32 %v13525_v18, %v8372_v33  ;;  %v1692_v25 = vsel %vm1659_vm1, %v1307_v7, %v7287_v21  ;;  %v1693_v54 = vsel %vm1659_vm1, %v1308_v51, %v7288_v36  ;;  %v7306_v29 = vpop.permute.xlu0 %7305  ;;  %v13530_v21 = vld [vmem:[#allocation13_spill] sm:$0xff] }
 0x192   :  { %v1738_v26 = vpack.c.bf16 %v632_v39, %v631_v14  ;;  %v572_v48 = vsub.f32 1.0, %v508_v41  ;;  %v447_v57 = vsub.f32 %v13526_v45, %v8372_v33  ;;  %v450_v56 = vsub.f32 %v13527_v4, %v8372_v33  ;;  %v13532_v41 = vld [vmem:[#allocation15_spill] sm:$0xff] }
 0x193   :  { %7076 = vmatmul.mubr.msk.bf16.vlgmr.msra.gmra.mrb[24].mxu1 %vm1659_vm1, %v1737_v44  ;;  %v1739_v35 = vpack.c.bf16 %v634_v61, %v633_v6  ;;  %v571_v50 = vsub.f32 1.0, %v507_v5  ;;  %v449_v19 = vsub.f32 %v13528_v37, %v8372_v33  ;;  %v1773_v15 = vpack.c.bf16 %v1695_v52, %v1694_v23  ;;  %v1317_v52 = vld [vmem:[%s13045_s6 + $0x150] sm:$0xff] }
 0x194   :  { %7070 = vmatmul.mubr.msk.bf16.vlgmr.msra.gmra.mrb[24].mxu0 %vm1659_vm1, %v1736_v10  ;;  %7086 = vmatpush3.bf16.msra.mxu1 %v1771_v12  ;;  %v638_v38 = vmax.f32 %v574_v42, 0.0  ;;  %v1772_v3 = vpack.c.bf16 %v1693_v54, %v1692_v25  ;;  %v7303_v11 = vunpack.i.h.bf16 %v7301_v24  ;;  %v7302_v60 = vunpack.i.l.bf16 %v7301_v24  ;;  %v7311_v12 = vpop.permute.xlu1 %7310  ;;  %v1315_v54 = vld [vmem:[%s13045_s6 + $0x140] sm:$0xff]  ;;  %v1316_v24 = vld [vmem:[%s13045_s6 + $0x148] sm:$0xff]  ;;  %v13534_v37 = vld [vmem:[#allocation17_spill] sm:$0xff] }
 0x195   :  { %7080 = vmatpush3.bf16.msra.mxu0 %v1770_v28  ;;  %7081 = vmatprep.mubr.msk.bf16.mxu0 %vm7767_vm0, %v13521_v55  ;;  %v637_v27 = vmax.f32 %v573_v8, 0.0  ;;  %v512_v59 = vand.u32 2147483647, %v448_v34  ;;  %v7298_v63 = vunpack.i.h.bf16 %v7296_v53  ;;  %v7297_v47 = vunpack.i.l.bf16 %v7296_v53  ;;  %v1318_v8 = vld [vmem:[%s13045_s6 + $0x158] sm:$0xff] }
 0x196   :  { %7087 = vmatprep.mubr.msk.bf16.mxu1 %vm7767_vm0, %v13521_v55  ;;  %7091 = vmatprep.subr.bf16.mxu0 %v13521_v55  ;;  %v511_v2 = vand.u32 2147483647, %v447_v57  ;;  %v514_v20 = vand.u32 2147483647, %v450_v56  ;;  %v513_v44 = vand.u32 2147483647, %v449_v19  ;;  %v1698_v62 = vsel %vm1659_vm1, %v1313_v31, %v7302_v60  ;;  %v7316_v31 = vpop.permute.xlu0 %7315 }
 0x197   :  { %7097 = vmatprep.subr.bf16.mxu1 %v13521_v55  ;;  %v636_v1 = vmax.f32 %v572_v48, 0.0  ;;  %v1699_v16 = vsel %vm1659_vm1, %v1314_v0, %v7303_v11  ;;  %v635_v32 = vmax.f32 %v571_v50, 0.0  ;;  %v576_v46 = vsub.f32 1.0, %v512_v59  ;;  %v13533_v56 = vld [vmem:[#allocation16_spill] sm:$0xff] }
 0x198   :  { %v1696_v22 = vsel %vm1659_vm1, %v1311_v49, %v7297_v47  ;;  %v1697_v13 = vsel %vm1659_vm1, %v1312_v43, %v7298_v63  ;;  %v1741_v17 = vpack.c.bf16 %v638_v38, %v637_v27  ;;  %v575_v28 = vsub.f32 1.0, %v511_v2  ;;  %v13535_v27 = vld [vmem:[#allocation18_spill] sm:$0xff]  ;;  %v13536_v63 = vld [vmem:[#allocation19_spill] sm:$0xff] }
 0x199   :  { %v578_v30 = vsub.f32 1.0, %v514_v20  ;;  %v452_v10 = vsub.f32 %v13529_v58, %v8372_v33  ;;  %v577_v36 = vsub.f32 1.0, %v513_v44  ;;  %v451_v40 = vsub.f32 %v13530_v21, %v8372_v33  ;;  %v1320_v58 = vld [vmem:[%s13045_s6 + $0x168] sm:$0xff] }
 0x19a   :  { %v454_v39 = vsub.f32 %v13531_v9, %v8372_v33  ;;  %v1775_v14 = vpack.c.bf16 %v1699_v16, %v1698_v62  ;;  %v453_v7 = vsub.f32 %v13532_v41, %v8372_v33  ;;  %v1774_v51 = vpack.c.bf16 %v1697_v13, %v1696_v22  ;;  %v1321_v13 = vld [vmem:[%s13045_s6 + $0x170] sm:$0xff] }
 0x19b   :  { %7088 = vmatmul.mubr.msk.bf16.vlgmr.msra.gmra.mrb[28].mxu1 %vm1659_vm1, %v1739_v35  ;;  %v7313_v61 = vunpack.i.h.bf16 %v7311_v12  ;;  %v7312_v6 = vunpack.i.l.bf16 %v7311_v12  ;;  %v1740_v5 = vpack.c.bf16 %v636_v1, %v635_v32  ;;  %v7308_v42 = vunpack.i.h.bf16 %v7306_v29  ;;  %v1322_v12 = vld [vmem:[%s13045_s6 + $0x178] sm:$0xff] }
 0x19c   :  { %7082 = vmatmul.mubr.msk.bf16.vlgmr.msra.gmra.mrb[28].mxu0 %vm1659_vm1, %v1738_v26  ;;  %7098 = vmatpush3.bf16.msra.mxu1 %v1773_v15  ;;  %v7307_v23 = vunpack.i.l.bf16 %v7306_v29  ;;  %v640_v18 = vmax.f32 %v576_v46, 0.0  ;;  %v639_v34 = vmax.f32 %v575_v28, 0.0  ;;  %v516_v25 = vand.u32 2147483647, %v452_v10  ;;  %v13537_v29 = vld [vmem:[#allocation20_spill] sm:$0xff]  ;;  %v13538_v41 = vld [vmem:[#allocation21_spill] sm:$0xff] }
 0x19d   :  { %7092 = vmatpush3.bf16.msra.mxu0 %v1772_v3  ;;  %7093 = vmatprep.mubr.msk.bf16.mxu0 %vm7767_vm0, %v13521_v55  ;;  %v642_v26 = vmax.f32 %v578_v30, 0.0  ;;  %v641_v48 = vmax.f32 %v577_v36, 0.0  ;;  %v515_v45 = vand.u32 2147483647, %v451_v40  ;;  %v518_v57 = vand.u32 2147483647, %v454_v39  ;;  %v7321_v3 = vpop.permute.xlu1 %7320 }
 0x19e   :  { %7099 = vmatprep.mubr.msk.bf16.mxu1 %vm7767_vm0, %v13521_v55  ;;  %7103 = vmatprep.subr.bf16.mxu0 %v13521_v55  ;;  %v517_v4 = vand.u32 2147483647, %v453_v7  ;;  %v456_v53 = vsub.f32 %v13533_v56, %v8372_v33  ;;  %v1702_v35 = vsel %vm1659_vm1, %v1317_v52, %v7312_v6  ;;  %v1703_v50 = vsel %vm1659_vm1, %v1318_v8, %v7313_v61  ;;  %v1319_v30 = vld [vmem:[%s13045_s6 + $0x160] sm:$0xff]  ;;  %v7326_v8 = vpop.permute.xlu0 %7325 }
 0x19f   :  { %7109 = vmatprep.subr.bf16.mxu1 %v13521_v55  ;;  %v455_v19 = vsub.f32 %v13534_v37, %v8372_v33  ;;  %v1700_v15 = vsel %vm1659_vm1, %v1315_v54, %v7307_v23  ;;  %v1701_v38 = vsel %vm1659_vm1, %v1316_v24, %v7308_v42  ;;  %v1742_v11 = vpack.c.bf16 %v640_v18, %v639_v34  ;;  %v13539_v34 = vld [vmem:[#allocation22_spill] sm:$0xff]  ;;  %v13540_v54 = vld [vmem:[#allocation23_spill] sm:$0xff]  ;;  %v1325_v37 = vld [vmem:[%s13045_s6 + $0x190] sm:$0xff] }
 0x1a0   :  { %v580_v60 = vsub.f32 1.0, %v516_v25  ;;  %v458_v59 = vsub.f32 %v13535_v27, %v8372_v33  ;;  %v457_v47 = vsub.f32 %v13536_v63, %v8372_v33  ;;  %v1743_v0 = vpack.c.bf16 %v642_v26, %v641_v48  ;;  %v1324_v27 = vld [vmem:[%s13045_s6 + $0x188] sm:$0xff] }
 0x1a1   :  { %v579_v2 = vsub.f32 1.0, %v515_v45  ;;  %v582_v20 = vsub.f32 1.0, %v518_v57  ;;  %v1777_v49 = vpack.c.bf16 %v1703_v50, %v1702_v35  ;;  %v581_v43 = vsub.f32 1.0, %v517_v4  ;;  %v7331_v6 = vpop.permute.xlu1 %7330 }
 0x1a2   :  { %v1776_v44 = vpack.c.bf16 %v1701_v38, %v1700_v15  ;;  %v7323_v1 = vunpack.i.h.bf16 %v7321_v3  ;;  %v7322_v62 = vunpack.i.l.bf16 %v7321_v3  ;;  %v520_v16 = vand.u32 2147483647, %v456_v53 }
 0x1a3   :  { %7100 = vmatmul.mubr.msk.bf16.vlgmr.msra.gmra.mrb[32].mxu1 %vm1659_vm1, %v1741_v17  ;;  %v519_v32 = vand.u32 2147483647, %v455_v19  ;;  %v7318_v46 = vunpack.i.h.bf16 %v7316_v31  ;;  %v7317_v22 = vunpack.i.l.bf16 %v7316_v31  ;;  %v522_v17 = vand.u32 2147483647, %v458_v59  ;;  %v1326_v19 = vld [vmem:[%s13045_s6 + $0x198] sm:$0xff]  ;;  %v13541_v31 = vld [vmem:[#allocation24_spill] sm:$0xff] }
 0x1a4   :  { %7094 = vmatmul.mubr.msk.bf16.vlgmr.msra.gmra.mrb[32].mxu0 %vm1659_vm1, %v1740_v5  ;;  %7110 = vmatpush3.bf16.msra.mxu1 %v1775_v14  ;;  %v521_v28 = vand.u32 2147483647, %v457_v47  ;;  %v644_v10 = vmax.f32 %v580_v60, 0.0  ;;  %v460_v36 = vsub.f32 %v13537_v29, %v8372_v33  ;;  %v646_v21 = vmax.f32 %v582_v20, 0.0  ;;  %v1323_v60 = vld [vmem:[%s13045_s6 + $0x180] sm:$0xff] }
 0x1a5   :  { %7104 = vmatpush3.bf16.msra.mxu0 %v1774_v51  ;;  %7105 = vmatprep.mubr.msk.bf16.mxu0 %vm7767_vm0, %v13521_v55  ;;  %v645_v40 = vmax.f32 %v581_v43, 0.0  ;;  %v1706_v9 = vsel %vm1659_vm1, %v1321_v13, %v7322_v62  ;;  %v1707_v39 = vsel %vm1659_vm1, %v1322_v12, %v7323_v1  ;;  %v643_v14 = vmax.f32 %v579_v2, 0.0  ;;  %v13542_v43 = vld [vmem:[#allocation25_spill] sm:$0xff]  ;;  %v13544_v12 = vld [vmem:[#allocation27_spill] sm:$0xff] }
 0x1a6   :  { %7111 = vmatprep.mubr.msk.bf16.mxu1 %vm7767_vm0, %v13521_v55  ;;  %7115 = vmatprep.subr.bf16.mxu0 %v13521_v55  ;;  %v459_v7 = vsub.f32 %v13538_v41, %v8372_v33  ;;  %v1704_v51 = vsel %vm1659_vm1, %v1319_v30, %v7317_v22  ;;  %v1705_v61 = vsel %vm1659_vm1, %v1320_v58, %v7318_v46  ;;  %v584_v5 = vsub.f32 1.0, %v520_v16  ;;  %v7341_v16 = vpop.permute.xlu1 %7340  ;;  %v13543_v22 = vld [vmem:[#allocation26_spill] sm:$0xff] }
 0x1a7   :  { %7121 = vmatprep.subr.bf16.mxu1 %v13521_v55  ;;  %v583_v42 = vsub.f32 1.0, %v519_v32  ;;  %v586_v23 = vsub.f32 1.0, %v522_v17  ;;  %v585_v52 = vsub.f32 1.0, %v521_v28  ;;  %v524_v18 = vand.u32 2147483647, %v460_v36  ;;  %v7336_v28 = vpop.permute.xlu0 %7335 }
 0x1a8   :  { %v462_v25 = vsub.f32 %v13539_v34, %v8372_v33  ;;  %v461_v24 = vsub.f32 %v13540_v54, %v8372_v33  ;;  %v1779_v26 = vpack.c.bf16 %v1707_v39, %v1706_v9  ;;  %v1745_v48 = vpack.c.bf16 %v646_v21, %v645_v40 }
 0x1a9   :  { %v1778_v45 = vpack.c.bf16 %v1705_v61, %v1704_v51  ;;  %v7333_v57 = vunpack.i.h.bf16 %v7331_v6  ;;  %v7332_v4 = vunpack.i.l.bf16 %v7331_v6  ;;  %v1744_v56 = vpack.c.bf16 %v644_v10, %v643_v14  ;;  %v1329_v51 = vld [vmem:[%s13045_s6 + $0x1b0] sm:$0xff]  ;;  %v1330_v61 = vld [vmem:[%s13045_s6 + $0x1b8] sm:$0xff] }
 0x1aa   :  { %v523_v53 = vand.u32 2147483647, %v459_v7  ;;  %v7328_v35 = vunpack.i.h.bf16 %v7326_v8  ;;  %v7327_v50 = vunpack.i.l.bf16 %v7326_v8  ;;  %v648_v15 = vmax.f32 %v584_v5, 0.0 }
 0x1ab   :  { %7112 = vmatmul.mubr.msk.bf16.vlgmr.msra.gmra.mrb[36].mxu1 %vm1659_vm1, %v1743_v0  ;;  %v647_v38 = vmax.f32 %v583_v42, 0.0  ;;  %v650_v3 = vmax.f32 %v586_v23, 0.0  ;;  %v588_v59 = vsub.f32 1.0, %v524_v18  ;;  %v526_v63 = vand.u32 2147483647, %v462_v25  ;;  %v1327_v42 = vld [vmem:[%s13045_s6 + $0x1a0] sm:$0xff] }
 0x1ac   :  { %7106 = vmatmul.mubr.msk.bf16.vlgmr.msra.gmra.mrb[36].mxu0 %vm1659_vm1, %v1742_v11  ;;  %7122 = vmatpush3.bf16.msra.mxu1 %v1777_v49  ;;  %v649_v11 = vmax.f32 %v585_v52, 0.0  ;;  %v525_v47 = vand.u32 2147483647, %v461_v24  ;;  %v464_v0 = vsub.f32 %v13541_v31, %v8372_v33  ;;  %v1710_v2 = vsel %vm1659_vm1, %v1325_v37, %v7332_v4  ;;  %v1328_v23 = vld [vmem:[%s13045_s6 + $0x1a8] sm:$0xff]  ;;  %v7346_v37 = vpop.permute.xlu0 %7345 }
 0x1ad   :  { %7116 = vmatpush3.bf16.msra.mxu0 %v1776_v44  ;;  %7117 = vmatprep.mubr.msk.bf16.mxu0 %vm7767_vm0, %v13521_v55  ;;  %v1711_v20 = vsel %vm1659_vm1, %v1326_v19, %v7333_v57  ;;  %v587_v49 = vsub.f32 1.0, %v523_v53  ;;  %v463_v44 = vsub.f32 %v13542_v43, %v8372_v33  ;;  %v1708_v1 = vsel %vm1659_vm1, %v1323_v60, %v7327_v50  ;;  %v13545_v24 = vld [vmem:[#allocation28_spill] sm:$0xff]  ;;  %v7351_v57 = vpop.permute.xlu1 %7350  ;;  %v1334_v43 = vld [vmem:[%s13045_s6 + $0x1d8] sm:$0xff] }
 0x1ae   :  { %7123 = vmatprep.mubr.msk.bf16.mxu1 %vm7767_vm0, %v13521_v55  ;;  %7127 = vmatprep.subr.bf16.mxu0 %v13521_v55  ;;  %v1709_v62 = vsel %vm1659_vm1, %v1324_v27, %v7328_v35  ;;  %v1746_v32 = vpack.c.bf16 %v648_v15, %v647_v38  ;;  %v1747_v46 = vpack.c.bf16 %v650_v3, %v649_v11  ;;  %v8873_v30 = vmax.f32 %v588_v59, 0.0  ;;  %v13546_v35 = vld [vmem:[#allocation29_spill] sm:$0xff]  ;;  %v13547_v15 = vld [vmem:[#allocation30_spill] sm:$0xff]  ;;  %v13548_v3 = vld [vmem:[#allocation31_spill] sm:$0xff] }
 0x1af   :  { %7133 = vmatprep.subr.bf16.mxu1 %v13521_v55  ;;  %v466_v13 = vsub.f32 %v13543_v22, %v8372_v33  ;;  %v465_v17 = vsub.f32 %v13544_v12, %v8372_v33  ;;  %v590_v58 = vsub.f32 1.0, %v526_v63  ;;  %v589_v10 = vsub.f32 1.0, %v525_v47 }
 0x1b0   :  { %v1781_v29 = vpack.c.bf16 %v1711_v20, %v1710_v2  ;;  %v528_v36 = vand.u32 2147483647, %v464_v0  ;;  %v1780_v21 = vpack.c.bf16 %v1709_v62, %v1708_v1  ;;  %v7343_v40 = vunpack.i.h.bf16 %v7341_v16 }
 0x1b1   :  { %v7342_v9 = vunpack.i.l.bf16 %v7341_v16  ;;  %v651_v39 = vmax.f32 %v587_v49, 0.0  ;;  %v527_v14 = vand.u32 2147483647, %v463_v44  ;;  %v7338_v41 = vunpack.i.h.bf16 %v7336_v28  ;;  %v1333_v49 = vld [vmem:[%s13045_s6 + $0x1d0] sm:$0xff]  ;;  %v1331_v16 = vld [vmem:[%s13045_s6 + $0x1c0] sm:$0xff] }
 0x1b2   :  { %v7337_v7 = vunpack.i.l.bf16 %v7336_v28  ;;  %v530_v6 = vand.u32 2147483647, %v466_v13  ;;  %v529_v5 = vand.u32 2147483647, %v465_v17  ;;  %v654_v52 = vmax.f32 %v590_v58, 0.0 }
 0x1b3   :  { %7124 = vmatmul.mubr.msk.bf16.vlgmr.msra.gmra.mrb[40].mxu1 %vm1659_vm1, %v1745_v48  ;;  %v653_v8 = vmax.f32 %v589_v10, 0.0  ;;  %v592_v18 = vsub.f32 1.0, %v528_v36  ;;  %v1714_v34 = vsel %vm1659_vm1, %v1329_v51, %v7342_v9  ;;  %v1715_v25 = vsel %vm1659_vm1, %v1330_v61, %v7343_v40 }
 0x1b4   :  { %7118 = vmatmul.mubr.msk.bf16.vlgmr.msra.gmra.mrb[40].mxu0 %vm1659_vm1, %v1744_v56  ;;  %7134 = vmatpush3.bf16.msra.mxu1 %v1779_v26  ;;  %v591_v54 = vsub.f32 1.0, %v527_v14  ;;  %v468_v26 = vsub.f32 %v13545_v24, %v8372_v33  ;;  %v1712_v48 = vsel %vm1659_vm1, %v1327_v42, %v7337_v7  ;;  %v1748_v4 = vpack.c.bf16 %v8873_v30, %v651_v39  ;;  %v7361_v30 = vpop.permute.xlu1 %7360  ;;  %v13549_v39 = vld [vmem:[#allocation34_spill] sm:$0xff]  ;;  %v13550_v7 = vld [vmem:[#allocation35_spill] sm:$0xff]  ;;  %v13551_v42 = vld [vmem:[#allocation32_spill] sm:$0xff] }
 0x1b5   :  { %7128 = vmatpush3.bf16.msra.mxu0 %v1778_v45  ;;  %7129 = vmatprep.mubr.msk.bf16.mxu0 %vm7767_vm0, %v13521_v55  ;;  %v1713_v45 = vsel %vm1659_vm1, %v1328_v23, %v7338_v41  ;;  %v594_v56 = vsub.f32 1.0, %v530_v6  ;;  %v593_v53 = vsub.f32 1.0, %v529_v5  ;;  %v467_v50 = vsub.f32 %v13546_v35, %v8372_v33  ;;  %v1335_v24 = vld [vmem:[%s13045_s6 + $0x1e0] sm:$0xff] }
 0x1b6   :  { %7135 = vmatprep.mubr.msk.bf16.mxu1 %vm7767_vm0, %v13521_v55  ;;  %7139 = vmatprep.subr.bf16.mxu0 %v13521_v55  ;;  %v1749_v19 = vpack.c.bf16 %v654_v52, %v653_v8  ;;  %v470_v38 = vsub.f32 %v13547_v15, %v8372_v33  ;;  %v469_v11 = vsub.f32 %v13548_v3, %v8372_v33  ;;  %v656_v27 = vmax.f32 %v592_v18, 0.0  ;;  %v13552_v52 = vld [vmem:[#allocation33_spill] sm:$0xff] }
 0x1b7   :  { %7145 = vmatprep.subr.bf16.mxu1 %v13521_v55  ;;  %v1783_v60 = vpack.c.bf16 %v1715_v25, %v1714_v34  ;;  %v1782_v59 = vpack.c.bf16 %v1713_v45, %v1712_v48  ;;  %v7353_v63 = vunpack.i.h.bf16 %v7351_v57  ;;  %v7352_v47 = vunpack.i.l.bf16 %v7351_v57  ;;  %v1337_v25 = vld [vmem:[%s13045_s6 + $0x1f0] sm:$0xff] }
 0x1b8   :  { %v655_v31 = vmax.f32 %v591_v54, 0.0  ;;  %v532_v0 = vand.u32 2147483647, %v468_v26  ;;  %v7348_v2 = vunpack.i.h.bf16 %v7346_v37  ;;  %v7347_v20 = vunpack.i.l.bf16 %v7346_v37  ;;  %v1338_v54 = vld [vmem:[%s13045_s6 + $0x1f8] sm:$0xff]  ;;  %v1336_v26 = vld [vmem:[%s13045_s6 + $0x1e8] sm:$0xff] }
 0x1b9   :  { %v658_v44 = vmax.f32 %v594_v56, 0.0  ;;  %v657_v1 = vmax.f32 %v593_v53, 0.0  ;;  %v531_v62 = vand.u32 2147483647, %v467_v50  ;;  %v533_v22 = vand.u32 2147483647, %v469_v11 }
 0x1ba   :  { %v1718_v13 = vsel %vm1659_vm1, %v1333_v49, %v7352_v47  ;;  %v1719_v12 = vsel %vm1659_vm1, %v1334_v43, %v7353_v63  ;;  %v1716_v17 = vsel %vm1659_vm1, %v1331_v16, %v7347_v20  ;;  %v1750_v58 = vpack.c.bf16 %v656_v27, %v655_v31  ;;  %v13554_v16 = vld [vmem:[#allocation36_spill] sm:$0xff] }
 0x1bb   :  { %7136 = vmatmul.mubr.msk.bf16.vlgmr.msra.gmra.mrb[44].mxu1 %vm1659_vm1, %v1747_v46  ;;  %v534_v46 = vand.u32 2147483647, %v470_v38  ;;  %v1751_v10 = vpack.c.bf16 %v658_v44, %v657_v1  ;;  %v595_v36 = vsub.f32 1.0, %v531_v62  ;;  %v597_v9 = vsub.f32 1.0, %v533_v22  ;;  %v13553_v1 = vld [vmem:[#allocation37_spill] sm:$0xff] }
 0x1bc   :  { %7130 = vmatmul.mubr.msk.bf16.vlgmr.msra.gmra.mrb[44].mxu0 %vm1659_vm1, %v1746_v32  ;;  %7146 = vmatpush3.bf16.msra.mxu1 %v1781_v29  ;;  %v1332_v32 = vld [vmem:[%s13045_s6 + $0x1c8] sm:$0xff]  ;;  %v596_v29 = vsub.f32 1.0, %v532_v0  ;;  %v474_v14 = vsub.f32 %v13549_v39, %v8372_v33  ;;  %v1785_v41 = vpack.c.bf16 %v1719_v12, %v1718_v13  ;;  %v473_v51 = vsub.f32 %v13550_v7, %v8372_v33  ;;  %s7769_s6 = smov 112  }
 0x1bd   :  { %7140 = vmatpush3.bf16.msra.mxu0 %v1780_v21  ;;  %7141 = vmatprep.mubr.msk.bf16.mxu0 %vm7767_vm0, %v13521_v55  ;;  %v1717_v28 = vsel %vm1659_vm1, %v1332_v32, %v7348_v2  ;;  %v7356_v21 = vpop.permute.xlu0 %7355  ;;  %v598_v40 = vsub.f32 1.0, %v534_v46  ;;  %v7363_v6 = vunpack.i.h.bf16 %v7361_v30  ;;  %v7362_v5 = vunpack.i.l.bf16 %v7361_v30  ;;  %v13555_v46 = vld [vmem:[#allocation39_spill] sm:$0xff] }
 0x1be   :  { %7147 = vmatprep.mubr.msk.bf16.mxu1 %vm7767_vm0, %v13521_v55  ;;  %7151 = vmatprep.subr.bf16.mxu0 %v13521_v55  ;;  %v1784_v61 = vpack.c.bf16 %v1717_v28, %v1716_v17  ;;  %v472_v23 = vsub.f32 %v13551_v42, %v8372_v33  ;;  %v471_v8 = vsub.f32 %v13552_v52, %v8372_v33  ;;  %v7358_v18 = vunpack.i.h.bf16 %v7356_v21  ;;  %v13556_v17 = vld [vmem:[#allocation38_spill] sm:$0xff] }
 0x1bf   :  { %7157 = vmatprep.subr.bf16.mxu1 %v13521_v55  ;;  %v7357_v34 = vunpack.i.l.bf16 %v7356_v21  ;;  %v660_v48 = vmax.f32 %v596_v29, 0.0  ;;  %v659_v45 = vmax.f32 %v595_v36, 0.0  ;;  %v662_v57 = vmax.f32 %v598_v40, 0.0  ;;  %v13558_v40 = vld [vmem:[#allocation40_spill] sm:$0xff] }
 0x1c0   :  { %v538_v56 = vand.u32 2147483647, %v474_v14  ;;  %v537_v53 = vand.u32 2147483647, %v473_v51  ;;  %v1722_v35 = vsel %vm1659_vm1, %v1337_v25, %v7362_v5  ;;  %v1723_v50 = vsel %vm1659_vm1, %v1338_v54, %v7363_v6  ;;  %v13559_v14 = vld [vmem:[#allocation43_spill] sm:$0xff] }
 0x1c1   :  { %v536_v37 = vand.u32 2147483647, %v472_v23  ;;  %v1720_v15 = vsel %vm1659_vm1, %v1335_v24, %v7357_v34  ;;  %v1721_v38 = vsel %vm1659_vm1, %v1336_v26, %v7358_v18  ;;  %v1787_v3 = vpack.c.bf16 %v1723_v50, %v1722_v35  ;;  %v13562_v18 = vld [vmem:[#allocation42_spill] sm:$0xff] }
 0x1c2   :  { %v601_v27 = vsub.f32 1.0, %v537_v53  ;;  %v1752_v63 = vpack.c.bf16 %v660_v48, %v659_v45  ;;  %v1019_v62 = vsub.f32 %v13553_v1, %v8372_v33  ;;  %v1020_v32 = vsub.f32 %v13554_v16, %v8372_v33  ;;  %v13564_v48 = vld [vmem:[#allocation45_spill] sm:$0xff] }
 0x1c3   :  { %7148 = vmatmul.mubr.msk.bf16.vlgmr.msra.gmra.mrb[48].mxu1 %vm1659_vm1, %v1749_v19  ;;  %v535_v19 = vand.u32 2147483647, %v471_v8  ;;  %v600_v47 = vsub.f32 1.0, %v536_v37  ;;  %v1021_v22 = vsub.f32 %v13555_v46, %v8372_v33  ;;  %v1022_v28 = vsub.f32 %v13556_v17, %v8372_v33 }
 0x1c4   :  { %7142 = vmatmul.mubr.msk.bf16.vlgmr.msra.gmra.mrb[48].mxu0 %vm1659_vm1, %v1748_v4  ;;  %7158 = vmatpush3.bf16.msra.mxu1 %v1783_v60  ;;  %v661_v4 = vmax.f32 %v597_v9, 0.0  ;;  %v602_v60 = vsub.f32 1.0, %v538_v56  ;;  %v665_v2 = vmax.f32 %v601_v27, 0.0  ;;  %v1083_v13 = vand.u32 2147483647, %v1019_v62  ;;  %v13567_v27 = vld [vmem:[#allocation47_spill] sm:$0xff] }
 0x1c5   :  { %7152 = vmatpush3.bf16.msra.mxu0 %v1782_v59  ;;  %7153 = vmatprep.mubr.msk.bf16.mxu0 %vm7767_vm0, %v13521_v55  ;;  %v1786_v59 = vpack.c.bf16 %v1721_v38, %v1720_v15  ;;  %v599_v31 = vsub.f32 1.0, %v535_v19  ;;  %v664_v20 = vmax.f32 %v600_v47, 0.0  ;;  %v1084_v12 = vand.u32 2147483647, %v1020_v32  ;;  %v13566_v38 = vld [vmem:[#allocation44_spill] sm:$0xff] }
 0x1c6   :  { %7159 = vmatprep.mubr.msk.bf16.mxu1 %vm7767_vm0, %v13521_v55  ;;  %7163 = vmatprep.subr.bf16.mxu0 %v13521_v55  ;;  %v1753_v11 = vpack.c.bf16 %v662_v57, %v661_v4  ;;  %v666_v0 = vmax.f32 %v602_v60, 0.0  ;;  %v1085_v30 = vand.u32 2147483647, %v1021_v22  ;;  %v1086_v21 = vand.u32 2147483647, %v1022_v28 }
 0x1c7   :  { %7169 = vmatprep.subr.bf16.mxu1 %v13521_v55  ;;  %v663_v49 = vmax.f32 %v599_v31, 0.0  ;;  %v1148_v36 = vsub.f32 1.0, %v1084_v12  ;;  %v1024_v9 = vsub.f32 %v13558_v40, %v8372_v33  ;;  %v1026_v34 = vsub.f32 %v13562_v18, %v8372_v33  ;;  %v13575_v18 = vld [vmem:[#allocation51_spill] sm:$0xff] }
 0x1c8   :  { %v1755_v43 = vpack.c.bf16 %v666_v0, %v665_v2  ;;  %v1149_v39 = vsub.f32 1.0, %v1085_v30  ;;  %v1150_v5 = vsub.f32 1.0, %v1086_v21  ;;  %v1027_v45 = vsub.f32 %v13564_v48, %v8372_v33  ;;  %v13572_v30 = vld [vmem:[#allocation49_spill] sm:$0xff] }
 0x1c9   :  { %v1754_v44 = vpack.c.bf16 %v664_v20, %v663_v49  ;;  %v8990_v6 = vmax.f32 %v1148_v36, 0.0  ;;  %v1088_v42 = vand.u32 2147483647, %v1024_v9 }
 0x1ca   :  { %v8994_v8 = vmax.f32 %v1149_v39, 0.0  ;;  %v9011_v19 = vmax.f32 %v1150_v5, 0.0  ;;  %v1091_v47 = vand.u32 2147483647, %v1027_v45 }
 0x1cb   :  { %7160 = vmatmul.mubr.msk.bf16.vlgmr.msra.gmra.mrb[52].mxu1 %vm1659_vm1, %v1751_v10  ;;  %v13557_v10 = vld [vmem:[#allocation41_spill] sm:$0xff]  ;;  %v1152_v15 = vsub.f32 1.0, %v1088_v42 }
 0x1cc   :  { %7154 = vmatmul.mubr.msk.bf16.vlgmr.msra.gmra.mrb[52].mxu0 %vm1659_vm1, %v1750_v58  ;;  %7170 = vmatpush3.bf16.msra.mxu1 %v1785_v41  ;;  %v1147_v58 = vsub.f32 1.0, %v1083_v13  ;;  %v1023_v29 = vsub.f32 %v13557_v10, %v8372_v33  ;;  %v1025_v41 = vsub.f32 %v13559_v14, %v8372_v33  ;;  %v1155_v28 = vsub.f32 1.0, %v1091_v47  ;;  %v13580_v47 = vld [vmem:[#allocation53_spill] sm:$0xff] }
 0x1cd   :  { %7164 = vmatpush3.bf16.msra.mxu0 %v1784_v61  ;;  %7165 = vmatprep.mubr.msk.bf16.mxu0 %vm7767_vm0, %v13521_v55  ;;  %v9025_v49 = vmax.f32 %v1152_v15, 0.0 }
 0x1ce   :  { %7171 = vmatprep.mubr.msk.bf16.mxu1 %vm7767_vm0, %v13521_v55  ;;  %7175 = vmatprep.subr.bf16.mxu0 %v13521_v55  ;;  %v8986_v7 = vmax.f32 %v1147_v58, 0.0  ;;  %v1087_v51 = vand.u32 2147483647, %v1023_v29  ;;  %v1089_v25 = vand.u32 2147483647, %v1025_v41  ;;  %v1031_v58 = vsub.f32 %v13572_v30, %v8372_v33 }
 0x1cf   :  { %7181 = vmatprep.subr.bf16.mxu1 %v13521_v55 }
 0x1d0   :  { %v1151_v56 = vsub.f32 1.0, %v1087_v51  ;;  %v1153_v60 = vsub.f32 1.0, %v1089_v25  ;;  %v13574_v51 = vld [vmem:[#allocation48_spill] sm:$0xff]  ;;  %v1095_v25 = vand.u32 2147483647, %v1031_v58 }
 0x1d1   :  { %v1032_v5 = vsub.f32 %v13574_v51, %v8372_v33 }
 0x1d2   :  { %v9018_v31 = vmax.f32 %v1151_v56, 0.0  ;;  %v9031_v46 = vmax.f32 %v1153_v60, 0.0 }
 0x1d3   :  { %7172 = vmatmul.mubr.msk.bf16.vlgmr.msra.gmra.mrb[56].mxu1 %vm1659_vm1, %v1753_v11  ;;  %v1090_v11 = vand.u32 2147483647, %v1026_v34  ;;  %v1033_v34 = vsub.f32 %v13575_v18, %v8372_v33  ;;  %v13587_v18 = vld [vmem:[#allocation54_spill] sm:$0xff] }
 0x1d4   :  { %7166 = vmatmul.mubr.msk.bf16.vlgmr.msra.gmra.mrb[56].mxu0 %vm1659_vm1, %v1752_v63  ;;  %7182 = vmatpush3.bf16.msra.mxu1 %v1787_v3  ;;  %v1028_v3 = vsub.f32 %v13566_v38, %v8372_v33  ;;  %v13578_v38 = vld [vmem:[#allocation50_spill] sm:$0xff] }
 0x1d5   :  { %7176 = vmatpush3.bf16.msra.mxu0 %v1786_v59  ;;  %7177 = vmatprep.mubr.msk.bf16.mxu0 %vm7767_vm0, %v13521_v55  ;;  %v1029_v59 = vsub.f32 %v13567_v27, %v8372_v33  ;;  %v1154_v32 = vsub.f32 1.0, %v1090_v11  ;;  %v1097_v11 = vand.u32 2147483647, %v1033_v34  ;;  %v1038_v34 = vsub.f32 %v13587_v18, %v8372_v33 }
 0x1d6   :  { %7183 = vmatprep.mubr.msk.bf16.mxu1 %vm7767_vm0, %v13521_v55 }
 0x1d7   :  { %v1093_v22 = vand.u32 2147483647, %v1029_v59  ;;  %v9049_v42 = vmax.f32 %v1154_v32, 0.0 }
 0x1db   :  { %7184 = vmatmul.mubr.msk.bf16.vlgmr.msra.gmra.mrb[60].mxu1 %vm1659_vm1, %v1755_v43  ;;  %v1092_v43 = vand.u32 2147483647, %v1028_v3  ;;  %v1034_v3 = vsub.f32 %v13578_v38, %v8372_v33 }
 0x1dc   :  { %7178 = vmatmul.mubr.msk.bf16.vlgmr.msra.gmra.mrb[60].mxu0 %vm1659_vm1, %v1754_v44  ;;  %v13569_v44 = vld [vmem:[#allocation46_spill] sm:$0xff] }
 0x1dd   :  { %v1030_v1 = vsub.f32 %v13569_v44, %v8372_v33  ;;  %v1156_v14 = vsub.f32 1.0, %v1092_v43  ;;  %v1098_v58 = vand.u32 2147483647, %v1034_v3 }
 0x1df   :  { %v1094_v41 = vand.u32 2147483647, %v1030_v1  ;;  %v9061_v56 = vmax.f32 %v1156_v14, 0.0 }
 0x236   :  { %v8988_v61 = vpop.f32.mrb[0].mxu1 }
 0x237   :  { %13560 = vst [vmem:[#allocation8_spill] sm:$0xff] %v8988_v61  ;;  %v8992_v23 = vpop.f32.mrb[0].mxu0  ;;  %v7005_v52 = vpop.f32.mrb[1].mxu1  ;;  %v3198_v53 = vmul.f32 %v8988_v61, %v8994_v8 }
 0x238   :  { %13561 = vst [vmem:[#allocation9_spill] sm:$0xff] %v8992_v23  ;;  %v3196_v54 = vmul.f32 %v8992_v23, %v8986_v7  ;;  %v6999_v24 = vpop.f32.mrb[1].mxu0  ;;  %v9000_v26 = vpop.f32.mrb[2].mxu1  ;;  %v1157_v52 = vsub.f32 1.0, %v1093_v22 }
 0x239   :  { %13563 = vst [vmem:[#allocation10_spill] sm:$0xff] %v9000_v26  ;;  %v9004_v57 = vpop.f32.mrb[2].mxu0  ;;  %v7006_v4 = vpop.f32.mrb[3].mxu1  ;;  %v3199_v0 = vmul.f32 %v9000_v26, %v9011_v19  ;;  %v3266_v20 = vsel %vm1659_vm1, %v3198_v53, 0.0  ;;  %v1158_v53 = vsub.f32 1.0, %v1094_v41 }
 0x23a   :  { %13565 = vst [vmem:[#allocation11_spill] sm:$0xff] %v9004_v57  ;;  %v3197_v35 = vmul.f32 %v9004_v57, %v8990_v6  ;;  %v7000_v50 = vpop.f32.mrb[3].mxu0  ;;  %v3260_v37 = vsel %vm1659_vm1, %v3196_v54, 0.0  ;;  %v9053_v54 = vmax.f32 %v1155_v28, 0.0  ;;  %v9065_v15 = vmax.f32 %v1157_v52, 0.0 }
 0x23b   :  { %3261 = vadd.xlane.f32.xlu0 %v3260_v37  ;;  %v3269_v9 = vsel %vm1659_vm1, %v3199_v0, 0.0  ;;  %v1035_v0 = vsub.f32 %v13580_v47, %v8372_v33  ;;  %v9085_v30 = vmax.f32 %v1158_v53, 0.0 }
 0x23c   :  { %v3263_v63 = vsel %vm1659_vm1, %v3197_v35, 0.0  ;;  %v1096_v35 = vand.u32 2147483647, %v1032_v5 }
 0x23d   :  { %3264 = vadd.xlane.f32.xlu1 %v3263_v63  ;;  %v1159_v63 = vsub.f32 1.0, %v1095_v25 }
 0x23e   :  { %v9022_v2 = vpop.f32.mrb[4].mxu1 }
 0x23f   :  { %13568 = vst [vmem:[#allocation12_spill] sm:$0xff] %v9022_v2  ;;  %3267 = vadd.xlane.f32.xlu0 %v3266_v20  ;;  %v9029_v62 = vpop.f32.mrb[4].mxu0  ;;  %v7017_v16 = vpop.f32.mrb[5].mxu1  ;;  %v3202_v36 = vmul.f32 %v9022_v2, %v9031_v46 }
 0x240   :  { %13570 = vst [vmem:[#allocation13_spill] sm:$0xff] %v9029_v62  ;;  %v3200_v13 = vmul.f32 %v9029_v62, %v9018_v31  ;;  %v7011_v12 = vpop.f32.mrb[5].mxu0  ;;  %v9035_v17 = vpop.f32.mrb[6].mxu1 }
 0x241   :  { %13571 = vst [vmem:[#allocation14_spill] sm:$0xff] %v9035_v17  ;;  %v9039_v10 = vpop.f32.mrb[6].mxu0  ;;  %v7018_v29 = vpop.f32.mrb[7].mxu1  ;;  %v3203_v24 = vmul.f32 %v9035_v17, %v9049_v42  ;;  %v3278_v45 = vsel %vm1659_vm1, %v3202_v36, 0.0  ;;  %v13582_v12 = vld [vmem:[#allocation52_spill] sm:$0xff]  ;;  %v13583_v36 = vld [vmem:[#allocation55_spill] sm:$0xff] }
 0x242   :  { %13573 = vst [vmem:[#allocation15_spill] sm:$0xff] %v9039_v10  ;;  %v3201_v21 = vmul.f32 %v9039_v10, %v9025_v49  ;;  %v7012_v40 = vpop.f32.mrb[7].mxu0  ;;  %v3272_v39 = vsel %vm1659_vm1, %v3200_v13, 0.0  ;;  %v1160_v13 = vsub.f32 1.0, %v1096_v35  ;;  %v1036_v28 = vsub.f32 %v13582_v12, %v8372_v33 }
 0x243   :  { %3270 = vadd.xlane.f32.xlu0 %v3269_v9  ;;  %3273 = vadd.xlane.f32.xlu1 %v3272_v39  ;;  %v3281_v32 = vsel %vm1659_vm1, %v3203_v24, 0.0  ;;  %v1161_v29 = vsub.f32 1.0, %v1097_v11  ;;  %v1099_v40 = vand.u32 2147483647, %v1035_v0  ;;  %v9089_v9 = vmax.f32 %v1159_v63, 0.0  ;;  %v13591_v11 = vld [vmem:[#allocation57_spill] sm:$0xff] }
 0x244   :  { %v3275_v4 = vsel %vm1659_vm1, %v3201_v21, 0.0  ;;  %v1037_v21 = vsub.f32 %v13583_v36, %v8372_v33  ;;  %v9097_v5 = vmax.f32 %v1160_v13, 0.0  ;;  %v1100_v52 = vand.u32 2147483647, %v1036_v28 }
 0x245   :  { %13584 = vst [vmem:[#allocation20_spill] sm:$0xff] %v9089_v9  ;;  %v1163_v3 = vsub.f32 1.0, %v1099_v40 }
 0x246   :  { %v9057_v48 = vpop.f32.mrb[8].mxu1  ;;  %13586 = vst [vmem:[#allocation22_spill] sm:$0xff] %v9097_v5  ;;  %v1101_v53 = vand.u32 2147483647, %v1037_v21 }
 0x247   :  { %13576 = vst [vmem:[#allocation16_spill] sm:$0xff] %v9057_v48  ;;  %3279 = vadd.xlane.f32.xlu1 %v3278_v45  ;;  %3276 = vadd.xlane.f32.xlu0 %v3275_v4  ;;  %v9063_v50 = vpop.f32.mrb[8].mxu0  ;;  %v7029_v37 = vpop.f32.mrb[9].mxu1  ;;  %v3206_v44 = vmul.f32 %v9057_v48, %v9065_v15  ;;  %v1162_v45 = vsub.f32 1.0, %v1098_v58  ;;  %v9103_v4 = vmax.f32 %v1161_v29, 0.0  ;;  %v13595_v58 = vld [vmem:[#allocation59_spill] sm:$0xff] }
 0x248   :  { %13577 = vst [vmem:[#allocation17_spill] sm:$0xff] %v9063_v50  ;;  %v3204_v60 = vmul.f32 %v9063_v50, %v9053_v54  ;;  %v7023_v27 = vpop.f32.mrb[9].mxu0  ;;  %v9071_v59 = vpop.f32.mrb[10].mxu1  ;;  %v1165_v28 = vsub.f32 1.0, %v1101_v53  ;;  %v1041_v29 = vsub.f32 %v13595_v58, %v8372_v33  ;;  %v9125_v21 = vmax.f32 %v1163_v3, 0.0 }
 0x249   :  { %13579 = vst [vmem:[#allocation18_spill] sm:$0xff] %v9071_v59  ;;  %v9075_v20 = vpop.f32.mrb[10].mxu0  ;;  %v7030_v43 = vpop.f32.mrb[11].mxu1  ;;  %v3207_v39 = vmul.f32 %v9071_v59, %v9085_v30  ;;  %v3290_v41 = vsel %vm1659_vm1, %v3206_v44, 0.0  ;;  %13589 = vst [vmem:[#allocation24_spill] sm:$0xff] %v9103_v4  ;;  %v9121_v12 = vmax.f32 %v1162_v45, 0.0 }
 0x24a   :  { %13581 = vst [vmem:[#allocation19_spill] sm:$0xff] %v9075_v20  ;;  %v3205_v1 = vmul.f32 %v9075_v20, %v9061_v56  ;;  %v7024_v16 = vpop.f32.mrb[11].mxu0  ;;  %v3284_v22 = vsel %vm1659_vm1, %v3204_v60, 0.0  ;;  %v1039_v60 = vsub.f32 %v13591_v11, %v8372_v33  ;;  %v9137_v53 = vmax.f32 %v1165_v28, 0.0 }
 0x24b   :  { %3282 = vadd.xlane.f32.xlu0 %v3281_v32  ;;  %3285 = vadd.xlane.f32.xlu1 %v3284_v22  ;;  %v3293_v44 = vsel %vm1659_vm1, %v3207_v39, 0.0  ;;  %v1164_v16 = vsub.f32 1.0, %v1100_v52  ;;  %v1102_v32 = vand.u32 2147483647, %v1038_v34  ;;  %v13593_v22 = vld [vmem:[#allocation56_spill] sm:$0xff]  ;;  %13594 = vst [vmem:[#allocation27_spill] sm:$0xff] %v9121_v12 }
 0x24c   :  { %v3287_v51 = vsel %vm1659_vm1, %v3205_v1, 0.0  ;;  %v1040_v13 = vsub.f32 %v13593_v22, %v8372_v33  ;;  %v1103_v36 = vand.u32 2147483647, %v1039_v60  ;;  %v1105_v3 = vand.u32 2147483647, %v1041_v29  ;;  %v13602_v29 = vld [vmem:[#allocation60_spill] sm:$0xff] }
 0x24d   :  { %v9133_v52 = vmax.f32 %v1164_v16, 0.0  ;;  %v1166_v18 = vsub.f32 1.0, %v1102_v32 }
 0x24e   :  { %v9093_v14 = vpop.f32.mrb[12].mxu1  ;;  %v1104_v34 = vand.u32 2147483647, %v1040_v13 }
 0x24f   :  { %13585 = vst [vmem:[#allocation21_spill] sm:$0xff] %v9093_v14  ;;  %3291 = vadd.xlane.f32.xlu1 %v3290_v41  ;;  %3288 = vadd.xlane.f32.xlu0 %v3287_v51  ;;  %v9101_v25 = vpop.f32.mrb[12].mxu0  ;;  %v7041_v24 = vpop.f32.mrb[13].mxu1  ;;  %v3210_v47 = vmul.f32 %v9093_v14, %v9103_v4 }
 0x250   :  { %13588 = vst [vmem:[#allocation23_spill] sm:$0xff] %v9101_v25  ;;  %v3208_v35 = vmul.f32 %v9101_v25, %v9089_v9  ;;  %v7035_v37 = vpop.f32.mrb[13].mxu0  ;;  %v9107_v38 = vpop.f32.mrb[14].mxu1  ;;  %v1168_v58 = vsub.f32 1.0, %v1104_v34  ;;  %v13611_v25 = vld [vmem:[#allocation67_spill] sm:$0xff] }
 0x251   :  { %13590 = vst [vmem:[#allocation25_spill] sm:$0xff] %v9107_v38  ;;  %v9111_v27 = vpop.f32.mrb[14].mxu0  ;;  %v7042_v63 = vpop.f32.mrb[15].mxu1  ;;  %v3211_v40 = vmul.f32 %v9107_v38, %v9121_v12  ;;  %v3302_v41 = vsel %vm1659_vm1, %v3210_v47, 0.0  ;;  %v1167_v47 = vsub.f32 1.0, %v1103_v36  ;;  %v1044_v36 = vsub.f32 %v13602_v29, %v8372_v33 }
 0x252   :  { %13592 = vst [vmem:[#allocation26_spill] sm:$0xff] %v9111_v27  ;;  %v3209_v0 = vmul.f32 %v9111_v27, %v9097_v5  ;;  %v7036_v43 = vpop.f32.mrb[15].mxu0  ;;  %v3296_v1 = vsel %vm1659_vm1, %v3208_v35, 0.0  ;;  %v13598_v35 = vld [vmem:[#allocation58_spill] sm:$0xff]  ;;  %v1049_v59 = vsub.f32 %v13611_v25, %v8372_v33 }
 0x253   :  { %3294 = vadd.xlane.f32.xlu0 %v3293_v44  ;;  %3297 = vadd.xlane.f32.xlu1 %v3296_v1  ;;  %v1042_v37 = vsub.f32 %v13598_v35, %v8372_v33  ;;  %v3305_v13 = vsel %vm1659_vm1, %v3211_v40, 0.0  ;;  %v13603_v35 = vld [vmem:[#allocation63_spill] sm:$0xff] }
 0x254   :  { %v3299_v51 = vsel %vm1659_vm1, %v3209_v0, 0.0  ;;  %v13600_v0 = vld [vmem:[#allocation61_spill] sm:$0xff]  ;;  %v1113_v50 = vand.u32 2147483647, %v1049_v59 }
 0x255   :  { %v1043_v43 = vsub.f32 %v13600_v0, %v8372_v33 }
 0x256   :  { %v9129_v39 = vpop.f32.mrb[16].mxu1  ;;  %v1177_v17 = vsub.f32 1.0, %v1113_v50 }
 0x257   :  { %13596 = vst [vmem:[#allocation28_spill] sm:$0xff] %v9129_v39  ;;  %3303 = vadd.xlane.f32.xlu1 %v3302_v41  ;;  %3300 = vadd.xlane.f32.xlu0 %v3299_v51  ;;  %v9135_v24 = vpop.f32.mrb[16].mxu0  ;;  %v7053_v45 = vpop.f32.mrb[17].mxu1  ;;  %v3214_v16 = vmul.f32 %v9129_v39, %v9137_v53  ;;  %v9157_v41 = vmax.f32 %v1166_v18, 0.0  ;;  %v1106_v51 = vand.u32 2147483647, %v1042_v37 }
 0x258   :  { %13597 = vst [vmem:[#allocation29_spill] sm:$0xff] %v9135_v24  ;;  %v3212_v11 = vmul.f32 %v9135_v24, %v9125_v21  ;;  %v7047_v60 = vpop.f32.mrb[17].mxu0  ;;  %v9143_v63 = vpop.f32.mrb[18].mxu1  ;;  %v1169_v45 = vsub.f32 1.0, %v1105_v3  ;;  %v1107_v0 = vand.u32 2147483647, %v1043_v43 }
 0x259   :  { %13599 = vst [vmem:[#allocation30_spill] sm:$0xff] %v9143_v63  ;;  %v9147_v44 = vpop.f32.mrb[18].mxu0  ;;  %v7054_v1 = vpop.f32.mrb[19].mxu1  ;;  %v1045_v60 = vsub.f32 %v13603_v35, %v8372_v33  ;;  %v3215_v40 = vmul.f32 %v9143_v63, %v9157_v41  ;;  %v3314_v34 = vsel %vm1659_vm1, %v3214_v16, 0.0  ;;  %v1108_v18 = vand.u32 2147483647, %v1044_v36 }
 0x25a   :  { %13601 = vst [vmem:[#allocation31_spill] sm:$0xff] %v9147_v44  ;;  %v3213_v32 = vmul.f32 %v9147_v44, %v9133_v52  ;;  %v7048_v22 = vpop.f32.mrb[19].mxu0  ;;  %v3308_v28 = vsel %vm1659_vm1, %v3212_v11, 0.0  ;;  %v9161_v1 = vmax.f32 %v1167_v47, 0.0  ;;  %v13605_v37 = vld [vmem:[#allocation62_spill] sm:$0xff]  ;;  %v9175_v29 = vmax.f32 %v1169_v45, 0.0 }
 0x25b   :  { %3306 = vadd.xlane.f32.xlu0 %v3305_v13  ;;  %3309 = vadd.xlane.f32.xlu1 %v3308_v28  ;;  %v9169_v13 = vmax.f32 %v1168_v58, 0.0  ;;  %v1046_v3 = vsub.f32 %v13605_v37, %v8372_v33  ;;  %v1170_v28 = vsub.f32 1.0, %v1106_v51  ;;  %v1109_v35 = vand.u32 2147483647, %v1045_v60  ;;  %v13608_v36 = vld [vmem:[#allocation65_spill] sm:$0xff] }
 0x25c   :  { %v3311_v22 = vsel %vm1659_vm1, %v3213_v32, 0.0  ;;  %v1171_v58 = vsub.f32 1.0, %v1107_v0  ;;  %v1047_v38 = vsub.f32 %v13608_v36, %v8372_v33  ;;  %v3317_v60 = vsel %vm1659_vm1, %v3215_v40, 0.0  ;;  %v13610_v0 = vld [vmem:[#allocation64_spill] sm:$0xff] }
 0x25d   :  { %v1110_v14 = vand.u32 2147483647, %v1046_v3  ;;  %v1048_v27 = vsub.f32 %v13610_v0, %v8372_v33  ;;  %v9193_v36 = vmax.f32 %v1170_v28, 0.0 }
 0x25e   :  { %v9165_v11 = vpop.f32.mrb[20].mxu1  ;;  %v1111_v48 = vand.u32 2147483647, %v1047_v38  ;;  %v9197_v20 = vmax.f32 %v1171_v58, 0.0 }
 0x25f   :  { %13604 = vst [vmem:[#allocation34_spill] sm:$0xff] %v9165_v11  ;;  %3315 = vadd.xlane.f32.xlu1 %v3314_v34  ;;  %3312 = vadd.xlane.f32.xlu0 %v3311_v22  ;;  %v9173_v43 = vpop.f32.mrb[20].mxu0  ;;  %v7065_v47 = vpop.f32.mrb[21].mxu1  ;;  %v3218_v22 = vmul.f32 %v9165_v11, %v9175_v29 }
 0x260   :  { %13606 = vst [vmem:[#allocation35_spill] sm:$0xff] %v9173_v43  ;;  %v3216_v16 = vmul.f32 %v9173_v43, %v9161_v1  ;;  %v7059_v55 = vpop.f32.mrb[21].mxu0  ;;  %v9179_v32 = vpop.f32.mrb[22].mxu1  ;;  %v1172_v47 = vsub.f32 1.0, %v1108_v18 }
 0x261   :  { %13607 = vst [vmem:[#allocation32_spill] sm:$0xff] %v9179_v32  ;;  %v9183_v37 = vpop.f32.mrb[22].mxu0  ;;  %v7066_v34 = vpop.f32.mrb[23].mxu1  ;;  %v3219_v40 = vmul.f32 %v9179_v32, %v9193_v36  ;;  %v3326_v18 = vsel %vm1659_vm1, %v3218_v22, 0.0 }
 0x262   :  { %13609 = vst [vmem:[#allocation33_spill] sm:$0xff] %v9183_v37  ;;  %v3217_v51 = vmul.f32 %v9183_v37, %v9169_v13  ;;  %v7060_v45 = vpop.f32.mrb[23].mxu0  ;;  %v3320_v55 = vsel %vm1659_vm1, %v3216_v16, 0.0  ;;  %v1173_v34 = vsub.f32 1.0, %v1109_v35  ;;  %v9207_v28 = vmax.f32 %v1172_v47, 0.0 }
 0x263   :  { %3318 = vadd.xlane.f32.xlu0 %v3317_v60  ;;  %3321 = vadd.xlane.f32.xlu1 %v3320_v55  ;;  %v9205_v45 = vpop.permute.xlu0 %936  ;;  %v1174_v35 = vsub.f32 1.0, %v1110_v14  ;;  %v1112_v60 = vand.u32 2147483647, %v1048_v27  ;;  %v13614_v55 = vld [vmem:[#allocation66_spill] sm:$0xff]  ;;  %v1175_v47 = vsub.f32 1.0, %v1111_v48  ;;  %v13616_v14 = vld [vmem:[#allocation69_spill] sm:$0xff] }
 0x264   :  { %v3323_v3 = vsel %vm1659_vm1, %v3217_v51, 0.0  ;;  %v9211_v58 = vmax.f32 %v1173_v34, 0.0  ;;  %v1050_v0 = vsub.f32 %v13614_v55, %v8372_v33  ;;  %v1051_v27 = vsub.f32 %v13616_v14, %v8372_v33  ;;  %v13618_v48 = vld [vmem:[#allocation68_spill] sm:$0xff] }
 0x265   :  { %v3329_v55 = vsel %vm1659_vm1, %v3219_v40, 0.0  ;;  %v1052_v11 = vsub.f32 %v13618_v48, %v8372_v33  ;;  %v9231_v14 = vmax.f32 %v1174_v35, 0.0 }
 0x266   :  { %v9201_v16 = vpop.f32.mrb[24].mxu1  ;;  %v1115_v2 = vand.u32 2147483647, %v1051_v27 }
 0x267   :  { %13612 = vst [vmem:[#allocation37_spill] sm:$0xff] %v9201_v16  ;;  %3327 = vadd.xlane.f32.xlu1 %v3326_v18  ;;  %3324 = vadd.xlane.f32.xlu0 %v3323_v3  ;;  %v9209_v25 = vpop.f32.mrb[24].mxu0  ;;  %v7077_v38 = vpop.f32.mrb[25].mxu1  ;;  %v3222_v34 = vmul.f32 %v9201_v16, %v9211_v58  ;;  %v13619_v16 = vld [vmem:[#allocation71_spill] sm:$0xff] }
 0x268   :  { %13613 = vst [vmem:[#allocation36_spill] sm:$0xff] %v9209_v25  ;;  %v3220_v22 = vmul.f32 %v9209_v25, %v9197_v20  ;;  %v7071_v51 = vpop.f32.mrb[25].mxu0  ;;  %v9217_v32 = vpop.f32.mrb[26].mxu1  ;;  %v1176_v25 = vsub.f32 1.0, %v1112_v60  ;;  %v1053_v37 = vsub.f32 %v13619_v16, %v8372_v33  ;;  %v13623_v16 = vld [vmem:[#allocation70_spill] sm:$0xff] }
 0x269   :  { %13615 = vst [vmem:[#allocation39_spill] sm:$0xff] %v9217_v32  ;;  %v9221_v18 = vpop.f32.mrb[26].mxu0  ;;  %v7078_v3 = vpop.f32.mrb[27].mxu1  ;;  %v3223_v40 = vmul.f32 %v9217_v32, %v9231_v14  ;;  %v1054_v27 = vsub.f32 %v13623_v16, %v8372_v33  ;;  %v9253_v32 = vmax.f32 %v1177_v17, 0.0 }
 0x26a   :  { %13617 = vst [vmem:[#allocation38_spill] sm:$0xff] %v9221_v18  ;;  %v3221_v38 = vmul.f32 %v9221_v18, %v9207_v28  ;;  %v7072_v59 = vpop.f32.mrb[27].mxu0  ;;  %v3332_v51 = vsel %vm1659_vm1, %v3220_v22, 0.0  ;;  %v1114_v3 = vand.u32 2147483647, %v1050_v0  ;;  %v9235_v18 = vpop.permute.xlu1 %940  ;;  %v3338_v22 = vsel %vm1659_vm1, %v3222_v34, 0.0 }
 0x26b   :  { %3330 = vadd.xlane.f32.xlu0 %v3329_v55  ;;  %3333 = vadd.xlane.f32.xlu1 %v3332_v51  ;;  %v9237_v59 = vmax.f32 %v1175_v47, 0.0  ;;  %v9245_v55 = vpop.permute.xlu0 %947  ;;  %v9247_v50 = vmax.f32 %v1176_v25, 0.0  ;;  %v1116_v0 = vand.u32 2147483647, %v1052_v11  ;;  %13625 = vst [vmem:[#allocation45_spill] sm:$0xff] %v9253_v32  ;;  %v1179_v25 = vsub.f32 1.0, %v1115_v2 }
 0x26c   :  { %v3335_v35 = vsel %vm1659_vm1, %v3221_v38, 0.0  ;;  %v1178_v48 = vsub.f32 1.0, %v1114_v3  ;;  %v1117_v43 = vand.u32 2147483647, %v1053_v37  ;;  %v13627_v11 = vld [vmem:[#allocation73_spill] sm:$0xff]  ;;  %v3341_v3 = vsel %vm1659_vm1, %v3223_v40, 0.0 }
 0x26d   :  { %13620 = vst [vmem:[#allocation41_spill] sm:$0xff] %v9237_v59  ;;  %13622 = vst [vmem:[#allocation43_spill] sm:$0xff] %v9247_v50  ;;  %v1055_v63 = vsub.f32 %v13627_v11, %v8372_v33  ;;  %v13629_v2 = vld [vmem:[#allocation72_spill] sm:$0xff] }
 0x26e   :  { %v9241_v60 = vpop.f32.mrb[28].mxu1  ;;  %v1056_v62 = vsub.f32 %v13629_v2, %v8372_v33  ;;  %v9271_v11 = vmax.f32 %v1178_v48, 0.0  ;;  %v13634_v2 = vld [vmem:[#allocation75_spill] sm:$0xff] }
 0x26f   :  { %13621 = vst [vmem:[#allocation40_spill] sm:$0xff] %v9241_v60  ;;  %3339 = vadd.xlane.f32.xlu1 %v3338_v22  ;;  %3336 = vadd.xlane.f32.xlu0 %v3335_v35  ;;  %v9251_v47 = vpop.f32.mrb[28].mxu0  ;;  %v7089_v51 = vpop.f32.mrb[29].mxu1  ;;  %v3226_v35 = vmul.f32 %v9241_v60, %v9253_v32  ;;  %v13631_v60 = vld [vmem:[#allocation76_spill] sm:$0xff]  ;;  %v1119_v44 = vand.u32 2147483647, %v1055_v63 }
 0x270   :  { %13624 = vst [vmem:[#allocation42_spill] sm:$0xff] %v9251_v47  ;;  %v3224_v34 = vmul.f32 %v9251_v47, %v9237_v59  ;;  %v7083_v38 = vpop.f32.mrb[29].mxu0  ;;  %v9257_v10 = vpop.f32.mrb[30].mxu1  ;;  %v1118_v47 = vand.u32 2147483647, %v1054_v27  ;;  %13630 = vst [vmem:[#allocation46_spill] sm:$0xff] %v9271_v11  ;;  %v1057_v39 = vsub.f32 %v13631_v60, %v8372_v33 }
 0x271   :  { %13626 = vst [vmem:[#allocation44_spill] sm:$0xff] %v9257_v10  ;;  %v9261_v16 = vpop.f32.mrb[30].mxu0  ;;  %v7090_v22 = vpop.f32.mrb[31].mxu1  ;;  %v1180_v38 = vsub.f32 1.0, %v1116_v0  ;;  %v3227_v40 = vmul.f32 %v9257_v10, %v9271_v11  ;;  %v3350_v27 = vsel %vm1659_vm1, %v3226_v35, 0.0  ;;  %v1058_v10 = vsub.f32 %v13634_v2, %v8372_v33 }
 0x272   :  { %13628 = vst [vmem:[#allocation47_spill] sm:$0xff] %v9261_v16  ;;  %v3225_v17 = vmul.f32 %v9261_v16, %v9247_v50  ;;  %v7084_v37 = vpop.f32.mrb[31].mxu0  ;;  %v3344_v51 = vsel %vm1659_vm1, %v3224_v34, 0.0  ;;  %v1181_v22 = vsub.f32 1.0, %v1117_v43  ;;  %v9275_v16 = vpop.permute.xlu1 %951  ;;  %v1120_v60 = vand.u32 2147483647, %v1056_v62 }
 0x273   :  { %3342 = vadd.xlane.f32.xlu0 %v3341_v3  ;;  %3345 = vadd.xlane.f32.xlu1 %v3344_v51  ;;  %v9277_v37 = vmax.f32 %v1179_v25, 0.0  ;;  %v9285_v48 = vpop.permute.xlu0 %958  ;;  %v9287_v43 = vmax.f32 %v1180_v38, 0.0  ;;  %v1182_v3 = vsub.f32 1.0, %v1118_v47  ;;  %v1121_v24 = vand.u32 2147483647, %v1057_v39  ;;  %v13636_v62 = vld [vmem:[#allocation78_spill] sm:$0xff] }
 0x274   :  { %v3347_v34 = vsel %vm1659_vm1, %v3225_v17, 0.0  ;;  %v9291_v51 = vmax.f32 %v1181_v22, 0.0  ;;  %v1183_v38 = vsub.f32 1.0, %v1119_v44  ;;  %v1059_v47 = vsub.f32 %v13636_v62, %v8372_v33  ;;  %v13638_v44 = vld [vmem:[#allocation77_spill] sm:$0xff] }
 0x275   :  { %v3353_v2 = vsel %vm1659_vm1, %v3227_v40, 0.0  ;;  %v1060_v61 = vsub.f32 %v13638_v44, %v8372_v33  ;;  %v9311_v62 = vmax.f32 %v1182_v3, 0.0  ;;  %v1185_v57 = vsub.f32 1.0, %v1121_v24 }
 0x276   :  { %v9281_v0 = vpop.f32.mrb[32].mxu1  ;;  %v1123_v32 = vand.u32 2147483647, %v1059_v47 }
 0x277   :  { %13632 = vst [vmem:[#allocation49_spill] sm:$0xff] %v9281_v0  ;;  %3351 = vadd.xlane.f32.xlu1 %v3350_v27  ;;  %3348 = vadd.xlane.f32.xlu0 %v3347_v34  ;;  %v9289_v63 = vpop.f32.mrb[32].mxu0  ;;  %v7101_v25 = vpop.f32.mrb[33].mxu1  ;;  %v3230_v22 = vmul.f32 %v9281_v0, %v9291_v51  ;;  %v13639_v0 = vld [vmem:[#allocation80_spill] sm:$0xff]  ;;  %v1124_v24 = vand.u32 2147483647, %v1060_v61 }
 0x278   :  { %13633 = vst [vmem:[#allocation48_spill] sm:$0xff] %v9289_v63  ;;  %v3228_v35 = vmul.f32 %v9289_v63, %v9277_v37  ;;  %v7095_v17 = vpop.f32.mrb[33].mxu0  ;;  %v9297_v26 = vpop.f32.mrb[34].mxu1  ;;  %v1184_v63 = vsub.f32 1.0, %v1120_v60  ;;  %v1061_v23 = vsub.f32 %v13639_v0, %v8372_v33  ;;  %v13641_v0 = vld [vmem:[#allocation79_spill] sm:$0xff]  ;;  %v13645_v61 = vld [vmem:[#allocation82_spill] sm:$0xff] }
 0x279   :  { %13635 = vst [vmem:[#allocation51_spill] sm:$0xff] %v9297_v26  ;;  %v9301_v27 = vpop.f32.mrb[34].mxu0  ;;  %v7102_v34 = vpop.f32.mrb[35].mxu1  ;;  %v3231_v40 = vmul.f32 %v9297_v26, %v9311_v62  ;;  %v1062_v47 = vsub.f32 %v13641_v0, %v8372_v33  ;;  %v9333_v26 = vmax.f32 %v1185_v57, 0.0  ;;  %v1063_v12 = vsub.f32 %v13645_v61, %v8372_v33 }
 0x27a   :  { %13637 = vst [vmem:[#allocation50_spill] sm:$0xff] %v9301_v27  ;;  %v3229_v25 = vmul.f32 %v9301_v27, %v9287_v43  ;;  %v7096_v39 = vpop.f32.mrb[35].mxu0  ;;  %v3356_v17 = vsel %vm1659_vm1, %v3228_v35, 0.0  ;;  %v1122_v34 = vand.u32 2147483647, %v1058_v10  ;;  %v9315_v27 = vpop.permute.xlu1 %962  ;;  %v3362_v35 = vsel %vm1659_vm1, %v3230_v22, 0.0 }
 0x27b   :  { %3354 = vadd.xlane.f32.xlu0 %v3353_v2  ;;  %3357 = vadd.xlane.f32.xlu1 %v3356_v17  ;;  %v9317_v39 = vmax.f32 %v1183_v38, 0.0  ;;  %v9325_v2 = vpop.permute.xlu0 %969  ;;  %v9327_v10 = vmax.f32 %v1184_v63, 0.0  ;;  %13643 = vst [vmem:[#allocation55_spill] sm:$0xff] %v9333_v26  ;;  %v1125_v11 = vand.u32 2147483647, %v1061_v23  ;;  %v1187_v63 = vsub.f32 1.0, %v1123_v32 }
 0x27c   :  { %v3359_v3 = vsel %vm1659_vm1, %v3229_v25, 0.0  ;;  %v1186_v44 = vsub.f32 1.0, %v1122_v34  ;;  %v3365_v34 = vsel %vm1659_vm1, %v3231_v40, 0.0  ;;  %v13647_v32 = vld [vmem:[#allocation81_spill] sm:$0xff]  ;;  %v1127_v9 = vand.u32 2147483647, %v1063_v12 }
 0x27d   :  { %v1064_v59 = vsub.f32 %v13647_v32, %v8372_v33  ;;  %v13653_v32 = vld [vmem:[#allocation83_spill] sm:$0xff] }
 0x27e   :  { %v9321_v60 = vpop.f32.mrb[36].mxu1  ;;  %v9351_v61 = vmax.f32 %v1186_v44, 0.0 }
 0x27f   :  { %13640 = vst [vmem:[#allocation53_spill] sm:$0xff] %v9321_v60  ;;  %3363 = vadd.xlane.f32.xlu1 %v3362_v35  ;;  %3360 = vadd.xlane.f32.xlu0 %v3359_v3  ;;  %v9331_v38 = vpop.f32.mrb[36].mxu0  ;;  %v7113_v17 = vpop.f32.mrb[37].mxu1  ;;  %v3234_v3 = vmul.f32 %v9321_v60, %v9333_v26  ;;  %v13648_v60 = vld [vmem:[#allocation84_spill] sm:$0xff] }
 0x280   :  { %13642 = vst [vmem:[#allocation52_spill] sm:$0xff] %v9331_v38  ;;  %v3232_v22 = vmul.f32 %v9331_v38, %v9317_v39  ;;  %v7107_v25 = vpop.f32.mrb[37].mxu0  ;;  %v9337_v4 = vpop.f32.mrb[38].mxu1  ;;  %v1126_v38 = vand.u32 2147483647, %v1062_v47  ;;  %v1065_v50 = vsub.f32 %v13648_v60, %v8372_v33 }
 0x281   :  { %13644 = vst [vmem:[#allocation54_spill] sm:$0xff] %v9337_v4  ;;  %v9341_v0 = vpop.f32.mrb[38].mxu0  ;;  %v7114_v35 = vpop.f32.mrb[39].mxu1  ;;  %v1188_v25 = vsub.f32 1.0, %v1124_v24  ;;  %v3235_v40 = vmul.f32 %v9337_v4, %v9351_v61  ;;  %v1128_v60 = vand.u32 2147483647, %v1064_v59  ;;  %v1066_v4 = vsub.f32 %v13653_v32, %v8372_v33 }
 0x282   :  { %13646 = vst [vmem:[#allocation57_spill] sm:$0xff] %v9341_v0  ;;  %v3233_v57 = vmul.f32 %v9341_v0, %v9327_v10  ;;  %v7108_v23 = vpop.f32.mrb[39].mxu0  ;;  %v3368_v17 = vsel %vm1659_vm1, %v3232_v22, 0.0  ;;  %v1189_v35 = vsub.f32 1.0, %v1125_v11  ;;  %v9355_v0 = vpop.permute.xlu1 %973  ;;  %v3374_v22 = vsel %vm1659_vm1, %v3234_v3, 0.0 }
 0x283   :  { %3366 = vadd.xlane.f32.xlu0 %v3365_v34  ;;  %3369 = vadd.xlane.f32.xlu1 %v3368_v17  ;;  %v9357_v23 = vmax.f32 %v1187_v63, 0.0  ;;  %v9361_v24 = vpop.permute.xlu0 %980  ;;  %v9367_v11 = vmax.f32 %v1188_v25, 0.0  ;;  %v1190_v34 = vsub.f32 1.0, %v1126_v38  ;;  %v1129_v5 = vand.u32 2147483647, %v1065_v50 }
 0x284   :  { %v3371_v44 = vsel %vm1659_vm1, %v3233_v57, 0.0  ;;  %v9371_v17 = vmax.f32 %v1189_v35, 0.0  ;;  %v1191_v25 = vsub.f32 1.0, %v1127_v9  ;;  %v1067_v59 = vsub.f32 %v9205_v45, %v8372_v33 }
 0x285   :  { %13649 = vst [vmem:[#allocation56_spill] sm:$0xff] %v9357_v23  ;;  %v1192_v32 = vsub.f32 1.0, %v1128_v60  ;;  %v1068_v9 = vsub.f32 %v9235_v18, %v8372_v33  ;;  %v9391_v45 = vmax.f32 %v1190_v34, 0.0 }
 0x286   :  { %v9363_v47 = vpop.f32.mrb[40].mxu1  ;;  %13652 = vst [vmem:[#allocation61_spill] sm:$0xff] %v9371_v17 }
 0x287   :  { %13650 = vst [vmem:[#allocation59_spill] sm:$0xff] %v9363_v47  ;;  %3375 = vadd.xlane.f32.xlu1 %v3374_v22  ;;  %3372 = vadd.xlane.f32.xlu0 %v3371_v44  ;;  %v9369_v12 = vpop.f32.mrb[40].mxu0  ;;  %v7125_v63 = vpop.f32.mrb[41].mxu1  ;;  %v3238_v35 = vmul.f32 %v9363_v47, %v9371_v17  ;;  %13656 = vst [vmem:[#allocation62_spill] sm:$0xff] %v9391_v45  ;;  %v1069_v47 = vsub.f32 %v9245_v55, %v8372_v33  ;;  %v1131_v17 = vand.u32 2147483647, %v1067_v59 }
 0x288   :  { %13651 = vst [vmem:[#allocation58_spill] sm:$0xff] %v9369_v12  ;;  %v3236_v3 = vmul.f32 %v9369_v12, %v9357_v23  ;;  %v7119_v26 = vpop.f32.mrb[41].mxu0  ;;  %v9377_v57 = vpop.f32.mrb[42].mxu1  ;;  %v3377_v63 = vsel %vm1659_vm1, %v3235_v40, 0.0  ;;  %v1193_v12 = vsub.f32 1.0, %v1129_v5  ;;  %v9407_v5 = vmax.f32 %v1192_v32, 0.0 }
 0x289   :  { %13654 = vst [vmem:[#allocation60_spill] sm:$0xff] %v9377_v57  ;;  %v9381_v38 = vpop.f32.mrb[42].mxu0  ;;  %v7126_v22 = vpop.f32.mrb[43].mxu1  ;;  %v3239_v60 = vmul.f32 %v9377_v57, %v9391_v45  ;;  %v3386_v34 = vsel %vm1659_vm1, %v3238_v35, 0.0  ;;  %v1070_v55 = vsub.f32 %v9275_v16, %v8372_v33  ;;  %v1133_v57 = vand.u32 2147483647, %v1069_v47 }
 0x28a   :  { %13655 = vst [vmem:[#allocation63_spill] sm:$0xff] %v9381_v38  ;;  %v3237_v44 = vmul.f32 %v9381_v38, %v9367_v11  ;;  %v7120_v50 = vpop.f32.mrb[43].mxu0  ;;  %v3380_v26 = vsel %vm1659_vm1, %v3236_v3, 0.0  ;;  %v1130_v22 = vand.u32 2147483647, %v1066_v4  ;;  %v9395_v38 = vpop.permute.xlu1 %984  ;;  %13659 = vst [vmem:[#allocation67_spill] sm:$0xff] %v9407_v5 }
 0x28b   :  { %3378 = vadd.xlane.f32.xlu0 %v3377_v63  ;;  %3381 = vadd.xlane.f32.xlu1 %v3380_v26  ;;  %v9397_v50 = vmax.f32 %v1191_v25, 0.0  ;;  %v9399_v40 = vpop.permute.xlu0 %991  ;;  %v1132_v3 = vand.u32 2147483647, %v1068_v9  ;;  %v9413_v26 = vmax.f32 %v1193_v12, 0.0  ;;  %v1195_v32 = vsub.f32 1.0, %v1131_v17 }
 0x28c   :  { %v3383_v4 = vsel %vm1659_vm1, %v3237_v44, 0.0  ;;  %v1194_v63 = vsub.f32 1.0, %v1130_v22  ;;  %v1071_v9 = vsub.f32 %v9285_v48, %v8372_v33  ;;  %v3389_v22 = vsel %vm1659_vm1, %v3239_v60, 0.0 }
 0x28d   :  { %13657 = vst [vmem:[#allocation65_spill] sm:$0xff] %v9397_v50  ;;  %13661 = vst [vmem:[#allocation69_spill] sm:$0xff] %v9413_v26  ;;  %v1072_v17 = vsub.f32 %v9315_v27, %v8372_v33 }
 0x28e   :  { %v9403_v18 = vpop.f32.mrb[44].mxu1  ;;  %v9431_v48 = vmax.f32 %v1194_v63, 0.0 }
 0x28f   :  { %13658 = vst [vmem:[#allocation64_spill] sm:$0xff] %v9403_v18  ;;  %3387 = vadd.xlane.f32.xlu1 %v3386_v34  ;;  %3384 = vadd.xlane.f32.xlu0 %v3383_v4  ;;  %v9411_v25 = vpop.f32.mrb[44].mxu0  ;;  %v7137_v59 = vpop.f32.mrb[45].mxu1  ;;  %v3242_v4 = vmul.f32 %v9403_v18, %v9413_v26  ;;  %v1073_v18 = vsub.f32 %v9325_v2, %v8372_v33  ;;  %v1135_v26 = vand.u32 2147483647, %v1071_v9 }
 0x290   :  { %13660 = vst [vmem:[#allocation66_spill] sm:$0xff] %v9411_v25  ;;  %v3240_v35 = vmul.f32 %v9411_v25, %v9397_v50  ;;  %v7131_v45 = vpop.f32.mrb[45].mxu0  ;;  %v9417_v44 = vpop.f32.mrb[46].mxu1  ;;  %v1196_v59 = vsub.f32 1.0, %v1132_v3  ;;  %v1134_v25 = vand.u32 2147483647, %v1070_v55 }
 0x291   :  { %13662 = vst [vmem:[#allocation68_spill] sm:$0xff] %v9417_v44  ;;  %v9421_v16 = vpop.f32.mrb[46].mxu0  ;;  %v7138_v34 = vpop.f32.mrb[47].mxu1  ;;  %13664 = vst [vmem:[#allocation70_spill] sm:$0xff] %v9431_v48  ;;  %v3243_v3 = vmul.f32 %v9417_v44, %v9431_v48  ;;  %v3398_v27 = vsel %vm1659_vm1, %v3242_v4, 0.0 }
 0x292   :  { %13663 = vst [vmem:[#allocation71_spill] sm:$0xff] %v9421_v16  ;;  %v3241_v12 = vmul.f32 %v9421_v16, %v9407_v5  ;;  %v7132_v47 = vpop.f32.mrb[47].mxu0  ;;  %v3392_v45 = vsel %vm1659_vm1, %v3240_v35, 0.0  ;;  %v1197_v34 = vsub.f32 1.0, %v1133_v57  ;;  %v9435_v16 = vpop.permute.xlu1 %995  ;;  %v9447_v57 = vmax.f32 %v1196_v59, 0.0 }
 0x293   :  { %3390 = vadd.xlane.f32.xlu0 %v3389_v22  ;;  %3393 = vadd.xlane.f32.xlu1 %v3392_v45  ;;  %v9437_v47 = vmax.f32 %v1195_v32, 0.0  ;;  %v9439_v60 = vpop.permute.xlu0 %1002  ;;  %v1198_v35 = vsub.f32 1.0, %v1134_v25  ;;  %v1136_v2 = vand.u32 2147483647, %v1072_v17  ;;  %v1074_v45 = vsub.f32 %v9355_v0, %v8372_v33 }
 0x294   :  { %v3395_v63 = vsel %vm1659_vm1, %v3241_v12, 0.0  ;;  %v9451_v22 = vmax.f32 %v1197_v34, 0.0  ;;  %v1137_v44 = vand.u32 2147483647, %v1073_v18  ;;  %v1199_v59 = vsub.f32 1.0, %v1135_v26 }
 0x295   :  { %v1075_v25 = vsub.f32 %v9361_v24, %v8372_v33  ;;  %v1076_v26 = vsub.f32 %v9395_v38, %v8372_v33  ;;  %v9471_v24 = vmax.f32 %v1198_v35, 0.0 }
 0x296   :  { %v9443_v55 = vpop.f32.mrb[48].mxu1 }
 0x297   :  { %13665 = vst [vmem:[#allocation73_spill] sm:$0xff] %v9443_v55  ;;  %3399 = vadd.xlane.f32.xlu1 %v3398_v27  ;;  %3396 = vadd.xlane.f32.xlu0 %v3395_v63  ;;  %v9449_v9 = vpop.f32.mrb[48].mxu0  ;;  %v7149_v32 = vpop.f32.mrb[49].mxu1  ;;  %v3246_v34 = vmul.f32 %v9443_v55, %v9451_v22  ;;  %v3401_v63 = vsel %vm1659_vm1, %v3243_v3, 0.0  ;;  %v1077_v55 = vsub.f32 %v9399_v40, %v8372_v33  ;;  %v1139_v50 = vand.u32 2147483647, %v1075_v25 }
 0x298   :  { %13666 = vst [vmem:[#allocation72_spill] sm:$0xff] %v9449_v9  ;;  %v3244_v4 = vmul.f32 %v9449_v9, %v9437_v47  ;;  %v7143_v48 = vpop.f32.mrb[49].mxu0  ;;  %v9457_v12 = vpop.f32.mrb[50].mxu1  ;;  %v1200_v32 = vsub.f32 1.0, %v1136_v2  ;;  %v1201_v9 = vsub.f32 1.0, %v1137_v44  ;;  %v1078_v40 = vsub.f32 %v9435_v16, %v8372_v33 }
 0x299   :  { %13667 = vst [vmem:[#allocation76_spill] sm:$0xff] %v9457_v12  ;;  %v9461_v17 = vpop.f32.mrb[50].mxu0  ;;  %v7150_v27 = vpop.f32.mrb[51].mxu1  ;;  %v3247_v2 = vmul.f32 %v9457_v12, %v9471_v24  ;;  %v3410_v38 = vsel %vm1659_vm1, %v3246_v34, 0.0  ;;  %v1140_v44 = vand.u32 2147483647, %v1076_v26  ;;  %v1079_v26 = vsub.f32 %v9439_v60, %v8372_v33 }
 0x29a   :  { %13668 = vst [vmem:[#allocation75_spill] sm:$0xff] %v9461_v17  ;;  %v3245_v0 = vmul.f32 %v9461_v17, %v9447_v57  ;;  %v7144_v18 = vpop.f32.mrb[51].mxu0  ;;  %v3404_v48 = vsel %vm1659_vm1, %v3244_v4, 0.0  ;;  %v1138_v27 = vand.u32 2147483647, %v1074_v45  ;;  %v1007_v17 = vpop.permute.xlu1 %1006 }
 0x29b   :  { %3402 = vadd.xlane.f32.xlu0 %v3401_v63  ;;  %3405 = vadd.xlane.f32.xlu1 %v3404_v48  ;;  %v9475_v18 = vmax.f32 %v1199_v59, 0.0  ;;  %v1014_v3 = vpop.permute.xlu0 %1013  ;;  %v9483_v63 = vmax.f32 %v1200_v32, 0.0  ;;  %v9489_v48 = vmax.f32 %v1201_v9, 0.0  ;;  %v1141_v12 = vand.u32 2147483647, %v1077_v55 }
 0x29c   :  { %v3407_v35 = vsel %vm1659_vm1, %v3245_v0, 0.0  ;;  %v1202_v25 = vsub.f32 1.0, %v1138_v27  ;;  %v1203_v32 = vsub.f32 1.0, %v1139_v50  ;;  %v3413_v27 = vsel %vm1659_vm1, %v3247_v2, 0.0 }
 0x29d   :  { %13669 = vst [vmem:[#allocation78_spill] sm:$0xff] %v9475_v18  ;;  %13672 = vst [vmem:[#allocation79_spill] sm:$0xff] %v9489_v48  ;;  %v1080_v50 = vsub.f32 %v1007_v17, %v8372_v33 }
 0x29e   :  { %v9479_v4 = vpop.f32.mrb[52].mxu1  ;;  %v9506_v60 = vmax.f32 %v1202_v25, 0.0  ;;  %v9509_v23 = vmax.f32 %v1203_v32, 0.0 }
 0x29f   :  { %13670 = vst [vmem:[#allocation77_spill] sm:$0xff] %v9479_v4  ;;  %3411 = vadd.xlane.f32.xlu1 %v3410_v38  ;;  %3408 = vadd.xlane.f32.xlu0 %v3407_v35  ;;  %v9487_v45 = vpop.f32.mrb[52].mxu0  ;;  %v7161_v59 = vpop.f32.mrb[53].mxu1  ;;  %v3250_v35 = vmul.f32 %v9479_v4, %v9489_v48  ;;  %v1143_v4 = vand.u32 2147483647, %v1079_v26 }
 0x2a0   :  { %13671 = vst [vmem:[#allocation80_spill] sm:$0xff] %v9487_v45  ;;  %v3248_v34 = vmul.f32 %v9487_v45, %v9475_v18  ;;  %v7155_v5 = vpop.f32.mrb[53].mxu0  ;;  %v9493_v0 = vpop.f32.mrb[54].mxu1  ;;  %v1204_v59 = vsub.f32 1.0, %v1140_v44  ;;  %v1142_v45 = vand.u32 2147483647, %v1078_v40  ;;  %v1081_v18 = vsub.f32 %v1014_v3, %v8372_v33 }
 0x2a1   :  { %13673 = vst [vmem:[#allocation82_spill] sm:$0xff] %v9493_v0  ;;  %v9497_v16 = vpop.f32.mrb[54].mxu0  ;;  %v7162_v38 = vpop.f32.mrb[55].mxu1  ;;  %v3251_v2 = vmul.f32 %v9493_v0, %v9506_v60  ;;  %v3422_v44 = vsel %vm1659_vm1, %v3250_v35, 0.0 }
 0x2a2   :  { %v3249_v9 = vmul.f32 %v9497_v16, %v9483_v63  ;;  %v7156_v55 = vpop.f32.mrb[55].mxu0  ;;  %v3416_v5 = vsel %vm1659_vm1, %v3248_v34, 0.0  ;;  %v1205_v38 = vsub.f32 1.0, %v1141_v12  ;;  %v1018_v48 = vpop.permute.xlu1 %1017  ;;  %v9517_v40 = vmax.f32 %v1204_v59, 0.0 }
 0x2a3   :  { %3414 = vadd.xlane.f32.xlu0 %v3413_v27  ;;  %3417 = vadd.xlane.f32.xlu1 %v3416_v5  ;;  %v1206_v25 = vsub.f32 1.0, %v1142_v45  ;;  %v1144_v34 = vand.u32 2147483647, %v1080_v50  ;;  %v1082_v26 = vsub.f32 %v1018_v48, %v8372_v33  ;;  %v1145_v27 = vand.u32 2147483647, %v1081_v18 }
 0x2a4   :  { %v3419_v17 = vsel %vm1659_vm1, %v3249_v9, 0.0  ;;  %v9521_v32 = vmax.f32 %v1205_v38, 0.0  ;;  %v1207_v9 = vsub.f32 1.0, %v1143_v4  ;;  %v3425_v33 = vsel %vm1659_vm1, %v3251_v2, 0.0 }
 0x2a5   :  { %v9536_v48 = vmax.f32 %v1206_v25, 0.0  ;;  %v1146_v4 = vand.u32 2147483647, %v1082_v26 }
 0x2a6   :  { %v9513_v55 = vpop.f32.mrb[56].mxu1 }
 0x2a7   :  { %13674 = vst [vmem:[#allocation81_spill] sm:$0xff] %v9513_v55  ;;  %3423 = vadd.xlane.f32.xlu1 %v3422_v44  ;;  %3420 = vadd.xlane.f32.xlu0 %v3419_v17  ;;  %v9519_v12 = vpop.f32.mrb[56].mxu0  ;;  %v7173_v3 = vpop.f32.mrb[57].mxu1  ;;  %v3254_v50 = vmul.f32 %v9513_v55, %v9521_v32  ;;  %v1208_v17 = vsub.f32 1.0, %v1144_v34  ;;  %v1210_v34 = vsub.f32 1.0, %v1146_v4 }
 0x2a8   :  { %v3252_v5 = vmul.f32 %v9519_v12, %v9509_v23  ;;  %v7167_v35 = vpop.f32.mrb[57].mxu0  ;;  %v9526_v0 = vpop.f32.mrb[58].mxu1  ;;  %v1209_v3 = vsub.f32 1.0, %v1145_v27 }
 0x2a9   :  { %13675 = vst [vmem:[#allocation84_spill] sm:$0xff] %v9526_v0  ;;  %v9528_v59 = vpop.f32.mrb[58].mxu0  ;;  %v7174_v45 = vpop.f32.mrb[59].mxu1  ;;  %v9538_v35 = vmax.f32 %v1207_v9, 0.0 }
 0x2aa   :  { %v3253_v38 = vmul.f32 %v9528_v59, %v9517_v40  ;;  %v7168_v44 = vpop.f32.mrb[59].mxu0  ;;  %v3428_v18 = vsel %vm1659_vm1, %v3252_v5, 0.0  ;;  %v3255_v45 = vmul.f32 %v9526_v0, %v9536_v48  ;;  %v9550_v26 = vmax.f32 %v1209_v3, 0.0 }
 0x2ab   :  { %3426 = vadd.xlane.f32.xlu0 %v3425_v33  ;;  %3429 = vadd.xlane.f32.xlu1 %v3428_v18  ;;  %v3434_v44 = vsel %vm1659_vm1, %v3254_v50, 0.0  ;;  %v9548_v33 = vmax.f32 %v1208_v17, 0.0 }
 0x2ac   :  { %v3431_v2 = vsel %vm1659_vm1, %v3253_v38, 0.0  ;;  %v3437_v4 = vsel %vm1659_vm1, %v3255_v45, 0.0 }
 0x2ae   :  { %v9542_v55 = vpop.f32.mrb[60].mxu1 }
 0x2af   :  { %13676 = vst [vmem:[#allocation83_spill] sm:$0xff] %v9542_v55  ;;  %3435 = vadd.xlane.f32.xlu1 %v3434_v44  ;;  %3432 = vadd.xlane.f32.xlu0 %v3431_v2  ;;  %v9546_v5 = vpop.f32.mrb[60].mxu0  ;;  %v7185_v25 = vpop.f32.mrb[61].mxu1  ;;  %v3258_v38 = vmul.f32 %v9542_v55, %v9550_v26  ;;  %v9564_v2 = vmax.f32 %v1210_v34, 0.0 }
 0x2b0   :  { %v3256_v27 = vmul.f32 %v9546_v5, %v9538_v35  ;;  %v7179_v9 = vpop.f32.mrb[61].mxu0  ;;  %v9554_v18 = vpop.f32.mrb[62].mxu1 }
 0x2b1   :  { %v9556_v0 = vpop.f32.mrb[62].mxu0  ;;  %v7186_v50 = vpop.f32.mrb[63].mxu1  ;;  %v3259_v25 = vmul.f32 %v9554_v18, %v9564_v2  ;;  %v3446_v9 = vsel %vm1659_vm1, %v3258_v38, 0.0 }
 0x2b2   :  { %v3257_v44 = vmul.f32 %v9556_v0, %v9548_v33  ;;  %v7180_v17 = vpop.f32.mrb[63].mxu0  ;;  %v3440_v3 = vsel %vm1659_vm1, %v3256_v27, 0.0 }
 0x2b3   :  { %3438 = vadd.xlane.f32.xlu0 %v3437_v4  ;;  %3441 = vadd.xlane.f32.xlu1 %v3440_v3  ;;  %v3449_v55 = vsel %vm1659_vm1, %v3259_v25, 0.0  ;;  %v13717_v25 = vld [vmem:[#allocation22_spill] sm:$0xff] }
 0x2b4   :  { %v3443_v50 = vsel %vm1659_vm1, %v3257_v44, 0.0 }
 0x2b7   :  { %3447 = vadd.xlane.f32.xlu1 %v3446_v9  ;;  %3444 = vadd.xlane.f32.xlu0 %v3443_v50  ;;  %v13721_v50 = vld [vmem:[#allocation43_spill] sm:$0xff] }
 0x2bb   :  { %3450 = vadd.xlane.f32.xlu0 %v3449_v55 }
 0x2c8   :  { %v9571_v17 = vpop.xlane.xlu0 %3261  ;;  %3516 = vrot.lane.b32.xlu1 %v8986_v7, %s7768_s21 }
 0x2c9   :  { %13677 = vst [vmem:[#allocation85_spill] sm:$0xff] %v9571_v17  ;;  %vm5052_vm2 = vcmp.ge.f32.partialorder %v9571_v17, 0.0 }
 0x2ca   :  { %v9575_v45 = vpop.xlane.xlu1 %3264 }
 0x2cb   :  { %13678 = vst [vmem:[#allocation86_spill] sm:$0xff] %v9575_v45  ;;  %vm5053_vm5 = vcmp.ge.f32.partialorder %v9575_v45, 0.0 }
 0x2cc   :  { %v9577_v34 = vpop.xlane.xlu0 %3267  ;;  %3520 = vrot.lane.b32.xlu1 %v8994_v8, %s7768_s21 }
 0x2cd   :  { %13679 = vst [vmem:[#allocation87_spill] sm:$0xff] %v9577_v34 }
 0x2d0   :  { %v9581_v27 = vpop.xlane.xlu0 %3270  ;;  %v9583_v38 = vpop.xlane.xlu1 %3273  ;;  %3522 = vrot.lane.b32.xlu1 %v9011_v19, %s7768_s21 }
 0x2d1   :  { %13680 = vst [vmem:[#allocation88_spill] sm:$0xff] %v9581_v27  ;;  %13681 = vst [vmem:[#allocation89_spill] sm:$0xff] %v9583_v38  ;;  %3518 = vrot.lane.b32.xlu0 %v8990_v6, %s7768_s21 }
 0x2d4   :  { %v9589_v55 = vpop.xlane.xlu1 %3279  ;;  %v9591_v7 = vpop.xlane.xlu0 %3276  ;;  %3526 = vrot.lane.b32.xlu1 %v9025_v49, %s7768_s21 }
 0x2d5   :  { %13682 = vst [vmem:[#allocation90_spill] sm:$0xff] %v9589_v55  ;;  %13683 = vst [vmem:[#allocation91_spill] sm:$0xff] %v9591_v7  ;;  %3524 = vrot.lane.b32.xlu0 %v9018_v31, %s7768_s21 }
 0x2d8   :  { %v9597_v8 = vpop.xlane.xlu0 %3282  ;;  %v9599_v44 = vpop.xlane.xlu1 %3285  ;;  %3530 = vrot.lane.b32.xlu1 %v9049_v42, %s7768_s21 }
 0x2d9   :  { %13684 = vst [vmem:[#allocation92_spill] sm:$0xff] %v9597_v8  ;;  %13685 = vst [vmem:[#allocation93_spill] sm:$0xff] %v9599_v44  ;;  %3528 = vrot.lane.b32.xlu0 %v9031_v46, %s7768_s21  ;;  %vm5059_vm8 = vcmp.ge.f32.partialorder %v9597_v8, 0.0 }
 0x2dc   :  { %v9605_v6 = vpop.xlane.xlu1 %3291  ;;  %v9607_v19 = vpop.xlane.xlu0 %3288  ;;  %3534 = vrot.lane.b32.xlu1 %v9061_v56, %s7768_s21 }
 0x2dd   :  { %13686 = vst [vmem:[#allocation94_spill] sm:$0xff] %v9605_v6  ;;  %13687 = vst [vmem:[#allocation95_spill] sm:$0xff] %v9607_v19  ;;  %3532 = vrot.lane.b32.xlu0 %v9053_v54, %s7768_s21 }
 0x2e0   :  { %v9613_v31 = vpop.xlane.xlu0 %3294  ;;  %v9615_v49 = vpop.xlane.xlu1 %3297  ;;  %3550 = vrot.lane.b32.xlu1 %v9133_v52, %s7768_s21 }
 0x2e1   :  { %13688 = vst [vmem:[#allocation96_spill] sm:$0xff] %v9613_v31  ;;  %13689 = vst [vmem:[#allocation97_spill] sm:$0xff] %v9615_v49  ;;  %3548 = vrot.lane.b32.xlu0 %v9125_v21, %s7768_s21 }
 0x2e4   :  { %v9621_v46 = vpop.xlane.xlu1 %3303  ;;  %v9623_v42 = vpop.xlane.xlu0 %3300  ;;  %3554 = vrot.lane.b32.xlu1 %v9157_v41, %s7768_s21 }
 0x2e5   :  { %13690 = vst [vmem:[#allocation98_spill] sm:$0xff] %v9621_v46  ;;  %13691 = vst [vmem:[#allocation99_spill] sm:$0xff] %v9623_v42  ;;  %3552 = vrot.lane.b32.xlu0 %v9137_v53, %s7768_s21 }
 0x2e8   :  { %v9629_v54 = vpop.xlane.xlu0 %3306  ;;  %v9631_v56 = vpop.xlane.xlu1 %3309  ;;  %3558 = vrot.lane.b32.xlu1 %v9169_v13, %s7768_s21 }
 0x2e9   :  { %13692 = vst [vmem:[#allocation100_spill] sm:$0xff] %v9629_v54  ;;  %13693 = vst [vmem:[#allocation101_spill] sm:$0xff] %v9631_v56  ;;  %3556 = vrot.lane.b32.xlu0 %v9161_v1, %s7768_s21 }
 0x2ec   :  { %v9637_v21 = vpop.xlane.xlu1 %3315  ;;  %v9639_v52 = vpop.xlane.xlu0 %3312  ;;  %3562 = vrot.lane.b32.xlu1 %v9193_v36, %s7768_s21 }
 0x2ed   :  { %13694 = vst [vmem:[#allocation102_spill] sm:$0xff] %v9637_v21  ;;  %13695 = vst [vmem:[#allocation103_spill] sm:$0xff] %v9639_v52  ;;  %3560 = vrot.lane.b32.xlu0 %v9175_v29, %s7768_s21  ;;  %vm5070_vm12 = vcmp.ge.f32.partialorder %v9637_v21, 0.0 }
 0x2f0   :  { %v9645_v53 = vpop.xlane.xlu0 %3318  ;;  %v9647_v41 = vpop.xlane.xlu1 %3321  ;;  %3582 = vrot.lane.b32.xlu1 %v9287_v43, %s7768_s21 }
 0x2f1   :  { %13696 = vst [vmem:[#allocation104_spill] sm:$0xff] %v9645_v53  ;;  %13697 = vst [vmem:[#allocation105_spill] sm:$0xff] %v9647_v41  ;;  %3580 = vrot.lane.b32.xlu0 %v9277_v37, %s7768_s21  ;;  %vm5071_vm11 = vcmp.ge.f32.partialorder %v9645_v53, 0.0 }
 0x2f4   :  { %v9653_v1 = vpop.xlane.xlu1 %3327  ;;  %v9655_v13 = vpop.xlane.xlu0 %3324  ;;  %3586 = vrot.lane.b32.xlu1 %v9311_v62, %s7768_s21 }
 0x2f5   :  { %13698 = vst [vmem:[#allocation106_spill] sm:$0xff] %v9653_v1  ;;  %13699 = vst [vmem:[#allocation107_spill] sm:$0xff] %v9655_v13  ;;  %3584 = vrot.lane.b32.xlu0 %v9291_v51, %s7768_s21 }
 0x2f8   :  { %v9661_v29 = vpop.xlane.xlu0 %3330  ;;  %v9663_v36 = vpop.xlane.xlu1 %3333  ;;  %3566 = vrot.lane.b32.xlu1 %v9207_v28, %s7768_s21 }
 0x2f9   :  { %13700 = vst [vmem:[#allocation108_spill] sm:$0xff] %v9661_v29  ;;  %13701 = vst [vmem:[#allocation109_spill] sm:$0xff] %v9663_v36  ;;  %3564 = vrot.lane.b32.xlu0 %v9197_v20, %s7768_s21 }
 0x2fc   :  { %v9669_v37 = vpop.xlane.xlu1 %3339  ;;  %v9671_v43 = vpop.xlane.xlu0 %3336  ;;  %3590 = vrot.lane.b32.xlu1 %v9327_v10, %s7768_s21 }
 0x2fd   :  { %13702 = vst [vmem:[#allocation110_spill] sm:$0xff] %v9669_v37  ;;  %13703 = vst [vmem:[#allocation111_spill] sm:$0xff] %v9671_v43  ;;  %3588 = vrot.lane.b32.xlu0 %v9317_v39, %s7768_s21 }
 0x300   :  { %v9677_v51 = vpop.xlane.xlu0 %3342  ;;  %v9679_v62 = vpop.xlane.xlu1 %3345  ;;  %3538 = vrot.lane.b32.xlu1 %v9085_v30, %s7768_s21  ;;  %v13710_v30 = vld [vmem:[#allocation55_spill] sm:$0xff] }
 0x301   :  { %13704 = vst [vmem:[#allocation112_spill] sm:$0xff] %v9677_v51  ;;  %13705 = vst [vmem:[#allocation113_spill] sm:$0xff] %v9679_v62  ;;  %3536 = vrot.lane.b32.xlu0 %v9065_v15, %s7768_s21 }
 0x304   :  { %v9685_v20 = vpop.xlane.xlu1 %3351  ;;  %v9687_v28 = vpop.xlane.xlu0 %3348  ;;  %3570 = vrot.lane.b32.xlu1 %v9231_v14, %s7768_s21 }
 0x305   :  { %13706 = vst [vmem:[#allocation114_spill] sm:$0xff] %v9685_v20  ;;  %13707 = vst [vmem:[#allocation115_spill] sm:$0xff] %v9687_v28  ;;  %3568 = vrot.lane.b32.xlu0 %v9211_v58, %s7768_s21 }
 0x308   :  { %v9693_v39 = vpop.xlane.xlu0 %3354  ;;  %v9695_v10 = vpop.xlane.xlu1 %3357  ;;  %3594 = vrot.lane.b32.xlu1 %v9351_v61, %s7768_s21 }
 0x309   :  { %13708 = vst [vmem:[#allocation116_spill] sm:$0xff] %v9693_v39  ;;  %13709 = vst [vmem:[#allocation117_spill] sm:$0xff] %v9695_v10  ;;  %3592 = vrot.lane.b32.xlu0 %v13710_v30, %s7768_s21 }
 0x30c   :  { %v9701_v15 = vpop.xlane.xlu1 %3363  ;;  %v9703_v4 = vpop.xlane.xlu0 %3360  ;;  %3614 = vrot.lane.b32.xlu1 %v9447_v57, %s7768_s21  ;;  %v13718_v57 = vld [vmem:[#allocation20_spill] sm:$0xff] }
 0x30d   :  { %13711 = vst [vmem:[#allocation55_spill] sm:$0xff] %v9701_v15  ;;  %13712 = vst [vmem:[#allocation118_spill] sm:$0xff] %v9703_v4  ;;  %3612 = vrot.lane.b32.xlu0 %v9437_v47, %s7768_s21 }
 0x310   :  { %v9709_v58 = vpop.xlane.xlu0 %3366  ;;  %v9711_v14 = vpop.xlane.xlu1 %3369  ;;  %3618 = vrot.lane.b32.xlu1 %v9471_v24, %s7768_s21  ;;  %v13722_v24 = vld [vmem:[#allocation41_spill] sm:$0xff] }
 0x311   :  { %13713 = vst [vmem:[#allocation119_spill] sm:$0xff] %v9709_v58  ;;  %13714 = vst [vmem:[#allocation120_spill] sm:$0xff] %v9711_v14  ;;  %3616 = vrot.lane.b32.xlu0 %v9451_v22, %s7768_s21  ;;  %v13808_v58 = vld [vmem:[#allocation77_spill] sm:$0xff] }
 0x314   :  { %v9717_v61 = vpop.xlane.xlu1 %3375  ;;  %v9719_v3 = vpop.xlane.xlu0 %3372  ;;  %3542 = vrot.lane.b32.xlu1 %v13717_v25, %s7768_s21  ;;  %v13725_v25 = vld [vmem:[#allocation56_spill] sm:$0xff] }
 0x315   :  { %13715 = vst [vmem:[#allocation121_spill] sm:$0xff] %v9717_v61  ;;  %13716 = vst [vmem:[#allocation122_spill] sm:$0xff] %v9719_v3  ;;  %3540 = vrot.lane.b32.xlu0 %v13718_v57, %s7768_s21  ;;  %v13767_v3 = vld [vmem:[#allocation30_spill] sm:$0xff] }
 0x318   :  { %v9725_v47 = vpop.xlane.xlu0 %3378  ;;  %v9727_v9 = vpop.xlane.xlu1 %3381  ;;  %3574 = vrot.lane.b32.xlu1 %v13721_v50, %s7768_s21  ;;  %v13728_v50 = vld [vmem:[#allocation78_spill] sm:$0xff] }
 0x319   :  { %13719 = vst [vmem:[#allocation22_spill] sm:$0xff] %v9725_v47  ;;  %13720 = vst [vmem:[#allocation20_spill] sm:$0xff] %v9727_v9  ;;  %3572 = vrot.lane.b32.xlu0 %v13722_v24, %s7768_s21 }
 0x31c   :  { %v9733_v22 = vpop.xlane.xlu1 %3387  ;;  %v9735_v30 = vpop.xlane.xlu0 %3384  ;;  %3598 = vrot.lane.b32.xlu1 %v9367_v11, %s7768_s21  ;;  %v13732_v11 = vld [vmem:[#allocation24_spill] sm:$0xff] }
 0x31d   :  { %13723 = vst [vmem:[#allocation43_spill] sm:$0xff] %v9733_v22  ;;  %13724 = vst [vmem:[#allocation41_spill] sm:$0xff] %v9735_v30  ;;  %3596 = vrot.lane.b32.xlu0 %v13725_v25, %s7768_s21  ;;  %v13731_v30 = vld [vmem:[#allocation27_spill] sm:$0xff] }
 0x320   :  { %v9741_v57 = vpop.xlane.xlu0 %3390  ;;  %v9743_v47 = vpop.xlane.xlu1 %3393  ;;  %3622 = vrot.lane.b32.xlu1 %v9483_v63, %s7768_s21  ;;  %v13736_v63 = vld [vmem:[#allocation45_spill] sm:$0xff] }
 0x321   :  { %13726 = vst [vmem:[#allocation56_spill] sm:$0xff] %v9741_v57  ;;  %13727 = vst [vmem:[#allocation123_spill] sm:$0xff] %v9743_v47  ;;  %3620 = vrot.lane.b32.xlu0 %v13728_v50, %s7768_s21  ;;  %v13735_v47 = vld [vmem:[#allocation46_spill] sm:$0xff] }
 0x324   :  { %v9749_v24 = vpop.xlane.xlu1 %3399  ;;  %v9751_v22 = vpop.xlane.xlu0 %3396  ;;  %3546 = vrot.lane.b32.xlu1 %v13731_v30, %s7768_s21  ;;  %v13740_v30 = vld [vmem:[#allocation61_spill] sm:$0xff] }
 0x325   :  { %13729 = vst [vmem:[#allocation78_spill] sm:$0xff] %v9749_v24  ;;  %13730 = vst [vmem:[#allocation124_spill] sm:$0xff] %v9751_v22  ;;  %3544 = vrot.lane.b32.xlu0 %v13732_v11, %s7768_s21  ;;  %v13739_v22 = vld [vmem:[#allocation62_spill] sm:$0xff] }
 0x328   :  { %v9757_v25 = vpop.xlane.xlu0 %3402  ;;  %v9759_v57 = vpop.xlane.xlu1 %3405  ;;  %3578 = vrot.lane.b32.xlu1 %v13735_v47, %s7768_s21  ;;  %v13743_v47 = vld [vmem:[#allocation79_spill] sm:$0xff] }
 0x329   :  { %13733 = vst [vmem:[#allocation27_spill] sm:$0xff] %v9757_v25  ;;  %13734 = vst [vmem:[#allocation24_spill] sm:$0xff] %v9759_v57  ;;  %3576 = vrot.lane.b32.xlu0 %v13736_v63, %s7768_s21  ;;  %v13765_v57 = vld [vmem:[#allocation28_spill] sm:$0xff] }
 0x32c   :  { %v9765_v50 = vpop.xlane.xlu1 %3411  ;;  %v9767_v24 = vpop.xlane.xlu0 %3408  ;;  %3602 = vrot.lane.b32.xlu1 %v13739_v22, %s7768_s21  ;;  %v13747_v22 = vld [vmem:[#allocation65_spill] sm:$0xff] }
 0x32d   :  { %13737 = vst [vmem:[#allocation46_spill] sm:$0xff] %v9765_v50  ;;  %13738 = vst [vmem:[#allocation45_spill] sm:$0xff] %v9767_v24  ;;  %3600 = vrot.lane.b32.xlu0 %v13740_v30, %s7768_s21  ;;  %v13746_v24 = vld [vmem:[#allocation67_spill] sm:$0xff] }
 0x330   :  { %v9773_v11 = vpop.xlane.xlu0 %3414  ;;  %v9775_v25 = vpop.xlane.xlu1 %3417  ;;  %3626 = vrot.lane.b32.xlu1 %v9506_v60, %s7768_s21 }
 0x331   :  { %13741 = vst [vmem:[#allocation62_spill] sm:$0xff] %v9773_v11  ;;  %13742 = vst [vmem:[#allocation61_spill] sm:$0xff] %v9775_v25  ;;  %3624 = vrot.lane.b32.xlu0 %v13743_v47, %s7768_s21 }
 0x334   :  { %v9781_v63 = vpop.xlane.xlu1 %3423  ;;  %v9783_v50 = vpop.xlane.xlu0 %3420  ;;  %3606 = vrot.lane.b32.xlu1 %v13746_v24, %s7768_s21  ;;  %v13753_v24 = vld [vmem:[#allocation69_spill] sm:$0xff] }
 0x335   :  { %13744 = vst [vmem:[#allocation79_spill] sm:$0xff] %v9781_v63  ;;  %13745 = vst [vmem:[#allocation125_spill] sm:$0xff] %v9783_v50  ;;  %3604 = vrot.lane.b32.xlu0 %v13747_v22, %s7768_s21  ;;  %v13752_v50 = vld [vmem:[#allocation70_spill] sm:$0xff]  ;;  %v13763_v63 = vld [vmem:[#allocation29_spill] sm:$0xff] }
 0x338   :  { %v9789_v30 = vpop.xlane.xlu0 %3426  ;;  %v9791_v11 = vpop.xlane.xlu1 %3429  ;;  %3630 = vrot.lane.b32.xlu1 %v9517_v40, %s7768_s21 }
 0x339   :  { %13748 = vst [vmem:[#allocation67_spill] sm:$0xff] %v9789_v30  ;;  %13749 = vst [vmem:[#allocation65_spill] sm:$0xff] %v9791_v11  ;;  %3628 = vrot.lane.b32.xlu0 %v9509_v23, %s7768_s21 }
 0x33c   :  { %v9797_v60 = vpop.xlane.xlu1 %3435  ;;  %v9799_v47 = vpop.xlane.xlu0 %3432  ;;  %3610 = vrot.lane.b32.xlu1 %v13752_v50, %s7768_s21 }
 0x33d   :  { %13750 = vst [vmem:[#allocation126_spill] sm:$0xff] %v9797_v60  ;;  %13751 = vst [vmem:[#allocation127_spill] sm:$0xff] %v9799_v47  ;;  %3608 = vrot.lane.b32.xlu0 %v13753_v24, %s7768_s21  ;;  %v13762_v60 = vld [vmem:[#allocation10_spill] sm:$0xff] }
 0x340   :  { %v9805_v22 = vpop.xlane.xlu0 %3438  ;;  %3634 = vrot.lane.b32.xlu1 %v9536_v48, %s7768_s21  ;;  %v9809_v11 = vpop.xlane.xlu1 %3441 }
 0x341   :  { %13754 = vst [vmem:[#allocation70_spill] sm:$0xff] %v9805_v22  ;;  %13755 = vst [vmem:[#allocation69_spill] sm:$0xff] %v9809_v11  ;;  %3632 = vrot.lane.b32.xlu0 %v9521_v32, %s7768_s21  ;;  %v13759_v32 = vld [vmem:[#allocation9_spill] sm:$0xff]  ;;  %v13760_v22 = vld [vmem:[#allocation11_spill] sm:$0xff] }
 0x344   :  { %3638 = vrot.lane.b32.xlu1 %v9548_v33, %s7768_s21  ;;  %v9815_v23 = vpop.xlane.xlu1 %3447  ;;  %v9817_v40 = vpop.xlane.xlu0 %3444 }
 0x345   :  { %13756 = vst [vmem:[#allocation128_spill] sm:$0xff] %v9815_v23  ;;  %13757 = vst [vmem:[#allocation129_spill] sm:$0xff] %v9817_v40  ;;  %3636 = vrot.lane.b32.xlu0 %v9538_v35, %s7768_s21  ;;  %v13761_v40 = vld [vmem:[#allocation8_spill] sm:$0xff] }
 0x348   :  { %3642 = vrot.lane.b32.xlu1 %v9564_v2, %s7768_s21  ;;  %v3517_v50 = vpop.permute.xlu1 %3516  ;;  %v9823_v48 = vpop.xlane.xlu0 %3450 }
 0x349   :  { %13758 = vst [vmem:[#allocation130_spill] sm:$0xff] %v9823_v48  ;;  %3640 = vrot.lane.b32.xlu0 %v9550_v26, %s7768_s21  ;;  %v3708_v24 = vmul.f32 %v3517_v50, %v13759_v32 }
 0x34c   :  { %v3521_v11 = vpop.permute.xlu1 %3520  ;;  %v3519_v33 = vpop.permute.xlu0 %3518 }
 0x34d   :  { %v3709_v23 = vmul.f32 %v3519_v33, %v13760_v22  ;;  %3836 = vrot.lane.b32.xlu0 %v3708_v24, %s7769_s6  ;;  %v3710_v35 = vmul.f32 %v3521_v11, %v13761_v40  ;;  %v13764_v40 = vld [vmem:[#allocation31_spill] sm:$0xff] }
 0x34f   :  { %3838 = vrot.lane.b32.xlu1 %v3709_v23, %s7769_s6 }
 0x350   :  { %v3523_v2 = vpop.permute.xlu1 %3522  ;;  %v3525_v47 = vpop.permute.xlu0 %3524 }
 0x351   :  { %v3711_v48 = vmul.f32 %v3523_v2, %v13762_v60  ;;  %3840 = vrot.lane.b32.xlu0 %v3710_v35, %s7769_s6  ;;  %v13766_v2 = vld [vmem:[#allocation13_spill] sm:$0xff] }
 0x352   :  { %v3712_v9 = vmul.f32 %v3525_v47, %v13766_v2  ;;  %v13771_v2 = vld [vmem:[#allocation33_spill] sm:$0xff] }
 0x353   :  { %3842 = vrot.lane.b32.xlu1 %v3711_v48, %s7769_s6 }
 0x354   :  { %v3527_v26 = vpop.permute.xlu1 %3526  ;;  %v3529_v50 = vpop.permute.xlu0 %3528 }
 0x358   :  { %v3531_v32 = vpop.permute.xlu1 %3530  ;;  %v3533_v30 = vpop.permute.xlu0 %3532 }
 0x35c   :  { %v3535_v22 = vpop.permute.xlu1 %3534  ;;  %v3549_v33 = vpop.permute.xlu0 %3548 }
 0x35d   :  { %v3724_v24 = vmul.f32 %v3549_v33, %v13763_v63 }
 0x35f   :  { %3868 = vrot.lane.b32.xlu0 %v3724_v24, %s7769_s6  ;;  %v13768_v24 = vld [vmem:[#allocation15_spill] sm:$0xff] }
 0x360   :  { %v3551_v11 = vpop.permute.xlu1 %3550  ;;  %v3553_v23 = vpop.permute.xlu0 %3552 }
 0x361   :  { %v3725_v25 = vmul.f32 %v3551_v11, %v13764_v40  ;;  %v3726_v60 = vmul.f32 %v3553_v23, %v13765_v57  ;;  %v3713_v11 = vmul.f32 %v3527_v26, %v13768_v24  ;;  %v13769_v40 = vld [vmem:[#allocation35_spill] sm:$0xff]  ;;  %v13773_v24 = vld [vmem:[#allocation34_spill] sm:$0xff] }
 0x363   :  { %3870 = vrot.lane.b32.xlu1 %v3725_v25, %s7769_s6  ;;  %3872 = vrot.lane.b32.xlu0 %v3726_v60, %s7769_s6  ;;  %v13770_v60 = vld [vmem:[#allocation12_spill] sm:$0xff] }
 0x364   :  { %v3555_v48 = vpop.permute.xlu1 %3554  ;;  %v3557_v35 = vpop.permute.xlu0 %3556  ;;  %v3714_v47 = vmul.f32 %v3529_v50, %v13770_v60  ;;  %v13775_v60 = vld [vmem:[#allocation48_spill] sm:$0xff] }
 0x365   :  { %v3727_v61 = vmul.f32 %v3555_v48, %v13767_v3  ;;  %v3728_v57 = vmul.f32 %v3557_v35, %v13769_v40  ;;  %v13772_v48 = vld [vmem:[#allocation14_spill] sm:$0xff] }
 0x366   :  { %v3715_v26 = vmul.f32 %v3531_v32, %v13772_v48  ;;  %v13777_v48 = vld [vmem:[#allocation49_spill] sm:$0xff] }
 0x367   :  { %3874 = vrot.lane.b32.xlu1 %v3727_v61, %s7769_s6  ;;  %3844 = vrot.lane.b32.xlu0 %v3712_v9, %s7769_s6 }
 0x368   :  { %v3559_v63 = vpop.permute.xlu1 %3558  ;;  %v3561_v33 = vpop.permute.xlu0 %3560 }
 0x369   :  { %v3729_v3 = vmul.f32 %v3559_v63, %v13771_v2  ;;  %v3730_v35 = vmul.f32 %v3561_v33, %v13773_v24 }
 0x36b   :  { %3846 = vrot.lane.b32.xlu1 %v3713_v11, %s7769_s6  ;;  %3876 = vrot.lane.b32.xlu0 %v3728_v57, %s7769_s6  ;;  %v13774_v57 = vld [vmem:[#allocation32_spill] sm:$0xff] }
 0x36c   :  { %v3563_v25 = vpop.permute.xlu1 %3562  ;;  %v3581_v23 = vpop.permute.xlu0 %3580 }
 0x36d   :  { %v3731_v50 = vmul.f32 %v3563_v25, %v13774_v57  ;;  %v3740_v63 = vmul.f32 %v3581_v23, %v13775_v60  ;;  %v13779_v57 = vld [vmem:[#allocation51_spill] sm:$0xff] }
 0x36f   :  { %3878 = vrot.lane.b32.xlu1 %v3729_v3, %s7769_s6  ;;  %3848 = vrot.lane.b32.xlu0 %v3714_v47, %s7769_s6  ;;  %v13776_v3 = vld [vmem:[#allocation50_spill] sm:$0xff] }
 0x370   :  { %v3583_v61 = vpop.permute.xlu1 %3582  ;;  %v3585_v9 = vpop.permute.xlu0 %3584 }
 0x371   :  { %v3741_v32 = vmul.f32 %v3583_v61, %v13776_v3  ;;  %v3742_v33 = vmul.f32 %v3585_v9, %v13777_v48  ;;  %v13781_v3 = vld [vmem:[#allocation36_spill] sm:$0xff] }
 0x373   :  { %3850 = vrot.lane.b32.xlu1 %v3715_v26, %s7769_s6  ;;  %3880 = vrot.lane.b32.xlu0 %v3730_v35, %s7769_s6  ;;  %v13778_v35 = vld [vmem:[#allocation17_spill] sm:$0xff] }
 0x374   :  { %v3587_v11 = vpop.permute.xlu1 %3586  ;;  %v3565_v40 = vpop.permute.xlu0 %3564  ;;  %v3716_v25 = vmul.f32 %v3533_v30, %v13778_v35  ;;  %v13783_v35 = vld [vmem:[#allocation52_spill] sm:$0xff] }
 0x375   :  { %v3743_v23 = vmul.f32 %v3587_v11, %v13779_v57  ;;  %v3732_v9 = vmul.f32 %v3565_v40, %v13781_v3 }
 0x377   :  { %3882 = vrot.lane.b32.xlu1 %v3731_v50, %s7769_s6  ;;  %3900 = vrot.lane.b32.xlu0 %v3740_v63, %s7769_s6  ;;  %v13780_v63 = vld [vmem:[#allocation19_spill] sm:$0xff] }
 0x378   :  { %v3567_v47 = vpop.permute.xlu1 %3566  ;;  %v3589_v2 = vpop.permute.xlu0 %3588  ;;  %v3717_v61 = vmul.f32 %v3535_v22, %v13780_v63  ;;  %v13785_v63 = vld [vmem:[#allocation16_spill] sm:$0xff] }
 0x379   :  { %v3744_v11 = vmul.f32 %v3589_v2, %v13783_v35 }
 0x37b   :  { %3902 = vrot.lane.b32.xlu1 %v3741_v32, %s7769_s6  ;;  %3904 = vrot.lane.b32.xlu0 %v3742_v33, %s7769_s6  ;;  %v13782_v33 = vld [vmem:[#allocation38_spill] sm:$0xff] }
 0x37c   :  { %v3591_v26 = vpop.permute.xlu1 %3590  ;;  %v3537_v24 = vpop.permute.xlu0 %3536  ;;  %v3733_v30 = vmul.f32 %v3567_v47, %v13782_v33  ;;  %v13787_v33 = vld [vmem:[#allocation37_spill] sm:$0xff] }
 0x37d   :  { %v3718_v40 = vmul.f32 %v3537_v24, %v13785_v63 }
 0x37f   :  { %3906 = vrot.lane.b32.xlu1 %v3743_v23, %s7769_s6  ;;  %3852 = vrot.lane.b32.xlu0 %v3716_v25, %s7769_s6  ;;  %v13784_v23 = vld [vmem:[#allocation57_spill] sm:$0xff] }
 0x380   :  { %v3539_v50 = vpop.permute.xlu1 %3538  ;;  %v3569_v60 = vpop.permute.xlu0 %3568  ;;  %v3745_v22 = vmul.f32 %v3591_v26, %v13784_v23  ;;  %v13789_v23 = vld [vmem:[#allocation53_spill] sm:$0xff] }
 0x381   :  { %v3734_v2 = vmul.f32 %v3569_v60, %v13787_v33 }
 0x383   :  { %3854 = vrot.lane.b32.xlu1 %v3717_v61, %s7769_s6  ;;  %3884 = vrot.lane.b32.xlu0 %v3732_v9, %s7769_s6  ;;  %v13786_v9 = vld [vmem:[#allocation18_spill] sm:$0xff] }
 0x384   :  { %v3571_v32 = vpop.permute.xlu1 %3570  ;;  %v3593_v48 = vpop.permute.xlu0 %3592  ;;  %v3719_v47 = vmul.f32 %v3539_v50, %v13786_v9  ;;  %v13791_v9 = vld [vmem:[#allocation72_spill] sm:$0xff] }
 0x385   :  { %v3746_v24 = vmul.f32 %v3593_v48, %v13789_v23 }
 0x387   :  { %3886 = vrot.lane.b32.xlu1 %v3733_v30, %s7769_s6  ;;  %3908 = vrot.lane.b32.xlu0 %v3744_v11, %s7769_s6  ;;  %v13788_v11 = vld [vmem:[#allocation39_spill] sm:$0xff] }
 0x388   :  { %v3595_v25 = vpop.permute.xlu1 %3594  ;;  %v3613_v57 = vpop.permute.xlu0 %3612  ;;  %v3735_v26 = vmul.f32 %v3571_v32, %v13788_v11  ;;  %v13793_v11 = vld [vmem:[#allocation73_spill] sm:$0xff] }
 0x389   :  { %v3756_v60 = vmul.f32 %v3613_v57, %v13791_v9 }
 0x38b   :  { %3910 = vrot.lane.b32.xlu1 %v3745_v22, %s7769_s6  ;;  %3856 = vrot.lane.b32.xlu0 %v3718_v40, %s7769_s6  ;;  %v13790_v40 = vld [vmem:[#allocation54_spill] sm:$0xff] }
 0x38c   :  { %v3615_v61 = vpop.permute.xlu1 %3614  ;;  %v3617_v3 = vpop.permute.xlu0 %3616  ;;  %v3747_v50 = vmul.f32 %v3595_v25, %v13790_v40  ;;  %v13795_v40 = vld [vmem:[#allocation23_spill] sm:$0xff] }
 0x38d   :  { %v3758_v48 = vmul.f32 %v3617_v3, %v13793_v11 }
 0x38f   :  { %3858 = vrot.lane.b32.xlu1 %v3719_v47, %s7769_s6  ;;  %3888 = vrot.lane.b32.xlu0 %v3734_v2, %s7769_s6  ;;  %v13792_v2 = vld [vmem:[#allocation75_spill] sm:$0xff] }
 0x390   :  { %v3619_v30 = vpop.permute.xlu1 %3618  ;;  %v3541_v35 = vpop.permute.xlu0 %3540  ;;  %v3757_v32 = vmul.f32 %v3615_v61, %v13792_v2  ;;  %v13797_v2 = vld [vmem:[#allocation42_spill] sm:$0xff] }
 0x391   :  { %v3720_v57 = vmul.f32 %v3541_v35, %v13795_v40 }
 0x393   :  { %3890 = vrot.lane.b32.xlu1 %v3735_v26, %s7769_s6  ;;  %3912 = vrot.lane.b32.xlu0 %v3746_v24, %s7769_s6  ;;  %v13794_v24 = vld [vmem:[#allocation76_spill] sm:$0xff] }
 0x394   :  { %v3543_v22 = vpop.permute.xlu1 %3542  ;;  %v3573_v63 = vpop.permute.xlu0 %3572  ;;  %v3759_v25 = vmul.f32 %v3619_v30, %v13794_v24  ;;  %v4220_v30 = vand.u32 2147483647, %v9571_v17  ;;  %v13799_v24 = vld [vmem:[#allocation58_spill] sm:$0xff] }
 0x395   :  { %v3736_v3 = vmul.f32 %v3573_v63, %v13797_v2  ;;  %v13800_v63 = vld [vmem:[#allocation63_spill] sm:$0xff] }
 0x397   :  { %3914 = vrot.lane.b32.xlu1 %v3747_v50, %s7769_s6  ;;  %3932 = vrot.lane.b32.xlu0 %v3756_v60, %s7769_s6  ;;  %v13796_v60 = vld [vmem:[#allocation26_spill] sm:$0xff] }
 0x398   :  { %v3575_v47 = vpop.permute.xlu1 %3574  ;;  %v3597_v33 = vpop.permute.xlu0 %3596  ;;  %v3721_v61 = vmul.f32 %v3543_v22, %v13796_v60 }
 0x39b   :  { %3934 = vrot.lane.b32.xlu1 %v3757_v32, %s7769_s6  ;;  %3936 = vrot.lane.b32.xlu0 %v3758_v48, %s7769_s6  ;;  %v13798_v48 = vld [vmem:[#allocation47_spill] sm:$0xff] }
 0x39c   :  { %v3599_v26 = vpop.permute.xlu1 %3598  ;;  %v3621_v23 = vpop.permute.xlu0 %3620  ;;  %v3737_v35 = vmul.f32 %v3575_v47, %v13798_v48 }
 0x39d   :  { %v3749_v60 = vmul.f32 %v3599_v26, %v13800_v63  ;;  %v4221_v63 = vand.u32 2147483647, %v9575_v45 }
 0x39f   :  { %3938 = vrot.lane.b32.xlu1 %v3759_v25, %s7769_s6  ;;  %3860 = vrot.lane.b32.xlu0 %v3720_v57, %s7769_s6  ;;  %v3748_v25 = vmul.f32 %v3597_v33, %v13799_v24  ;;  %v4284_v57 = vsub.f32 0.0, %v4220_v30  ;;  %v13802_v24 = vld [vmem:[#allocation21_spill] sm:$0xff]  ;;  %v4223_v30 = vand.u32 2147483647, %v9581_v27 }
 0x3a0   :  { %v3623_v50 = vpop.permute.xlu1 %3622  ;;  %v3545_v9 = vpop.permute.xlu0 %3544 }
 0x3a1   :  { %v4348_v33 = vmul.f32 1.442695, %v4284_v57 }
 0x3a3   :  { %3862 = vrot.lane.b32.xlu1 %v3721_v61, %s7769_s6  ;;  %3892 = vrot.lane.b32.xlu0 %v3736_v3, %s7769_s6  ;;  %v13801_v61 = vld [vmem:[#allocation80_spill] sm:$0xff]  ;;  %v4222_v3 = vand.u32 2147483647, %v9577_v34  ;;  %7366 = vpow2.f32 %v4348_v33 }
 0x3a4   :  { %v3547_v32 = vpop.permute.xlu1 %3546  ;;  %v3577_v11 = vpop.permute.xlu0 %3576  ;;  %v3760_v2 = vmul.f32 %v3621_v23, %v13801_v61 }
 0x3a5   :  { %v4286_v14 = vsub.f32 0.0, %v4222_v3  ;;  %v4225_v3 = vand.u32 2147483647, %v9591_v7  ;;  %v13807_v7 = vld [vmem:[#allocation60_spill] sm:$0xff] }
 0x3a7   :  { %3894 = vrot.lane.b32.xlu1 %v3737_v35, %s7769_s6  ;;  %3916 = vrot.lane.b32.xlu0 %v3748_v25, %s7769_s6  ;;  %v3761_v35 = vmul.f32 %v3623_v50, %v9497_v16  ;;  %v3722_v25 = vmul.f32 %v3545_v9, %v13802_v24  ;;  %v4352_v34 = vmul.f32 1.442695, %v4286_v14  ;;  %v4287_v16 = vsub.f32 0.0, %v4223_v30 }
 0x3a8   :  { %v3579_v40 = vpop.permute.xlu1 %3578  ;;  %v3601_v22 = vpop.permute.xlu0 %3600  ;;  %v4224_v50 = vand.u32 2147483647, %v9583_v38  ;;  %v4226_v9 = vand.u32 2147483647, %v9589_v55  ;;  %v4285_v24 = vsub.f32 0.0, %v4221_v63 }
 0x3a9   :  { %7368 = vpow2.f32 %v4352_v34  ;;  %v4354_v14 = vmul.f32 1.442695, %v4287_v16  ;;  %v4228_v34 = vand.u32 2147483647, %v9599_v44 }
 0x3aa   :  { %v4290_v30 = vsub.f32 0.0, %v4226_v9  ;;  %v4350_v38 = vmul.f32 1.442695, %v4285_v24 }
 0x3ab   :  { %3918 = vrot.lane.b32.xlu1 %v3749_v60, %s7769_s6  ;;  %3940 = vrot.lane.b32.xlu0 %v3760_v2, %s7769_s6  ;;  %v13803_v60 = vld [vmem:[#allocation25_spill] sm:$0xff]  ;;  %v13804_v2 = vld [vmem:[#allocation40_spill] sm:$0xff]  ;;  %7370 = vpow2.f32 %v4354_v14 }
 0x3ac   :  { %v3603_v47 = vpop.permute.xlu1 %3602  ;;  %v3625_v48 = vpop.permute.xlu0 %3624  ;;  %v3723_v61 = vmul.f32 %v3547_v32, %v13803_v60  ;;  %v3738_v57 = vmul.f32 %v3577_v11, %v13804_v2  ;;  %v13806_v32 = vld [vmem:[#allocation59_spill] sm:$0xff]  ;;  %v4288_v11 = vsub.f32 0.0, %v4224_v50  ;;  %v4227_v2 = vand.u32 2147483647, %v9597_v8 }
 0x3ad   :  { %v3750_v60 = vmul.f32 %v3601_v22, %v13806_v32  ;;  %v3751_v63 = vmul.f32 %v3603_v47, %v13807_v7  ;;  %v9936_v16 = vpop.eup %7366  ;;  %v4360_v50 = vmul.f32 1.442695, %v4290_v30  ;;  %7372 = vpow2.f32 %v4350_v38  ;;  %v13809_v47 = vld [vmem:[#allocation82_spill] sm:$0xff] }
 0x3ae   :  { %v4356_v22 = vmul.f32 1.442695, %v4288_v11  ;;  %v4291_v9 = vsub.f32 0.0, %v4227_v2  ;;  %v4230_v7 = vand.u32 2147483647, %v9605_v6  ;;  %v4292_v32 = vsub.f32 0.0, %v4228_v34 }
 0x3af   :  { %3942 = vrot.lane.b32.xlu1 %v3761_v35, %s7769_s6  ;;  %3864 = vrot.lane.b32.xlu0 %v3722_v25, %s7769_s6  ;;  %v13805_v25 = vld [vmem:[#allocation44_spill] sm:$0xff]  ;;  %v4476_v14 = vadd.f32 1.0, %v9936_v16  ;;  %v13811_v2 = vld [vmem:[#allocation71_spill] sm:$0xff] }
 0x3b0   :  { %v3627_v26 = vpop.permute.xlu1 %3626  ;;  %v3605_v23 = vpop.permute.xlu0 %3604  ;;  %v3739_v27 = vmul.f32 %v3579_v40, %v13805_v25  ;;  %v3762_v40 = vmul.f32 %v3625_v48, %v13808_v58  ;;  %v13810_v48 = vld [vmem:[#allocation66_spill] sm:$0xff]  ;;  %7374 = vpow2.f32 %v4356_v22  ;;  %v4362_v38 = vmul.f32 1.442695, %v4291_v9 }
 0x3b1   :  { %v3763_v58 = vmul.f32 %v3627_v26, %v13809_v47  ;;  %v3752_v24 = vmul.f32 %v3605_v23, %v13810_v48  ;;  %7376 = vpow2.f32 %v4360_v50  ;;  %v4294_v23 = vsub.f32 0.0, %v4230_v7  ;;  %v13813_v48 = vld [vmem:[#allocation64_spill] sm:$0xff] }
 0x3b2   :  { %v4364_v22 = vmul.f32 1.442695, %v4292_v32  ;;  %v4232_v50 = vand.u32 2147483647, %v9615_v49  ;;  %v4236_v7 = vand.u32 2147483647, %v9631_v56 }
 0x3b3   :  { %3866 = vrot.lane.b32.xlu1 %v3723_v61, %s7769_s6  ;;  %3896 = vrot.lane.b32.xlu0 %v3738_v57, %s7769_s6  ;;  %v4289_v61 = vsub.f32 0.0, %v4225_v3  ;;  %v9947_v11 = vpop.eup %7368 }
 0x3b4   :  { %v3607_v35 = vpop.permute.xlu1 %3606  ;;  %v3629_v33 = vpop.permute.xlu0 %3628 }
 0x3b5   :  { %v9960_v9 = vpop.eup %7370 }
 0x3b6   :  { %13812 = vst [vmem:[#allocation9_spill] sm:$0xff] %v9960_v9 }
 0x3b7   :  { %3898 = vrot.lane.b32.xlu1 %v3739_v27, %s7769_s6  ;;  %3920 = vrot.lane.b32.xlu0 %v3750_v60, %s7769_s6  ;;  %v4358_v27 = vmul.f32 1.442695, %v4289_v61  ;;  %v4229_v60 = vand.u32 2147483647, %v9607_v19  ;;  %v4231_v61 = vand.u32 2147483647, %v9613_v31 }
 0x3b8   :  { %v3631_v57 = vpop.permute.xlu1 %3630  ;;  %v3609_v55 = vpop.permute.xlu0 %3608 }
 0x3b9   :  { %7378 = vpow2.f32 %v4358_v27  ;;  %v4293_v34 = vsub.f32 0.0, %v4229_v60  ;;  %v4478_v27 = vadd.f32 1.0, %v9947_v11  ;;  %v4295_v47 = vsub.f32 0.0, %v4231_v61 }
 0x3ba   :  { %7380 = vrcp.f32 %v4476_v14  ;;  %v4296_v60 = vsub.f32 0.0, %v4232_v50 }
 0x3bb   :  { %3922 = vrot.lane.b32.xlu1 %v3751_v63, %s7769_s6  ;;  %3944 = vrot.lane.b32.xlu0 %v3762_v40, %s7769_s6  ;;  %v3753_v63 = vmul.f32 %v3607_v35, %v13811_v2  ;;  %v3764_v40 = vmul.f32 %v3629_v33, %v9519_v12  ;;  %7382 = vlog2.f32 %v4476_v14  ;;  %v4368_v33 = vmul.f32 1.442695, %v4294_v23  ;;  %v9970_v2 = vpop.eup %7372 }
 0x3bc   :  { %v3611_v3 = vpop.permute.xlu1 %3610  ;;  %v3633_v25 = vpop.permute.xlu0 %3632  ;;  %7384 = vpow2.f32 %v4362_v38  ;;  %v4366_v32 = vmul.f32 1.442695, %v4293_v34  ;;  %v4234_v14 = vand.u32 2147483647, %v9621_v46  ;;  %v4233_v38 = vand.u32 2147483647, %v9623_v42 }
 0x3bd   :  { %7386 = vpow2.f32 %v4364_v22  ;;  %v4479_v23 = vadd.f32 1.0, %v9960_v9  ;;  %v9976_v61 = vpop.eup %7374  ;;  %v4370_v22 = vmul.f32 1.442695, %v4295_v47  ;;  %v13816_v34 = vld [vmem:[#allocation68_spill] sm:$0xff]  ;;  %v4372_v9 = vmul.f32 1.442695, %v4296_v60 }
 0x3be   :  { %7388 = vrcp.f32 %v4478_v27  ;;  %13814 = vst [vmem:[#allocation11_spill] sm:$0xff] %v9976_v61  ;;  %v3755_v50 = vmul.f32 %v3611_v3, %v13816_v34  ;;  %v4297_v56 = vsub.f32 0.0, %v4233_v38  ;;  %v13819_v38 = vld [vmem:[#allocation84_spill] sm:$0xff] }
 0x3bf   :  { %3946 = vrot.lane.b32.xlu1 %v3763_v58, %s7769_s6  ;;  %3924 = vrot.lane.b32.xlu0 %v3752_v24, %s7769_s6  ;;  %v3765_v58 = vmul.f32 %v3631_v57, %v9528_v59  ;;  %v3754_v24 = vmul.f32 %v3609_v55, %v13813_v48  ;;  %v4300_v59 = vsub.f32 0.0, %v4236_v7  ;;  %v4237_v55 = vand.u32 2147483647, %v9639_v52  ;;  %v13882_v42 = vld [vmem:[#allocation56_spill] sm:$0xff] }
 0x3c0   :  { %v9949_v30 = vpop.permute.xlu1 %3634  ;;  %v9951_v26 = vpop.permute.xlu0 %3636  ;;  %7390 = vlog2.f32 %v4478_v27  ;;  %v4298_v7 = vsub.f32 0.0, %v4234_v14  ;;  %v4235_v52 = vand.u32 2147483647, %v9629_v54  ;;  %v4477_v27 = vadd.f32 1.0, %v9970_v2 }
 0x3c1   :  { %7392 = vpow2.f32 %v4368_v33  ;;  %v4380_v3 = vmul.f32 1.442695, %v4300_v59  ;;  %v4301_v47 = vsub.f32 0.0, %v4237_v55  ;;  %v4238_v14 = vand.u32 2147483647, %v9637_v21 }
 0x3c2   :  { %7394 = vpow2.f32 %v4366_v32  ;;  %v4376_v55 = vmul.f32 1.442695, %v4298_v7  ;;  %v4374_v54 = vmul.f32 1.442695, %v4297_v56  ;;  %v13822_v7 = vld [vmem:[#allocation83_spill] sm:$0xff] }
 0x3c3   :  { %3926 = vrot.lane.b32.xlu1 %v3753_v63, %s7769_s6  ;;  %3948 = vrot.lane.b32.xlu0 %v3764_v40, %s7769_s6  ;;  %v9983_v40 = vpop.eup %7376  ;;  %7396 = vrcp.f32 %v4479_v23 }
 0x3c4   :  { %v9963_v35 = vpop.permute.xlu1 %3638  ;;  %v9965_v12 = vpop.permute.xlu0 %3640  ;;  %13815 = vst [vmem:[#allocation8_spill] sm:$0xff] %v9983_v40  ;;  %7398 = vlog2.f32 %v4479_v23 }
 0x3c5   :  { %7400 = vpow2.f32 %v4370_v22  ;;  %v3769_v56 = vmul.f32 %v9963_v35, %v9556_v0 }
 0x3c6   :  { %7402 = vpow2.f32 %v4372_v9 }
 0x3c7   :  { %3950 = vrot.lane.b32.xlu1 %v3765_v58, %s7769_s6  ;;  %3928 = vrot.lane.b32.xlu0 %v3754_v24, %s7769_s6  ;;  %v13817_v58 = vld [vmem:[#allocation81_spill] sm:$0xff]  ;;  %v9987_v24 = vpop.eup %7378  ;;  %7404 = vrcp.f32 %v4477_v27 }
 0x3c8   :  { %v9979_v57 = vpop.permute.xlu1 %3642  ;;  %v9981_v63 = vpop.permute.xlu0 %3836  ;;  %v3766_v48 = vmul.f32 %v3633_v25, %v13817_v58  ;;  %13818 = vst [vmem:[#allocation10_spill] sm:$0xff] %v9987_v24  ;;  %v4239_v25 = vand.u32 2147483647, %v9645_v53  ;;  %v3768_v58 = vmul.f32 %v9951_v26, %v9546_v5  ;;  %v4481_v23 = vadd.f32 1.0, %v9987_v24 }
 0x3c9   :  { %v9993_v33 = vpop.eup %7380  ;;  %7406 = vpow2.f32 %v4380_v3  ;;  %v4240_v5 = vand.u32 2147483647, %v9647_v41 }
 0x3ca   :  { %v10000_v60 = vpop.eup %7382  ;;  %7408 = vlog2.f32 %v4477_v27  ;;  %v4241_v27 = vand.u32 2147483647, %v9655_v13 }
 0x3cb   :  { %3930 = vrot.lane.b32.xlu1 %v3755_v50, %s7769_s6  ;;  %3952 = vrot.lane.b32.xlu0 %v3766_v48, %s7769_s6  ;;  %v3767_v50 = vmul.f32 %v9949_v30, %v13819_v38  ;;  %v10007_v59 = vpop.eup %7384  ;;  %v4299_v48 = vsub.f32 0.0, %v4235_v52  ;;  %v4382_v30 = vmul.f32 1.442695, %v4301_v47  ;;  %v4303_v38 = vsub.f32 0.0, %v4239_v25 }
 0x3cc   :  { %v9996_v34 = vpop.permute.xlu1 %3838  ;;  %v9998_v32 = vpop.permute.xlu0 %3840  ;;  %13820 = vst [vmem:[#allocation29_spill] sm:$0xff] %v10007_v59  ;;  %v4302_v52 = vsub.f32 0.0, %v4238_v14  ;;  %7410 = vpow2.f32 %v4376_v55  ;;  %v4242_v25 = vand.u32 2147483647, %v9653_v1 }
 0x3cd   :  { %v10012_v22 = vpop.eup %7386  ;;  %v4378_v3 = vmul.f32 1.442695, %v4299_v48  ;;  %7412 = vpow2.f32 %v4374_v54  ;;  %v4386_v35 = vmul.f32 1.442695, %v4303_v38  ;;  %v3771_v48 = vmul.f32 %v9979_v57, %v9554_v18 }
 0x3ce   :  { %13821 = vst [vmem:[#allocation31_spill] sm:$0xff] %v10012_v22  ;;  %v10017_v9 = vpop.eup %7388  ;;  %7414 = vpow2.f32 %v4382_v30  ;;  %v4384_v55 = vmul.f32 1.442695, %v4302_v52  ;;  %v4480_v30 = vadd.f32 1.0, %v9976_v61  ;;  %v4305_v57 = vsub.f32 0.0, %v4241_v27 }
 0x3cf   :  { %3954 = vrot.lane.b32.xlu1 %v3767_v50, %s7769_s6  ;;  %3956 = vrot.lane.b32.xlu0 %v3768_v58, %s7769_s6  ;;  %v3770_v50 = vmul.f32 %v9965_v12, %v13822_v7  ;;  %v10025_v22 = vpop.eup %7390  ;;  %v4304_v12 = vsub.f32 0.0, %v4240_v5  ;;  %7416 = vrcp.f32 %v4481_v23  ;;  %v4306_v5 = vsub.f32 0.0, %v4242_v25 }
 0x3d0   :  { %v10015_v26 = vpop.permute.xlu1 %3842  ;;  %v10027_v47 = vpop.eup %7392  ;;  %7418 = vpow2.f32 %v4378_v3  ;;  %v4483_v25 = vadd.f32 1.0, %v10007_v59 }
 0x3d1   :  { %v10023_v58 = vpop.permute.xlu0 %3868  ;;  %13823 = vst [vmem:[#allocation28_spill] sm:$0xff] %v10027_v47  ;;  %v10032_v0 = vpop.eup %7394  ;;  %7420 = vlog2.f32 %v4481_v23  ;;  %v4388_v18 = vmul.f32 1.442695, %v4304_v12  ;;  %v4244_v47 = vand.u32 2147483647, %v9663_v36 }
 0x3d2   :  { %13824 = vst [vmem:[#allocation13_spill] sm:$0xff] %v10032_v0  ;;  %v10035_v14 = vpop.eup %7396  ;;  %7422 = vpow2.f32 %v4386_v35  ;;  %v4246_v12 = vand.u32 2147483647, %v9669_v37  ;;  %v4245_v36 = vand.u32 2147483647, %v9671_v43 }
 0x3d3   :  { %3958 = vrot.lane.b32.xlu1 %v3769_v56, %s7769_s6  ;;  %3960 = vrot.lane.b32.xlu0 %v3770_v50, %s7769_s6  ;;  %v10043_v56 = vpop.eup %7398  ;;  %v4243_v50 = vand.u32 2147483647, %v9661_v29  ;;  %7424 = vpow2.f32 %v4384_v55  ;;  %v4390_v55 = vmul.f32 1.442695, %v4305_v57  ;;  %v4248_v37 = vand.u32 2147483647, %v9679_v62 }
 0x3d4   :  { %v10046_v38 = vpop.eup %7400  ;;  %7426 = vrcp.f32 %v4480_v30 }
 0x3d5   :  { %v10039_v54 = vpop.permute.xlu1 %3870  ;;  %v10041_v7 = vpop.permute.xlu0 %3872  ;;  %13825 = vst [vmem:[#allocation30_spill] sm:$0xff] %v10046_v38  ;;  %v4307_v35 = vsub.f32 0.0, %v4243_v50  ;;  %7428 = vlog2.f32 %v4480_v30  ;;  %v4312_v62 = vsub.f32 0.0, %v4248_v37  ;;  %v4251_v37 = vand.u32 2147483647, %v9693_v39 }
 0x3d6   :  { %v10050_v52 = vpop.eup %7402  ;;  %7430 = vpow2.f32 %v4388_v18  ;;  %v4310_v18 = vsub.f32 0.0, %v4246_v12 }
 0x3d7   :  { %3962 = vrot.lane.b32.xlu1 %v3771_v48, %s7769_s6  ;;  %13826 = vst [vmem:[#allocation15_spill] sm:$0xff] %v10050_v52  ;;  %v10053_v1 = vpop.eup %7404  ;;  %v4392_v48 = vmul.f32 1.442695, %v4306_v5  ;;  %v4308_v52 = vsub.f32 0.0, %v4244_v47  ;;  %7432 = vrcp.f32 %v4483_v25  ;;  %v4394_v50 = vmul.f32 1.442695, %v4307_v35 }
 0x3d8   :  { %v10060_v38 = vpop.eup %7406  ;;  %7434 = vlog2.f32 %v4483_v25  ;;  %v4247_v47 = vand.u32 2147483647, %v9677_v51  ;;  %v4400_v12 = vmul.f32 1.442695, %v4310_v18  ;;  %v4249_v51 = vand.u32 2147483647, %v9687_v28 }
 0x3d9   :  { %v10055_v3 = vpop.permute.xlu1 %3874  ;;  %v10057_v61 = vpop.permute.xlu0 %3844  ;;  %13827 = vst [vmem:[#allocation35_spill] sm:$0xff] %v10060_v38  ;;  %v4492_v24 = vadd.f32 1.0, %v10060_v38  ;;  %7436 = vpow2.f32 %v4392_v48 }
 0x3da   :  { %v10062_v23 = vpop.eup %7408  ;;  %7438 = vpow2.f32 %v4390_v55  ;;  %v4313_v28 = vsub.f32 0.0, %v4249_v51 }
 0x3db   :  { %13828 = vst [vmem:[#allocation12_spill] sm:$0xff] %v10062_v23  ;;  %v10065_v27 = vpop.eup %7410  ;;  %7440 = vrcp.f32 %v4492_v24 }
 0x3dc   :  { %13829 = vst [vmem:[#allocation33_spill] sm:$0xff] %v10065_v27  ;;  %v10068_v29 = vpop.eup %7412  ;;  %v4396_v27 = vmul.f32 1.442695, %v4308_v52  ;;  %7442 = vlog2.f32 %v4492_v24  ;;  %v4311_v52 = vsub.f32 0.0, %v4247_v47 }
 0x3dd   :  { %13830 = vst [vmem:[#allocation14_spill] sm:$0xff] %v10068_v29  ;;  %v10070_v59 = vpop.permute.xlu1 %3846  ;;  %v10072_v13 = vpop.permute.xlu0 %3876  ;;  %v4309_v29 = vsub.f32 0.0, %v4245_v36  ;;  %7444 = vpow2.f32 %v4394_v50  ;;  %v4250_v36 = vand.u32 2147483647, %v9685_v20  ;;  %v4404_v20 = vmul.f32 1.442695, %v4312_v62 }
 0x3de   :  { %v10075_v5 = vpop.eup %7414  ;;  %7446 = vpow2.f32 %v4396_v27  ;;  %v4402_v27 = vmul.f32 1.442695, %v4311_v52 }
 0x3df   :  { %13831 = vst [vmem:[#allocation34_spill] sm:$0xff] %v10075_v5  ;;  %v10077_v30 = vpop.eup %7416  ;;  %v4493_v25 = vadd.f32 1.0, %v10075_v5 }
 0x3e0   :  { %13832 = vst [vmem:[#allocation32_spill] sm:$0xff] %v10077_v30  ;;  %v10080_v57 = vpop.eup %7418 }
 0x3e1   :  { %13833 = vst [vmem:[#allocation48_spill] sm:$0xff] %v10080_v57  ;;  %v10083_v43 = vpop.eup %7420  ;;  %v10085_v38 = vpop.permute.xlu1 %3878  ;;  %v4398_v57 = vmul.f32 1.442695, %v4309_v29  ;;  %7448 = vrcp.f32 %v4493_v25  ;;  %v4314_v29 = vsub.f32 0.0, %v4250_v36  ;;  %v13846_v36 = vld [vmem:[#allocation74_spill] sm:$0xff] }
 0x3e2   :  { %13834 = vst [vmem:[#allocation50_spill] sm:$0xff] %v10083_v43  ;;  %v10087_v23 = vpop.permute.xlu0 %3848  ;;  %v10090_v48 = vpop.eup %7422  ;;  %7450 = vlog2.f32 %v4493_v25  ;;  %v5337_v39 = vadd.s32 4294967288, %v13846_v36 }
 0x3e3   :  { %13835 = vst [vmem:[#allocation49_spill] sm:$0xff] %v10090_v48  ;;  %v10092_v35 = vpop.eup %7424  ;;  %v4495_v24 = vadd.f32 1.0, %v10090_v48  ;;  %7452 = vpow2.f32 %v4400_v12  ;;  %v4252_v48 = vand.u32 2147483647, %v9695_v10  ;;  %v4408_v51 = vmul.f32 1.442695, %v4314_v29 }
 0x3e4   :  { %13836 = vst [vmem:[#allocation17_spill] sm:$0xff] %v10092_v35  ;;  %v10095_v55 = vpop.eup %7426  ;;  %7454 = vpow2.f32 %v4398_v57  ;;  %v4494_v12 = vadd.f32 1.0, %v10092_v35  ;;  %v4315_v57 = vsub.f32 0.0, %v4251_v37  ;;  %v4406_v10 = vmul.f32 1.442695, %v4313_v28  ;;  %v13849_v35 = vld [vmem:[#allocation7_spill] sm:$0xff] }
 0x3e5   :  { %13837 = vst [vmem:[#allocation51_spill] sm:$0xff] %v10095_v55  ;;  %v10098_v43 = vpop.eup %7428  ;;  %v10100_v5 = vpop.permute.xlu1 %3850  ;;  %7456 = vrcp.f32 %v4495_v24  ;;  %v10133_v0 = vsub.s32 %v13846_v36, %v13849_v35  ;;  %v4316_v41 = vsub.f32 0.0, %v4252_v48  ;;  %v13856_v36 = vld [vmem:[#allocation119_spill] sm:$0xff] }
 0x3e6   :  { %13838 = vst [vmem:[#allocation19_spill] sm:$0xff] %v10098_v43  ;;  %v10102_v30 = vpop.permute.xlu0 %3880  ;;  %v10105_v50 = vpop.eup %7430  ;;  %v4253_v43 = vand.u32 2147483647, %v9703_v4  ;;  %7458 = vlog2.f32 %v4495_v24  ;;  %v4410_v48 = vmul.f32 1.442695, %v4315_v57  ;;  %v13863_v57 = vld [vmem:[#allocation88_spill] sm:$0xff] }
 0x3e7   :  { %13839 = vst [vmem:[#allocation36_spill] sm:$0xff] %v10102_v30  ;;  %13840 = vst [vmem:[#allocation38_spill] sm:$0xff] %v10105_v50  ;;  %v10107_v18 = vpop.eup %7432  ;;  %7460 = vpow2.f32 %v4402_v27  ;;  %vm5055_vm4 = vcmp.ge.f32.partialorder %v13863_v57, 0.0  ;;  %v13909_v57 = vld [vmem:[#allocation61_spill] sm:$0xff] }
 0x3e8   :  { %13841 = vst [vmem:[#allocation52_spill] sm:$0xff] %v10107_v18  ;;  %v10110_v47 = vpop.eup %7434  ;;  %7462 = vpow2.f32 %v4404_v20  ;;  %v4317_v18 = vsub.f32 0.0, %v4253_v43  ;;  %13850 = vst [vmem:[#allocation54_spill] sm:$0xff] %v10133_v0  ;;  %v10143_v20 = vsub.s32 %v5337_v39, %v13849_v35  ;;  %v4255_v0 = vand.u32 2147483647, %v13856_v36  ;;  %v13859_v39 = vld [vmem:[#allocation120_spill] sm:$0xff] }
 0x3e9   :  { %13842 = vst [vmem:[#allocation57_spill] sm:$0xff] %v10110_v47  ;;  %v10113_v55 = vpop.eup %7436  ;;  %v10116_v30 = vpop.permute.xlu1 %3882  ;;  %v4254_v47 = vand.u32 2147483647, %v9701_v15  ;;  %7464 = vrcp.f32 %v4494_v12  ;;  %v13857_v15 = vld [vmem:[#allocation87_spill] sm:$0xff]  ;;  %v4256_v35 = vand.u32 2147483647, %v13859_v39 }
 0x3ea   :  { %13843 = vst [vmem:[#allocation16_spill] sm:$0xff] %v10116_v30  ;;  %v10118_v25 = vpop.permute.xlu0 %3900  ;;  %v10121_v52 = vpop.eup %7438  ;;  %13854 = vst [vmem:[#allocation76_spill] sm:$0xff] %v10143_v20  ;;  %7466 = vlog2.f32 %v4494_v12  ;;  %v4412_v43 = vmul.f32 1.442695, %v4316_v41  ;;  %v4496_v41 = vadd.f32 1.0, %v10105_v50  ;;  %v4482_v39 = vadd.f32 1.0, %v9983_v40 }
 0x3eb   :  { %13844 = vst [vmem:[#allocation18_spill] sm:$0xff] %v10118_v25  ;;  %13845 = vst [vmem:[#allocation37_spill] sm:$0xff] %v10121_v52  ;;  %v10124_v62 = vpop.eup %7440  ;;  %v4497_v27 = vadd.f32 1.0, %v10121_v52  ;;  %7468 = vpow2.f32 %v4408_v51  ;;  %v4318_v52 = vsub.f32 0.0, %v4254_v47  ;;  %v4028_v51 = vsel %vm1659_vm1, %v9981_v63, 0.0  ;;  %v13866_v47 = vld [vmem:[#allocation89_spill] sm:$0xff] }
 0x3ec   :  { %13847 = vst [vmem:[#allocation39_spill] sm:$0xff] %v10124_v62  ;;  %v10126_v4 = vpop.eup %7442  ;;  %7470 = vpow2.f32 %v4406_v10  ;;  %v13865_v10 = vld [vmem:[#allocation91_spill] sm:$0xff]  ;;  %v13868_v63 = vld [vmem:[#allocation90_spill] sm:$0xff]  ;;  %v13873_v40 = vld [vmem:[#allocation20_spill] sm:$0xff]  ;;  %vm5054_vm3 = vcmp.ge.f32.partialorder %v13857_v15, 0.0  ;;  %vm5056_vm7 = vcmp.ge.f32.partialorder %v13866_v47, 0.0 }
 0x3ed   :  { %13848 = vst [vmem:[#allocation53_spill] sm:$0xff] %v10126_v4  ;;  %v10129_v25 = vpop.eup %7444  ;;  %v10135_v24 = vpop.permute.xlu1 %3902  ;;  %7472 = vrcp.f32 %v4497_v27  ;;  %vm5057_vm6 = vcmp.ge.f32.partialorder %v13865_v10, 0.0  ;;  %v13944_v10 = vld [vmem:[#allocation108_spill] sm:$0xff]  ;;  %vm5058_vm15 = vcmp.ge.f32.partialorder %v13868_v63, 0.0 }
 0x3ee   :  { %13851 = vst [vmem:[#allocation72_spill] sm:$0xff] %v10135_v24  ;;  %v10137_v62 = vpop.permute.xlu0 %3904  ;;  %v10140_v29 = vpop.eup %7446  ;;  %7474 = vlog2.f32 %v4497_v27  ;;  %v4416_v24 = vmul.f32 1.442695, %v4318_v52  ;;  %vm5075_vm0 = vcmp.ge.f32.partialorder %v13944_v10, 0.0  ;;  %v14033_v10 = vld [vmem:[#allocation95_spill] sm:$0xff] }
 0x3ef   :  { %13852 = vst [vmem:[#allocation75_spill] sm:$0xff] %v10137_v62  ;;  %13853 = vst [vmem:[#allocation73_spill] sm:$0xff] %v10140_v29  ;;  %v10147_v37 = vpop.eup %7448  ;;  %v4414_v29 = vmul.f32 1.442695, %v4317_v18  ;;  %7476 = vpow2.f32 %v4410_v48  ;;  %v4034_v48 = vsel %vm1659_vm1, %v9998_v32, 0.0 }
 0x3f0   :  { %13855 = vst [vmem:[#allocation23_spill] sm:$0xff] %v10147_v37  ;;  %v10151_v62 = vpop.eup %7450  ;;  %v13867_v37 = vld [vmem:[#allocation121_spill] sm:$0xff] }
 0x3f1   :  { %13858 = vst [vmem:[#allocation26_spill] sm:$0xff] %v10151_v62  ;;  %v10154_v20 = vpop.eup %7452  ;;  %v10156_v28 = vpop.permute.xlu1 %3906  ;;  %v4319_v62 = vsub.f32 0.0, %v4255_v0  ;;  %7478 = vpow2.f32 %v4414_v29 }
 0x3f2   :  { %13860 = vst [vmem:[#allocation42_spill] sm:$0xff] %v10154_v20  ;;  %13861 = vst [vmem:[#allocation47_spill] sm:$0xff] %v10156_v28  ;;  %v10158_v12 = vpop.permute.xlu0 %3852  ;;  %v10163_v4 = vpop.eup %7454  ;;  %4029 = vadd.xlane.f32.xlu0 %v4028_v51  ;;  %v4320_v51 = vsub.f32 0.0, %v4256_v35  ;;  %7480 = vpow2.f32 %v4412_v43  ;;  %v4260_v35 = vand.u32 2147483647, %v13873_v40 }
 0x3f3   :  { %13862 = vst [vmem:[#allocation58_spill] sm:$0xff] %v10158_v12  ;;  %13864 = vst [vmem:[#allocation63_spill] sm:$0xff] %v10163_v4  ;;  %v10168_v20 = vpop.eup %7456  ;;  %v4258_v12 = vand.u32 2147483647, %v13867_v37  ;;  %v13869_v4 = vld [vmem:[#allocation122_spill] sm:$0xff]  ;;  %7482 = vrcp.f32 %v4496_v41 }
 0x3f4   :  { %v10172_v36 = vpop.eup %7458  ;;  %v4257_v18 = vand.u32 2147483647, %v13869_v4  ;;  %v4418_v37 = vmul.f32 1.442695, %v4319_v62  ;;  %7484 = vlog2.f32 %v4496_v41  ;;  %v4037_v62 = vsel %vm1659_vm1, %v10015_v26, 0.0 }
 0x3f5   :  { %v10175_v30 = vpop.eup %7460  ;;  %v10177_v27 = vpop.permute.xlu1 %3854  ;;  %v4322_v4 = vsub.f32 0.0, %v4258_v12  ;;  %7486 = vpow2.f32 %v4416_v24  ;;  %v4499_v12 = vadd.f32 1.0, %v10129_v25  ;;  %v4031_v24 = vsel %vm1659_vm1, %v9996_v34, 0.0 }
 0x3f6   :  { %13870 = vst [vmem:[#allocation80_spill] sm:$0xff] %v10175_v30  ;;  %v10183_v28 = vpop.eup %7462  ;;  %4035 = vadd.xlane.f32.xlu0 %v4034_v48  ;;  %v13872_v30 = vld [vmem:[#allocation22_spill] sm:$0xff]  ;;  %v10191_v50 = vpop.permute.xlu0 %3884  ;;  %v4420_v48 = vmul.f32 1.442695, %v4320_v51  ;;  %7488 = vrcp.f32 %v4482_v39  ;;  %v4324_v31 = vsub.f32 0.0, %v4260_v35 }
 0x3f7   :  { %13871 = vst [vmem:[#allocation21_spill] sm:$0xff] %v10183_v28  ;;  %v10188_v43 = vpop.eup %7464  ;;  %v4259_v32 = vand.u32 2147483647, %v13872_v30  ;;  %v4321_v28 = vsub.f32 0.0, %v4257_v18  ;;  %7490 = vlog2.f32 %v4482_v39  ;;  %v4424_v26 = vmul.f32 1.442695, %v4322_v4 }
 0x3f8   :  { %v10193_v0 = vpop.eup %7466  ;;  %7492 = vpow2.f32 %v4418_v37  ;;  %v13876_v30 = vld [vmem:[#allocation43_spill] sm:$0xff]  ;;  %v4079_v4 = vsel %vm1659_vm1, %v10039_v54, 0.0  ;;  %v5116_v37 = vmul.f32 %v9993_v33, %v9936_v16 }
 0x3f9   :  { %v10197_v52 = vpop.eup %7468  ;;  %v10199_v29 = vpop.permute.xlu1 %3886  ;;  %v4323_v40 = vsub.f32 0.0, %v4259_v32  ;;  %v4262_v44 = vand.u32 2147483647, %v13876_v30  ;;  %7494 = vpow2.f32 %v4420_v48  ;;  %v4076_v32 = vsel %vm1659_vm1, %v10023_v58, 0.0  ;;  %v13883_v58 = vld [vmem:[#allocation123_spill] sm:$0xff] }
 0x3fa   :  { %13874 = vst [vmem:[#allocation25_spill] sm:$0xff] %v10197_v52  ;;  %v10205_v6 = vpop.eup %7470  ;;  %4038 = vadd.xlane.f32.xlu0 %v4037_v62  ;;  %v4422_v62 = vmul.f32 1.442695, %v4321_v28  ;;  %v10219_v18 = vpop.permute.xlu0 %3908  ;;  %7496 = vrcp.f32 %v4499_v12  ;;  %v4498_v28 = vadd.f32 1.0, %v10113_v55  ;;  %v10234_v48 = vmul.f32 0.6931472, %v10000_v60 }
 0x3fb   :  { %13875 = vst [vmem:[#allocation40_spill] sm:$0xff] %v10205_v6  ;;  %v10211_v52 = vpop.eup %7472  ;;  %4032 = vadd.xlane.f32.xlu1 %v4031_v24  ;;  %v13877_v6 = vld [vmem:[#allocation41_spill] sm:$0xff]  ;;  %7498 = vlog2.f32 %v4499_v12  ;;  %v4426_v16 = vmul.f32 1.442695, %v4323_v40  ;;  %v4326_v49 = vsub.f32 0.0, %v4262_v44  ;;  %v4085_v12 = vsel %vm1659_vm1, %v10055_v3, 0.0 }
 0x3fc   :  { %v10214_v41 = vpop.eup %7474  ;;  %v4261_v34 = vand.u32 2147483647, %v13877_v6  ;;  %13880 = vst [vmem:[#allocation60_spill] sm:$0xff] %v10234_v48  ;;  %7500 = vpow2.f32 %v4424_v26  ;;  %v4263_v30 = vand.u32 2147483647, %v13882_v42  ;;  %v10250_v40 = vsel %vm5052_vm2, %v9993_v33, %v5116_v37  ;;  %v13886_v3 = vld [vmem:[#allocation101_spill] sm:$0xff] }
 0x3fd   :  { %v10217_v39 = vpop.eup %7476  ;;  %v10221_v51 = vpop.permute.xlu1 %3910  ;;  %7502 = vpow2.f32 %v4422_v62  ;;  %v4264_v19 = vand.u32 2147483647, %v13883_v58  ;;  %13884 = vst [vmem:[#allocation82_spill] sm:$0xff] %v10250_v40  ;;  %v4432_v33 = vmul.f32 1.442695, %v4326_v49  ;;  %v13887_v48 = vld [vmem:[#allocation78_spill] sm:$0xff] }
 0x3fe   :  { %13878 = vst [vmem:[#allocation44_spill] sm:$0xff] %v10217_v39  ;;  %v10229_v35 = vpop.eup %7478  ;;  %4080 = vadd.xlane.f32.xlu0 %v4079_v4  ;;  %v4428_v4 = vmul.f32 1.442695, %v4324_v31  ;;  %v4325_v6 = vsub.f32 0.0, %v4261_v34  ;;  %7504 = vrcp.f32 %v4498_v28  ;;  %v4082_v31 = vsel %vm1659_vm1, %v10041_v7, 0.0  ;;  %v10265_v17 = vpop.permute.xlu0 %3856  ;;  %v13888_v58 = vld [vmem:[#allocation124_spill] sm:$0xff] }
 0x3ff   :  { %13879 = vst [vmem:[#allocation59_spill] sm:$0xff] %v10229_v35  ;;  %v10237_v24 = vpop.eup %7480  ;;  %4077 = vadd.xlane.f32.xlu1 %v4076_v32  ;;  %v4509_v44 = vadd.f32 1.0, %v10229_v35  ;;  %v5118_v34 = vmul.f32 %v10017_v9, %v9947_v11  ;;  %7506 = vlog2.f32 %v4498_v28  ;;  %v4327_v37 = vsub.f32 0.0, %v4263_v30  ;;  %v13907_v32 = vld [vmem:[#allocation62_spill] sm:$0xff] }
 0x400   :  { %13881 = vst [vmem:[#allocation77_spill] sm:$0xff] %v10237_v24  ;;  %v10240_v39 = vpop.eup %7482  ;;  %7508 = vpow2.f32 %v4426_v16  ;;  %v4266_v40 = vand.u32 2147483647, %v13887_v48  ;;  %v4430_v7 = vmul.f32 1.442695, %v4325_v6  ;;  %v4328_v46 = vsub.f32 0.0, %v4264_v19 }
 0x401   :  { %v10243_v60 = vpop.eup %7484  ;;  %v10255_v62 = vpop.permute.xlu1 %3858  ;;  %7510 = vpow2.f32 %v4428_v4  ;;  %v4265_v11 = vand.u32 2147483647, %v13888_v58  ;;  %v4043_v49 = vsel %vm1659_vm1, %v10070_v59, 0.0  ;;  %v10276_v30 = vmul.f32 0.6931472, %v10025_v22  ;;  %v13893_v4 = vld [vmem:[#allocation103_spill] sm:$0xff] }
 0x402   :  { %v10253_v26 = vpop.eup %7486  ;;  %4086 = vadd.xlane.f32.xlu0 %v4085_v12  ;;  %7512 = vrcp.f32 %v4509_v44  ;;  %v4508_v16 = vadd.f32 1.0, %v10237_v24  ;;  %v4040_v6 = vsel %vm1659_vm1, %v10057_v61, 0.0  ;;  %v10286_v19 = vsel %vm5054_vm3, %v10017_v9, %v5118_v34  ;;  %v13894_v48 = vld [vmem:[#allocation27_spill] sm:$0xff]  ;;  %v13896_v24 = vld [vmem:[#allocation24_spill] sm:$0xff] }
 0x403   :  { %13885 = vst [vmem:[#allocation66_spill] sm:$0xff] %v10253_v26  ;;  %v10262_v54 = vpop.eup %7488  ;;  %4083 = vadd.xlane.f32.xlu1 %v4082_v31  ;;  %13890 = vst [vmem:[#allocation64_spill] sm:$0xff] %v10276_v30  ;;  %7514 = vlog2.f32 %v4509_v44  ;;  %v4434_v22 = vmul.f32 1.442695, %v4327_v37  ;;  %v4330_v30 = vsub.f32 0.0, %v4266_v40  ;;  %v4329_v42 = vsub.f32 0.0, %v4265_v11  ;;  %v10299_v44 = vpop.permute.xlu0 %3888 }
 0x404   :  { %v10267_v12 = vpop.eup %7490  ;;  %13892 = vst [vmem:[#allocation81_spill] sm:$0xff] %v10286_v19  ;;  %7516 = vpow2.f32 %v4432_v33  ;;  %v4267_v58 = vand.u32 2147483647, %v13894_v48  ;;  %v4436_v61 = vmul.f32 1.442695, %v4328_v46  ;;  %v4091_v33 = vsel %vm1659_vm1, %v10085_v38, 0.0 }
 0x405   :  { %v10271_v28 = vpop.eup %7492  ;;  %7518 = vpow2.f32 %v4430_v7  ;;  %v4268_v15 = vand.u32 2147483647, %v13896_v24  ;;  %v10295_v9 = vpop.permute.xlu1 %3890  ;;  %v13898_v40 = vld [vmem:[#allocation9_spill] sm:$0xff]  ;;  %v4088_v46 = vsel %vm1659_vm1, %v10072_v13, 0.0  ;;  %v10311_v11 = vmul.f32 0.6931472, %v10043_v56 }
 0x406   :  { %13889 = vst [vmem:[#allocation71_spill] sm:$0xff] %v10271_v28  ;;  %v10279_v31 = vpop.eup %7494  ;;  %4044 = vadd.xlane.f32.xlu0 %v4043_v49  ;;  %v5119_v37 = vmul.f32 %v10035_v14, %v13898_v40  ;;  %7520 = vrcp.f32 %v4508_v16  ;;  %v4440_v38 = vmul.f32 1.442695, %v4330_v30  ;;  %v4331_v40 = vsub.f32 0.0, %v4267_v58  ;;  %v13901_v48 = vld [vmem:[#allocation46_spill] sm:$0xff]  ;;  %v13903_v13 = vld [vmem:[#allocation45_spill] sm:$0xff] }
 0x407   :  { %13891 = vst [vmem:[#allocation68_spill] sm:$0xff] %v10279_v31  ;;  %v10289_v59 = vpop.eup %7496  ;;  %4041 = vadd.xlane.f32.xlu1 %v4040_v6  ;;  %v4511_v6 = vadd.f32 1.0, %v10271_v28  ;;  %13900 = vst [vmem:[#allocation131_spill] sm:$0xff] %v10311_v11  ;;  %7522 = vlog2.f32 %v4508_v16  ;;  %v4270_v24 = vand.u32 2147483647, %v13901_v48  ;;  %v4049_v16 = vsel %vm1659_vm1, %v10100_v5, 0.0 }
 0x408   :  { %v10292_v49 = vpop.eup %7498  ;;  %7524 = vpow2.f32 %v4434_v22  ;;  %v10328_v58 = vsel %vm5055_vm4, %v10035_v14, %v5119_v37  ;;  %v4510_v30 = vadd.f32 1.0, %v10253_v26  ;;  %v4442_v37 = vmul.f32 1.442695, %v4331_v40  ;;  %v13919_v26 = vld [vmem:[#allocation32_spill] sm:$0xff] }
 0x409   :  { %13895 = vst [vmem:[#allocation84_spill] sm:$0xff] %v10292_v49  ;;  %v10297_v34 = vpop.eup %7500  ;;  %7526 = vpow2.f32 %v4436_v61  ;;  %v4332_v49 = vsub.f32 0.0, %v4268_v15  ;;  %13904 = vst [vmem:[#allocation133_spill] sm:$0xff] %v10328_v58  ;;  %v4046_v15 = vsel %vm1659_vm1, %v10087_v23, 0.0  ;;  %v5117_v61 = vmul.f32 %v10053_v1, %v9970_v2  ;;  %v10344_v58 = vpop.permute.xlu0 %3912 }
 0x40a   :  { %13897 = vst [vmem:[#allocation83_spill] sm:$0xff] %v10297_v34  ;;  %v10306_v7 = vpop.eup %7502  ;;  %4092 = vadd.xlane.f32.xlu0 %v4091_v33  ;;  %v4438_v33 = vmul.f32 1.442695, %v4329_v42  ;;  %v4269_v34 = vand.u32 2147483647, %v13903_v13  ;;  %7528 = vrcp.f32 %v4511_v6  ;;  %v10333_v42 = vpop.permute.xlu1 %3914  ;;  %vm5068_vm9 = vcmp.ge.f32.partialorder %v13886_v3, 0.0 }
 0x40b   :  { %13899 = vst [vmem:[#allocation9_spill] sm:$0xff] %v10306_v7  ;;  %v10314_v19 = vpop.eup %7504  ;;  %4089 = vadd.xlane.f32.xlu1 %v4088_v46  ;;  %7530 = vlog2.f32 %v4511_v6  ;;  %v4334_v46 = vsub.f32 0.0, %v4270_v24  ;;  %v4271_v11 = vand.u32 2147483647, %v13907_v32  ;;  %v4444_v23 = vmul.f32 1.442695, %v4332_v49 }
 0x40c   :  { %v10317_v28 = vpop.eup %7506  ;;  %7532 = vpow2.f32 %v4440_v38  ;;  %v4333_v2 = vsub.f32 0.0, %v4269_v34  ;;  %v4272_v5 = vand.u32 2147483647, %v13909_v57  ;;  %v13911_v6 = vld [vmem:[#allocation16_spill] sm:$0xff]  ;;  %v13912_v38 = vld [vmem:[#allocation105_spill] sm:$0xff]  ;;  %v13918_v57 = vld [vmem:[#allocation10_spill] sm:$0xff] }
 0x40d   :  { %13902 = vst [vmem:[#allocation132_spill] sm:$0xff] %v10317_v28  ;;  %v10321_v56 = vpop.eup %7508  ;;  %7534 = vpow2.f32 %v4438_v33  ;;  %v4097_v48 = vsel %vm1659_vm1, %v13911_v6, 0.0  ;;  %v13913_v24 = vld [vmem:[#allocation13_spill] sm:$0xff]  ;;  %v13916_v49 = vld [vmem:[#allocation12_spill] sm:$0xff]  ;;  %v4448_v6 = vmul.f32 1.442695, %v4334_v46 }
 0x40e   :  { %v10331_v22 = vpop.eup %7510  ;;  %4050 = vadd.xlane.f32.xlu0 %v4049_v16  ;;  %7536 = vrcp.f32 %v4510_v30  ;;  %v4485_v32 = vadd.f32 1.0, %v13913_v24  ;;  %v10360_v34 = vmul.f32 0.6931472, %v13916_v49  ;;  %v4335_v40 = vsub.f32 0.0, %v4271_v11  ;;  %v13921_v28 = vld [vmem:[#allocation79_spill] sm:$0xff] }
 0x40f   :  { %13905 = vst [vmem:[#allocation134_spill] sm:$0xff] %v10331_v22  ;;  %v10341_v14 = vpop.eup %7512  ;;  %4047 = vadd.xlane.f32.xlu1 %v4046_v15  ;;  %v13915_v15 = vld [vmem:[#allocation36_spill] sm:$0xff]  ;;  %7538 = vlog2.f32 %v4510_v30  ;;  %v4274_v24 = vand.u32 2147483647, %v13921_v28  ;;  %v10381_v11 = vsel %vm5053_vm5, %v10053_v1, %v5117_v61  ;;  %v13927_v46 = vld [vmem:[#allocation31_spill] sm:$0xff]  ;;  %vm5069_vm10 = vcmp.ge.f32.partialorder %v13893_v4, 0.0 }
 0x410   :  { %13906 = vst [vmem:[#allocation135_spill] sm:$0xff] %v10341_v14  ;;  %v10346_v16 = vpop.eup %7514  ;;  %v4094_v33 = vsel %vm1659_vm1, %v13915_v15, 0.0  ;;  %13917 = vst [vmem:[#allocation36_spill] sm:$0xff] %v10360_v34  ;;  %7540 = vpow2.f32 %v4442_v37  ;;  %v4336_v15 = vsub.f32 0.0, %v4272_v5  ;;  %v13923_v14 = vld [vmem:[#allocation125_spill] sm:$0xff]  ;;  %v10370_v34 = vpop.permute.xlu1 %3934  ;;  %v13925_v30 = vld [vmem:[#allocation72_spill] sm:$0xff] }
 0x411   :  { %13908 = vst [vmem:[#allocation136_spill] sm:$0xff] %v10346_v16  ;;  %v10349_v22 = vpop.eup %7516  ;;  %7542 = vpow2.f32 %v4444_v23  ;;  %v4273_v49 = vand.u32 2147483647, %v13923_v14  ;;  %v4127_v37 = vsel %vm1659_vm1, %v13925_v30, 0.0  ;;  %13926 = vst [vmem:[#allocation72_spill] sm:$0xff] %v10381_v11  ;;  %v4484_v23 = vadd.f32 1.0, %v13927_v46 }
 0x412   :  { %13910 = vst [vmem:[#allocation137_spill] sm:$0xff] %v10349_v22  ;;  %v10355_v13 = vpop.eup %7518  ;;  %4098 = vadd.xlane.f32.xlu0 %v4097_v48  ;;  %v5121_v22 = vmul.f32 %v13919_v26, %v13918_v57  ;;  %v4446_v48 = vmul.f32 1.442695, %v4333_v2  ;;  %v10374_v57 = vpop.permute.xlu0 %3932  ;;  %7544 = vrcp.f32 %v4485_v32  ;;  %v13929_v2 = vld [vmem:[#allocation18_spill] sm:$0xff]  ;;  %v13930_v28 = vld [vmem:[#allocation107_spill] sm:$0xff]  ;;  %v4338_v61 = vsub.f32 0.0, %v4274_v24 }
 0x413   :  { %13914 = vst [vmem:[#allocation16_spill] sm:$0xff] %v10355_v13  ;;  %v10364_v16 = vpop.eup %7520  ;;  %4095 = vadd.xlane.f32.xlu1 %v4094_v33  ;;  %v4124_v33 = vsel %vm1659_vm1, %v13929_v2, 0.0  ;;  %v13931_v14 = vld [vmem:[#allocation106_spill] sm:$0xff]  ;;  %7546 = vlog2.f32 %v4485_v32  ;;  %v4450_v1 = vmul.f32 1.442695, %v4335_v40  ;;  %v4337_v45 = vsub.f32 0.0, %v4273_v49 }
 0x414   :  { %13920 = vst [vmem:[#allocation12_spill] sm:$0xff] %v10364_v16  ;;  %v10367_v13 = vpop.eup %7522  ;;  %7548 = vpow2.f32 %v4448_v6  ;;  %v4452_v2 = vmul.f32 1.442695, %v4336_v15  ;;  %v13937_v32 = vld [vmem:[#allocation65_spill] sm:$0xff]  ;;  %v13938_v6 = vld [vmem:[#allocation47_spill] sm:$0xff]  ;;  %v13942_v49 = vld [vmem:[#allocation50_spill] sm:$0xff] }
 0x415   :  { %13922 = vst [vmem:[#allocation10_spill] sm:$0xff] %v10367_v13  ;;  %v10372_v35 = vpop.eup %7524  ;;  %7550 = vpow2.f32 %v4446_v48  ;;  %v4276_v46 = vand.u32 2147483647, %v13937_v32  ;;  %v4133_v40 = vsel %vm1659_vm1, %v13938_v6, 0.0  ;;  %v13939_v24 = vld [vmem:[#allocation63_spill] sm:$0xff]  ;;  %vm5073_vm13 = vcmp.ge.f32.partialorder %v13930_v28, 0.0 }
 0x416   :  { %13924 = vst [vmem:[#allocation32_spill] sm:$0xff] %v10372_v35  ;;  %v10384_v5 = vpop.eup %7526  ;;  %4128 = vadd.xlane.f32.xlu0 %v4127_v37  ;;  %v10396_v37 = vsel %vm5057_vm6, %v13919_v26, %v5121_v22  ;;  %v13935_v35 = vld [vmem:[#allocation67_spill] sm:$0xff]  ;;  %7552 = vrcp.f32 %v4484_v23  ;;  %v4501_v26 = vadd.f32 1.0, %v13939_v24  ;;  %v4456_v32 = vmul.f32 1.442695, %v4338_v61 }
 0x417   :  { %13928 = vst [vmem:[#allocation138_spill] sm:$0xff] %v10384_v5  ;;  %v10391_v13 = vpop.eup %7528  ;;  %4125 = vadd.xlane.f32.xlu1 %v4124_v33  ;;  %13933 = vst [vmem:[#allocation139_spill] sm:$0xff] %v10396_v37  ;;  %v4275_v5 = vand.u32 2147483647, %v13935_v35  ;;  %v10410_v33 = vpop.permute.xlu1 %3938  ;;  %v13941_v48 = vld [vmem:[#allocation75_spill] sm:$0xff]  ;;  %7554 = vlog2.f32 %v4484_v23  ;;  %vm5072_vm14 = vcmp.ge.f32.partialorder %v13912_v38, 0.0 }
 0x418   :  { %13932 = vst [vmem:[#allocation18_spill] sm:$0xff] %v10391_v13  ;;  %v10398_v11 = vpop.eup %7530  ;;  %v4130_v15 = vsel %vm1659_vm1, %v13941_v48, 0.0  ;;  %v10415_v37 = vmul.f32 0.6931472, %v13942_v49  ;;  %7556 = vpow2.f32 %v4450_v1  ;;  %v10420_v35 = vpop.permute.xlu0 %3936  ;;  %v13948_v24 = vld [vmem:[#allocation51_spill] sm:$0xff]  ;;  %vm5074_vm2 = vcmp.ge.f32.partialorder %v13931_v14, 0.0 }
 0x419   :  { %13934 = vst [vmem:[#allocation140_spill] sm:$0xff] %v10398_v11  ;;  %v10401_v30 = vpop.eup %7532  ;;  %13946 = vst [vmem:[#allocation142_spill] sm:$0xff] %v10420_v35  ;;  %7558 = vpow2.f32 %v4452_v2  ;;  %v4454_v48 = vmul.f32 1.442695, %v4337_v45  ;;  %v4339_v49 = vsub.f32 0.0, %v4275_v5  ;;  %v13953_v1 = vld [vmem:[#allocation127_spill] sm:$0xff] }
 0x41a   :  { %13936 = vst [vmem:[#allocation141_spill] sm:$0xff] %v10401_v30  ;;  %v10408_v22 = vpop.eup %7534  ;;  %4134 = vadd.xlane.f32.xlu0 %v4133_v40  ;;  %13943 = vst [vmem:[#allocation75_spill] sm:$0xff] %v10415_v37  ;;  %v13951_v37 = vld [vmem:[#allocation126_spill] sm:$0xff]  ;;  %v4277_v61 = vand.u32 2147483647, %v13953_v1  ;;  %7560 = vrcp.f32 %v4501_v26  ;;  %v13956_v45 = vld [vmem:[#allocation29_spill] sm:$0xff] }
 0x41b   :  { %13940 = vst [vmem:[#allocation47_spill] sm:$0xff] %v10408_v22  ;;  %v10418_v6 = vpop.eup %7536  ;;  %4131 = vadd.xlane.f32.xlu1 %v4130_v15  ;;  %v13947_v22 = vld [vmem:[#allocation11_spill] sm:$0xff]  ;;  %v4278_v30 = vand.u32 2147483647, %v13951_v37  ;;  %v4055_v15 = vsel %vm1659_vm1, %v10177_v27, 0.0  ;;  %v13957_v5 = vld [vmem:[#allocation52_spill] sm:$0xff]  ;;  %7562 = vlog2.f32 %v4501_v26 }
 0x41c   :  { %13945 = vst [vmem:[#allocation50_spill] sm:$0xff] %v10418_v6  ;;  %v5120_v11 = vmul.f32 %v13948_v24, %v13947_v22  ;;  %v10425_v16 = vpop.eup %7538  ;;  %v4340_v6 = vsub.f32 0.0, %v4276_v46  ;;  %v13955_v22 = vld [vmem:[#allocation58_spill] sm:$0xff]  ;;  %v5123_v2 = vmul.f32 %v13957_v5, %v13956_v45  ;;  %v13958_v37 = vld [vmem:[#allocation73_spill] sm:$0xff]  ;;  %7564 = vpow2.f32 %v4456_v32  ;;  %v13960_v27 = vld [vmem:[#allocation19_spill] sm:$0xff]  ;;  %v10457_v32 = vpop.permute.xlu1 %3862 }
 0x41d   :  { %13950 = vst [vmem:[#allocation11_spill] sm:$0xff] %v10425_v16  ;;  %v10428_v23 = vpop.eup %7540  ;;  %v4052_v13 = vsel %vm1659_vm1, %v13955_v22, 0.0  ;;  %v4500_v46 = vadd.f32 1.0, %v13958_v37  ;;  %v10444_v1 = vmul.f32 0.6931472, %v13960_v27  ;;  %v13963_v22 = vld [vmem:[#allocation57_spill] sm:$0xff]  ;;  %7566 = vpow2.f32 %v4454_v48 }
 0x41e   :  { %13952 = vst [vmem:[#allocation51_spill] sm:$0xff] %v10428_v23  ;;  %v10433_v35 = vpop.eup %7542  ;;  %4056 = vadd.xlane.f32.xlu0 %v4055_v15  ;;  %v10449_v15 = vsel %vm5056_vm7, %v13948_v24, %v5120_v11  ;;  %v10452_v16 = vmul.f32 0.6931472, %v13963_v22  ;;  %v4458_v26 = vmul.f32 1.442695, %v4339_v49  ;;  %v4342_v45 = vsub.f32 0.0, %v4278_v30  ;;  %v10462_v11 = vpop.permute.xlu0 %3860 }
 0x41f   :  { %13954 = vst [vmem:[#allocation143_spill] sm:$0xff] %v10433_v35  ;;  %v10441_v23 = vpop.eup %7544  ;;  %4053 = vadd.xlane.f32.xlu1 %v4052_v13  ;;  %13961 = vst [vmem:[#allocation29_spill] sm:$0xff] %v10444_v1  ;;  %v13966_v37 = vld [vmem:[#allocation70_spill] sm:$0xff]  ;;  %v4460_v27 = vmul.f32 1.442695, %v4340_v6  ;;  %v4341_v1 = vsub.f32 0.0, %v4277_v61  ;;  %v10473_v48 = vsel %vm5059_vm8, %v13957_v5, %v5123_v2  ;;  %7568 = vrcp.f32 %v4500_v46 }
 0x420   :  { %13959 = vst [vmem:[#allocation58_spill] sm:$0xff] %v10441_v23  ;;  %13962 = vst [vmem:[#allocation52_spill] sm:$0xff] %v10449_v15  ;;  %v10454_v40 = vpop.eup %7546  ;;  %v4279_v23 = vand.u32 2147483647, %v13966_v37  ;;  %v13968_v35 = vld [vmem:[#allocation69_spill] sm:$0xff]  ;;  %v4103_v24 = vsel %vm1659_vm1, %v10199_v29, 0.0  ;;  %7570 = vlog2.f32 %v4500_v46  ;;  %v10493_v46 = vpop.permute.xlu1 %3894 }
 0x421   :  { %13964 = vst [vmem:[#allocation19_spill] sm:$0xff] %v10452_v16  ;;  %13965 = vst [vmem:[#allocation57_spill] sm:$0xff] %v10454_v40  ;;  %v10459_v13 = vpop.eup %7548  ;;  %v4280_v47 = vand.u32 2147483647, %v13968_v35  ;;  %v4100_v30 = vsel %vm1659_vm1, %v10191_v50, 0.0  ;;  %v4513_v6 = vadd.f32 1.0, %v10306_v7  ;;  %7572 = vpow2.f32 %v4458_v26 }
 0x422   :  { %13967 = vst [vmem:[#allocation144_spill] sm:$0xff] %v10459_v13  ;;  %v10466_v22 = vpop.eup %7550  ;;  %4104 = vadd.xlane.f32.xlu0 %v4103_v24  ;;  %13969 = vst [vmem:[#allocation145_spill] sm:$0xff] %v10473_v48  ;;  %v13971_v61 = vld [vmem:[#allocation128_spill] sm:$0xff]  ;;  %v13972_v29 = vld [vmem:[#allocation35_spill] sm:$0xff]  ;;  %v4464_v5 = vmul.f32 1.442695, %v4342_v45  ;;  %7574 = vpow2.f32 %v4460_v27  ;;  %v10501_v45 = vpop.permute.xlu0 %3892 }
 0x423   :  { %v10476_v49 = vpop.eup %7552  ;;  %v4282_v16 = vand.u32 2147483647, %v13971_v61  ;;  %4101 = vadd.xlane.f32.xlu1 %v4100_v30  ;;  %v13973_v24 = vld [vmem:[#allocation39_spill] sm:$0xff]  ;;  %v13974_v35 = vld [vmem:[#allocation109_spill] sm:$0xff]  ;;  %v4343_v2 = vsub.f32 0.0, %v4279_v23  ;;  %v4344_v30 = vsub.f32 0.0, %v4280_v47  ;;  %7576 = vrcp.f32 %v4513_v6 }
 0x424   :  { %13970 = vst [vmem:[#allocation146_spill] sm:$0xff] %v10476_v49  ;;  %v5132_v15 = vmul.f32 %v13973_v24, %v13972_v29  ;;  %v10483_v37 = vpop.eup %7554  ;;  %v13975_v48 = vld [vmem:[#allocation129_spill] sm:$0xff]  ;;  %v4462_v61 = vmul.f32 1.442695, %v4341_v1  ;;  %v4139_v40 = vsel %vm1659_vm1, %v10221_v51, 0.0  ;;  %v13978_v29 = vld [vmem:[#allocation130_spill] sm:$0xff]  ;;  %7578 = vlog2.f32 %v4513_v6 }
 0x425   :  { %v4281_v8 = vand.u32 2147483647, %v13975_v48  ;;  %v10486_v7 = vpop.eup %7556  ;;  %v4283_v50 = vand.u32 2147483647, %v13978_v29  ;;  %v4136_v23 = vsel %vm1659_vm1, %v10219_v18, 0.0  ;;  %v4512_v26 = vadd.f32 1.0, %v10279_v31 }
 0x426   :  { %13976 = vst [vmem:[#allocation35_spill] sm:$0xff] %v10486_v7  ;;  %v10490_v49 = vpop.eup %7558  ;;  %4140 = vadd.xlane.f32.xlu0 %v4139_v40  ;;  %v4346_v47 = vsub.f32 0.0, %v4282_v16  ;;  %v13979_v51 = vld [vmem:[#allocation53_spill] sm:$0xff]  ;;  %v10509_v40 = vsel %vm5068_vm9, %v13973_v24, %v5132_v15  ;;  %7580 = vpow2.f32 %v4464_v5  ;;  %v4466_v29 = vmul.f32 1.442695, %v4343_v2  ;;  %v13983_v31 = vld [vmem:[#allocation23_spill] sm:$0xff] }
 0x427   :  { %13977 = vst [vmem:[#allocation39_spill] sm:$0xff] %v10490_v49  ;;  %v10499_v1 = vpop.eup %7560  ;;  %4137 = vadd.xlane.f32.xlu1 %v4136_v23  ;;  %v10504_v27 = vmul.f32 0.6931472, %v13979_v51  ;;  %13981 = vst [vmem:[#allocation147_spill] sm:$0xff] %v10509_v40  ;;  %v4345_v48 = vsub.f32 0.0, %v4281_v8  ;;  %v13982_v49 = vld [vmem:[#allocation34_spill] sm:$0xff]  ;;  %7582 = vpow2.f32 %v4462_v61 }
 0x428   :  { %v10511_v18 = vpop.eup %7562  ;;  %v5133_v16 = vmul.f32 %v13983_v31, %v13982_v49  ;;  %v4468_v51 = vmul.f32 1.442695, %v4344_v30  ;;  %v13985_v15 = vld [vmem:[#allocation117_spill] sm:$0xff]  ;;  %v4347_v5 = vsub.f32 0.0, %v4283_v50  ;;  %v4058_v8 = vsel %vm1659_vm1, %v10265_v17, 0.0  ;;  %v13987_v49 = vld [vmem:[#allocation30_spill] sm:$0xff] }
 0x429   :  { %13980 = vst [vmem:[#allocation53_spill] sm:$0xff] %v10504_v27  ;;  %v10516_v23 = vpop.eup %7564  ;;  %v4061_v27 = vsel %vm1659_vm1, %v10255_v62, 0.0  ;;  %7584 = vrcp.f32 %v4512_v26  ;;  %v4487_v2 = vadd.f32 1.0, %v13987_v49  ;;  %v4472_v40 = vmul.f32 1.442695, %v4346_v47  ;;  %v13988_v61 = vld [vmem:[#allocation26_spill] sm:$0xff] }
 0x42a   :  { %13984 = vst [vmem:[#allocation34_spill] sm:$0xff] %v10516_v23  ;;  %v10522_v24 = vpop.eup %7566  ;;  %4062 = vadd.xlane.f32.xlu0 %v4061_v27  ;;  %v10528_v30 = vmul.f32 0.6931472, %v13988_v61  ;;  %v13990_v62 = vld [vmem:[#allocation49_spill] sm:$0xff]  ;;  %7586 = vlog2.f32 %v4512_v26  ;;  %v4470_v50 = vmul.f32 1.442695, %v4345_v48  ;;  %v10535_v27 = vpop.permute.xlu1 %3918  ;;  %v10540_v17 = vsel %vm5069_vm10, %v13983_v31, %v5133_v16 }
 0x42b   :  { %13986 = vst [vmem:[#allocation23_spill] sm:$0xff] %v10522_v24  ;;  %4059 = vadd.xlane.f32.xlu1 %v4058_v8  ;;  %v5135_v3 = vmul.f32 %v10168_v20, %v13990_v62  ;;  %v10533_v6 = vpop.eup %7568  ;;  %7588 = vpow2.f32 %v4466_v29  ;;  %13991 = vst [vmem:[#allocation26_spill] sm:$0xff] %v10540_v17  ;;  %v13992_v47 = vld [vmem:[#allocation118_spill] sm:$0xff]  ;;  %v10545_v62 = vpop.permute.xlu0 %3916  ;;  %v4109_v26 = vsel %vm1659_vm1, %v10295_v9, 0.0  ;;  %v13994_v29 = vld [vmem:[#allocation55_spill] sm:$0xff]  ;;  %v4106_v31 = vsel %vm1659_vm1, %v10299_v44, 0.0 }
 0x42c   :  { %13989 = vst [vmem:[#allocation30_spill] sm:$0xff] %v10528_v30  ;;  %v10543_v61 = vpop.eup %7570  ;;  %7590 = vpow2.f32 %v4468_v51  ;;  %v13993_v30 = vld [vmem:[#allocation17_spill] sm:$0xff]  ;;  %v4474_v4 = vmul.f32 1.442695, %v4347_v5  ;;  %v10562_v9 = vmul.f32 0.6931472, %v10172_v36 }
 0x42d   :  { %v5134_v48 = vmul.f32 %v10188_v43, %v13993_v30  ;;  %v10552_v24 = vpop.eup %7572  ;;  %v13995_v16 = vld [vmem:[#allocation37_spill] sm:$0xff]  ;;  %7592 = vrcp.f32 %v4487_v2  ;;  %v10567_v5 = vsel %vm5071_vm11, %v10168_v20, %v5135_v3  ;;  %v13999_v44 = vld [vmem:[#allocation28_spill] sm:$0xff]  ;;  %v14002_v36 = vld [vmem:[#allocation119_spill] sm:$0xff]  ;;  %v4145_v20 = vsel %vm1659_vm1, %v10333_v42, 0.0 }
 0x42e   :  { %4110 = vadd.xlane.f32.xlu0 %v4109_v26  ;;  %v5137_v51 = vmul.f32 %v10211_v52, %v13995_v16  ;;  %v10559_v8 = vpop.eup %7574  ;;  %7594 = vpow2.f32 %v4472_v40  ;;  %13997 = vst [vmem:[#allocation17_spill] sm:$0xff] %v10562_v9  ;;  %13998 = vst [vmem:[#allocation37_spill] sm:$0xff] %v10567_v5  ;;  %v4486_v30 = vadd.f32 1.0, %v13999_v44  ;;  %v10574_v16 = vmul.f32 0.6931472, %v10193_v0  ;;  %v14001_v40 = vld [vmem:[#allocation38_spill] sm:$0xff] }
 0x42f   :  { %13996 = vst [vmem:[#allocation49_spill] sm:$0xff] %v10559_v8  ;;  %4107 = vadd.xlane.f32.xlu1 %v4106_v31  ;;  %v10571_v26 = vpop.eup %7576  ;;  %7596 = vpow2.f32 %v4470_v50  ;;  %v5136_v31 = vmul.f32 %v10240_v39, %v14001_v40  ;;  %v10587_v3 = vsel %vm5070_vm12, %v10188_v43, %v5134_v48  ;;  %v14004_v0 = vld [vmem:[#allocation80_spill] sm:$0xff]  ;;  %v10592_v40 = vpop.permute.xlu1 %3942  ;;  %v4142_v23 = vsel %vm1659_vm1, %v10344_v58, 0.0  ;;  %v14020_v38 = vld [vmem:[#allocation135_spill] sm:$0xff]  ;;  %v14040_v53 = vld [vmem:[#allocation10_spill] sm:$0xff] }
 0x430   :  { %14000 = vst [vmem:[#allocation28_spill] sm:$0xff] %v10574_v16  ;;  %v10580_v9 = vpop.eup %7578  ;;  %14003 = vst [vmem:[#allocation38_spill] sm:$0xff] %v10587_v3  ;;  %7598 = vlog2.f32 %v4487_v2  ;;  %v4503_v50 = vadd.f32 1.0, %v14004_v0  ;;  %v10597_v5 = vmul.f32 0.6931472, %v10214_v41  ;;  %v10602_v43 = vsel %vm5073_vm13, %v10211_v52, %v5137_v51  ;;  %v10607_v2 = vpop.permute.xlu0 %3940  ;;  %v14011_v41 = vld [vmem:[#allocation42_spill] sm:$0xff] }
 0x431   :  { %v10590_v16 = vpop.eup %7580  ;;  %7600 = vpow2.f32 %v4474_v4  ;;  %14007 = vst [vmem:[#allocation149_spill] sm:$0xff] %v10602_v43  ;;  %vm5085_vm3 = vcmp.ge.f32.partialorder %v13992_v47, 0.0  ;;  %v14009_v4 = vld [vmem:[#allocation8_spill] sm:$0xff]  ;;  %v10616_v52 = vmul.f32 0.6931472, %v10243_v60  ;;  %v10621_v51 = vsel %vm5072_vm14, %v10240_v39, %v5136_v31  ;;  %v14043_v21 = vld [vmem:[#allocation18_spill] sm:$0xff] }
 0x432   :  { %14005 = vst [vmem:[#allocation80_spill] sm:$0xff] %v10590_v16  ;;  %4146 = vadd.xlane.f32.xlu0 %v4145_v20  ;;  %14006 = vst [vmem:[#allocation148_spill] sm:$0xff] %v10597_v5  ;;  %v10605_v42 = vpop.eup %7582  ;;  %v5122_v48 = vmul.f32 %v10262_v54, %v14009_v4  ;;  %v14010_v20 = vld [vmem:[#allocation122_spill] sm:$0xff]  ;;  %7602 = vrcp.f32 %v4486_v30  ;;  %v4502_v5 = vadd.f32 1.0, %v14011_v41  ;;  %v4175_v58 = vsel %vm1659_vm1, %v10370_v34, 0.0  ;;  %v14047_v47 = vld [vmem:[#allocation93_spill] sm:$0xff] }
 0x433   :  { %14008 = vst [vmem:[#allocation150_spill] sm:$0xff] %v10605_v42  ;;  %4143 = vadd.xlane.f32.xlu1 %v4142_v23  ;;  %v10613_v3 = vpop.eup %7584  ;;  %14012 = vst [vmem:[#allocation8_spill] sm:$0xff] %v10616_v52  ;;  %v5139_v23 = vmul.f32 %v10289_v59, %v10129_v25  ;;  %7604 = vlog2.f32 %v4486_v30  ;;  %v5138_v43 = vmul.f32 %v10314_v19, %v10113_v55  ;;  %vm5084_vm4 = vcmp.ge.f32.partialorder %v13985_v15, 0.0  ;;  %v14016_v30 = vld [vmem:[#allocation120_spill] sm:$0xff]  ;;  %v10654_v31 = vpop.permute.xlu1 %3866  ;;  %v14053_v8 = vld [vmem:[#allocation58_spill] sm:$0xff] }
 0x434   :  { %14013 = vst [vmem:[#allocation42_spill] sm:$0xff] %v10621_v51  ;;  %v10625_v4 = vpop.eup %7586  ;;  %7606 = vrcp.f32 %v4503_v50  ;;  %v4515_v60 = vadd.f32 1.0, %v10321_v56  ;;  %v4172_v25 = vsel %vm1659_vm1, %v10374_v57, 0.0  ;;  %v10638_v39 = vmul.f32 0.6931472, %v10267_v12  ;;  %v14019_v51 = vld [vmem:[#allocation59_spill] sm:$0xff] }
 0x435   :  { %v10633_v52 = vpop.eup %7588  ;;  %7608 = vlog2.f32 %v4503_v50  ;;  %v10646_v55 = vsel %vm5058_vm15, %v10262_v54, %v5122_v48  ;;  %vm5087_vm5 = vcmp.ge.f32.partialorder %v14002_v36, 0.0  ;;  %v14021_v57 = vld [vmem:[#allocation83_spill] sm:$0xff]  ;;  %v14022_v50 = vld [vmem:[#allocation84_spill] sm:$0xff]  ;;  %v10662_v54 = vsel %vm5075_vm0, %v10289_v59, %v5139_v23 }
 0x436   :  { %14014 = vst [vmem:[#allocation151_spill] sm:$0xff] %v10633_v52  ;;  %4176 = vadd.xlane.f32.xlu0 %v4175_v58  ;;  %14015 = vst [vmem:[#allocation152_spill] sm:$0xff] %v10638_v39  ;;  %v10641_v34 = vpop.eup %7590  ;;  %v5149_v58 = vmul.f32 %v14020_v38, %v14019_v51  ;;  %7610 = vrcp.f32 %v4502_v5  ;;  %v4514_v12 = vadd.f32 1.0, %v14021_v57  ;;  %v10657_v28 = vmul.f32 0.6931472, %v14022_v50  ;;  %v14025_v48 = vld [vmem:[#allocation132_spill] sm:$0xff] }
 0x437   :  { %14017 = vst [vmem:[#allocation153_spill] sm:$0xff] %v10641_v34  ;;  %4173 = vadd.xlane.f32.xlu1 %v4172_v25  ;;  %14018 = vst [vmem:[#allocation154_spill] sm:$0xff] %v10646_v55  ;;  %v10652_v39 = vpop.eup %7592  ;;  %v10665_v25 = vmul.f32 0.6931472, %v14025_v48  ;;  %vm5086_vm6 = vcmp.ge.f32.partialorder %v13994_v29, 0.0  ;;  %7612 = vlog2.f32 %v4502_v5  ;;  %v10670_v55 = vpop.permute.xlu0 %3864  ;;  %v4181_v63 = vsel %vm1659_vm1, %v10410_v33, 0.0 }
 0x438   :  { %14023 = vst [vmem:[#allocation59_spill] sm:$0xff] %v10657_v28  ;;  %14024 = vst [vmem:[#allocation135_spill] sm:$0xff] %v10662_v54  ;;  %v10668_v51 = vpop.eup %7594  ;;  %v10677_v50 = vsel %vm5074_vm2, %v10314_v19, %v5138_v43  ;;  %7614 = vrcp.f32 %v4515_v60  ;;  %v4525_v59 = vadd.f32 1.0, %v10466_v22  ;;  %v14030_v48 = vld [vmem:[#allocation142_spill] sm:$0xff]  ;;  %v14032_v28 = vld [vmem:[#allocation12_spill] sm:$0xff]  ;;  %vm5061_vm7 = vcmp.ge.f32.partialorder %v14033_v10, 0.0 }
 0x439   :  { %14026 = vst [vmem:[#allocation83_spill] sm:$0xff] %v10665_v25  ;;  %14027 = vst [vmem:[#allocation84_spill] sm:$0xff] %v10668_v51  ;;  %v10680_v23 = vpop.eup %7596  ;;  %v4178_v5 = vsel %vm1659_vm1, %v14030_v48, 0.0  ;;  %v14031_v25 = vld [vmem:[#allocation77_spill] sm:$0xff]  ;;  %v14034_v33 = vld [vmem:[#allocation112_spill] sm:$0xff]  ;;  %7616 = vlog2.f32 %v4515_v60  ;;  %vm5060_vm8 = vcmp.ge.f32.partialorder %v14047_v47, 0.0 }
 0x43a   :  { %14028 = vst [vmem:[#allocation132_spill] sm:$0xff] %v10677_v50  ;;  %14029 = vst [vmem:[#allocation155_spill] sm:$0xff] %v10680_v23  ;;  %4182 = vadd.xlane.f32.xlu0 %v4181_v63  ;;  %v5148_v54 = vmul.f32 %v14032_v28, %v14031_v25  ;;  %v10688_v14 = vpop.eup %7598  ;;  %v14035_v19 = vld [vmem:[#allocation136_spill] sm:$0xff]  ;;  %v10696_v63 = vsel %vm5085_vm3, %v14020_v38, %v5149_v58  ;;  %7618 = vrcp.f32 %v4514_v12  ;;  %v14038_v48 = vld [vmem:[#allocation143_spill] sm:$0xff]  ;;  %v10702_v17 = vmul.f32 0.6931472, %v14040_v53 }
 0x43b   :  { %4179 = vadd.xlane.f32.xlu1 %v4178_v5  ;;  %v10691_v43 = vmul.f32 0.6931472, %v14035_v19  ;;  %14037 = vst [vmem:[#allocation77_spill] sm:$0xff] %v10696_v63  ;;  %v4524_v50 = vadd.f32 1.0, %v14038_v48  ;;  %v10699_v25 = vpop.eup %7600  ;;  %v14042_v60 = vld [vmem:[#allocation71_spill] sm:$0xff]  ;;  %v14044_v5 = vld [vmem:[#allocation110_spill] sm:$0xff]  ;;  %7620 = vlog2.f32 %v4514_v12  ;;  %v10729_v23 = vpop.permute.xlu0 %3896 }
 0x43c   :  { %14039 = vst [vmem:[#allocation12_spill] sm:$0xff] %v10699_v25  ;;  %14041 = vst [vmem:[#allocation136_spill] sm:$0xff] %v10702_v17  ;;  %v5151_v51 = vmul.f32 %v14043_v21, %v14042_v60  ;;  %v10707_v19 = vpop.eup %7602  ;;  %v4067_v38 = vsel %vm1659_vm1, %v10457_v32, 0.0  ;;  %v14045_v58 = vld [vmem:[#allocation66_spill] sm:$0xff]  ;;  %7622 = vrcp.f32 %v4525_v59  ;;  %v4527_v53 = vadd.f32 1.0, %v10486_v7  ;;  %v10717_v25 = vpop.permute.xlu1 %3898  ;;  %v14050_v16 = vld [vmem:[#allocation140_spill] sm:$0xff] }
 0x43d   :  { %14036 = vst [vmem:[#allocation142_spill] sm:$0xff] %v10691_v43  ;;  %v14046_v43 = vld [vmem:[#allocation50_spill] sm:$0xff]  ;;  %v10715_v17 = vpop.eup %7604  ;;  %v4064_v12 = vsel %vm1659_vm1, %v10462_v11, 0.0  ;;  %v10724_v32 = vsel %vm5084_vm4, %v14032_v28, %v5148_v54  ;;  %7624 = vlog2.f32 %v4525_v59  ;;  %v10732_v52 = vmul.f32 0.6931472, %v14050_v16  ;;  %v14054_v11 = vld [vmem:[#allocation111_spill] sm:$0xff] }
 0x43e   :  { %v5150_v63 = vmul.f32 %v14046_v43, %v14045_v58  ;;  %4068 = vadd.xlane.f32.xlu0 %v4067_v38  ;;  %14048 = vst [vmem:[#allocation10_spill] sm:$0xff] %v10724_v32  ;;  %v14049_v60 = vld [vmem:[#allocation22_spill] sm:$0xff]  ;;  %v10727_v34 = vpop.eup %7606  ;;  %v14052_v38 = vld [vmem:[#allocation13_spill] sm:$0xff]  ;;  %vm5077_vm9 = vcmp.ge.f32.partialorder %v14054_v11, 0.0  ;;  %7626 = vrcp.f32 %v4524_v50  ;;  %v4526_v28 = vadd.f32 1.0, %v10459_v13  ;;  %v14056_v58 = vld [vmem:[#allocation11_spill] sm:$0xff] }
 0x43f   :  { %4065 = vadd.xlane.f32.xlu1 %v4064_v12  ;;  %14051 = vst [vmem:[#allocation71_spill] sm:$0xff] %v10732_v52  ;;  %v5125_v42 = vmul.f32 %v14053_v8, %v14052_v38  ;;  %v10738_v54 = vpop.eup %7608  ;;  %v10743_v59 = vsel %vm5087_vm5, %v14043_v21, %v5151_v51  ;;  %v10746_v12 = vmul.f32 0.6931472, %v14056_v58  ;;  %vm5076_vm10 = vcmp.ge.f32.partialorder %v13974_v35, 0.0  ;;  %v14058_v16 = vld [vmem:[#allocation121_spill] sm:$0xff]  ;;  %v14060_v21 = vld [vmem:[#allocation14_spill] sm:$0xff] }
 0x440   :  { %14055 = vst [vmem:[#allocation18_spill] sm:$0xff] %v10743_v59  ;;  %7628 = vlog2.f32 %v4524_v50  ;;  %v10750_v38 = vpop.eup %7610  ;;  %v4115_v32 = vsel %vm1659_vm1, %v10493_v46, 0.0  ;;  %v10757_v15 = vsel %vm5086_vm6, %v14046_v43, %v5150_v63  ;;  %v4489_v51 = vadd.f32 1.0, %v14060_v21  ;;  %v14061_v50 = vld [vmem:[#allocation31_spill] sm:$0xff]  ;;  %v14063_v46 = vld [vmem:[#allocation45_spill] sm:$0xff]  ;;  %v10781_v21 = vpop.permute.xlu1 %3922  ;;  %v14078_v48 = vld [vmem:[#allocation96_spill] sm:$0xff] }
 0x441   :  { %14057 = vst [vmem:[#allocation66_spill] sm:$0xff] %v10746_v12  ;;  %14059 = vst [vmem:[#allocation50_spill] sm:$0xff] %v10757_v15  ;;  %7630 = vrcp.f32 %v4527_v53  ;;  %v10760_v58 = vpop.eup %7612  ;;  %v4112_v52 = vsel %vm1659_vm1, %v10501_v45, 0.0  ;;  %v14062_v12 = vld [vmem:[#allocation146_spill] sm:$0xff]  ;;  %vm5089_vm11 = vcmp.ge.f32.partialorder %v14010_v20, 0.0  ;;  %v14064_v43 = vld [vmem:[#allocation57_spill] sm:$0xff] }
 0x442   :  { %4116 = vadd.xlane.f32.xlu0 %v4115_v32  ;;  %v5124_v59 = vmul.f32 %v14062_v12, %v14061_v50  ;;  %7632 = vlog2.f32 %v4527_v53  ;;  %v10768_v29 = vpop.eup %7614  ;;  %v10771_v63 = vmul.f32 0.6931472, %v14064_v43  ;;  %v10776_v32 = vsel %vm5061_vm7, %v14053_v8, %v5125_v42  ;;  %v14067_v45 = vld [vmem:[#allocation15_spill] sm:$0xff]  ;;  %v14070_v43 = vld [vmem:[#allocation24_spill] sm:$0xff]  ;;  %v10793_v42 = vpop.permute.xlu0 %3920 }
 0x443   :  { %4113 = vadd.xlane.f32.xlu1 %v4112_v52  ;;  %14066 = vst [vmem:[#allocation13_spill] sm:$0xff] %v10776_v32  ;;  %7634 = vrcp.f32 %v4526_v28  ;;  %v4488_v15 = vadd.f32 1.0, %v14067_v45  ;;  %v10779_v50 = vpop.eup %7616  ;;  %v10784_v53 = vmul.f32 0.6931472, %v10483_v37  ;;  %v14069_v36 = vld [vmem:[#allocation63_spill] sm:$0xff]  ;;  %v4151_v8 = vsel %vm1659_vm1, %v10535_v27, 0.0 }
 0x444   :  { %14065 = vst [vmem:[#allocation140_spill] sm:$0xff] %v10771_v63  ;;  %v5141_v52 = vmul.f32 %v10499_v1, %v14069_v36  ;;  %7636 = vlog2.f32 %v4526_v28  ;;  %v10789_v13 = vpop.eup %7618  ;;  %v14071_v32 = vld [vmem:[#allocation73_spill] sm:$0xff]  ;;  %vm5088_vm12 = vcmp.ge.f32.partialorder %v14016_v30, 0.0  ;;  %v14072_v37 = vld [vmem:[#allocation40_spill] sm:$0xff]  ;;  %v4148_v36 = vsel %vm1659_vm1, %v10545_v62, 0.0  ;;  %v14075_v28 = vld [vmem:[#allocation62_spill] sm:$0xff] }
 0x445   :  { %14068 = vst [vmem:[#allocation58_spill] sm:$0xff] %v10784_v53  ;;  %v5140_v10 = vmul.f32 %v10533_v6, %v14071_v32  ;;  %7638 = vrcp.f32 %v4489_v51  ;;  %v4505_v53 = vadd.f32 1.0, %v14072_v37  ;;  %v10799_v45 = vpop.eup %7620  ;;  %v10806_v27 = vsel %vm5060_vm8, %v14062_v12, %v5124_v59  ;;  %v14077_v37 = vld [vmem:[#allocation9_spill] sm:$0xff] }
 0x446   :  { %14073 = vst [vmem:[#allocation11_spill] sm:$0xff] %v10799_v45  ;;  %4152 = vadd.xlane.f32.xlu0 %v4151_v8  ;;  %14074 = vst [vmem:[#allocation31_spill] sm:$0xff] %v10806_v27  ;;  %7640 = vlog2.f32 %v4489_v51  ;;  %v10809_v32 = vpop.eup %7622  ;;  %v10812_v7 = vmul.f32 0.6931472, %v10511_v18  ;;  %v5153_v8 = vmul.f32 %v10571_v26, %v14077_v37  ;;  %vm5063_vm13 = vcmp.ge.f32.partialorder %v14078_v48, 0.0  ;;  %v14079_v62 = vld [vmem:[#allocation21_spill] sm:$0xff] }
 0x447   :  { %4149 = vadd.xlane.f32.xlu1 %v4148_v36  ;;  %7642 = vrcp.f32 %v4488_v15  ;;  %v4504_v45 = vadd.f32 1.0, %v14079_v62  ;;  %v10818_v47 = vpop.eup %7624  ;;  %v10823_v59 = vsel %vm5077_vm9, %v10499_v1, %v5141_v52  ;;  %v10826_v12 = vmul.f32 0.6931472, %v10543_v61  ;;  %v14082_v18 = vld [vmem:[#allocation46_spill] sm:$0xff]  ;;  %v10841_v61 = vpop.permute.xlu1 %3946  ;;  %v14085_v51 = vld [vmem:[#allocation68_spill] sm:$0xff] }
 0x448   :  { %14076 = vst [vmem:[#allocation146_spill] sm:$0xff] %v10812_v7  ;;  %14080 = vst [vmem:[#allocation57_spill] sm:$0xff] %v10823_v59  ;;  %7644 = vlog2.f32 %v4488_v15  ;;  %v10829_v36 = vpop.eup %7626  ;;  %v4187_v37 = vsel %vm1659_vm1, %v10592_v40, 0.0  ;;  %v10836_v63 = vsel %vm5076_vm10, %v10533_v6, %v5140_v10  ;;  %v14084_v7 = vld [vmem:[#allocation16_spill] sm:$0xff]  ;;  %v4184_v15 = vsel %vm1659_vm1, %v10607_v2, 0.0  ;;  %v14086_v40 = vld [vmem:[#allocation115_spill] sm:$0xff]  ;;  %v10850_v10 = vpop.permute.xlu0 %3944 }
 0x449   :  { %14081 = vst [vmem:[#allocation63_spill] sm:$0xff] %v10826_v12  ;;  %14083 = vst [vmem:[#allocation73_spill] sm:$0xff] %v10836_v63  ;;  %7646 = vrcp.f32 %v4505_v53  ;;  %v4517_v1 = vadd.f32 1.0, %v14084_v7  ;;  %v5152_v12 = vmul.f32 %v10613_v3, %v14085_v51  ;;  %v10853_v6 = vmul.f32 0.6931472, %v10580_v9  ;;  %v14089_v2 = vld [vmem:[#allocation134_spill] sm:$0xff] }
 0x44a   :  { %v10839_v52 = vpop.eup %7628  ;;  %4188 = vadd.xlane.f32.xlu0 %v4187_v37  ;;  %7648 = vlog2.f32 %v4505_v53  ;;  %v10858_v37 = vsel %vm5089_vm11, %v10571_v26, %v5153_v8  ;;  %v4516_v63 = vadd.f32 1.0, %v14089_v2  ;;  %v5127_v53 = vmul.f32 %v10652_v39, %v13987_v49  ;;  %v14090_v59 = vld [vmem:[#allocation113_spill] sm:$0xff]  ;;  %v14093_v8 = vld [vmem:[#allocation94_spill] sm:$0xff]  ;;  %v14104_v48 = vld [vmem:[#allocation44_spill] sm:$0xff] }
 0x44b   :  { %v10848_v35 = vpop.eup %7630  ;;  %4185 = vadd.xlane.f32.xlu1 %v4184_v15  ;;  %14087 = vst [vmem:[#allocation9_spill] sm:$0xff] %v10853_v6  ;;  %14088 = vst [vmem:[#allocation68_spill] sm:$0xff] %v10858_v37  ;;  %7650 = vrcp.f32 %v4504_v45  ;;  %v14091_v15 = vld [vmem:[#allocation41_spill] sm:$0xff]  ;;  %v4073_v6 = vsel %vm1659_vm1, %v10654_v31, 0.0  ;;  %v10872_v26 = vmul.f32 0.6931472, %v10625_v4  ;;  %v10894_v30 = vpop.permute.xlu1 %3926 }
 0x44c   :  { %v10861_v51 = vpop.eup %7632  ;;  %7652 = vlog2.f32 %v4504_v45  ;;  %vm5062_vm14 = vcmp.ge.f32.partialorder %v14093_v8, 0.0  ;;  %v14094_v37 = vld [vmem:[#allocation23_spill] sm:$0xff]  ;;  %v4070_v49 = vsel %vm1659_vm1, %v10670_v55, 0.0  ;;  %v10883_v45 = vsel %vm5088_vm12, %v10613_v3, %v5152_v12  ;;  %v14096_v4 = vld [vmem:[#allocation20_spill] sm:$0xff] }
 0x44d   :  { %v10867_v9 = vpop.eup %7634  ;;  %14092 = vst [vmem:[#allocation156_spill] sm:$0xff] %v10872_v26  ;;  %7654 = vrcp.f32 %v4517_v1  ;;  %v4529_v20 = vadd.f32 1.0, %v14094_v37  ;;  %14095 = vst [vmem:[#allocation157_spill] sm:$0xff] %v10883_v45  ;;  %vm5079_vm15 = vcmp.ge.f32.partialorder %v14034_v33, 0.0  ;;  %v10899_v3 = vsel %vm5063_vm13, %v10652_v39, %v5127_v53  ;;  %v14101_v12 = vld [vmem:[#allocation48_spill] sm:$0xff]  ;;  %v10908_v45 = vpop.permute.xlu0 %3924  ;;  %v14127_v33 = vld [vmem:[#allocation143_spill] sm:$0xff] }
 0x44e   :  { %v10876_v2 = vpop.eup %7636  ;;  %4074 = vadd.xlane.f32.xlu0 %v4073_v6  ;;  %7656 = vlog2.f32 %v4517_v1  ;;  %v14098_v6 = vld [vmem:[#allocation39_spill] sm:$0xff]  ;;  %14100 = vst [vmem:[#allocation20_spill] sm:$0xff] %v10899_v3  ;;  %vm5078_vm0 = vcmp.ge.f32.partialorder %v14044_v5, 0.0  ;;  %v4491_v1 = vadd.f32 1.0, %v14101_v12  ;;  %v4121_v55 = vsel %vm1659_vm1, %v10717_v25, 0.0  ;;  %v14109_v12 = vld [vmem:[#allocation32_spill] sm:$0xff] }
 0x44f   :  { %v10887_v27 = vpop.eup %7638  ;;  %4071 = vadd.xlane.f32.xlu1 %v4070_v49  ;;  %7658 = vrcp.f32 %v4516_v63  ;;  %v4528_v37 = vadd.f32 1.0, %v14098_v6  ;;  %v14103_v6 = vld [vmem:[#allocation33_spill] sm:$0xff]  ;;  %v4507_v39 = vadd.f32 1.0, %v14104_v48  ;;  %v5126_v26 = vmul.f32 %v10707_v19, %v13999_v44  ;;  %v14108_v44 = vld [vmem:[#allocation114_spill] sm:$0xff] }
 0x450   :  { %v10892_v62 = vpop.eup %7640  ;;  %7660 = vlog2.f32 %v4516_v63  ;;  %v4490_v7 = vadd.f32 1.0, %v14103_v6  ;;  %v4118_v63 = vsel %vm1659_vm1, %v10729_v23, 0.0  ;;  %v10922_v49 = vmul.f32 0.6931472, %v10688_v14 }
 0x451   :  { %v10904_v31 = vpop.eup %7642  ;;  %7662 = vrcp.f32 %v4529_v20  ;;  %v5143_v48 = vmul.f32 %v10727_v34, %v14004_v0  ;;  %vm5091_vm2 = vcmp.ge.f32.partialorder %v14049_v60, 0.0  ;;  %v10932_v3 = vadd.f32 1.0, %v14109_v12  ;;  %v10960_v12 = vpop.permute.xlu0 %3948 }
 0x452   :  { %v10912_v53 = vpop.eup %7644  ;;  %4122 = vadd.xlane.f32.xlu0 %v4121_v55  ;;  %7664 = vlog2.f32 %v4529_v20  ;;  %14106 = vst [vmem:[#allocation158_spill] sm:$0xff] %v10922_v49  ;;  %v14107_v55 = vld [vmem:[#allocation25_spill] sm:$0xff]  ;;  %v4157_v0 = vsel %vm1659_vm1, %v10781_v21, 0.0  ;;  %v10940_v49 = vmul.f32 0.6931472, %v10715_v17  ;;  %vm5090_vm3 = vcmp.ge.f32.partialorder %v14058_v16, 0.0  ;;  %v10947_v20 = vpop.permute.xlu1 %3950 }
 0x453   :  { %v10919_v25 = vpop.eup %7646  ;;  %4119 = vadd.xlane.f32.xlu1 %v4118_v63  ;;  %7666 = vrcp.f32 %v4528_v37  ;;  %v4506_v23 = vadd.f32 1.0, %v14107_v55  ;;  %v14110_v63 = vld [vmem:[#allocation56_spill] sm:$0xff]  ;;  %v5142_v55 = vmul.f32 %v10750_v38, %v14011_v41  ;;  %v4154_v11 = vsel %vm1659_vm1, %v10793_v42, 0.0  ;;  %v14113_v17 = vld [vmem:[#allocation137_spill] sm:$0xff]  ;;  %v14136_v16 = vld [vmem:[#allocation150_spill] sm:$0xff] }
 0x454   :  { %v10928_v6 = vpop.eup %7648  ;;  %7668 = vlog2.f32 %v4528_v37  ;;  %14111 = vst [vmem:[#allocation114_spill] sm:$0xff] %v10940_v49  ;;  %v10954_v21 = vsel %vm5062_vm14, %v10707_v19, %v5126_v26  ;;  %vm5101_vm4 = vcmp.ge.f32.partialorder %v14063_v46, 0.0  ;;  %v4518_v41 = vadd.f32 1.0, %v14113_v17  ;;  %v14116_v19 = vld [vmem:[#allocation43_spill] sm:$0xff] }
 0x455   :  { %v10935_v14 = vpop.eup %7650  ;;  %7670 = vrcp.f32 %v4491_v1  ;;  %14112 = vst [vmem:[#allocation159_spill] sm:$0xff] %v10954_v21  ;;  %v10968_v42 = vsel %vm5079_vm15, %v10727_v34, %v5143_v48  ;;  %v5155_v8 = vmul.f32 %v10768_v29, %v10321_v56  ;;  %vm5100_vm5 = vcmp.ge.f32.partialorder %v14070_v43, 0.0 }
 0x456   :  { %v10945_v37 = vpop.eup %7652  ;;  %4158 = vadd.xlane.f32.xlu0 %v4157_v0  ;;  %7672 = vlog2.f32 %v4491_v1  ;;  %v10963_v0 = vmul.f32 0.6931472, %v10738_v54  ;;  %14115 = vst [vmem:[#allocation160_spill] sm:$0xff] %v10968_v42  ;;  %v10974_v1 = vmul.f32 0.6931472, %v10760_v58  ;;  %v4193_v34 = vsel %vm1659_vm1, %v10841_v61, 0.0 }
 0x457   :  { %v10958_v49 = vpop.eup %7654  ;;  %4155 = vadd.xlane.f32.xlu1 %v4154_v11  ;;  %7674 = vrcp.f32 %v4490_v7  ;;  %v4531_v11 = vadd.f32 1.0, %v10552_v24  ;;  %v10987_v48 = vsel %vm5078_vm0, %v10750_v38, %v5142_v55  ;;  %v14119_v58 = vld [vmem:[#allocation67_spill] sm:$0xff]  ;;  %v10995_v56 = vmul.f32 0.6931472, %v10779_v50  ;;  %v3931_v50 = vpop.permute.xlu1 %3930 }
 0x458   :  { %14114 = vst [vmem:[#allocation137_spill] sm:$0xff] %v10963_v0  ;;  %v10971_v21 = vpop.eup %7656  ;;  %14117 = vst [vmem:[#allocation43_spill] sm:$0xff] %v10974_v1  ;;  %7676 = vlog2.f32 %v4490_v7  ;;  %v4190_v7 = vsel %vm1659_vm1, %v10850_v10, 0.0  ;;  %v5154_v61 = vmul.f32 %v10789_v13, %v14021_v57  ;;  %vm5103_vm6 = vcmp.ge.f32.partialorder %v14075_v28, 0.0  ;;  %v14122_v0 = vld [vmem:[#allocation79_spill] sm:$0xff]  ;;  %v3929_v10 = vpop.permute.xlu0 %3928 }
 0x459   :  { %v10980_v54 = vpop.eup %7658  ;;  %14118 = vst [vmem:[#allocation161_spill] sm:$0xff] %v10987_v48  ;;  %7678 = vrcp.f32 %v4507_v39  ;;  %14120 = vst [vmem:[#allocation67_spill] sm:$0xff] %v10995_v56  ;;  %v5165_v55 = vmul.f32 %v10809_v32, %v10466_v22  ;;  %v11011_v57 = vsel %vm5091_vm2, %v10768_v29, %v5155_v8  ;;  %v4163_v42 = vsel %vm1659_vm1, %v10894_v30, 0.0  ;;  %v14128_v29 = vld [vmem:[#allocation124_spill] sm:$0xff]  ;;  %v14132_v8 = vld [vmem:[#allocation35_spill] sm:$0xff] }
 0x45a   :  { %v10990_v1 = vpop.eup %7660  ;;  %4194 = vadd.xlane.f32.xlu0 %v4193_v34  ;;  %7680 = vlog2.f32 %v4507_v39  ;;  %v14121_v34 = vld [vmem:[#allocation34_spill] sm:$0xff]  ;;  %14123 = vst [vmem:[#allocation162_spill] sm:$0xff] %v11011_v57  ;;  %v14124_v39 = vld [vmem:[#allocation11_spill] sm:$0xff]  ;;  %vm5102_vm7 = vcmp.ge.f32.partialorder %v14082_v18, 0.0  ;;  %v11033_v30 = vsel %vm5090_vm3, %v10789_v13, %v5154_v61  ;;  %v4196_v46 = vsel %vm1659_vm1, %v10960_v12, 0.0  ;;  %v14145_v12 = vld [vmem:[#allocation65_spill] sm:$0xff] }
 0x45b   :  { %v11000_v38 = vpop.eup %7662  ;;  %4191 = vadd.xlane.f32.xlu1 %v4190_v7  ;;  %7682 = vrcp.f32 %v4506_v23  ;;  %v4530_v26 = vadd.f32 1.0, %v14121_v34  ;;  %v11014_v56 = vmul.f32 0.6931472, %v14124_v39  ;;  %v14126_v7 = vld [vmem:[#allocation47_spill] sm:$0xff]  ;;  %v5164_v34 = vmul.f32 %v10829_v36, %v14127_v33  ;;  %14129 = vst [vmem:[#allocation143_spill] sm:$0xff] %v11033_v30  ;;  %v14134_v13 = vld [vmem:[#allocation138_spill] sm:$0xff]  ;;  %v3955_v60 = vpop.permute.xlu1 %3954 }
 0x45c   :  { %v11006_v48 = vpop.eup %7664  ;;  %7684 = vlog2.f32 %v4506_v23  ;;  %v4521_v5 = vadd.f32 1.0, %v14126_v7  ;;  %v4160_v23 = vsel %vm1659_vm1, %v10908_v45, 0.0  ;;  %v5167_v45 = vmul.f32 %v10848_v35, %v14132_v8  ;;  %v14133_v57 = vld [vmem:[#allocation99_spill] sm:$0xff]  ;;  %v14161_v18 = vld [vmem:[#allocation40_spill] sm:$0xff] }
 0x45d   :  { %14125 = vst [vmem:[#allocation11_spill] sm:$0xff] %v11014_v56  ;;  %v11017_v22 = vpop.eup %7666  ;;  %7686 = vrcp.f32 %v10932_v3  ;;  %v11036_v56 = vmul.f32 0.6931472, %v10818_v47  ;;  %vm5065_vm8 = vcmp.ge.f32.partialorder %v14133_v57, 0.0  ;;  %v4520_v61 = vadd.f32 1.0, %v14134_v13  ;;  %v14137_v30 = vld [vmem:[#allocation127_spill] sm:$0xff] }
 0x45e   :  { %v11026_v39 = vpop.eup %7668  ;;  %4164 = vadd.xlane.f32.xlu0 %v4163_v42  ;;  %7688 = vlog2.f32 %v10932_v3  ;;  %v11044_v42 = vsel %vm5101_vm4, %v10809_v32, %v5165_v55  ;;  %v14135_v3 = vld [vmem:[#allocation123_spill] sm:$0xff]  ;;  %v4199_v55 = vsel %vm1659_vm1, %v10947_v20, 0.0  ;;  %v11062_v8 = vmul.f32 0.6931472, %v10839_v52  ;;  %v14142_v52 = vld [vmem:[#allocation49_spill] sm:$0xff] }
 0x45f   :  { %14130 = vst [vmem:[#allocation163_spill] sm:$0xff] %v11036_v56  ;;  %v11039_v33 = vpop.eup %7670  ;;  %4161 = vadd.xlane.f32.xlu1 %v4160_v23  ;;  %14131 = vst [vmem:[#allocation164_spill] sm:$0xff] %v11044_v42  ;;  %7690 = vrcp.f32 %v4518_v41  ;;  %v11054_v23 = vadd.f32 1.0, %v14136_v16  ;;  %v11067_v42 = vsel %vm5100_vm5, %v10829_v36, %v5164_v34  ;;  %v14141_v16 = vld [vmem:[#allocation144_spill] sm:$0xff]  ;;  %v3953_v36 = vpop.permute.xlu0 %3952  ;;  %v11080_v34 = vmul.f32 0.6931472, %v10861_v51 }
 0x460   :  { %v11050_v47 = vpop.eup %7672  ;;  %7692 = vlog2.f32 %v4518_v41  ;;  %14138 = vst [vmem:[#allocation35_spill] sm:$0xff] %v11062_v8  ;;  %14139 = vst [vmem:[#allocation165_spill] sm:$0xff] %v11067_v42  ;;  %v14140_v41 = vld [vmem:[#allocation97_spill] sm:$0xff]  ;;  %v5166_v20 = vmul.f32 %v10867_v9, %v14141_v16  ;;  %v4532_v8 = vadd.f32 1.0, %v14142_v52  ;;  %v14146_v16 = vld [vmem:[#allocation14_spill] sm:$0xff]  ;;  %vm5081_vm10 = vcmp.ge.f32.partialorder %v14086_v40, 0.0 }
 0x461   :  { %v11057_v32 = vpop.eup %7674  ;;  %vm5064_vm9 = vcmp.ge.f32.partialorder %v14140_v41, 0.0  ;;  %7694 = vrcp.f32 %v4531_v11  ;;  %14143 = vst [vmem:[#allocation144_spill] sm:$0xff] %v11080_v34  ;;  %v14148_v51 = vld [vmem:[#allocation27_spill] sm:$0xff]  ;;  %v14150_v42 = vld [vmem:[#allocation141_spill] sm:$0xff]  ;;  %vm5080_vm11 = vcmp.ge.f32.partialorder %v14090_v59, 0.0  ;;  %vm5093_vm12 = vcmp.ge.f32.partialorder %v14091_v15, 0.0 }
 0x462   :  { %v11070_v56 = vpop.eup %7676  ;;  %4200 = vadd.xlane.f32.xlu0 %v4199_v55  ;;  %7696 = vlog2.f32 %v4531_v11  ;;  %v11085_v55 = vsel %vm5103_vm6, %v10848_v35, %v5167_v45  ;;  %v5129_v11 = vmul.f32 %v10887_v27, %v14146_v16  ;;  %v4169_v35 = vsel %vm1659_vm1, %v3931_v50, 0.0  ;;  %v14152_v28 = vld [vmem:[#allocation15_spill] sm:$0xff] }
 0x463   :  { %v11077_v13 = vpop.eup %7678  ;;  %4197 = vadd.xlane.f32.xlu1 %v4196_v46  ;;  %14144 = vst [vmem:[#allocation166_spill] sm:$0xff] %v11085_v55  ;;  %7698 = vrcp.f32 %v4530_v26  ;;  %v14147_v46 = vld [vmem:[#allocation51_spill] sm:$0xff]  ;;  %v11101_v45 = vmul.f32 0.6931472, %v10876_v2  ;;  %v11104_v55 = vadd.f32 1.0, %v14150_v42  ;;  %v11112_v34 = vsel %vm5102_vm7, %v10867_v9, %v5166_v20  ;;  %v3957_v9 = vpop.permute.xlu0 %3956 }
 0x464   :  { %v11088_v43 = vpop.eup %7680  ;;  %7700 = vlog2.f32 %v4530_v26  ;;  %v11094_v52 = vadd.f32 1.0, %v14147_v46  ;;  %v4166_v26 = vsel %vm1659_vm1, %v3929_v10, 0.0  ;;  %14151 = vst [vmem:[#allocation167_spill] sm:$0xff] %v11112_v34  ;;  %v5128_v50 = vmul.f32 %v10904_v31, %v14152_v28  ;;  %v14154_v10 = vld [vmem:[#allocation151_spill] sm:$0xff]  ;;  %v3959_v34 = vpop.permute.xlu1 %3958 }
 0x465   :  { %v11097_v7 = vpop.eup %7682  ;;  %14149 = vst [vmem:[#allocation14_spill] sm:$0xff] %v11101_v45  ;;  %7702 = vrcp.f32 %v4521_v5  ;;  %v11122_v42 = vadd.f32 1.0, %v14154_v10  ;;  %v11128_v28 = vmul.f32 0.6931472, %v10892_v62  ;;  %v4205_v10 = vsel %vm1659_vm1, %v3955_v60, 0.0  ;;  %v14163_v60 = vld [vmem:[#allocation126_spill] sm:$0xff] }
 0x466   :  { %v11106_v16 = vpop.eup %7684  ;;  %4170 = vadd.xlane.f32.xlu0 %v4169_v35  ;;  %7704 = vlog2.f32 %v4521_v5  ;;  %v14153_v35 = vld [vmem:[#allocation78_spill] sm:$0xff]  ;;  %v11133_v5 = vsel %vm5065_vm8, %v10887_v27, %v5129_v11  ;;  %v5145_v62 = vmul.f32 %v10919_v25, %v14161_v18  ;;  %v4202_v27 = vsel %vm1659_vm1, %v3953_v36, 0.0  ;;  %v14164_v18 = vld [vmem:[#allocation21_spill] sm:$0xff]  ;;  %v14166_v36 = vld [vmem:[#allocation155_spill] sm:$0xff] }
 0x467   :  { %v11117_v2 = vpop.eup %7686  ;;  %4167 = vadd.xlane.f32.xlu1 %v4166_v26  ;;  %7706 = vrcp.f32 %v4520_v61  ;;  %14157 = vst [vmem:[#allocation168_spill] sm:$0xff] %v11128_v28  ;;  %14158 = vst [vmem:[#allocation169_spill] sm:$0xff] %v11133_v5  ;;  %v14159_v26 = vld [vmem:[#allocation80_spill] sm:$0xff]  ;;  %vm5092_vm13 = vcmp.ge.f32.partialorder %v14096_v4, 0.0  ;;  %v11164_v5 = vadd.f32 1.0, %v14166_v36  ;;  %v4211_v36 = vsel %vm1659_vm1, %v3959_v34, 0.0  ;;  %v3961_v40 = vpop.permute.xlu0 %3960 }
 0x468   :  { %v11125_v20 = vpop.eup %7688  ;;  %7708 = vlog2.f32 %v4520_v61  ;;  %v11136_v46 = vadd.f32 1.0, %v14159_v26  ;;  %v11153_v61 = vsel %vm5064_vm9, %v10904_v31, %v5128_v50  ;;  %v11184_v50 = vsel %vm5081_vm10, %v10919_v25, %v5145_v62  ;;  %v14177_v34 = vld [vmem:[#allocation98_spill] sm:$0xff]  ;;  %v14178_v25 = vld [vmem:[#allocation12_spill] sm:$0xff]  ;;  %v14184_v59 = vld [vmem:[#allocation23_spill] sm:$0xff] }
 0x469   :  { %14156 = vst [vmem:[#allocation15_spill] sm:$0xff] %v11125_v20  ;;  %v11138_v45 = vpop.eup %7690  ;;  %v11142_v20 = vmul.f32 0.6931472, %v10912_v53  ;;  %7710 = vrcp.f32 %v11054_v23  ;;  %14162 = vst [vmem:[#allocation40_spill] sm:$0xff] %v11153_v61  ;;  %v14170_v53 = vld [vmem:[#allocation16_spill] sm:$0xff]  ;;  %vm5066_vm2 = vcmp.ge.f32.partialorder %v14177_v34, 0.0 }
 0x46a   :  { %v11147_v28 = vpop.eup %7692  ;;  %4206 = vadd.xlane.f32.xlu0 %v4205_v10  ;;  %7712 = vlog2.f32 %v11054_v23  ;;  %v14165_v10 = vld [vmem:[#allocation125_spill] sm:$0xff]  ;;  %v11170_v23 = vmul.f32 0.6931472, %v10928_v6  ;;  %v5157_v41 = vmul.f32 %v10958_v49, %v14170_v53  ;;  %14173 = vst [vmem:[#allocation16_spill] sm:$0xff] %v11184_v50  ;;  %v14174_v6 = vld [vmem:[#allocation100_spill] sm:$0xff]  ;;  %v11198_v62 = vadd.f32 1.0, %v14178_v25 }
 0x46b   :  { %14160 = vst [vmem:[#allocation170_spill] sm:$0xff] %v11142_v20  ;;  %v11158_v11 = vpop.eup %7694  ;;  %4203 = vadd.xlane.f32.xlu1 %v4202_v27  ;;  %v5144_v20 = vmul.f32 %v10935_v14, %v14164_v18  ;;  %vm5105_vm14 = vcmp.ge.f32.partialorder %v14165_v10, 0.0  ;;  %7714 = vrcp.f32 %v4532_v8  ;;  %v14171_v27 = vld [vmem:[#allocation61_spill] sm:$0xff]  ;;  %vm5067_vm0 = vcmp.ge.f32.partialorder %v14174_v6, 0.0 }
 0x46c   :  { %v11167_v61 = vpop.eup %7696  ;;  %14169 = vst [vmem:[#allocation125_spill] sm:$0xff] %v11170_v23  ;;  %vm5104_vm15 = vcmp.ge.f32.partialorder %v14171_v27, 0.0  ;;  %7716 = vlog2.f32 %v4532_v8  ;;  %v14172_v18 = vld [vmem:[#allocation153_spill] sm:$0xff]  ;;  %v4208_v8 = vsel %vm1659_vm1, %v3957_v9, 0.0  ;;  %vm5082_vm4 = vcmp.ge.f32.partialorder %v14108_v44, 0.0 }
 0x46d   :  { %14168 = vst [vmem:[#allocation21_spill] sm:$0xff] %v11167_v61  ;;  %v11176_v57 = vadd.f32 1.0, %v14172_v18  ;;  %v11178_v26 = vpop.eup %7698  ;;  %7718 = vrcp.f32 %v11094_v52  ;;  %v14175_v53 = vld [vmem:[#allocation69_spill] sm:$0xff]  ;;  %v3963_v18 = vpop.permute.xlu1 %3962  ;;  %v11193_v61 = vmul.f32 0.6931472, %v10945_v37  ;;  %v11205_v9 = vsel %vm5080_vm11, %v10935_v14, %v5144_v20  ;;  %v14181_v37 = vld [vmem:[#allocation134_spill] sm:$0xff] }
 0x46e   :  { %v11189_v31 = vpop.eup %7700  ;;  %4212 = vadd.xlane.f32.xlu0 %v4211_v36  ;;  %7720 = vlog2.f32 %v11094_v52  ;;  %14179 = vst [vmem:[#allocation100_spill] sm:$0xff] %v11205_v9  ;;  %v11208_v36 = vmul.f32 0.6931472, %v10971_v21  ;;  %v5156_v23 = vmul.f32 %v10980_v54, %v14181_v37  ;;  %v5169_v14 = vmul.f32 %v11000_v38, %v14184_v59  ;;  %v14186_v9 = vld [vmem:[#allocation39_spill] sm:$0xff]  ;;  %v14188_v20 = vld [vmem:[#allocation48_spill] sm:$0xff] }
 0x46f   :  { %14176 = vst [vmem:[#allocation61_spill] sm:$0xff] %v11193_v61  ;;  %v11200_v50 = vpop.eup %7702  ;;  %4209 = vadd.xlane.f32.xlu1 %v4208_v8  ;;  %v14182_v61 = vld [vmem:[#allocation116_spill] sm:$0xff]  ;;  %7722 = vrcp.f32 %v11104_v55  ;;  %v11219_v8 = vsel %vm5093_vm12, %v10958_v49, %v5157_v41  ;;  %v4217_v37 = vsel %vm1659_vm1, %v3963_v18, 0.0  ;;  %v5168_v25 = vmul.f32 %v11017_v22, %v14186_v9 }
 0x470   :  { %14180 = vst [vmem:[#allocation98_spill] sm:$0xff] %v11208_v36  ;;  %vm5083_vm3 = vcmp.ge.f32.partialorder %v14182_v61, 0.0  ;;  %v11214_v52 = vpop.eup %7704  ;;  %14183 = vst [vmem:[#allocation134_spill] sm:$0xff] %v11219_v8  ;;  %7724 = vlog2.f32 %v11104_v55  ;;  %vm5095_vm5 = vcmp.ge.f32.partialorder %v14110_v63, 0.0  ;;  %v14187_v49 = vld [vmem:[#allocation84_spill] sm:$0xff]  ;;  %v4214_v55 = vsel %vm1659_vm1, %v3961_v40, 0.0 }
 0x471   :  { %v11225_v36 = vpop.eup %7706  ;;  %7726 = vrcp.f32 %v11122_v42  ;;  %v11234_v41 = vadd.f32 1.0, %v14187_v49  ;;  %v5131_v18 = vmul.f32 %v11039_v33, %v14188_v20  ;;  %vm5094_vm6 = vcmp.ge.f32.partialorder %v14116_v19, 0.0  ;;  %v14189_v9 = vld [vmem:[#allocation128_spill] sm:$0xff] }
 0x472   :  { %v11236_v59 = vpop.eup %7708  ;;  %4218 = vadd.xlane.f32.xlu0 %v4217_v37  ;;  %7728 = vrcp.f32 %v11136_v46  ;;  %v11247_v49 = vmul.f32 0.6931472, %v10990_v1  ;;  %v11252_v40 = vsel %vm5092_vm13, %v10980_v54, %v5156_v23  ;;  %v14190_v37 = vld [vmem:[#allocation33_spill] sm:$0xff]  ;;  %vm5107_vm7 = vcmp.ge.f32.partialorder %v14119_v58, 0.0 }
 0x473   :  { %v11244_v15 = vpop.eup %7710  ;;  %4215 = vadd.xlane.f32.xlu1 %v4214_v55  ;;  %v5130_v20 = vmul.f32 %v11057_v32, %v14190_v37  ;;  %7730 = vrcp.f32 %v11164_v5  ;;  %v11261_v8 = vmul.f32 0.6931472, %v11006_v48  ;;  %v11266_v1 = vsel %vm5105_vm14, %v11000_v38, %v5169_v14  ;;  %v14192_v55 = vld [vmem:[#allocation44_spill] sm:$0xff] }
 0x474   :  { %v11258_v21 = vpop.eup %7712  ;;  %v5147_v54 = vmul.f32 %v11077_v13, %v14192_v55  ;;  %vm5106_vm8 = vcmp.ge.f32.partialorder %v14122_v0, 0.0  ;;  %vm5097_vm9 = vcmp.ge.f32.partialorder %v14128_v29, 0.0  ;;  %7732 = vrcp.f32 %v11176_v57 }
 0x475   :  { %14191 = vst [vmem:[#allocation116_spill] sm:$0xff] %v11261_v8  ;;  %v11273_v23 = vpop.eup %7714  ;;  %v11276_v37 = vmul.f32 0.6931472, %v11026_v39  ;;  %v11281_v48 = vsel %vm5104_vm15, %v11017_v22, %v5168_v25  ;;  %v11284_v38 = vmul.f32 0.6931472, %v11050_v47  ;;  %vm5096_vm10 = vcmp.ge.f32.partialorder %v14135_v3, 0.0 }
 0x476   :  { %7734 = vlog2.f32 %v11122_v42  ;;  %v7717_v14 = vpop.eup %7716  ;;  %v11291_v55 = vsel %vm5067_vm0, %v11039_v33, %v5131_v18  ;;  %v14194_v39 = vld [vmem:[#allocation25_spill] sm:$0xff]  ;;  %v14195_v8 = vld [vmem:[#allocation32_spill] sm:$0xff]  ;;  %vm5109_vm11 = vcmp.ge.f32.partialorder %v14137_v30, 0.0  ;;  %vm5108_vm12 = vcmp.ge.f32.partialorder %v14145_v12, 0.0 }
 0x477   :  { %14193 = vst [vmem:[#allocation23_spill] sm:$0xff] %v11276_v37  ;;  %v5146_v37 = vmul.f32 %v11097_v7, %v14194_v39  ;;  %v5159_v22 = vmul.f32 %v11117_v2, %v14195_v8  ;;  %7736 = vlog2.f32 %v11136_v46  ;;  %v7719_v47 = vpop.eup %7718  ;;  %v11301_v42 = vmul.f32 0.6931472, %v11070_v56 }
 0x478   :  { %v11306_v33 = vsel %vm5066_vm2, %v11057_v32, %v5130_v20  ;;  %v5158_v25 = vmul.f32 %v11138_v45, %v14113_v17  ;;  %vm5099_vm13 = vcmp.ge.f32.partialorder %v14148_v51, 0.0  ;;  %7738 = vlog2.f32 %v11164_v5  ;;  %v7721_v8 = vpop.eup %7720  ;;  %v14199_v5 = vld [vmem:[#allocation34_spill] sm:$0xff]  ;;  %v14200_v20 = vld [vmem:[#allocation47_spill] sm:$0xff] }
 0x479   :  { %14196 = vst [vmem:[#allocation39_spill] sm:$0xff] %v11301_v42  ;;  %v11313_v18 = vmul.f32 0.6931472, %v11088_v43  ;;  %v11318_v56 = vsel %vm5083_vm3, %v11077_v13, %v5147_v54  ;;  %v5171_v32 = vmul.f32 %v11158_v11, %v10552_v24  ;;  %vm5098_vm14 = vcmp.ge.f32.partialorder %v14153_v35, 0.0  ;;  %v7723_v17 = vpop.eup %7722 }
 0x47a   :  { %7740 = vlog2.f32 %v11176_v57  ;;  %v11325_v46 = vmul.f32 0.6931472, %v11106_v16  ;;  %v5170_v43 = vmul.f32 %v11178_v26, %v14199_v5  ;;  %v5161_v39 = vmul.f32 %v11200_v50, %v14200_v20  ;;  %v7725_v13 = vpop.eup %7724  ;;  %v14202_v57 = vld [vmem:[#allocation15_spill] sm:$0xff]  ;;  %v14204_v5 = vld [vmem:[#allocation138_spill] sm:$0xff] }
 0x47b   :  { %14197 = vst [vmem:[#allocation48_spill] sm:$0xff] %v11313_v18  ;;  %v14201_v18 = vld [vmem:[#allocation70_spill] sm:$0xff]  ;;  %7742 = vrcp.f32 %v11198_v62  ;;  %v11336_v24 = vsel %vm5082_vm4, %v11097_v7, %v5146_v37  ;;  %v11339_v54 = vmul.f32 0.6931472, %v14202_v57  ;;  %v11344_v16 = vsel %vm5095_vm5, %v11117_v2, %v5159_v22  ;;  %v14208_v22 = vld [vmem:[#allocation21_spill] sm:$0xff] }
 0x47c   :  { %14198 = vst [vmem:[#allocation33_spill] sm:$0xff] %v11325_v46  ;;  %vm5111_vm15 = vcmp.ge.f32.partialorder %v14201_v18, 0.0  ;;  %v5160_v20 = vmul.f32 %v11225_v36, %v14204_v5  ;;  %v7727_v46 = vpop.eup %7726  ;;  %v11349_v42 = vmul.f32 0.6931472, %v11147_v28  ;;  %v11354_v7 = vsel %vm5094_vm6, %v11138_v45, %v5158_v25  ;;  %v14206_v37 = vld [vmem:[#allocation150_spill] sm:$0xff]  ;;  %v14211_v25 = vld [vmem:[#allocation51_spill] sm:$0xff] }
 0x47d   :  { %14203 = vst [vmem:[#allocation44_spill] sm:$0xff] %v11339_v54  ;;  %v5173_v57 = vmul.f32 %v11244_v15, %v14206_v37  ;;  %v14207_v54 = vld [vmem:[#allocation49_spill] sm:$0xff]  ;;  %vm5110_vm0 = vcmp.ge.f32.partialorder %v14163_v60, 0.0  ;;  %v7729_v2 = vpop.eup %7728  ;;  %v11362_v5 = vmul.f32 0.6931472, %v14208_v22  ;;  %v11367_v28 = vsel %vm5107_vm7, %v11158_v11, %v5171_v32 }
 0x47e   :  { %14205 = vst [vmem:[#allocation25_spill] sm:$0xff] %v11349_v42  ;;  %v5172_v63 = vmul.f32 %v11273_v23, %v14207_v54  ;;  %v11370_v45 = vmul.f32 0.6931472, %v11189_v31  ;;  %v5163_v42 = vmul.f32 %v7719_v47, %v14211_v25  ;;  %v14212_v37 = vld [vmem:[#allocation129_spill] sm:$0xff]  ;;  %vm5112_vm3 = vcmp.ge.f32.partialorder %v14175_v53, 0.0  ;;  %v7731_v54 = vpop.eup %7730 }
 0x47f   :  { %14209 = vst [vmem:[#allocation32_spill] sm:$0xff] %v11362_v5  ;;  %vm5113_vm2 = vcmp.ge.f32.partialorder %v14212_v37, 0.0  ;;  %v11378_v22 = vsel %vm5106_vm8, %v11178_v26, %v5170_v43  ;;  %v11381_v5 = vmul.f32 0.6931472, %v11214_v52  ;;  %v11386_v11 = vsel %vm5097_vm9, %v11200_v50, %v5161_v39  ;;  %v14215_v31 = vld [vmem:[#allocation141_spill] sm:$0xff]  ;;  %v7733_v25 = vpop.eup %7732  ;;  %v14219_v52 = vld [vmem:[#allocation151_spill] sm:$0xff]  ;;  %v4030_v29 = vpop.xlane.xlu0 %4029 }
 0x480   :  { %14210 = vst [vmem:[#allocation34_spill] sm:$0xff] %v11370_v45  ;;  %14214 = vst [vmem:[#allocation15_spill] sm:$0xff] %v11386_v11  ;;  %v5162_v32 = vmul.f32 %v7723_v17, %v14215_v31  ;;  %v11390_v45 = vmul.f32 0.6931472, %v11236_v59  ;;  %v11395_v0 = vsel %vm5096_vm10, %v11225_v36, %v5160_v20  ;;  %v11398_v26 = vmul.f32 0.6931472, %v11258_v21 }
 0x481   :  { %14213 = vst [vmem:[#allocation47_spill] sm:$0xff] %v11381_v5  ;;  %14217 = vst [vmem:[#allocation150_spill] sm:$0xff] %v11395_v0  ;;  %v5175_v43 = vmul.f32 %v7727_v46, %v14219_v52  ;;  %v7735_v5 = vpop.eup %7734  ;;  %v11404_v50 = vsel %vm5109_vm11, %v11244_v15, %v5173_v57  ;;  %v11406_v39 = vmul.f32 0.6931472, %v7717_v14  ;;  %v11411_v59 = vsel %vm5108_vm12, %v11273_v23, %v5172_v63  ;;  %v14224_v20 = vld [vmem:[#allocation85_spill] sm:$0xff]  ;;  %v14227_v15 = vld [vmem:[#allocation80_spill] sm:$0xff] }
 0x482   :  { %14216 = vst [vmem:[#allocation138_spill] sm:$0xff] %v11390_v45  ;;  %14218 = vst [vmem:[#allocation49_spill] sm:$0xff] %v11398_v26  ;;  %v11413_v36 = vmul.f32 0.6931472, %v7721_v8  ;;  %v7737_v21 = vpop.eup %7736  ;;  %v4732_v31 = vmul.f32 %v4030_v29, %v14224_v20  ;;  %v11418_v52 = vsel %vm5099_vm13, %v7719_v47, %v5163_v42  ;;  %v11420_v26 = vmul.f32 0.6931472, %v7725_v13 }
 0x483   :  { %14220 = vst [vmem:[#allocation21_spill] sm:$0xff] %v11404_v50  ;;  %14221 = vst [vmem:[#allocation51_spill] sm:$0xff] %v11406_v39  ;;  %v5174_v57 = vmul.f32 %v7729_v2, %v14227_v15  ;;  %v7739_v14 = vpop.eup %7738  ;;  %v11425_v39 = vsel %vm5098_vm14, %v7723_v17, %v5162_v32  ;;  %v14229_v63 = vld [vmem:[#allocation155_spill] sm:$0xff]  ;;  %v14230_v8 = vld [vmem:[#allocation153_spill] sm:$0xff]  ;;  %7744 = vlog2.f32 %v11198_v62  ;;  %v14231_v51 = vmax.f32 %v14224_v20, 0.0 }
 0x484   :  { %14222 = vst [vmem:[#allocation141_spill] sm:$0xff] %v11411_v59  ;;  %14223 = vst [vmem:[#allocation151_spill] sm:$0xff] %v11413_v36  ;;  %v5177_v23 = vmul.f32 %v7731_v54, %v14229_v63  ;;  %v5176_v36 = vmul.f32 %v7733_v25, %v14230_v8  ;;  %v7741_v59 = vpop.eup %7740  ;;  %v11432_v42 = vmul.f32 0.6931472, %v7735_v5  ;;  %v11436_v13 = vsel %vm5111_vm15, %v7727_v46, %v5175_v43  ;;  %v14234_v32 = vld [vmem:[#allocation82_spill] sm:$0xff]  ;;  %v4036_v8 = vpop.xlane.xlu0 %4035  ;;  %v14237_v20 = vld [vmem:[#allocation87_spill] sm:$0xff] }
 0x485   :  { %14225 = vst [vmem:[#allocation85_spill] sm:$0xff] %v11418_v52  ;;  %14226 = vst [vmem:[#allocation171_spill] sm:$0xff] %v11420_v26  ;;  %v4796_v47 = vsub.f32 %v14231_v51, %v4732_v31  ;;  %7746 = vrcp.f32 %v11234_v41  ;;  %v11439_v17 = vpop.eup %7742  ;;  %v5683_v15 = vmul.f32 %v14234_v32, %v4030_v29  ;;  %v6147_v63 = vadd.f32 %v14234_v32, %v4030_v29  ;;  %v14236_v51 = vld [vmem:[#allocation60_spill] sm:$0xff]  ;;  %v14290_v0 = vld [vmem:[#allocation130_spill] sm:$0xff] }
 0x486   :  { %14228 = vst [vmem:[#allocation80_spill] sm:$0xff] %v11425_v39  ;;  %14232 = vst [vmem:[#allocation155_spill] sm:$0xff] %v11432_v42  ;;  %v11443_v62 = vmul.f32 0.6931472, %v7737_v21  ;;  %7748 = vlog2.f32 %v11234_v41  ;;  %v4734_v31 = vmul.f32 %v4036_v8, %v14237_v20  ;;  %v11452_v46 = vsel %vm5110_vm0, %v7729_v2, %v5174_v57  ;;  %v14240_v42 = vld [vmem:[#allocation81_spill] sm:$0xff]  ;;  %v14245_v57 = vld [vmem:[#allocation12_spill] sm:$0xff] }
 0x487   :  { %14233 = vst [vmem:[#allocation153_spill] sm:$0xff] %v11436_v13  ;;  %v11447_v5 = vadd.f32 %v14236_v51, %v4796_v47  ;;  %14238 = vst [vmem:[#allocation60_spill] sm:$0xff] %v11452_v46  ;;  %v11454_v43 = vmul.f32 0.6931472, %v7739_v14  ;;  %v5685_v26 = vmul.f32 %v14240_v42, %v4036_v8  ;;  %v11459_v29 = vsel %vm5113_vm2, %v7731_v54, %v5177_v23  ;;  %v14246_v51 = vld [vmem:[#allocation54_spill] sm:$0xff]  ;;  %v14277_v50 = vld [vmem:[#allocation28_spill] sm:$0xff] }
 0x488   :  { %14235 = vst [vmem:[#allocation82_spill] sm:$0xff] %v11443_v62  ;;  %14241 = vst [vmem:[#allocation81_spill] sm:$0xff] %v11459_v29  ;;  %v11461_v21 = vmul.f32 0.6931472, %v7741_v59  ;;  %v11465_v41 = vsel %vm5112_vm3, %v7733_v25, %v5176_v36  ;;  %v14244_v47 = vmax.f32 %v14237_v20, 0.0  ;;  %v6149_v2 = vadd.f32 %v14240_v42, %v4036_v8  ;;  %v14247_v25 = vld [vmem:[#allocation64_spill] sm:$0xff] }
 0x489   :  { %14239 = vst [vmem:[#allocation87_spill] sm:$0xff] %v11454_v43  ;;  %14243 = vst [vmem:[#allocation173_spill] sm:$0xff] %v11465_v41  ;;  %vm5342_vm4 = vcmask 130112   ;;  %v11472_v14 = vmul.f32 %v11439_v17, %v14245_v57  ;;  %v5336_v54 = vrot.slane %v11447_v5, %v14246_v51  ;;  %v5814_v59 = vrot.slane %v5683_v15, %v14246_v51  ;;  %v14248_v20 = vld [vmem:[#allocation88_spill] sm:$0xff]  ;;  %v4033_v41 = vpop.xlane.xlu1 %4032  ;;  %v14250_v43 = vld [vmem:[#allocation86_spill] sm:$0xff] }
 0x48a   :  { %14242 = vst [vmem:[#allocation172_spill] sm:$0xff] %v11461_v21  ;;  %v4798_v32 = vsub.f32 %v14244_v47, %v4734_v31  ;;  %v6278_v23 = vrot.slane %v6147_v63, %v14246_v51  ;;  %v4039_v21 = vpop.xlane.xlu0 %4038  ;;  %vm5623_vm5 = vcmask 1041409   ;;  %v14249_v47 = vld [vmem:[#allocation133_spill] sm:$0xff]  ;;  %v5823_v57 = vrot.slane %v5685_v26, %v14246_v51  ;;  %v14251_v5 = vld [vmem:[#allocation72_spill] sm:$0xff] }
 0x48b   :  { %v4735_v31 = vmul.f32 %v4039_v21, %v14248_v20  ;;  %v5686_v42 = vmul.f32 %v14249_v47, %v4039_v21  ;;  %v6150_v8 = vadd.f32 %v14249_v47, %v4039_v21  ;;  %v4733_v62 = vmul.f32 %v4033_v41, %v14250_v43 }
 0x48c   :  { %v4990_v36 = vadd.f32 %v14247_v25, %v4798_v32  ;;  %v5684_v53 = vmul.f32 %v14251_v5, %v4033_v41  ;;  %v6148_v15 = vadd.f32 %v14251_v5, %v4033_v41  ;;  %v6287_v63 = vrot.slane %v6149_v2, %v14246_v51  ;;  %v14253_v25 = vld [vmem:[#allocation76_spill] sm:$0xff] }
 0x48d   :  { %v14252_v29 = vmax.f32 %v14248_v20, 0.0  ;;  %v5827_v37 = vrot.slane %v5686_v42, %v14253_v25  ;;  %v6291_v46 = vrot.slane %v6150_v8, %v14253_v25  ;;  %v11491_v60 = vpop.eup %7744  ;;  %v14254_v26 = vmax.f32 %v14250_v43, 0.0  ;;  %v14255_v20 = vld [vmem:[#allocation131_spill] sm:$0xff]  ;;  %v4078_v39 = vpop.xlane.xlu1 %4077  ;;  %v14257_v43 = vld [vmem:[#allocation36_spill] sm:$0xff] }
 0x48e   :  { %v5347_v21 = vrot.slane %v4990_v36, %v14246_v51  ;;  %v5818_v13 = vrot.slane %v5684_v53, %v14253_v25  ;;  %v6282_v41 = vrot.slane %v6148_v15, %v14253_v25  ;;  %v4081_v5 = vpop.xlane.xlu0 %4080  ;;  %v14256_v8 = vld [vmem:[#allocation103_spill] sm:$0xff]  ;;  %vm5625_vm6 = vcmask 1042434  }
 0x48f   :  { %v4799_v32 = vsub.f32 %v14252_v29, %v4735_v31  ;;  %v4797_v47 = vsub.f32 %v14254_v26, %v4733_v62  ;;  %v11498_v2 = vpop.eup %7746  ;;  %v5828_v31 = vsel %vm5342_vm4, %v5827_v37, %v5823_v57  ;;  %v6292_v42 = vsel %vm5342_vm4, %v6291_v46, %v6287_v63  ;;  %v14258_v26 = vld [vmem:[#allocation26_spill] sm:$0xff] }
 0x490   :  { %v4749_v18 = vmul.f32 %v4081_v5, %v14256_v8  ;;  %v11504_v36 = vpop.eup %7748  ;;  %v5819_v53 = vsel %vm5342_vm4, %v5818_v13, %v5814_v59  ;;  %v6283_v15 = vsel %vm5342_vm4, %v6282_v41, %v6278_v23  ;;  %v5700_v35 = vmul.f32 %v14258_v26, %v4081_v5  ;;  %v14260_v59 = vld [vmem:[#allocation101_spill] sm:$0xff] }
 0x491   :  { %v4991_v29 = vadd.f32 %v14255_v20, %v4799_v32  ;;  %v4989_v62 = vadd.f32 %v14257_v43, %v4797_v47  ;;  %v11512_v32 = vsel %vm5623_vm5, %v5828_v31, %v5819_v53  ;;  %v11515_v37 = vsel %vm5623_vm5, %v6292_v42, %v6283_v15  ;;  %v14263_v43 = vld [vmem:[#allocation147_spill] sm:$0xff]  ;;  %v14266_v15 = vld [vmem:[#allocation104_spill] sm:$0xff] }
 0x492   :  { %v14259_v46 = vmax.f32 %v14256_v8, 0.0  ;;  %v5890_v47 = vrot.slane %v5700_v35, %v14253_v25  ;;  %v6164_v13 = vadd.f32 %v14258_v26, %v4081_v5  ;;  %v4748_v23 = vmul.f32 %v4078_v39, %v14260_v59  ;;  %v4087_v41 = vpop.xlane.xlu0 %4086  ;;  %v4084_v8 = vpop.xlane.xlu1 %4083 }
 0x493   :  { %v5351_v52 = vrot.slane %v4991_v29, %v14253_v25  ;;  %v5341_v63 = vrot.slane %v4989_v62, %v14253_v25  ;;  %v14262_v29 = vld [vmem:[#allocation30_spill] sm:$0xff]  ;;  %v5699_v42 = vmul.f32 %v14263_v43, %v4078_v39  ;;  %v6163_v53 = vadd.f32 %v14263_v43, %v4078_v39  ;;  %v14268_v39 = vld [vmem:[#allocation53_spill] sm:$0xff] }
 0x494   :  { %v4813_v57 = vsub.f32 %v14259_v46, %v4749_v18  ;;  %v6354_v35 = vrot.slane %v6164_v13, %v14253_v25  ;;  %v14265_v5 = vmax.f32 %v14260_v59, 0.0  ;;  %v4751_v26 = vmul.f32 %v4087_v41, %v14266_v15 }
 0x495   :  { %v11524_v20 = vsel %vm5342_vm4, %v5351_v52, %v5347_v21  ;;  %v11530_v18 = vsel %vm5342_vm4, %v5341_v63, %v5336_v54  ;;  %v5886_v21 = vrot.slane %v5699_v42, %v14246_v51  ;;  %v6350_v46 = vrot.slane %v6163_v53, %v14246_v51 }
 0x496   :  { %14261 = vst [vmem:[#allocation12_spill] sm:$0xff] %v11524_v20  ;;  %v5005_v31 = vadd.f32 %v14262_v29, %v4813_v57  ;;  %14264 = vst [vmem:[#allocation54_spill] sm:$0xff] %v11530_v18  ;;  %v4812_v62 = vsub.f32 %v14265_v5, %v4748_v23  ;;  %v14267_v57 = vld [vmem:[#allocation37_spill] sm:$0xff]  ;;  %v14269_v54 = vmax.f32 %v14266_v15, 0.0  ;;  %v14270_v20 = vld [vmem:[#allocation102_spill] sm:$0xff]  ;;  %v4045_v23 = vpop.xlane.xlu0 %4044  ;;  %v4042_v45 = vpop.xlane.xlu1 %4041  ;;  %vm5115_vm7 = vcmp.ge.f32.partialorder %v14290_v0, 0.0 }
 0x497   :  { %v5702_v29 = vmul.f32 %v14267_v57, %v4087_v41  ;;  %v6166_v13 = vadd.f32 %v14267_v57, %v4087_v41  ;;  %v4750_v59 = vmul.f32 %v4084_v8, %v14270_v20  ;;  %v5891_v5 = vsel %vm5342_vm4, %v5890_v47, %v5886_v21  ;;  %v14271_v18 = vld [vmem:[#allocation38_spill] sm:$0xff]  ;;  %v14343_v0 = vld [vmem:[#allocation83_spill] sm:$0xff] }
 0x498   :  { %v5414_v52 = vrot.slane %v5005_v31, %v14253_v25  ;;  %v5004_v43 = vadd.f32 %v14268_v39, %v4812_v62  ;;  %v4815_v63 = vsub.f32 %v14269_v54, %v4751_v26  ;;  %v6355_v31 = vsel %vm5342_vm4, %v6354_v35, %v6350_v46  ;;  %v14272_v39 = vld [vmem:[#allocation17_spill] sm:$0xff]  ;;  %v14274_v35 = vld [vmem:[#allocation91_spill] sm:$0xff] }
 0x499   :  { %v5899_v42 = vrot.slane %v5702_v29, %v14253_v25  ;;  %v5701_v53 = vmul.f32 %v14271_v18, %v4084_v8  ;;  %v6363_v26 = vrot.slane %v6166_v13, %v14253_v25  ;;  %v14273_v41 = vmax.f32 %v14270_v20, 0.0  ;;  %v14275_v46 = vld [vmem:[#allocation139_spill] sm:$0xff] }
 0x49a   :  { %v5410_v62 = vrot.slane %v5004_v43, %v14246_v51  ;;  %v5007_v15 = vadd.f32 %v14272_v39, %v4815_v63  ;;  %v6165_v47 = vadd.f32 %v14271_v18, %v4084_v8  ;;  %v4737_v21 = vmul.f32 %v4045_v23, %v14274_v35  ;;  %v4093_v39 = vpop.xlane.xlu0 %4092 }
 0x49b   :  { %v4814_v57 = vsub.f32 %v14273_v41, %v4750_v59  ;;  %v5895_v54 = vrot.slane %v5701_v53, %v14246_v51  ;;  %v5688_v29 = vmul.f32 %v14275_v46, %v4045_v23  ;;  %v6152_v13 = vadd.f32 %v14275_v46, %v4045_v23  ;;  %v4090_v41 = vpop.xlane.xlu1 %4089  ;;  %v14280_v46 = vld [vmem:[#allocation75_spill] sm:$0xff] }
 0x49c   :  { %v11559_v12 = vsel %vm5342_vm4, %v5414_v52, %v5410_v62  ;;  %v5423_v43 = vrot.slane %v5007_v15, %v14253_v25  ;;  %v6359_v59 = vrot.slane %v6165_v47, %v14246_v51  ;;  %v14278_v8 = vmax.f32 %v14274_v35, 0.0 }
 0x49d   :  { %14276 = vst [vmem:[#allocation64_spill] sm:$0xff] %v11559_v12  ;;  %v5006_v63 = vadd.f32 %v14277_v50, %v4814_v57  ;;  %v5900_v20 = vsel %vm5342_vm4, %v5899_v42, %v5895_v54  ;;  %v5836_v53 = vrot.slane %v5688_v29, %v14253_v25  ;;  %v6300_v15 = vrot.slane %v6152_v13, %v14253_v25  ;;  %v14279_v50 = vld [vmem:[#allocation89_spill] sm:$0xff]  ;;  %v14281_v54 = vld [vmem:[#allocation52_spill] sm:$0xff] }
 0x49e   :  { %v4801_v18 = vsub.f32 %v14278_v8, %v4737_v21  ;;  %v6106_v62 = vsel %vm5623_vm5, %v5900_v20, %v5891_v5  ;;  %v4736_v57 = vmul.f32 %v4042_v45, %v14279_v50  ;;  %v6364_v23 = vsel %vm5342_vm4, %v6363_v26, %v6359_v59  ;;  %v14284_v20 = vld [vmem:[#allocation107_spill] sm:$0xff]  ;;  %v4051_v8 = vpop.xlane.xlu0 %4050 }
 0x49f   :  { %v5419_v52 = vrot.slane %v5006_v63, %v14246_v51  ;;  %v5687_v47 = vmul.f32 %v14281_v54, %v4042_v45  ;;  %v6151_v35 = vadd.f32 %v14281_v54, %v4042_v45  ;;  %v6570_v29 = vsel %vm5623_vm5, %v6364_v23, %v6355_v31  ;;  %v4048_v45 = vpop.xlane.xlu1 %4047  ;;  %v14286_v54 = vld [vmem:[#allocation29_spill] sm:$0xff] }
 0x4a0   :  { %v4993_v42 = vadd.f32 %v14280_v46, %v4801_v18  ;;  %v14283_v63 = vmax.f32 %v14279_v50, 0.0  ;;  %v4753_v13 = vmul.f32 %v4093_v39, %v14284_v20  ;;  %v14285_v18 = vld [vmem:[#allocation149_spill] sm:$0xff]  ;;  %vm5114_vm8 = vcmp.ge.f32.partialorder %v14189_v9, 0.0 }
 0x4a1   :  { %v11578_v21 = vsel %vm5342_vm4, %v5423_v43, %v5419_v52  ;;  %v5832_v26 = vrot.slane %v5687_v47, %v14246_v51  ;;  %v6296_v59 = vrot.slane %v6151_v35, %v14246_v51  ;;  %v5704_v46 = vmul.f32 %v14285_v18, %v4093_v39 }
 0x4a2   :  { %14282 = vst [vmem:[#allocation88_spill] sm:$0xff] %v11578_v21  ;;  %v4800_v5 = vsub.f32 %v14283_v63, %v4736_v57  ;;  %v5360_v12 = vrot.slane %v4993_v42, %v14253_v25  ;;  %v14287_v52 = vmax.f32 %v14284_v20, 0.0  ;;  %v6168_v50 = vadd.f32 %v14285_v18, %v4093_v39  ;;  %v14288_v57 = vld [vmem:[#allocation105_spill] sm:$0xff]  ;;  %v14289_v21 = vld [vmem:[#allocation42_spill] sm:$0xff]  ;;  %v14292_v20 = vld [vmem:[#allocation148_spill] sm:$0xff] }
 0x4a3   :  { %v4752_v23 = vmul.f32 %v4090_v41, %v14288_v57  ;;  %v5837_v63 = vsel %vm5342_vm4, %v5836_v53, %v5832_v26  ;;  %v6301_v42 = vsel %vm5342_vm4, %v6300_v15, %v6296_v59  ;;  %v5908_v47 = vrot.slane %v5704_v46, %v14253_v25 }
 0x4a4   :  { %v4992_v43 = vadd.f32 %v14286_v54, %v4800_v5  ;;  %v4817_v31 = vsub.f32 %v14287_v52, %v4753_v13  ;;  %v5703_v35 = vmul.f32 %v14289_v21, %v4090_v41  ;;  %v11601_v5 = vsel %vm5625_vm6, %v5837_v63, %v11512_v32  ;;  %v4099_v13 = vpop.xlane.xlu0 %4098  ;;  %v4096_v54 = vpop.xlane.xlu1 %4095 }
 0x4a5   :  { %14291 = vst [vmem:[#allocation133_spill] sm:$0xff] %v11601_v5  ;;  %v11605_v39 = vsel %vm5625_vm6, %v6301_v42, %v11515_v37  ;;  %v6372_v15 = vrot.slane %v6168_v50, %v14253_v25  ;;  %v14293_v26 = vmax.f32 %v14288_v57, 0.0  ;;  %v6167_v46 = vadd.f32 %v14289_v21, %v4090_v41  ;;  %v14296_v37 = vld [vmem:[#allocation145_spill] sm:$0xff] }
 0x4a6   :  { %v5356_v30 = vrot.slane %v4992_v43, %v14246_v51  ;;  %v5009_v53 = vadd.f32 %v14292_v20, %v4817_v31  ;;  %v5904_v18 = vrot.slane %v5703_v35, %v14246_v51  ;;  %v14295_v43 = vld [vmem:[#allocation92_spill] sm:$0xff]  ;;  %v5690_v63 = vmul.f32 %v14296_v37, %v4051_v8 }
 0x4a7   :  { %v4816_v59 = vsub.f32 %v14293_v26, %v4752_v23  ;;  %v4739_v52 = vmul.f32 %v4051_v8, %v14295_v43  ;;  %v14297_v31 = vld [vmem:[#allocation84_spill] sm:$0xff]  ;;  %v6368_v41 = vrot.slane %v6167_v46, %v14246_v51  ;;  %v6154_v20 = vadd.f32 %v14296_v37, %v4051_v8  ;;  %v14301_v26 = vld [vmem:[#allocation90_spill] sm:$0xff] }
 0x4a8   :  { %v11614_v32 = vsel %vm5342_vm4, %v5360_v12, %v5356_v30  ;;  %v5178_v50 = vmul.f32 %v11498_v2, %v14297_v31  ;;  %v5432_v57 = vrot.slane %v5009_v53, %v14253_v25  ;;  %v14298_v23 = vld [vmem:[#allocation8_spill] sm:$0xff]  ;;  %v5909_v35 = vsel %vm5342_vm4, %v5908_v47, %v5904_v18  ;;  %v4129_v5 = vpop.xlane.xlu0 %4128  ;;  %v14302_v47 = vld [vmem:[#allocation154_spill] sm:$0xff]  ;;  %v4126_v46 = vpop.xlane.xlu1 %4125 }
 0x4a9   :  { %14294 = vst [vmem:[#allocation86_spill] sm:$0xff] %v11614_v32  ;;  %v5008_v42 = vadd.f32 %v14298_v23, %v4816_v59  ;;  %v11626_v30 = vsel %vm5625_vm6, %v5909_v35, %v6106_v62  ;;  %v14300_v12 = vmax.f32 %v14295_v43, 0.0  ;;  %v4738_v32 = vmul.f32 %v4048_v45, %v14301_v26  ;;  %v14304_v23 = vld [vmem:[#allocation19_spill] sm:$0xff] }
 0x4aa   :  { %14299 = vst [vmem:[#allocation72_spill] sm:$0xff] %v11626_v30  ;;  %v6373_v53 = vsel %vm5342_vm4, %v6372_v15, %v6368_v41  ;;  %v5845_v59 = vrot.slane %v5690_v63, %v14253_v25  ;;  %v5689_v18 = vmul.f32 %v14302_v47, %v4048_v45  ;;  %v14306_v8 = vmax.f32 %v14301_v26, 0.0  ;;  %v14308_v63 = vld [vmem:[#allocation108_spill] sm:$0xff]  ;;  %v14309_v41 = vld [vmem:[#allocation135_spill] sm:$0xff] }
 0x4ab   :  { %v4803_v21 = vsub.f32 %v14300_v12, %v4739_v52  ;;  %v5428_v31 = vrot.slane %v5008_v42, %v14246_v51  ;;  %v11637_v62 = vsel %vm5625_vm6, %v6373_v53, %v6570_v29  ;;  %v6153_v37 = vadd.f32 %v14302_v47, %v4048_v45  ;;  %v14310_v53 = vld [vmem:[#allocation152_spill] sm:$0xff] }
 0x4ac   :  { %14303 = vst [vmem:[#allocation76_spill] sm:$0xff] %v11637_v62  ;;  %v4802_v52 = vsub.f32 %v14306_v8, %v4738_v32  ;;  %v5841_v15 = vrot.slane %v5689_v18, %v14246_v51  ;;  %v4755_v35 = vmul.f32 %v4099_v13, %v14308_v63  ;;  %v5706_v12 = vmul.f32 %v14309_v41, %v4099_v13  ;;  %v4132_v18 = vpop.xlane.xlu1 %4131 }
 0x4ad   :  { %v11640_v43 = vadd.f32 %v14304_v23, %v4803_v21  ;;  %v11646_v42 = vsel %vm5342_vm4, %v5432_v57, %v5428_v31  ;;  %v6309_v29 = vrot.slane %v6154_v20, %v14253_v25  ;;  %v4135_v21 = vpop.xlane.xlu0 %4134  ;;  %v11656_v26 = vmul.f32 0.6931472, %v11491_v60  ;;  %v14316_v23 = vld [vmem:[#allocation106_spill] sm:$0xff] }
 0x4ae   :  { %14307 = vst [vmem:[#allocation103_spill] sm:$0xff] %v11646_v42  ;;  %v11653_v30 = vadd.f32 %v14310_v53, %v4802_v52  ;;  %v11662_v45 = vsel %vm5115_vm7, %v11439_v17, %v11472_v14  ;;  %v11665_v32 = vsel %vm5342_vm4, %v5845_v59, %v5841_v15  ;;  %v6305_v57 = vrot.slane %v6153_v37, %v14246_v51  ;;  %v14317_v52 = vld [vmem:[#allocation132_spill] sm:$0xff]  ;;  %v14319_v37 = vld [vmem:[#allocation118_spill] sm:$0xff]  ;;  %v14323_v59 = vld [vmem:[#allocation59_spill] sm:$0xff] }
 0x4af   :  { %14305 = vst [vmem:[#allocation131_spill] sm:$0xff] %v11640_v43  ;;  %14312 = vst [vmem:[#allocation26_spill] sm:$0xff] %v11656_v26  ;;  %v14315_v20 = vmax.f32 %v14308_v63, 0.0  ;;  %v11671_v47 = vadd.f32 %v14309_v41, %v4099_v13  ;;  %v5917_v60 = vrot.slane %v5706_v12, %v14253_v25  ;;  %v4754_v8 = vmul.f32 %v4096_v54, %v14316_v23  ;;  %v14322_v12 = vld [vmem:[#allocation117_spill] sm:$0xff] }
 0x4b0   :  { %14311 = vst [vmem:[#allocation36_spill] sm:$0xff] %v11653_v30  ;;  %14313 = vst [vmem:[#allocation101_spill] sm:$0xff] %v11662_v45  ;;  %v5705_v53 = vmul.f32 %v14317_v52, %v4096_v54  ;;  %v11677_v17 = vmul.f32 0.6931472, %v11504_v36  ;;  %v4765_v15 = vmul.f32 %v4129_v5, %v14319_v37  ;;  %v11687_v13 = vsel %vm5114_vm8, %v11498_v2, %v5178_v50 }
 0x4b1   :  { %14314 = vst [vmem:[#allocation30_spill] sm:$0xff] %v11665_v32  ;;  %v4819_v31 = vsub.f32 %v14315_v20, %v4755_v35  ;;  %14320 = vst [vmem:[#allocation104_spill] sm:$0xff] %v11687_v13  ;;  %v14321_v35 = vld [vmem:[#allocation77_spill] sm:$0xff]  ;;  %v4764_v20 = vmul.f32 %v4126_v46, %v14322_v12  ;;  %v11694_v14 = vsel %vm5342_vm4, %v6309_v29, %v6305_v57  ;;  %v14325_v2 = vmax.f32 %v14319_v37, 0.0  ;;  %v14331_v32 = vld [vmem:[#allocation136_spill] sm:$0xff] }
 0x4b2   :  { %14318 = vst [vmem:[#allocation147_spill] sm:$0xff] %v11677_v17  ;;  %v5913_v63 = vrot.slane %v5705_v53, %v14246_v51  ;;  %v5716_v41 = vmul.f32 %v14321_v35, %v4129_v5  ;;  %v6180_v36 = vadd.f32 %v14321_v35, %v4129_v5  ;;  %v4057_v17 = vpop.xlane.xlu0 %4056  ;;  %v4054_v53 = vpop.xlane.xlu1 %4053  ;;  %v14326_v43 = vmax.f32 %v14316_v23, 0.0 }
 0x4b3   :  { %v11697_v42 = vadd.f32 %v14323_v59, %v4819_v31  ;;  %v4829_v50 = vsub.f32 %v14325_v2, %v4765_v15  ;;  %v11709_v35 = vadd.f32 %v14317_v52, %v4096_v54  ;;  %v14328_v29 = vmax.f32 %v14322_v12, 0.0  ;;  %v14329_v31 = vld [vmem:[#allocation142_spill] sm:$0xff] }
 0x4b4   :  { %v4818_v30 = vsub.f32 %v14326_v43, %v4754_v8  ;;  %v11706_v5 = vsel %vm5342_vm4, %v5917_v60, %v5913_v63  ;;  %v5962_v26 = vrot.slane %v5716_v41, %v14253_v25  ;;  %v6426_v37 = vrot.slane %v6180_v36, %v14253_v25  ;;  %v14330_v15 = vld [vmem:[#allocation10_spill] sm:$0xff]  ;;  %v14332_v60 = vld [vmem:[#allocation119_spill] sm:$0xff] }
 0x4b5   :  { %14324 = vst [vmem:[#allocation37_spill] sm:$0xff] %v11697_v42  ;;  %14327 = vst [vmem:[#allocation53_spill] sm:$0xff] %v11706_v5  ;;  %v4828_v57 = vsub.f32 %v14328_v29, %v4764_v20  ;;  %v5021_v59 = vadd.f32 %v14329_v31, %v4829_v50  ;;  %v5715_v2 = vmul.f32 %v14330_v15, %v4126_v46  ;;  %v14333_v63 = vld [vmem:[#allocation18_spill] sm:$0xff]  ;;  %v14334_v41 = vld [vmem:[#allocation55_spill] sm:$0xff]  ;;  %vm5627_vm9 = vcmask 1043459  }
 0x4b6   :  { %v6179_v43 = vadd.f32 %v14330_v15, %v4126_v46  ;;  %v4767_v8 = vmul.f32 %v4135_v21, %v14332_v60  ;;  %v5718_v54 = vmul.f32 %v14333_v63, %v4135_v21  ;;  %v4105_v52 = vpop.xlane.xlu0 %4104  ;;  %v6182_v50 = vadd.f32 %v14333_v63, %v4135_v21  ;;  %v4102_v36 = vpop.xlane.xlu1 %4101  ;;  %v14337_v21 = vld [vmem:[#allocation50_spill] sm:$0xff] }
 0x4b7   :  { %v5020_v23 = vadd.f32 %v14331_v32, %v4828_v57  ;;  %v5486_v12 = vrot.slane %v5021_v59, %v14253_v25  ;;  %v5958_v20 = vrot.slane %v5715_v2, %v14246_v51  ;;  %v4766_v29 = vmul.f32 %v4132_v18, %v14334_v41 }
 0x4b8   :  { %v6422_v32 = vrot.slane %v6179_v43, %v14246_v51  ;;  %v14335_v46 = vmax.f32 %v14332_v60, 0.0  ;;  %v5971_v15 = vrot.slane %v5718_v54, %v14253_v25  ;;  %v6435_v59 = vrot.slane %v6182_v50, %v14253_v25  ;;  %v14339_v43 = vld [vmem:[#allocation71_spill] sm:$0xff]  ;;  %v14340_v54 = vld [vmem:[#allocation66_spill] sm:$0xff] }
 0x4b9   :  { %v5482_v31 = vrot.slane %v5020_v23, %v14246_v51  ;;  %v5963_v5 = vsel %vm5342_vm4, %v5962_v26, %v5958_v20  ;;  %v14336_v2 = vmax.f32 %v14334_v41, 0.0  ;;  %v5717_v63 = vmul.f32 %v14337_v21, %v4132_v18  ;;  %v14341_v20 = vld [vmem:[#allocation95_spill] sm:$0xff]  ;;  %v14342_v41 = vld [vmem:[#allocation13_spill] sm:$0xff] }
 0x4ba   :  { %v4831_v57 = vsub.f32 %v14335_v46, %v4767_v8  ;;  %v6427_v23 = vsel %vm5342_vm4, %v6426_v37, %v6422_v32  ;;  %v6181_v60 = vadd.f32 %v14337_v21, %v4132_v18  ;;  %v4141_v8 = vpop.xlane.xlu0 %4140  ;;  %v4741_v50 = vmul.f32 %v4057_v17, %v14341_v20 }
 0x4bb   :  { %v4830_v9 = vsub.f32 %v14336_v2, %v4766_v29  ;;  %v11736_v13 = vsel %vm5342_vm4, %v5486_v12, %v5482_v31  ;;  %v5967_v26 = vrot.slane %v5717_v63, %v14246_v51  ;;  %v5692_v29 = vmul.f32 %v14342_v41, %v4057_v17  ;;  %v4138_v2 = vpop.xlane.xlu1 %4137  ;;  %v14345_v31 = vld [vmem:[#allocation93_spill] sm:$0xff] }
 0x4bc   :  { %14338 = vst [vmem:[#allocation102_spill] sm:$0xff] %v11736_v13  ;;  %v5023_v45 = vadd.f32 %v14339_v43, %v4831_v57  ;;  %v11746_v3 = vadd.f32 %v14343_v0, %v4818_v30  ;;  %v6431_v37 = vrot.slane %v6181_v60, %v14246_v51  ;;  %v4740_v32 = vmul.f32 %v4054_v53, %v14345_v31  ;;  %v14360_v13 = vld [vmem:[#allocation73_spill] sm:$0xff] }
 0x4bd   :  { %v5022_v46 = vadd.f32 %v14340_v54, %v4830_v9  ;;  %v5972_v9 = vsel %vm5342_vm4, %v5971_v15, %v5967_v26  ;;  %v14346_v57 = vmax.f32 %v14341_v20, 0.0  ;;  %v6156_v63 = vadd.f32 %v14342_v41, %v4057_v17  ;;  %v14349_v26 = vld [vmem:[#allocation31_spill] sm:$0xff] }
 0x4be   :  { %14344 = vst [vmem:[#allocation38_spill] sm:$0xff] %v11746_v3  ;;  %v5495_v12 = vrot.slane %v5023_v45, %v14253_v25  ;;  %v6377_v43 = vrot.slane %v11709_v35, %v14246_v51  ;;  %v11759_v0 = vsel %vm5623_vm5, %v5972_v9, %v5963_v5  ;;  %v6436_v30 = vsel %vm5342_vm4, %v6435_v59, %v6431_v37  ;;  %v4063_v54 = vpop.xlane.xlu0 %4062  ;;  %v14350_v5 = vld [vmem:[#allocation140_spill] sm:$0xff]  ;;  %v14352_v41 = vld [vmem:[#allocation111_spill] sm:$0xff] }
 0x4bf   :  { %v5491_v18 = vrot.slane %v5022_v46, %v14246_v51  ;;  %v4805_v21 = vsub.f32 %v14346_v57, %v4741_v50  ;;  %v14347_v45 = vmax.f32 %v14345_v31, 0.0  ;;  %v11768_v15 = vsel %vm5623_vm5, %v6436_v30, %v6427_v23  ;;  %v11772_v35 = vpop.xlane.xlu1 %4059  ;;  %v14353_v31 = vld [vmem:[#allocation57_spill] sm:$0xff]  ;;  %v14355_v57 = vld [vmem:[#allocation58_spill] sm:$0xff] }
 0x4c0   :  { %v5854_v17 = vrot.slane %v5692_v29, %v14253_v25  ;;  %v5691_v20 = vmul.f32 %v14349_v26, %v4054_v53  ;;  %v6155_v59 = vadd.f32 %v14349_v26, %v4054_v53  ;;  %v4757_v37 = vmul.f32 %v4105_v52, %v14352_v41 }
 0x4c1   :  { %v4804_v60 = vsub.f32 %v14347_v45, %v4740_v32  ;;  %v11765_v46 = vsel %vm5342_vm4, %v5495_v12, %v5491_v18  ;;  %v11775_v50 = vadd.f32 %v14350_v5, %v4805_v21  ;;  %v5708_v32 = vmul.f32 %v14353_v31, %v4105_v52  ;;  %v14354_v18 = vld [vmem:[#allocation109_spill] sm:$0xff] }
 0x4c2   :  { %14348 = vst [vmem:[#allocation17_spill] sm:$0xff] %v11765_v46  ;;  %v6318_v23 = vrot.slane %v6156_v63, %v14253_v25  ;;  %v5850_v29 = vrot.slane %v5691_v20, %v14246_v51  ;;  %v4756_v9 = vmul.f32 %v4102_v36, %v14354_v18  ;;  %v6314_v21 = vrot.slane %v6155_v59, %v14246_v51  ;;  %v11792_v5 = vpop.xlane.xlu0 %4110  ;;  %v14366_v59 = vld [vmem:[#allocation120_spill] sm:$0xff] }
 0x4c3   :  { %14351 = vst [vmem:[#allocation91_spill] sm:$0xff] %v11775_v50  ;;  %v11786_v30 = vadd.f32 %v14355_v57, %v4804_v60  ;;  %v14357_v53 = vmax.f32 %v14352_v41, 0.0  ;;  %v6172_v26 = vadd.f32 %v14353_v31, %v4105_v52  ;;  %v5926_v63 = vrot.slane %v5708_v32, %v14253_v25  ;;  %v11801_v57 = vpop.xlane.xlu1 %4107 }
 0x4c4   :  { %v11795_v12 = vsel %vm5342_vm4, %v5854_v17, %v5850_v29  ;;  %v14359_v20 = vmax.f32 %v14354_v18, 0.0  ;;  %v5707_v60 = vmul.f32 %v14360_v13, %v4102_v36  ;;  %v14361_v52 = vrot.slane %v11671_v47, %v14253_v25  ;;  %v14364_v18 = vld [vmem:[#allocation68_spill] sm:$0xff] }
 0x4c5   :  { %14356 = vst [vmem:[#allocation139_spill] sm:$0xff] %v11786_v30  ;;  %v4821_v45 = vsub.f32 %v14357_v53, %v4757_v37  ;;  %14358 = vst [vmem:[#allocation28_spill] sm:$0xff] %v11795_v12  ;;  %v14363_v37 = vld [vmem:[#allocation122_spill] sm:$0xff]  ;;  %v6171_v29 = vadd.f32 %v14360_v13, %v4102_v36  ;;  %v6184_v53 = vadd.f32 %v14364_v18, %v4141_v8  ;;  %v14369_v36 = vld [vmem:[#allocation63_spill] sm:$0xff]  ;;  %vm5629_vm10 = vcmask 1044484  }
 0x4c6   :  { %v4820_v46 = vsub.f32 %v14359_v20, %v4756_v9  ;;  %v11809_v41 = vsel %vm5342_vm4, %v14361_v52, %v6377_v43  ;;  %v4769_v31 = vmul.f32 %v4141_v8, %v14363_v37  ;;  %v5922_v32 = vrot.slane %v5707_v60, %v14246_v51  ;;  %v4147_v42 = vpop.xlane.xlu0 %4146  ;;  %v14367_v60 = vld [vmem:[#allocation146_spill] sm:$0xff]  ;;  %v14376_v30 = vld [vmem:[#allocation156_spill] sm:$0xff] }
 0x4c7   :  { %14362 = vst [vmem:[#allocation89_spill] sm:$0xff] %v11809_v41  ;;  %v5720_v9 = vmul.f32 %v14364_v18, %v4141_v8  ;;  %v6390_v47 = vrot.slane %v6172_v26, %v14253_v25  ;;  %v14365_v43 = vmax.f32 %v14363_v37, 0.0  ;;  %v4768_v17 = vmul.f32 %v4138_v2, %v14366_v59  ;;  %v11836_v18 = vpop.xlane.xlu1 %4143  ;;  %v14372_v26 = vld [vmem:[#allocation9_spill] sm:$0xff] }
 0x4c8   :  { %v11825_v3 = vsel %vm5342_vm4, %v6318_v23, %v6314_v21  ;;  %v11828_v13 = vadd.f32 %v14367_v60, %v4821_v45  ;;  %v11831_v50 = vadd.f32 %v14369_v36, %v4820_v46  ;;  %v11834_v8 = vsel %vm5342_vm4, %v5926_v63, %v5922_v32  ;;  %v14374_v23 = vld [vmem:[#allocation157_spill] sm:$0xff]  ;;  %v14375_v36 = vld [vmem:[#allocation96_spill] sm:$0xff] }
 0x4c9   :  { %v4833_v52 = vsub.f32 %v14365_v43, %v4769_v31  ;;  %14371 = vst [vmem:[#allocation107_spill] sm:$0xff] %v11834_v8  ;;  %v5980_v31 = vrot.slane %v5720_v9, %v14253_v25  ;;  %v14373_v43 = vmax.f32 %v14366_v59, 0.0  ;;  %v5719_v21 = vmul.f32 %v14374_v23, %v4138_v2  ;;  %v14377_v9 = vld [vmem:[#allocation94_spill] sm:$0xff] }
 0x4ca   :  { %14368 = vst [vmem:[#allocation75_spill] sm:$0xff] %v11828_v13  ;;  %14370 = vst [vmem:[#allocation52_spill] sm:$0xff] %v11831_v50  ;;  %v6386_v45 = vrot.slane %v6171_v29, %v14246_v51  ;;  %v6444_v60 = vrot.slane %v6184_v53, %v14253_v25  ;;  %v6183_v46 = vadd.f32 %v14374_v23, %v4138_v2  ;;  %v14378_v29 = vmax.f32 %v14375_v36, 0.0 }
 0x4cb   :  { %v5025_v37 = vadd.f32 %v14372_v26, %v4833_v52  ;;  %v4832_v20 = vsub.f32 %v14373_v43, %v4768_v17  ;;  %v4743_v63 = vmul.f32 %v4063_v54, %v14375_v36  ;;  %v5976_v52 = vrot.slane %v5719_v21, %v14246_v51  ;;  %v11852_v17 = vpop.xlane.xlu0 %4176  ;;  %v14379_v43 = vld [vmem:[#allocation20_spill] sm:$0xff] }
 0x4cc   :  { %v4742_v59 = vmul.f32 %v11772_v35, %v14377_v9  ;;  %v6440_v26 = vrot.slane %v6183_v46, %v14246_v51  ;;  %v11858_v2 = vmul.f32 %v14379_v43, %v4063_v54  ;;  %v11861_v23 = vadd.f32 %v14379_v43, %v4063_v54  ;;  %v14382_v46 = vld [vmem:[#allocation159_spill] sm:$0xff]  ;;  %v14400_v54 = vld [vmem:[#allocation22_spill] sm:$0xff] }
 0x4cd   :  { %v5504_v32 = vrot.slane %v5025_v37, %v14253_v25  ;;  %v5024_v8 = vadd.f32 %v14376_v30, %v4832_v20  ;;  %v4807_v53 = vsub.f32 %v14378_v29, %v4743_v63  ;;  %v11863_v37 = vpop.xlane.xlu1 %4173  ;;  %v5981_v20 = vsel %vm5342_vm4, %v5980_v31, %v5976_v52 }
 0x4ce   :  { %14380 = vst [vmem:[#allocation149_spill] sm:$0xff] %v11858_v2  ;;  %v14381_v21 = vmax.f32 %v14377_v9, 0.0  ;;  %v11871_v11 = vmul.f32 %v14382_v46, %v11772_v35  ;;  %v11879_v63 = vsel %vm5625_vm6, %v5981_v20, %v11759_v0  ;;  %v14387_v9 = vld [vmem:[#allocation158_spill] sm:$0xff]  ;;  %v11894_v29 = vadd.f32 %v14382_v46, %v11772_v35 }
 0x4cf   :  { %v5500_v30 = vrot.slane %v5024_v8, %v14246_v51  ;;  %14384 = vst [vmem:[#allocation105_spill] sm:$0xff] %v11879_v63  ;;  %v6445_v8 = vsel %vm5342_vm4, %v6444_v60, %v6440_v26  ;;  %v4183_v43 = vpop.xlane.xlu0 %4182  ;;  %v11897_v0 = vsel %vm5342_vm4, %v6390_v47, %v6386_v45  ;;  %v14390_v26 = vld [vmem:[#allocation112_spill] sm:$0xff]  ;;  %v4771_v60 = vmul.f32 %v4147_v42, %v14400_v54 }
 0x4d0   :  { %v4806_v12 = vsub.f32 %v14381_v21, %v4742_v59  ;;  %14383 = vst [vmem:[#allocation29_spill] sm:$0xff] %v11871_v11  ;;  %v11887_v52 = vsel %vm5625_vm6, %v6445_v8, %v11768_v15  ;;  %v11890_v59 = vadd.f32 %v14387_v9, %v4807_v53  ;;  %14389 = vst [vmem:[#allocation145_spill] sm:$0xff] %v11897_v0  ;;  %v14391_v53 = vld [vmem:[#allocation114_spill] sm:$0xff]  ;;  %v14393_v47 = vld [vmem:[#allocation160_spill] sm:$0xff]  ;;  %v14396_v8 = vmax.f32 %v14390_v26, 0.0 }
 0x4d1   :  { %v11883_v31 = vsel %vm5342_vm4, %v5504_v32, %v5500_v30  ;;  %14386 = vst [vmem:[#allocation148_spill] sm:$0xff] %v11887_v52  ;;  %v4759_v15 = vmul.f32 %v11792_v5, %v14390_v26  ;;  %v11905_v30 = vpop.xlane.xlu1 %4179  ;;  %v11914_v45 = vmul.f32 %v14393_v47, %v11792_v5  ;;  %v14395_v21 = vld [vmem:[#allocation110_spill] sm:$0xff]  ;;  %v11922_v36 = vadd.f32 %v14393_v47, %v11792_v5  ;;  %v14403_v5 = vld [vmem:[#allocation137_spill] sm:$0xff] }
 0x4d2   :  { %14385 = vst [vmem:[#allocation42_spill] sm:$0xff] %v11883_v31  ;;  %14388 = vst [vmem:[#allocation92_spill] sm:$0xff] %v11890_v59  ;;  %v11908_v20 = vadd.f32 %v14391_v53, %v4806_v12  ;;  %v4758_v46 = vmul.f32 %v11801_v57, %v14395_v21  ;;  %v14398_v12 = vld [vmem:[#allocation161_spill] sm:$0xff]  ;;  %v14401_v31 = vmax.f32 %v14395_v21, 0.0  ;;  %v14406_v63 = vmax.f32 %v14400_v54, 0.0  ;;  %v14407_v21 = vld [vmem:[#allocation43_spill] sm:$0xff] }
 0x4d3   :  { %14394 = vst [vmem:[#allocation8_spill] sm:$0xff] %v11914_v45  ;;  %v4823_v9 = vsub.f32 %v14396_v8, %v4759_v15  ;;  %14397 = vst [vmem:[#allocation90_spill] sm:$0xff] %v11922_v36  ;;  %v11926_v53 = vmul.f32 %v14398_v12, %v11801_v57  ;;  %v14402_v15 = vld [vmem:[#allocation162_spill] sm:$0xff]  ;;  %v11936_v13 = vpop.xlane.xlu0 %4068  ;;  %v11943_v50 = vadd.f32 %v14398_v12, %v11801_v57  ;;  %v14419_v0 = vld [vmem:[#allocation165_spill] sm:$0xff]  ;;  %vm5631_vm11 = vcmask 1045509  }
 0x4d4   :  { %14392 = vst [vmem:[#allocation84_spill] sm:$0xff] %v11908_v20  ;;  %v4822_v26 = vsub.f32 %v14401_v31, %v4758_v46  ;;  %v5722_v8 = vmul.f32 %v14402_v15, %v4147_v42  ;;  %v4835_v35 = vsub.f32 %v14406_v63, %v4771_v60  ;;  %v11948_v59 = vadd.f32 %v14402_v15, %v4147_v42  ;;  %v14410_v60 = vld [vmem:[#allocation121_spill] sm:$0xff]  ;;  %v14411_v15 = vld [vmem:[#allocation67_spill] sm:$0xff] }
 0x4d5   :  { %14399 = vst [vmem:[#allocation154_spill] sm:$0xff] %v11926_v53  ;;  %v11939_v47 = vadd.f32 %v14403_v5, %v4823_v9  ;;  %14405 = vst [vmem:[#allocation108_spill] sm:$0xff] %v11943_v50  ;;  %v11950_v32 = vpop.xlane.xlu1 %4065  ;;  %v14409_v5 = vld [vmem:[#allocation143_spill] sm:$0xff]  ;;  %v4770_v12 = vmul.f32 %v11836_v18, %v14410_v60  ;;  %v14413_v31 = vld [vmem:[#allocation45_spill] sm:$0xff]  ;;  %v14418_v2 = vmax.f32 %v14410_v60, 0.0  ;;  %vm5633_vm12 = vcmask 1046534  }
 0x4d6   :  { %v11955_v46 = vadd.f32 %v14407_v21, %v4822_v26  ;;  %v5989_v9 = vrot.slane %v5722_v8, %v14253_v25  ;;  %v5721_v57 = vmul.f32 %v14409_v5, %v11836_v18  ;;  %v11969_v26 = vadd.f32 %v14411_v15, %v4835_v35  ;;  %v14414_v15 = vld [vmem:[#allocation164_spill] sm:$0xff] }
 0x4d7   :  { %14404 = vst [vmem:[#allocation19_spill] sm:$0xff] %v11939_v47  ;;  %v6185_v21 = vadd.f32 %v14409_v5, %v11836_v18  ;;  %v4781_v54 = vmul.f32 %v11852_v17, %v14413_v31  ;;  %v11976_v20 = vpop.xlane.xlu0 %4116  ;;  %v6453_v35 = vrot.slane %v11948_v59, %v14253_v25  ;;  %v14416_v53 = vmax.f32 %v14413_v31, 0.0  ;;  %v14417_v47 = vld [vmem:[#allocation24_spill] sm:$0xff] }
 0x4d8   :  { %14408 = vst [vmem:[#allocation135_spill] sm:$0xff] %v11955_v46  ;;  %14412 = vst [vmem:[#allocation152_spill] sm:$0xff] %v11969_v26  ;;  %v5985_v8 = vrot.slane %v5721_v57, %v14246_v51  ;;  %v5732_v57 = vmul.f32 %v14414_v15, %v11852_v17  ;;  %v4780_v63 = vmul.f32 %v11863_v37, %v14417_v47  ;;  %vm5635_vm13 = vcmask 1047559  }
 0x4d9   :  { %v11986_v45 = vpop.xlane.xlu1 %4113  ;;  %v4845_v42 = vsub.f32 %v14416_v53, %v4781_v54  ;;  %v4834_v59 = vsub.f32 %v14418_v2, %v4770_v12  ;;  %v6196_v52 = vadd.f32 %v14414_v15, %v11852_v17  ;;  %v5731_v18 = vmul.f32 %v14419_v0, %v11863_v37  ;;  %v14420_v53 = vld [vmem:[#allocation163_spill] sm:$0xff]  ;;  %v14422_v12 = vld [vmem:[#allocation62_spill] sm:$0xff] }
 0x4da   :  { %v11991_v5 = vsel %vm5342_vm4, %v5989_v9, %v5985_v8  ;;  %v6034_v11 = vrot.slane %v5732_v57, %v14253_v25  ;;  %v6449_v31 = vrot.slane %v6185_v21, %v14246_v51  ;;  %v14421_v8 = vmax.f32 %v14417_v47, 0.0  ;;  %v14423_v17 = vld [vmem:[#allocation166_spill] sm:$0xff]  ;;  %v14424_v21 = vld [vmem:[#allocation35_spill] sm:$0xff] }
 0x4db   :  { %14415 = vst [vmem:[#allocation106_spill] sm:$0xff] %v11991_v5  ;;  %v5037_v54 = vadd.f32 %v14420_v53, %v4845_v42  ;;  %v12010_v60 = vpop.xlane.xlu0 %4152  ;;  %v6030_v2 = vrot.slane %v5731_v18, %v14246_v51  ;;  %v4783_v57 = vmul.f32 %v4183_v43, %v14422_v12  ;;  %v5734_v15 = vmul.f32 %v14423_v17, %v4183_v43  ;;  %v14425_v42 = vld [vmem:[#allocation46_spill] sm:$0xff]  ;;  %v14426_v53 = vld [vmem:[#allocation11_spill] sm:$0xff] }
 0x4dc   :  { %v4844_v46 = vsub.f32 %v14421_v8, %v4780_v63  ;;  %v6198_v5 = vadd.f32 %v14423_v17, %v4183_v43  ;;  %v6195_v47 = vadd.f32 %v14419_v0, %v11863_v37  ;;  %v4782_v63 = vmul.f32 %v11905_v30, %v14425_v42  ;;  %v14430_v0 = vld [vmem:[#allocation167_spill] sm:$0xff] }
 0x4dd   :  { %v12016_v41 = vpop.xlane.xlu1 %4149  ;;  %v5558_v9 = vrot.slane %v5037_v54, %v14253_v25  ;;  %v12025_v18 = vadd.f32 %v14426_v53, %v4834_v59  ;;  %v6498_v8 = vrot.slane %v6196_v52, %v14253_v25  ;;  %v6035_v62 = vsel %vm5342_vm4, %v6034_v11, %v6030_v2  ;;  %v14431_v59 = vld [vmem:[#allocation144_spill] sm:$0xff]  ;;  %v14432_v2 = vld [vmem:[#allocation99_spill] sm:$0xff] }
 0x4de   :  { %v5036_v26 = vadd.f32 %v14424_v21, %v4844_v46  ;;  %v14428_v43 = vmax.f32 %v14422_v12, 0.0  ;;  %v6043_v46 = vrot.slane %v5734_v15, %v14253_v25  ;;  %v14429_v21 = vmax.f32 %v14425_v42, 0.0  ;;  %v14434_v42 = vld [vmem:[#allocation14_spill] sm:$0xff] }
 0x4df   :  { %14427 = vst [vmem:[#allocation132_spill] sm:$0xff] %v12025_v18  ;;  %v5733_v36 = vmul.f32 %v14430_v0, %v11905_v30  ;;  %v12037_v50 = vpop.xlane.xlu0 %4188  ;;  %v6507_v52 = vrot.slane %v6198_v5, %v14253_v25  ;;  %v6197_v11 = vadd.f32 %v14430_v0, %v11905_v30  ;;  %v6494_v15 = vrot.slane %v6195_v47, %v14246_v51  ;;  %v14436_v0 = vld [vmem:[#allocation169_spill] sm:$0xff] }
 0x4e0   :  { %v4847_v17 = vsub.f32 %v14428_v43, %v4783_v57  ;;  %v5554_v54 = vrot.slane %v5036_v26, %v14246_v51  ;;  %v4846_v37 = vsub.f32 %v14429_v21, %v4782_v63  ;;  %v4745_v26 = vmul.f32 %v11936_v13, %v14432_v2 }
 0x4e1   :  { %v12045_v12 = vpop.xlane.xlu1 %4185  ;;  %v6039_v43 = vrot.slane %v5733_v36, %v14246_v51  ;;  %v6503_v5 = vrot.slane %v6197_v11, %v14246_v51  ;;  %v14435_v30 = vmax.f32 %v14432_v2, 0.0  ;;  %v12065_v47 = vadd.f32 %v14436_v0, %v11936_v13  ;;  %v14437_v36 = vld [vmem:[#allocation97_spill] sm:$0xff] }
 0x4e2   :  { %v5039_v53 = vadd.f32 %v14431_v59, %v4847_v17  ;;  %v12048_v57 = vsel %vm5342_vm4, %v5558_v9, %v5554_v54  ;;  %v5038_v63 = vadd.f32 %v14434_v42, %v4846_v37  ;;  %v12059_v59 = vmul.f32 %v14436_v0, %v11936_v13  ;;  %v14450_v0 = vld [vmem:[#allocation100_spill] sm:$0xff] }
 0x4e3   :  { %14433 = vst [vmem:[#allocation118_spill] sm:$0xff] %v12048_v57  ;;  %v4809_v21 = vsub.f32 %v14435_v30, %v4745_v26  ;;  %v6044_v54 = vsel %vm5342_vm4, %v6043_v46, %v6039_v43  ;;  %v4744_v37 = vmul.f32 %v11950_v32, %v14437_v36  ;;  %v6508_v2 = vsel %vm5342_vm4, %v6507_v52, %v6503_v5  ;;  %v14438_v26 = vld [vmem:[#allocation168_spill] sm:$0xff] }
 0x4e4   :  { %v5567_v17 = vrot.slane %v5039_v53, %v14253_v25  ;;  %v5563_v9 = vrot.slane %v5038_v63, %v14246_v51  ;;  %v12070_v53 = vsel %vm5342_vm4, %v6453_v35, %v6449_v31  ;;  %v12073_v11 = vsel %vm5623_vm5, %v6044_v54, %v6035_v62  ;;  %v12079_v63 = vpop.xlane.xlu0 %4074  ;;  %v14442_v5 = vld [vmem:[#allocation40_spill] sm:$0xff] }
 0x4e5   :  { %v12077_v42 = vadd.f32 %v14438_v26, %v4809_v21  ;;  %v6499_v46 = vsel %vm5342_vm4, %v6498_v8, %v6494_v15  ;;  %v14441_v35 = vmax.f32 %v14437_v36, 0.0  ;;  %v12089_v62 = vpop.xlane.xlu1 %4071  ;;  %v12095_v30 = vmul.f32 %v14442_v5, %v11950_v32  ;;  %v14443_v8 = vld [vmem:[#allocation115_spill] sm:$0xff]  ;;  %v14445_v36 = vld [vmem:[#allocation113_spill] sm:$0xff]  ;;  %v14446_v26 = vld [vmem:[#allocation170_spill] sm:$0xff] }
 0x4e6   :  { %v12085_v43 = vsel %vm5342_vm4, %v5567_v17, %v5563_v9  ;;  %v12099_v21 = vadd.f32 %v14442_v5, %v11950_v32  ;;  %v4761_v15 = vmul.f32 %v11976_v20, %v14443_v8  ;;  %v12104_v17 = vsel %vm5623_vm5, %v6508_v2, %v6499_v46  ;;  %v14444_v9 = vld [vmem:[#allocation16_spill] sm:$0xff] }
 0x4e7   :  { %14439 = vst [vmem:[#allocation77_spill] sm:$0xff] %v12077_v42  ;;  %14440 = vst [vmem:[#allocation117_spill] sm:$0xff] %v12085_v43  ;;  %v4808_v31 = vsub.f32 %v14441_v35, %v4744_v37  ;;  %v12110_v54 = vmul.f32 %v14444_v9, %v11976_v20  ;;  %v4760_v37 = vmul.f32 %v11986_v45, %v14445_v36  ;;  %v14448_v5 = vmax.f32 %v14443_v8, 0.0 }
 0x4e8   :  { %v12123_v46 = vadd.f32 %v14444_v9, %v11976_v20  ;;  %v14449_v13 = vmax.f32 %v14445_v36, 0.0  ;;  %v12129_v18 = vmul.f32 %v14450_v0, %v11986_v45  ;;  %v12133_v32 = vadd.f32 %v14450_v0, %v11986_v45 }
 0x4e9   :  { %v12117_v35 = vadd.f32 %v14446_v26, %v4808_v31  ;;  %v4825_v2 = vsub.f32 %v14448_v5, %v4761_v15  ;;  %v14451_v31 = vld [vmem:[#allocation41_spill] sm:$0xff]  ;;  %v4772_v20 = vmul.f32 %v12016_v41, %v14096_v4  ;;  %v12156_v43 = vpop.xlane.xlu1 %4119  ;;  %v5723_v45 = vmul.f32 %v11252_v40, %v12016_v41 }
 0x4ea   :  { %v4824_v52 = vsub.f32 %v14449_v13, %v4760_v37  ;;  %v4773_v26 = vmul.f32 %v12010_v60, %v14451_v31  ;;  %v14452_v15 = vld [vmem:[#allocation125_spill] sm:$0xff]  ;;  %v14454_v13 = vld [vmem:[#allocation134_spill] sm:$0xff]  ;;  %v12146_v37 = vpop.xlane.xlu0 %4122  ;;  %v14455_v0 = vmax.f32 %v14451_v31, 0.0  ;;  %v6187_v31 = vadd.f32 %v11252_v40, %v12016_v41 }
 0x4eb   :  { %14447 = vst [vmem:[#allocation59_spill] sm:$0xff] %v12117_v35  ;;  %v12142_v9 = vadd.f32 %v14452_v15, %v4825_v2  ;;  %v5724_v36 = vmul.f32 %v14454_v13, %v12010_v60  ;;  %v6188_v8 = vadd.f32 %v14454_v13, %v12010_v60  ;;  %v14457_v2 = vmax.f32 %v14096_v4, 0.0 }
 0x4ec   :  { %v4837_v5 = vsub.f32 %v14455_v0, %v4773_v26  ;;  %v14456_v26 = vld [vmem:[#allocation61_spill] sm:$0xff]  ;;  %v4785_v40 = vmul.f32 %v12037_v50, %v14165_v10  ;;  %v5736_v41 = vmul.f32 %v11266_v1, %v12037_v50  ;;  %v6200_v4 = vadd.f32 %v11266_v1, %v12037_v50 }
 0x4ed   :  { %14453 = vst [vmem:[#allocation142_spill] sm:$0xff] %v12142_v9  ;;  %v12167_v0 = vadd.f32 %v14456_v26, %v4824_v52  ;;  %v4836_v57 = vsub.f32 %v14457_v2, %v4772_v20  ;;  %v5998_v42 = vrot.slane %v5724_v36, %v14253_v25  ;;  %v14458_v52 = vld [vmem:[#allocation98_spill] sm:$0xff]  ;;  %v6462_v60 = vrot.slane %v6188_v8, %v14253_v25 }
 0x4ee   :  { %v12183_v26 = vadd.f32 %v14458_v52, %v4837_v5  ;;  %v4784_v20 = vmul.f32 %v12045_v12, %v14171_v27  ;;  %v5994_v36 = vrot.slane %v5723_v45, %v14246_v51  ;;  %v6458_v15 = vrot.slane %v6187_v31, %v14246_v51  ;;  %v4159_v5 = vpop.xlane.xlu0 %4158 }
 0x4ef   :  { %v12191_v2 = vadd.f32 %v11247_v49, %v4836_v57  ;;  %v14461_v13 = vmax.f32 %v14165_v10, 0.0  ;;  %v6052_v52 = vrot.slane %v5736_v41, %v14253_v25  ;;  %v6516_v8 = vrot.slane %v6200_v4, %v14253_v25  ;;  %v12203_v49 = vpop.xlane.xlu1 %4155  ;;  %v14463_v57 = vld [vmem:[#allocation116_spill] sm:$0xff] }
 0x4f0   :  { %14459 = vst [vmem:[#allocation10_spill] sm:$0xff] %v12183_v26  ;;  %v14462_v1 = vmax.f32 %v14171_v27, 0.0  ;;  %v5735_v35 = vmul.f32 %v11281_v48, %v12045_v12  ;;  %v6199_v31 = vadd.f32 %v11281_v48, %v12045_v12  ;;  %v4747_v10 = vmul.f32 %v12079_v63, %v14174_v6 }
 0x4f1   :  { %14460 = vst [vmem:[#allocation136_spill] sm:$0xff] %v12191_v2  ;;  %v4849_v9 = vsub.f32 %v14461_v13, %v4785_v40  ;;  %v12212_v13 = vmul.f32 %v11291_v55, %v12079_v63  ;;  %v14464_v40 = vld [vmem:[#allocation23_spill] sm:$0xff]  ;;  %v12218_v4 = vadd.f32 %v11291_v55, %v12079_v63  ;;  %v12232_v55 = vsel %vm5342_vm4, %v5998_v42, %v5994_v36 }
 0x4f2   :  { %v4848_v50 = vsub.f32 %v14462_v1, %v4784_v20  ;;  %v6048_v41 = vrot.slane %v5735_v35, %v14246_v51  ;;  %v6512_v20 = vrot.slane %v6199_v31, %v14246_v51  ;;  %v14465_v1 = vmax.f32 %v14174_v6, 0.0 }
 0x4f3   :  { %v5041_v45 = vadd.f32 %v14463_v57, %v4849_v9  ;;  %v4746_v9 = vmul.f32 %v12089_v62, %v14177_v34  ;;  %v12235_v63 = vsel %vm5342_vm4, %v6462_v60, %v6458_v15  ;;  %v6345_v31 = vrot.slane %v12218_v4, %v14253_v25 }
 0x4f4   :  { %v5040_v27 = vadd.f32 %v14464_v40, %v4848_v50  ;;  %v4811_v50 = vsub.f32 %v14465_v1, %v4747_v10  ;;  %v6053_v57 = vsel %vm5342_vm4, %v6052_v52, %v6048_v41  ;;  %v4195_v10 = vpop.xlane.xlu0 %4194  ;;  %v6517_v15 = vsel %vm5342_vm4, %v6516_v8, %v6512_v20  ;;  %v14469_v20 = vld [vmem:[#allocation56_spill] sm:$0xff] }
 0x4f5   :  { %v5576_v40 = vrot.slane %v5041_v45, %v14253_v25  ;;  %v12246_v42 = vsel %vm5625_vm6, %v6053_v57, %v12073_v11  ;;  %v14466_v60 = vmax.f32 %v14177_v34, 0.0  ;;  %v12253_v52 = vmul.f32 %v11306_v33, %v12089_v62  ;;  %v4192_v45 = vpop.xlane.xlu1 %4191 }
 0x4f6   :  { %v5572_v12 = vrot.slane %v5040_v27, %v14246_v51  ;;  %v12256_v27 = vadd.f32 %v11284_v38, %v4811_v50  ;;  %v6161_v41 = vadd.f32 %v11306_v33, %v12089_v62  ;;  %v4763_v11 = vmul.f32 %v12146_v37, %v14182_v61  ;;  %v14470_v50 = vld [vmem:[#allocation39_spill] sm:$0xff] }
 0x4f7   :  { %v4810_v36 = vsub.f32 %v14466_v60, %v4746_v9  ;;  %v12264_v8 = vmul.f32 %v11318_v56, %v12146_v37  ;;  %v12268_v34 = vadd.f32 %v11318_v56, %v12146_v37  ;;  %v4762_v4 = vmul.f32 %v12156_v43, %v14108_v44 }
 0x4f8   :  { %v12274_v38 = vmul.f32 %v11336_v24, %v12156_v43  ;;  %v12278_v33 = vadd.f32 %v11336_v24, %v12156_v43  ;;  %v12281_v62 = vsel %vm5342_vm4, %v5576_v40, %v5572_v12  ;;  %v12285_v9 = vsel %vm5625_vm6, %v6517_v15, %v12104_v17  ;;  %v14514_v24 = vld [vmem:[#allocation49_spill] sm:$0xff] }
 0x4f9   :  { %14467 = vst [vmem:[#allocation119_spill] sm:$0xff] %v12281_v62  ;;  %v14468_v56 = vmax.f32 %v14182_v61, 0.0  ;;  %v4775_v1 = vmul.f32 %v4159_v5, %v14469_v20  ;;  %v12291_v57 = vadd.f32 %v14470_v50, %v4810_v36  ;;  %v14471_v43 = vmax.f32 %v14108_v44, 0.0 }
 0x4fa   :  { %v12298_v12 = vmul.f32 %v11344_v16, %v4159_v5  ;;  %v6341_v17 = vrot.slane %v6161_v41, %v14246_v51  ;;  %v14472_v40 = vmax.f32 %v14469_v20, 0.0  ;;  %v12304_v15 = vadd.f32 %v11344_v16, %v4159_v5  ;;  %v12318_v20 = vpop.xlane.xlu1 %4161  ;;  %v14473_v16 = vld [vmem:[#allocation48_spill] sm:$0xff] }
 0x4fb   :  { %v4827_v37 = vsub.f32 %v14468_v56, %v4763_v11  ;;  %v4826_v60 = vsub.f32 %v14471_v43, %v4762_v4  ;;  %v4774_v36 = vmul.f32 %v12203_v49, %v14116_v19  ;;  %v12308_v11 = vpop.xlane.xlu0 %4164  ;;  %v6417_v4 = vrot.slane %v12268_v34, %v14253_v25 }
 0x4fc   :  { %v4839_v61 = vsub.f32 %v14472_v40, %v4775_v1  ;;  %v6413_v56 = vrot.slane %v12278_v33, %v14246_v51  ;;  %v14474_v1 = vld [vmem:[#allocation33_spill] sm:$0xff]  ;;  %v12330_v34 = vmul.f32 %v11354_v7, %v12203_v49  ;;  %v14475_v40 = vld [vmem:[#allocation44_spill] sm:$0xff]  ;;  %v14479_v48 = vmax.f32 %v14116_v19, 0.0 }
 0x4fd   :  { %v12321_v5 = vadd.f32 %v14473_v16, %v4827_v37  ;;  %v12324_v50 = vadd.f32 %v14474_v1, %v4826_v60  ;;  %v12339_v37 = vadd.f32 %v11354_v7, %v12203_v49  ;;  %v14477_v60 = vrot.slane %v11894_v29, %v14246_v51 }
 0x4fe   :  { %v12333_v35 = vadd.f32 %v14475_v40, %v4839_v61  ;;  %v14478_v16 = vrot.slane %v11861_v23, %v14253_v25  ;;  %v4838_v43 = vsub.f32 %v14479_v48, %v4774_v36  ;;  %v14480_v61 = vrot.slane %v12099_v21, %v14246_v51  ;;  %v14482_v36 = vld [vmem:[#allocation79_spill] sm:$0xff] }
 0x4ff   :  { %v14481_v40 = vrot.slane %v12065_v47, %v14253_v25  ;;  %v6565_v29 = vsel %vm5627_vm9, %v11694_v14, %v11605_v39  ;;  %v4787_v49 = vmul.f32 %v4195_v10, %v14119_v58  ;;  %v6346_v23 = vsel %vm5342_vm4, %v6345_v31, %v6341_v17  ;;  %v4201_v14 = vpop.xlane.xlu0 %4200  ;;  %v14487_v31 = vld [vmem:[#allocation32_spill] sm:$0xff] }
 0x500   :  { %14476 = vst [vmem:[#allocation18_spill] sm:$0xff] %v12333_v35  ;;  %v6328_v1 = vsel %vm5342_vm4, %v14478_v16, %v14477_v60  ;;  %v6566_v19 = vsel %vm5629_vm10, %v11825_v3, %v6565_v29  ;;  %v5738_v48 = vmul.f32 %v11367_v28, %v4195_v10  ;;  %v4786_v21 = vmul.f32 %v4192_v45, %v14482_v36  ;;  %v14524_v3 = vld [vmem:[#allocation80_spill] sm:$0xff] }
 0x501   :  { %v6337_v7 = vsel %vm5342_vm4, %v14481_v40, %v14480_v61  ;;  %v6567_v60 = vsel %vm5631_vm11, %v6328_v1, %v6566_v19  ;;  %v14483_v47 = vmax.f32 %v14119_v58, 0.0  ;;  %v6202_v61 = vadd.f32 %v11367_v28, %v4195_v10  ;;  %v4198_v1 = vpop.xlane.xlu1 %4197  ;;  %v14531_v35 = vld [vmem:[#allocation60_spill] sm:$0xff] }
 0x502   :  { %v5737_v39 = vmul.f32 %v11378_v22, %v4192_v45  ;;  %v6568_v17 = vsel %vm5633_vm12, %v6337_v7, %v6567_v60  ;;  %v14484_v40 = vmax.f32 %v14482_v36, 0.0  ;;  %v6201_v19 = vadd.f32 %v11378_v22, %v4192_v45  ;;  %v14489_v60 = vld [vmem:[#allocation34_spill] sm:$0xff] }
 0x503   :  { %v4851_v16 = vsub.f32 %v14483_v47, %v4787_v49  ;;  %v14485_v49 = vld [vmem:[#allocation25_spill] sm:$0xff]  ;;  %v6569_v10 = vsel %vm5635_vm13, %v6346_v23, %v6568_v17  ;;  %v6061_v7 = vrot.slane %v5738_v48, %v14253_v25  ;;  %v14490_v23 = vld [vmem:[#allocation108_spill] sm:$0xff]  ;;  %v14492_v45 = vld [vmem:[#allocation90_spill] sm:$0xff]  ;;  %v14494_v48 = vrot.slane %v12133_v32, %v14246_v51 }
 0x504   :  { %v4850_v29 = vsub.f32 %v14484_v40, %v4786_v21  ;;  %v12381_v28 = vadd.f32 %v14485_v49, %v4838_v43  ;;  %v6595_v47 = vsel %vm1659_vm1, %v6569_v10, 0.0  ;;  %v6057_v36 = vrot.slane %v5737_v39, %v14246_v51  ;;  %v14498_v10 = vld [vmem:[#allocation124_spill] sm:$0xff] }
 0x505   :  { %v12387_v44 = vadd.f32 %v14487_v31, %v4851_v16  ;;  %6596 = vadd.xlane.f32.xlu1 %v6595_v47  ;;  %v6525_v21 = vrot.slane %v6202_v61, %v14253_v25  ;;  %v6521_v43 = vrot.slane %v6201_v19, %v14246_v51  ;;  %v14491_v22 = vrot.slane %v14490_v23, %v14246_v51  ;;  %v14496_v31 = vld [vmem:[#allocation76_spill] sm:$0xff]  ;;  %v14499_v47 = vld [vmem:[#allocation15_spill] sm:$0xff]  ;;  %v4168_v41 = vpop.xlane.xlu1 %4167 }
 0x506   :  { %14486 = vst [vmem:[#allocation55_spill] sm:$0xff] %v12381_v28  ;;  %v12393_v40 = vadd.f32 %v14489_v60, %v4850_v29  ;;  %v14493_v17 = vrot.slane %v14492_v45, %v14253_v25  ;;  %v14495_v39 = vrot.slane %v12123_v46, %v14253_v25  ;;  %v14497_v29 = vld [vmem:[#allocation89_spill] sm:$0xff]  ;;  %v4777_v19 = vmul.f32 %v12308_v11, %v14498_v10  ;;  %v14501_v45 = vld [vmem:[#allocation123_spill] sm:$0xff] }
 0x507   :  { %14488 = vst [vmem:[#allocation50_spill] sm:$0xff] %v12387_v44  ;;  %v6572_v49 = vsel %vm5627_vm9, %v14497_v29, %v14496_v31  ;;  %v12417_v60 = vmul.f32 %v14499_v47, %v12308_v11  ;;  %v6418_v32 = vsel %vm5342_vm4, %v6417_v4, %v6413_v56  ;;  %v12429_v31 = vsel %vm5342_vm4, %v6061_v7, %v6057_v36 }
 0x508   :  { %v6400_v16 = vsel %vm5342_vm4, %v14493_v17, %v14491_v22  ;;  %v6409_v61 = vsel %vm5342_vm4, %v14495_v39, %v14494_v48  ;;  %v14500_v22 = vld [vmem:[#allocation145_spill] sm:$0xff]  ;;  %v4776_v17 = vmul.f32 %v12318_v20, %v14501_v45  ;;  %v4171_v48 = vpop.xlane.xlu0 %4170  ;;  %v14502_v58 = vmax.f32 %v14498_v10, 0.0 }
 0x509   :  { %v6573_v46 = vsel %vm5629_vm10, %v14500_v22, %v6572_v49  ;;  %v12437_v56 = vsel %vm5342_vm4, %v6525_v21, %v6521_v43  ;;  %v14503_v22 = vmax.f32 %v14501_v45, 0.0  ;;  %v14505_v21 = vld [vmem:[#allocation150_spill] sm:$0xff]  ;;  %v14507_v45 = vld [vmem:[#allocation47_spill] sm:$0xff]  ;;  %vm39_vm14 = vcmask 7168  }
 0x50a   :  { %v6574_v29 = vsel %vm5631_vm11, %v6400_v16, %v6573_v46  ;;  %v4841_v23 = vsub.f32 %v14502_v58, %v4777_v19  ;;  %v12447_v58 = vadd.f32 %v14499_v47, %v12308_v11  ;;  %v14504_v16 = vld [vmem:[#allocation127_spill] sm:$0xff]  ;;  %v12453_v43 = vmul.f32 %v14505_v21, %v12318_v20 }
 0x50b   :  { %v6575_v49 = vsel %vm5633_vm12, %v6409_v61, %v6574_v29  ;;  %v4840_v39 = vsub.f32 %v14503_v22, %v4776_v17  ;;  %v4789_v10 = vmul.f32 %v4201_v14, %v14504_v16  ;;  %v12457_v61 = vadd.f32 %v14505_v21, %v12318_v20  ;;  %v14513_v20 = vld [vmem:[#allocation141_spill] sm:$0xff] }
 0x50c   :  { %v6576_v7 = vsel %vm5635_vm13, %v6418_v32, %v6575_v49  ;;  %v14506_v32 = vld [vmem:[#allocation21_spill] sm:$0xff]  ;;  %v12461_v17 = vadd.f32 %v14507_v45, %v4841_v23  ;;  %v14509_v11 = vmax.f32 %v14504_v16, 0.0  ;;  %v5739_v21 = vmul.f32 %v14513_v20, %v4198_v1 }
 0x50d   :  { %v6598_v19 = vsel %vm1659_vm1, %v6576_v7, 0.0  ;;  %v5740_v46 = vmul.f32 %v14506_v32, %v4201_v14  ;;  %v6204_v29 = vadd.f32 %v14506_v32, %v4201_v14  ;;  %v14510_v49 = vld [vmem:[#allocation65_spill] sm:$0xff]  ;;  %v14511_v7 = vld [vmem:[#allocation138_spill] sm:$0xff]  ;;  %v6203_v6 = vadd.f32 %v14513_v20, %v4198_v1  ;;  %v14517_v32 = vld [vmem:[#allocation27_spill] sm:$0xff] }
 0x50e   :  { %6599 = vadd.xlane.f32.xlu0 %v6598_v19  ;;  %14508 = vst [vmem:[#allocation71_spill] sm:$0xff] %v12461_v17  ;;  %v4853_v47 = vsub.f32 %v14509_v11, %v4789_v10  ;;  %v4788_v22 = vmul.f32 %v4198_v1, %v14510_v49  ;;  %v12468_v4 = vadd.f32 %v14511_v7, %v4840_v39  ;;  %v4207_v19 = vpop.xlane.xlu0 %4206  ;;  %v14516_v10 = vmax.f32 %v14510_v49, 0.0  ;;  %v4204_v11 = vpop.xlane.xlu1 %4203  ;;  %v14518_v7 = vld [vmem:[#allocation85_spill] sm:$0xff] }
 0x50f   :  { %v6070_v36 = vrot.slane %v5740_v46, %v14253_v25  ;;  %v6534_v16 = vrot.slane %v6204_v29, %v14253_v25  ;;  %v4779_v45 = vmul.f32 %v4171_v48, %v14517_v32  ;;  %v6066_v39 = vrot.slane %v5739_v21, %v14246_v51  ;;  %v14519_v29 = vld [vmem:[#allocation51_spill] sm:$0xff] }
 0x510   :  { %14512 = vst [vmem:[#allocation66_spill] sm:$0xff] %v12468_v4  ;;  %v12474_v23 = vadd.f32 %v14514_v24, %v4853_v47  ;;  %v4852_v14 = vsub.f32 %v14516_v10, %v4788_v22  ;;  %v6530_v46 = vrot.slane %v6203_v6, %v14246_v51  ;;  %v12483_v33 = vmul.f32 %v14518_v7, %v4171_v48  ;;  %v14521_v22 = vld [vmem:[#allocation78_spill] sm:$0xff]  ;;  %v14528_v6 = vld [vmem:[#allocation151_spill] sm:$0xff] }
 0x511   :  { %v6194_v1 = vadd.f32 %v14518_v7, %v4171_v48  ;;  %v6480_v24 = vrot.slane %v12447_v58, %v14253_v25  ;;  %v4778_v20 = vmul.f32 %v4168_v41, %v14521_v22  ;;  %v6476_v48 = vrot.slane %v12457_v61, %v14246_v51 }
 0x512   :  { %14515 = vst [vmem:[#allocation95_spill] sm:$0xff] %v12474_v23  ;;  %v12491_v49 = vadd.f32 %v14519_v29, %v4852_v14  ;;  %v14522_v10 = vmax.f32 %v14517_v32, 0.0  ;;  %v12505_v14 = vsel %vm5342_vm4, %v6070_v36, %v6066_v39  ;;  %v12508_v29 = vsel %vm5342_vm4, %v6534_v16, %v6530_v46  ;;  %v4213_v7 = vpop.xlane.xlu0 %4212  ;;  %v14526_v39 = vld [vmem:[#allocation153_spill] sm:$0xff]  ;;  %v14532_v36 = vld [vmem:[#allocation171_spill] sm:$0xff] }
 0x513   :  { %v14523_v21 = vmax.f32 %v14521_v22, 0.0  ;;  %v6489_v61 = vrot.slane %v6194_v1, %v14253_v25  ;;  %v12516_v32 = vmul.f32 %v14524_v3, %v4168_v41  ;;  %v6193_v16 = vadd.f32 %v14524_v3, %v4168_v41  ;;  %v14527_v22 = vld [vmem:[#allocation126_spill] sm:$0xff]  ;;  %v14535_v23 = vld [vmem:[#allocation129_spill] sm:$0xff] }
 0x514   :  { %14520 = vst [vmem:[#allocation13_spill] sm:$0xff] %v12491_v49  ;;  %v4843_v58 = vsub.f32 %v14522_v10, %v4779_v45  ;;  %v14525_v45 = vld [vmem:[#allocation70_spill] sm:$0xff]  ;;  %v12523_v46 = vmul.f32 %v14526_v39, %v4207_v19  ;;  %v6206_v62 = vadd.f32 %v14526_v39, %v4207_v19  ;;  %v12533_v28 = vmul.f32 %v14531_v35, %v4204_v11  ;;  %v14538_v39 = vld [vmem:[#allocation69_spill] sm:$0xff] }
 0x515   :  { %v4842_v47 = vsub.f32 %v14523_v21, %v4778_v20  ;;  %v4791_v10 = vmul.f32 %v4207_v19, %v14525_v45  ;;  %v4790_v20 = vmul.f32 %v4204_v11, %v14527_v22  ;;  %v4210_v21 = vpop.xlane.xlu1 %4209  ;;  %v14530_v1 = vmax.f32 %v14525_v45, 0.0  ;;  %v14537_v19 = vld [vmem:[#allocation81_spill] sm:$0xff] }
 0x516   :  { %v12527_v17 = vadd.f32 %v14528_v6, %v4843_v58  ;;  %v14534_v41 = vmax.f32 %v14527_v22, 0.0  ;;  %v6205_v2 = vadd.f32 %v14531_v35, %v4204_v11  ;;  %v4793_v49 = vmul.f32 %v4213_v7, %v14535_v23  ;;  %v14536_v58 = vld [vmem:[#allocation155_spill] sm:$0xff] }
 0x517   :  { %v4855_v4 = vsub.f32 %v14530_v1, %v4791_v10  ;;  %v12536_v26 = vadd.f32 %v14532_v36, %v4842_v47  ;;  %v12548_v10 = vmul.f32 %v14537_v19, %v4213_v7  ;;  %v4792_v1 = vmul.f32 %v4210_v21, %v14538_v39  ;;  %v14542_v36 = vld [vmem:[#allocation87_spill] sm:$0xff] }
 0x518   :  { %14529 = vst [vmem:[#allocation83_spill] sm:$0xff] %v12527_v17  ;;  %v4854_v3 = vsub.f32 %v14534_v41, %v4790_v20  ;;  %v6485_v47 = vrot.slane %v6193_v16, %v14246_v51  ;;  %v14539_v35 = vmax.f32 %v14535_v23, 0.0  ;;  %v6208_v22 = vadd.f32 %v14537_v19, %v4213_v7  ;;  %v14540_v41 = vld [vmem:[#allocation82_spill] sm:$0xff]  ;;  %v4219_v16 = vpop.xlane.xlu0 %4218  ;;  %v14543_v23 = vld [vmem:[#allocation173_spill] sm:$0xff]  ;;  %v14544_v19 = vld [vmem:[#allocation172_spill] sm:$0xff] }
 0x519   :  { %14533 = vst [vmem:[#allocation93_spill] sm:$0xff] %v12536_v26  ;;  %v12545_v45 = vadd.f32 %v14536_v58, %v4855_v4  ;;  %v6543_v20 = vrot.slane %v6206_v62, %v14253_v25  ;;  %v6075_v58 = vrot.slane %v12533_v28, %v14246_v51  ;;  %v14541_v6 = vmax.f32 %v14538_v39, 0.0 }
 0x51a   :  { %v4857_v11 = vsub.f32 %v14539_v35, %v4793_v49  ;;  %v12559_v4 = vadd.f32 %v14540_v41, %v4854_v3  ;;  %v6539_v26 = vrot.slane %v6205_v2, %v14246_v51  ;;  %v12570_v49 = vmul.f32 %v14543_v23, %v4210_v21  ;;  %v14547_v35 = vld [vmem:[#allocation148_spill] sm:$0xff]  ;;  %v14548_v41 = vld [vmem:[#allocation130_spill] sm:$0xff] }
 0x51b   :  { %v4856_v17 = vsub.f32 %v14541_v6, %v4792_v1  ;;  %v6207_v62 = vadd.f32 %v14543_v23, %v4210_v21  ;;  %v14545_v2 = vrot.slane %v12339_v37, %v14246_v51  ;;  %v14546_v6 = vrot.slane %v12304_v15, %v14253_v25 }
 0x51c   :  { %v12567_v44 = vadd.f32 %v14542_v36, %v4857_v11  ;;  %v6552_v36 = vrot.slane %v6208_v22, %v14253_v25  ;;  %v6481_v21 = vsel %vm5342_vm4, %v6480_v24, %v6476_v48  ;;  %v6579_v11 = vsel %vm5627_vm9, %v12070_v53, %v14547_v35 }
 0x51d   :  { %v12578_v39 = vadd.f32 %v14544_v19, %v4856_v17  ;;  %v6472_v1 = vsel %vm5342_vm4, %v14546_v6, %v14545_v2  ;;  %v4795_v23 = vmul.f32 %v4219_v16, %v14548_v41  ;;  %v4216_v17 = vpop.xlane.xlu1 %4215  ;;  %v6490_v37 = vsel %vm5342_vm4, %v6489_v61, %v6485_v47  ;;  %v14549_v2 = vld [vmem:[#allocation101_spill] sm:$0xff] }
 0x51e   :  { %v6580_v15 = vsel %vm5629_vm10, %v12235_v63, %v6579_v11  ;;  %v6210_v6 = vadd.f32 %v14549_v2, %v4219_v16  ;;  %v6084_v48 = vrot.slane %v12570_v49, %v14246_v51  ;;  %v6548_v53 = vrot.slane %v6207_v62, %v14246_v51  ;;  %v14550_v63 = vld [vmem:[#allocation104_spill] sm:$0xff]  ;;  %v14626_v49 = vld [vmem:[#allocation50_spill] sm:$0xff] }
 0x51f   :  { %v6581_v22 = vsel %vm5631_vm11, %v6472_v1, %v6580_v15  ;;  %v6209_v11 = vadd.f32 %v14550_v63, %v4216_v17  ;;  %v14551_v24 = vmax.f32 %v14548_v41, 0.0  ;;  %v12616_v3 = vmul.f32 %v14549_v2, %v4219_v16  ;;  %v14552_v62 = vld [vmem:[#allocation128_spill] sm:$0xff] }
 0x520   :  { %v6582_v61 = vsel %vm5633_vm12, %v6481_v21, %v6581_v22  ;;  %v6561_v47 = vrot.slane %v6210_v6, %v14253_v25  ;;  %v4794_v1 = vmul.f32 %v4216_v17, %v14552_v62  ;;  %v12621_v35 = vmul.f32 %v14550_v63, %v4216_v17  ;;  %v14553_v6 = vld [vmem:[#allocation29_spill] sm:$0xff] }
 0x521   :  { %v6583_v7 = vsel %vm5635_vm13, %v6490_v37, %v6582_v61  ;;  %v12613_v19 = vsub.f32 %v14551_v24, %v4795_v23  ;;  %v6557_v21 = vrot.slane %v6209_v11, %v14246_v51  ;;  %v14554_v22 = vrot.slane %v14553_v6, %v14246_v51  ;;  %v14555_v37 = vld [vmem:[#allocation149_spill] sm:$0xff]  ;;  %v14562_v11 = vld [vmem:[#allocation30_spill] sm:$0xff] }
 0x522   :  { %v6601_v15 = vsel %vm1659_vm1, %v6583_v7, 0.0  ;;  %v14556_v41 = vrot.slane %v14555_v37, %v14253_v25  ;;  %v14557_v16 = vrot.slane %v12095_v30, %v14246_v51  ;;  %v14558_v7 = vrot.slane %v12059_v59, %v14253_v25  ;;  %v14561_v63 = vld [vmem:[#allocation133_spill] sm:$0xff]  ;;  %v14563_v30 = vld [vmem:[#allocation28_spill] sm:$0xff] }
 0x523   :  { %6602 = vadd.xlane.f32.xlu1 %v6601_v15  ;;  %v14559_v2 = vrot.slane %v12253_v52, %v14246_v51  ;;  %v14560_v24 = vrot.slane %v12212_v13, %v14253_v25  ;;  %v6101_v15 = vsel %vm5627_vm9, %v14562_v11, %v14561_v63  ;;  %v6544_v6 = vsel %vm5342_vm4, %v6543_v20, %v6539_v26  ;;  %v14566_v26 = vld [vmem:[#allocation8_spill] sm:$0xff]  ;;  %v14573_v63 = vld [vmem:[#allocation53_spill] sm:$0xff] }
 0x524   :  { %v5864_v23 = vsel %vm5342_vm4, %v14556_v41, %v14554_v22  ;;  %v5873_v17 = vsel %vm5342_vm4, %v14558_v7, %v14557_v16  ;;  %v6102_v22 = vsel %vm5629_vm10, %v14563_v30, %v6101_v15  ;;  %v6553_v59 = vsel %vm5342_vm4, %v6552_v36, %v6548_v53  ;;  %v14564_v16 = vld [vmem:[#allocation154_spill] sm:$0xff]  ;;  %v14574_v15 = vld [vmem:[#allocation107_spill] sm:$0xff] }
 0x525   :  { %v5882_v61 = vsel %vm5342_vm4, %v14560_v24, %v14559_v2  ;;  %v6562_v37 = vsel %vm5342_vm4, %v6561_v47, %v6557_v21  ;;  %v6586_v52 = vsel %vm5627_vm9, %v12437_v56, %v12285_v9  ;;  %v6103_v13 = vsel %vm5631_vm11, %v5864_v23, %v6102_v22  ;;  %v14572_v24 = vld [vmem:[#allocation72_spill] sm:$0xff] }
 0x526   :  { %v6587_v41 = vsel %vm5629_vm10, %v12508_v29, %v6586_v52  ;;  %v14565_v7 = vrot.slane %v14564_v16, %v14246_v51  ;;  %v14567_v20 = vrot.slane %v14566_v26, %v14253_v25  ;;  %v14568_v36 = vrot.slane %v12129_v18, %v14246_v51  ;;  %v14579_v26 = vld [vmem:[#allocation105_spill] sm:$0xff] }
 0x527   :  { %v14569_v53 = vrot.slane %v12110_v54, %v14253_v25  ;;  %v6104_v56 = vsel %vm5633_vm12, %v5873_v17, %v6103_v13  ;;  %v6588_v29 = vsel %vm5631_vm11, %v6544_v6, %v6587_v41  ;;  %v14570_v47 = vrot.slane %v12274_v38, %v14246_v51 }
 0x528   :  { %v5936_v2 = vsel %vm5342_vm4, %v14567_v20, %v14565_v7  ;;  %v14571_v21 = vrot.slane %v12264_v8, %v14253_v25  ;;  %v6108_v18 = vsel %vm5627_vm9, %v14573_v63, %v14572_v24  ;;  %v6105_v54 = vsel %vm5635_vm13, %v5882_v61, %v6104_v56  ;;  %v14580_v20 = vld [vmem:[#allocation106_spill] sm:$0xff]  ;;  %v14587_v56 = vld [vmem:[#allocation91_spill] sm:$0xff] }
 0x529   :  { %v5945_v9 = vsel %vm5342_vm4, %v14569_v53, %v14568_v36  ;;  %v6589_v11 = vsel %vm5633_vm12, %v6553_v59, %v6588_v29  ;;  %v6109_v17 = vsel %vm5629_vm10, %v14574_v15, %v6108_v18  ;;  %v6097_v6 = vrot.slane %v12616_v3, %v14253_v25  ;;  %v14583_v36 = vld [vmem:[#allocation131_spill] sm:$0xff]  ;;  %v14593_v15 = vld [vmem:[#allocation92_spill] sm:$0xff] }
 0x52a   :  { %v5954_v23 = vsel %vm5342_vm4, %v14571_v21, %v14570_v47  ;;  %v6131_v38 = vsel %vm1659_vm1, %v6105_v54, 0.0  ;;  %v6590_v8 = vsel %vm5635_vm13, %v6562_v37, %v6589_v11  ;;  %v6110_v30 = vsel %vm5631_vm11, %v5936_v2, %v6109_v17  ;;  %v14581_v2 = vld [vmem:[#allocation36_spill] sm:$0xff] }
 0x52b   :  { %v7770_v22 = vmov 0   ;;  %6132 = vadd.xlane.f32.xlu1 %v6131_v38  ;;  %v6604_v61 = vsel %vm1659_vm1, %v6590_v8, 0.0  ;;  %v6111_v59 = vsel %vm5633_vm12, %v5945_v9, %v6110_v30  ;;  %v14575_v52 = vrot.slane %v12330_v34, %v14246_v51  ;;  %v14585_v9 = vld [vmem:[#allocation139_spill] sm:$0xff]  ;;  %v14591_v54 = vld [vmem:[#allocation84_spill] sm:$0xff]  ;;  %v14595_v30 = vld [vmem:[#allocation54_spill] sm:$0xff] }
 0x52c   :  { %7364 = vset.pattern.permute.xlu1 %v7770_v22  ;;  %7365 = vset.pattern.permute.xlu0 %v7770_v22  ;;  %v14576_v3 = vrot.slane %v12298_v12, %v14253_v25  ;;  %v14577_v37 = vrot.slane %v12453_v43, %v14246_v51  ;;  %v14578_v41 = vrot.slane %v12417_v60, %v14253_v25  ;;  %v14596_v22 = vld [vmem:[#allocation12_spill] sm:$0xff]  ;;  %vm6669_vm15 = vcmask 126976  }
 0x52d   :  { %6605 = vadd.xlane.f32.xlu0 %v6604_v61  ;;  %v6112_v7 = vsel %vm5635_vm13, %v5954_v23, %v6111_v59  ;;  %v6115_v34 = vsel %vm5627_vm9, %v14580_v20, %v14579_v26  ;;  %v14582_v12 = vrot.slane %v14581_v2, %v14246_v51  ;;  %v14584_v53 = vrot.slane %v14583_v36, %v14253_v25  ;;  %v14597_v59 = vld [vmem:[#allocation86_spill] sm:$0xff]  ;;  %v14604_v26 = vld [vmem:[#allocation75_spill] sm:$0xff]  ;;  %v14608_v36 = vld [vmem:[#allocation77_spill] sm:$0xff] }
 0x52e   :  { %v6008_v13 = vsel %vm5342_vm4, %v14576_v3, %v14575_v52  ;;  %v6017_v16 = vsel %vm5342_vm4, %v14578_v41, %v14577_v37  ;;  %v14586_v60 = vrot.slane %v14585_v9, %v14246_v51  ;;  %v14588_v29 = vrot.slane %v14587_v56, %v14253_v25  ;;  %v14598_v3 = vld [vmem:[#allocation38_spill] sm:$0xff]  ;;  %v14600_v41 = vld [vmem:[#allocation37_spill] sm:$0xff]  ;;  %v14606_v2 = vld [vmem:[#allocation59_spill] sm:$0xff] }
 0x52f   :  { %v5370_v43 = vsel %vm5342_vm4, %v14584_v53, %v14582_v12  ;;  %v6134_v21 = vsel %vm1659_vm1, %v6112_v7, 0.0  ;;  %v14589_v23 = vrot.slane %v12516_v32, %v14246_v51  ;;  %v14590_v24 = vrot.slane %v12483_v33, %v14253_v25  ;;  %v14602_v7 = vld [vmem:[#allocation52_spill] sm:$0xff]  ;;  %v14610_v56 = vld [vmem:[#allocation135_spill] sm:$0xff] }
 0x530   :  { %v5379_v47 = vsel %vm5342_vm4, %v14588_v29, %v14586_v60  ;;  %v6116_v18 = vsel %vm5629_vm10, %v12232_v55, %v6115_v34  ;;  %v14592_v11 = vrot.slane %v14591_v54, %v14246_v51  ;;  %v14594_v17 = vrot.slane %v14593_v15, %v14253_v25 }
 0x531   :  { %v6026_v63 = vsel %vm5342_vm4, %v14590_v24, %v14589_v23  ;;  %v6117_v8 = vsel %vm5631_vm11, %v6008_v13, %v6116_v18  ;;  %v5401_v32 = vrot.slane %v12291_v57, %v14246_v51  ;;  %v5405_v33 = vrot.slane %v12256_v27, %v14253_v25  ;;  %6135 = vadd.xlane.f32.xlu0 %v6134_v21  ;;  %v14612_v23 = vld [vmem:[#allocation19_spill] sm:$0xff] }
 0x532   :  { %v5388_v38 = vsel %vm5342_vm4, %v14594_v17, %v14592_v11  ;;  %v5624_v55 = vsel %vm5623_vm5, %v14596_v22, %v14595_v30  ;;  %v6118_v61 = vsel %vm5633_vm12, %v6017_v16, %v6117_v8  ;;  %v14599_v37 = vrot.slane %v14598_v3, %v14246_v51  ;;  %v14615_v30 = vld [vmem:[#allocation64_spill] sm:$0xff] }
 0x533   :  { %v5626_v52 = vsel %vm5625_vm6, %v14597_v59, %v5624_v55  ;;  %v14601_v13 = vrot.slane %v14600_v41, %v14253_v25  ;;  %v14603_v27 = vrot.slane %v14602_v7, %v14246_v51  ;;  %v14605_v20 = vrot.slane %v14604_v26, %v14253_v25  ;;  %v14616_v22 = vld [vmem:[#allocation88_spill] sm:$0xff] }
 0x534   :  { %v6119_v16 = vsel %vm5635_vm13, %v6026_v63, %v6118_v61  ;;  %v14607_v12 = vrot.slane %v14606_v2, %v14246_v51  ;;  %v14609_v53 = vrot.slane %v14608_v36, %v14253_v25  ;;  %v5628_v60 = vsel %vm5627_vm9, %v5370_v43, %v5626_v52 }
 0x535   :  { %v5442_v57 = vsel %vm5342_vm4, %v14601_v13, %v14599_v37  ;;  %v5451_v34 = vsel %vm5342_vm4, %v14605_v20, %v14603_v27  ;;  %v14611_v29 = vrot.slane %v14610_v56, %v14246_v51  ;;  %v14613_v24 = vrot.slane %v14612_v23, %v14253_v25  ;;  %v14623_v37 = vld [vmem:[#allocation147_spill] sm:$0xff] }
 0x536   :  { %v5397_v9 = vsel %vm5342_vm4, %v14609_v53, %v14607_v12  ;;  %v14614_v63 = vmax.f32 %v14552_v62, 0.0  ;;  %v5406_v54 = vsel %vm5342_vm4, %v5405_v33, %v5401_v32  ;;  %v5630_v11 = vsel %vm5629_vm10, %v5379_v47, %v5628_v60  ;;  %v14635_v60 = vld [vmem:[#allocation117_spill] sm:$0xff] }
 0x537   :  { %v5460_v21 = vsel %vm5342_vm4, %v14613_v24, %v14611_v29  ;;  %v5473_v15 = vrot.slane %v12324_v50, %v14246_v51  ;;  %v6093_v43 = vrot.slane %v12621_v35, %v14246_v51  ;;  %v5632_v17 = vsel %vm5631_vm11, %v5388_v38, %v5630_v11  ;;  %v14618_v50 = vld [vmem:[#allocation103_spill] sm:$0xff]  ;;  %v14620_v38 = vld [vmem:[#allocation142_spill] sm:$0xff] }
 0x538   :  { %v4858_v18 = vsub.f32 %v14614_v63, %v4794_v1  ;;  %v5477_v8 = vrot.slane %v12321_v5, %v14253_v25  ;;  %v5637_v62 = vsel %vm5623_vm5, %v14616_v22, %v14615_v30  ;;  %v14617_v1 = vld [vmem:[#allocation26_spill] sm:$0xff]  ;;  %v6137_v47 = vsel %vm1659_vm1, %v6119_v16, 0.0  ;;  %v14630_v16 = vld [vmem:[#allocation95_spill] sm:$0xff] }
 0x539   :  { %v5051_v32 = vadd.f32 %v14617_v1, %v12613_v19  ;;  %v5634_v33 = vsel %vm5633_vm12, %v5397_v9, %v5632_v17  ;;  %v5638_v55 = vsel %vm5625_vm6, %v14618_v50, %v5637_v62  ;;  %6138 = vadd.xlane.f32.xlu0 %v6137_v47  ;;  %v14619_v5 = vrot.slane %v12167_v0, %v14246_v51  ;;  %v14634_v9 = vld [vmem:[#allocation118_spill] sm:$0xff] }
 0x53a   :  { %v5636_v35 = vsel %vm5635_vm13, %v5406_v54, %v5634_v33  ;;  %v14621_v61 = vrot.slane %v14620_v38, %v14253_v25  ;;  %v5639_v19 = vsel %vm5627_vm9, %v5442_v57, %v5638_v55  ;;  %v14622_v52 = vrot.slane %v12523_v46, %v14253_v25  ;;  %v6661_v29 = vld [vmem:[%s13046_s3] sm:$0x1f] }
 0x53b   :  { %v5050_v41 = vadd.f32 %v14623_v37, %v4858_v18  ;;  %v5478_v13 = vsel %vm5342_vm4, %v5477_v8, %v5473_v15  ;;  %v5640_v0 = vsel %vm5629_vm10, %v5451_v34, %v5639_v19  ;;  %v6122_v7 = vsel %vm5627_vm9, %v12429_v31, %v12246_v42  ;;  %v14642_v8 = vld [vmem:[#allocation136_spill] sm:$0xff]  ;;  %v14644_v22 = vld [vmem:[#allocation10_spill] sm:$0xff]  ;;  %v14650_v55 = vld [vmem:[#allocation119_spill] sm:$0xff] }
 0x53c   :  { %v5469_v59 = vsel %vm5342_vm4, %v14621_v61, %v14619_v5  ;;  %v6080_v3 = vsel %vm5342_vm4, %v14622_v52, %v6075_v58  ;;  %v5641_v57 = vsel %vm5631_vm11, %v5460_v21, %v5640_v0  ;;  %v14624_v28 = vrot.slane %v12548_v10, %v14253_v25  ;;  %v14648_v33 = vld [vmem:[#allocation18_spill] sm:$0xff]  ;;  %v14653_v38 = vld [vmem:[#allocation71_spill] sm:$0xff]  ;;  %v14655_v19 = vld [vmem:[#allocation93_spill] sm:$0xff]  ;;  %6700 = vperm.xlu1 %7364, %v6661_v29  }
 0x53d   :  { %v6098_v58 = vsel %vm5342_vm4, %v6097_v6, %v6093_v43  ;;  %v6123_v27 = vsel %vm5629_vm10, %v12505_v14, %v6122_v7  ;;  %v5662_v26 = vsel %vm1659_vm1, %v5636_v35, 0.0  ;;  %v5642_v20 = vsel %vm5633_vm12, %v5469_v59, %v5641_v57  ;;  %v14628_v6 = vld [vmem:[#allocation13_spill] sm:$0xff]  ;;  %v14651_v35 = vld [vmem:[#allocation66_spill] sm:$0xff] }
 0x53e   :  { %v6089_v46 = vsel %vm5342_vm4, %v14624_v28, %v6084_v48  ;;  %v6124_v42 = vsel %vm5631_vm11, %v6080_v3, %v6123_v27  ;;  %v14625_v31 = vrot.slane %v12393_v40, %v14246_v51  ;;  %v14627_v34 = vrot.slane %v14626_v49, %v14253_v25  ;;  %5663 = vadd.xlane.f32.xlu0 %v5662_v26  ;;  %v14656_v3 = vld [vmem:[#allocation83_spill] sm:$0xff]  ;;  %v14657_v0 = vld [vmem:[#allocation102_spill] sm:$0xff]  ;;  %v14658_v7 = vld [vmem:[#allocation17_spill] sm:$0xff] }
 0x53f   :  { %v5643_v48 = vsel %vm5635_vm13, %v5478_v13, %v5642_v20  ;;  %v14629_v14 = vrot.slane %v14628_v6, %v14246_v51  ;;  %v14631_v2 = vrot.slane %v14630_v16, %v14253_v25  ;;  %v14632_v36 = vrot.slane %v12559_v4, %v14246_v51  ;;  %v14636_v4 = vld [vmem:[#allocation132_spill] sm:$0xff]  ;;  %v14659_v27 = vld [vmem:[#allocation42_spill] sm:$0xff] }
 0x540   :  { %v5586_v10 = vsel %vm5342_vm4, %v14627_v34, %v14625_v31  ;;  %v14633_v40 = vrot.slane %v12545_v45, %v14253_v25  ;;  %v5651_v56 = vsel %vm5623_vm5, %v14635_v60, %v14634_v9  ;;  %v6125_v23 = vsel %vm5633_vm12, %v6089_v46, %v6124_v42  ;;  %v14638_v45 = vld [vmem:[#allocation152_spill] sm:$0xff] }
 0x541   :  { %v5595_v12 = vsel %vm5342_vm4, %v14631_v2, %v14629_v14  ;;  %v5617_v24 = vrot.slane %v5050_v41, %v14246_v51  ;;  %v5621_v21 = vrot.slane %v5051_v32, %v14253_v25  ;;  %v14637_v63 = vrot.slane %v14636_v4, %v14246_v51  ;;  %v14646_v32 = vld [vmem:[#allocation55_spill] sm:$0xff] }
 0x542   :  { %v5604_v53 = vsel %vm5342_vm4, %v14633_v40, %v14632_v36  ;;  %v14639_v18 = vrot.slane %v14638_v45, %v14253_v25  ;;  %v5665_v11 = vsel %vm1659_vm1, %v5643_v48, 0.0  ;;  %v14640_v15 = vrot.slane %v12578_v39, %v14246_v51  ;;  %v6659_v2 = vld [vmem:[%s13047_s1] sm:$0x1f] }
 0x543   :  { %v14641_v43 = vrot.slane %v12567_v44, %v14253_v25  ;;  %v14643_v30 = vrot.slane %v14642_v8, %v14246_v51  ;;  %v14645_v62 = vrot.slane %v14644_v22, %v14253_v25  ;;  %v14647_v47 = vrot.slane %v14646_v32, %v14246_v51  ;;  %5666 = vadd.xlane.f32.xlu0 %v5665_v11  ;;  %v6929_v22 = vld [vmem:[%s13050_s2] ss:$0 sm:$0xff] }
 0x544   :  { %v5514_v54 = vsel %vm5342_vm4, %v14639_v18, %v14637_v63  ;;  %v14649_v50 = vrot.slane %v14648_v33, %v14253_v25  ;;  %v5652_v44 = vsel %vm5625_vm6, %v14650_v55, %v5651_v56  ;;  %v14652_v5 = vrot.slane %v14651_v35, %v14246_v51 }
 0x545   :  { %v5613_v17 = vsel %vm5342_vm4, %v14641_v43, %v14640_v15  ;;  %v5523_v1 = vsel %vm5342_vm4, %v14645_v62, %v14643_v30  ;;  %v14654_v61 = vrot.slane %v14653_v38, %v14253_v25  ;;  %v5545_v52 = vrot.slane %v14655_v19, %v14246_v51 }
 0x546   :  { %v5532_v39 = vsel %vm5342_vm4, %v14649_v50, %v14647_v47  ;;  %v5549_v37 = vrot.slane %v14656_v3, %v14253_v25  ;;  %v6126_v41 = vsel %vm5635_vm13, %v6098_v58, %v6125_v23  ;;  %v5653_v13 = vsel %vm5627_vm9, %v5586_v10, %v5652_v44  ;;  %v14661_v50 = vld [vmem:[#allocation7_spill] sm:$0xff] }
 0x547   :  { %v5541_v59 = vsel %vm5342_vm4, %v14654_v61, %v14652_v5  ;;  %v5644_v57 = vsel %vm5623_vm5, %v14658_v7, %v14657_v0  ;;  %v5622_v28 = vsel %vm5342_vm4, %v5621_v21, %v5617_v24  ;;  %v5654_v46 = vsel %vm5629_vm10, %v5595_v12, %v5653_v13  ;;  %v12962_v24 = vld [vmem:[%s13048_s4] sm:$0xff] }
 0x548   :  { %v5645_v51 = vsel %vm5625_vm6, %v14659_v27, %v5644_v57  ;;  %v5655_v26 = vsel %vm5631_vm11, %v5604_v53, %v5654_v46  ;;  %v6140_v20 = vsel %vm1659_vm1, %v6126_v41, 0.0  ;;  %v5550_v42 = vsel %vm5342_vm4, %v5549_v37, %v5545_v52  ;;  %v12967_v21 = vld [vmem:[%s13049_s5] sm:$0xff] }
 0x549   :  { %v5646_v25 = vsel %vm5627_vm9, %v5514_v54, %v5645_v51  ;;  %v5656_v58 = vsel %vm5633_vm12, %v5613_v17, %v5655_v26  ;;  %6141 = vadd.xlane.f32.xlu0 %v6140_v20  ;;  %v14660_v14 = vmov 0.0   ;;  %v6670_v12 = vsel %vm6669_vm15, %v6659_v2, -inf }
 0x54a   :  { %v5647_v31 = vsel %vm5629_vm10, %v5523_v1, %v5646_v25  ;;  %v5657_v49 = vsel %vm5635_vm13, %v5622_v28, %v5656_v58  ;;  %40 = vst.msk [vmem:[#allocation2] sm:$0xff] %vm39_vm14, %v14660_v14  ;;  %44 = vst.msk [vmem:[#allocation3] sm:$0xff] %vm39_vm14, %v14660_v14  ;;  %v6671_v36 = vrot.slane %v6670_v12, 4  ;;  %v6749_v63 = vmul.f32 0.5, %v12962_v24 }
 0x54b   :  { %v5648_v34 = vsel %vm5631_vm11, %v5532_v39, %v5647_v31  ;;  %v5671_v6 = vsel %vm1659_vm1, %v5657_v49, 0.0  ;;  %41 = vst.msk [vmem:[#allocation2 + $0x8] sm:$0xff] %vm39_vm14, %v14660_v14  ;;  %42 = vst.msk [vmem:[#allocation2 + $0x10] sm:$0xff] %vm39_vm14, %v14660_v14  ;;  %v6755_v45 = vmul.f32 0.5, %v12967_v21  ;;  %vm6713_vm4 = vcmask 122880  }
 0x54c   :  { %v5649_v10 = vsel %vm5633_vm12, %v5541_v59, %v5648_v34  ;;  %43 = vst.msk [vmem:[#allocation2 + $0x18] sm:$0xff] %vm39_vm14, %v14660_v14  ;;  %45 = vst.msk [vmem:[#allocation3 + $0x8] sm:$0xff] %vm39_vm14, %v14660_v14  ;;  %v6672_v40 = vmax.f32 %v6670_v12, %v6671_v36  ;;  %v6751_v54 = vrot.slane %v6749_v63, 3  ;;  %v12992_v63 = vstv %s13051_s0 }
 0x54d   :  { %v5650_v48 = vsel %vm5635_vm13, %v5550_v42, %v5649_v10  ;;  %5672 = vadd.xlane.f32.xlu0 %v5671_v6  ;;  %46 = vst.msk [vmem:[#allocation3 + $0x10] sm:$0xff] %vm39_vm14, %v14660_v14  ;;  %47 = vst.msk [vmem:[#allocation3 + $0x18] sm:$0xff] %vm39_vm14, %v14660_v14  ;;  %v6757_v11 = vrot.slane %v6755_v45, 3  ;;  %vm5257_vm0 = vcmp.lt.s32.totalorder %v14661_v50, %v12992_v63  ;;  %vm6738_vm6 = vcmask 37888  }
 0x54e   :  { %v5668_v16 = vsel %vm1659_vm1, %v5650_v48, 0.0  ;;  %v6673_v53 = vrot.slane %v6672_v40, 2  ;;  %v6753_v43 = vsub.f32 %v12962_v24, %v6751_v54  ;;  %v6754_v17 = vadd.f32 %v6751_v54, %v12962_v24 }
 0x54f   :  { %v6759_v8 = vsub.f32 %v12967_v21, %v6757_v11  ;;  %v6760_v30 = vadd.f32 %v6757_v11, %v12967_v21  ;;  %vm6666_vm1 = vcmp.eq.s32.totalorder %v14661_v50, %v6929_v22  ;;  %v5247_v22 = vadd.s32 8, %v14661_v50 }
 0x550   :  { %v6674_v9 = vmax.f32 %v6672_v40, %v6673_v53  ;;  %v6761_v1 = vsub.f32 %v6754_v17, %v6753_v43  ;;  %v6930_v35 = vsel %vm6666_vm1, 1.0, %v14660_v14  ;;  %vm6812_vm7 = vcmask 32768  }
 0x551   :  { %v6770_v32 = vsub.f32 %v6760_v30, %v6759_v8  ;;  %v6779_v47 = vmax.f32 %v6753_v43, %v6759_v8  ;;  %v6780_v33 = vmin.f32 %v6754_v17, %v6760_v30  ;;  %v6792_v55 = vmin.f32 %v6753_v43, %v6759_v8 }
 0x552   :  { %v6675_v60 = vrot.slane %v6674_v9, 1  ;;  %v6793_v44 = vmax.f32 %v6754_v17, %v6760_v30  ;;  %v6762_v5 = vmax.f32 %v6761_v1, 0.0  ;;  %v6690_v19 = vmul.f32 %v6930_v35, %v6659_v2 }
 0x553   :  { %v6771_v38 = vmax.f32 %v6770_v32, 0.0  ;;  %v6781_v61 = vsub.f32 %v6780_v33, %v6779_v47  ;;  %vm5258_vm2 = vcmp.lt.s32.totalorder %v5247_v22, %v12992_v63 }
 0x554   :  { %v12956_v56 = vmax.f32 %v6674_v9, %v6675_v60  ;;  %v6794_v52 = vsub.f32 %v6793_v44, %v6792_v55  ;;  %v6764_v3 = vrot.slane %v6762_v5, 1  ;;  %v6691_v0 = vsel %vm6669_vm15, %v6690_v19, 0.0 }
 0x555   :  { %v6773_v37 = vrot.slane %v6771_v38, 1  ;;  %v6782_v41 = vmax.f32 %v6781_v61, 0.0  ;;  %v6767_v7 = vrot.slane %v6762_v5, 2  ;;  %v6776_v51 = vrot.slane %v6771_v38, 2 }
 0x556   :  { %v6677_v29 = vsub.f32 %v6659_v2, %v12956_v56  ;;  %v6795_v57 = vmax.f32 %v6794_v52, 0.0  ;;  %v6766_v46 = vmul.f32 %v6764_v3, %v6762_v5  ;;  %v6692_v58 = vrot.slane %v6691_v0, 4 }
 0x557   :  { %v6775_v27 = vmul.f32 %v6773_v37, %v6771_v38  ;;  %v6784_v26 = vrot.slane %v6782_v41, 1  ;;  %v6787_v10 = vrot.slane %v6782_v41, 2  ;;  %v5248_v19 = vadd.s32 16, %v14661_v50 }
 0x558   :  { %v6678_v23 = vmul.f32 1.442695, %v6677_v29  ;;  %v6797_v42 = vrot.slane %v6795_v57, 1  ;;  %v6769_v31 = vmul.f32 %v6767_v7, %v6766_v46  ;;  %v6800_v12 = vrot.slane %v6795_v57, 2 }
 0x559   :  { %v6778_v49 = vmul.f32 %v6776_v51, %v6775_v27  ;;  %v6786_v34 = vmul.f32 %v6784_v26, %v6782_v41  ;;  %v6926_v46 = vsel %vm5258_vm2, 1.0, %v14660_v14  ;;  %vm5259_vm3 = vcmp.lt.s32.totalorder %v5248_v19, %v12992_v63 }
 0x55a   :  { %7750 = vpow2.f32 %v6678_v23  ;;  %v6799_v2 = vmul.f32 %v6797_v42, %v6795_v57 }
 0x55b   :  { %v12982_v40 = vmul.f32 %v6787_v10, %v6786_v34  ;;  %v6790_v53 = vadd.f32 %v6778_v49, %v6769_v31  ;;  %v6631_v10 = vld [vmem:[#allocation2] sm:$0xff] }
 0x55c   :  { %v12984_v60 = vmul.f32 %v6800_v12, %v6799_v2 }
 0x55d   :  { %v12987_v23 = vsub.f32 %v6790_v53, %v12982_v40 }
 0x55e   :  { %v6807_v11 = vmax.f32 %v12984_v60, 1e-07 }
 0x55f   :  { %v6803_v17 = vmax.f32 %v12987_v23, 1e-07 }
 0x560   :  { %5669 = vadd.xlane.f32.xlu1 %v5668_v16  ;;  %v6693_v16 = vadd.f32 %v6692_v58, %v6691_v0  ;;  %v6645_v58 = vld [vmem:[#allocation3 + $0x8] sm:$0xff] }
 0x562   :  { %v6694_v9 = vrot.slane %v6693_v16, 2 }
 0x564   :  { %v7751_v4 = vpop.eup %7750  ;;  %v6695_v54 = vadd.f32 %v6694_v9, %v6693_v16 }
 0x565   :  { %v6680_v18 = vsel %vm6669_vm15, %v7751_v4, 0.0 }
 0x566   :  { %v6681_v15 = vrot.slane %v6680_v18, 4  ;;  %v6696_v47 = vrot.slane %v6695_v54, 1 }
 0x568   :  { %v6682_v62 = vadd.f32 %v6681_v15, %v6680_v18  ;;  %v6697_v0 = vadd.f32 %v6696_v47, %v6695_v54 }
 0x56a   :  { %v6683_v39 = vrot.slane %v6682_v62, 2 }
 0x56c   :  { %v6684_v59 = vadd.f32 %v6683_v39, %v6682_v62  ;;  %v6925_v39 = vsel %vm5257_vm0, 1.0, %v14660_v14 }
 0x56e   :  { %v6685_v13 = vrot.slane %v6684_v59, 1 }
 0x570   :  { %v6686_v25 = vadd.f32 %v6685_v13, %v6684_v59  ;;  %v6644_v59 = vld [vmem:[#allocation3] sm:$0xff] }
 0x572   :  { %7752 = vlog2.f32 %v6686_v25 }
 0x57c   :  { %v7753_v15 = vpop.eup %7752 }
 0x57d   :  { %v6688_v5 = vmul.f32 0.6931472, %v7753_v15 }
 0x592   :  { %v6597_v28 = vpop.xlane.xlu1 %6596 }
 0x593   :  { %v6611_v20 = vadd.f32 1.0, %v6597_v28  ;;  %v6689_v28 = vadd.f32 %v6688_v5, %v12956_v56  ;;  %v6806_v56 = vsub.f32 %v12984_v60, %v12987_v23  ;;  %v6736_v60 = vsub.f32 %v12962_v24, %v12967_v21 }
 0x595   :  { %7754 = vrcp.f32 %v6611_v20  ;;  %v6737_v21 = vand.u32 2147483647, %v6736_v60 }
 0x59b   :  { %v6600_v48 = vpop.xlane.xlu0 %6599 }
 0x59c   :  { %v6612_v36 = vadd.f32 1.0, %v6600_v48  ;;  %v6711_v48 = vsub.f32 %v6689_v28, %v6697_v0  ;;  %v6633_v0 = vld [vmem:[#allocation2 + $0x10] sm:$0xff] }
 0x59e   :  { %7756 = vrcp.f32 %v6612_v36 }
 0x59f   :  { %v7755_v8 = vpop.eup %7754 }
 0x5a8   :  { %v7757_v52 = vpop.eup %7756 }
 0x5b0   :  { %v6603_v6 = vpop.xlane.xlu1 %6602 }
 0x5b1   :  { %v6613_v29 = vadd.f32 1.0, %v6603_v6  ;;  %v6927_v6 = vsel %vm5259_vm3, 1.0, %v14660_v14 }
 0x5b3   :  { %7758 = vrcp.f32 %v6613_v29 }
 0x5b4   :  { %7760 = vrcp.f32 %v6807_v11 }
 0x5b5   :  { %7762 = vrcp.f32 %v6803_v17 }
 0x5b8   :  { %v6133_v4 = vpop.xlane.xlu1 %6132 }
 0x5b9   :  { %v6143_v45 = vmul.f32 2.0, %v6133_v4  ;;  %v5249_v4 = vadd.s32 24, %v14661_v50 }
 0x5ba   :  { %v6606_v18 = vpop.xlane.xlu0 %6605 }
 0x5bb   :  { %v6607_v43 = vadd.f32 1.0, %v6143_v45  ;;  %v6614_v7 = vadd.f32 1.0, %v6606_v18  ;;  %v6646_v45 = vld [vmem:[#allocation3 + $0x10] sm:$0xff]  ;;  %vm5260_vm5 = vcmp.lt.s32.totalorder %v5249_v4, %v12992_v63 }
 0x5bc   :  { %v6701_v30 = vpop.permute.xlu1 %6700 }
 0x5bd   :  { %v6616_v62 = vmul.f32 %v7755_v8, %v6607_v43  ;;  %v6703_v1 = vmul.f32 %v6930_v35, %v6701_v30  ;;  %v7759_v25 = vpop.eup %7758  ;;  %7764 = vrcp.f32 %v6614_v7  ;;  %v6632_v43 = vld [vmem:[#allocation2 + $0x8] sm:$0xff] }
 0x5be   :  { %v6136_v32 = vpop.xlane.xlu0 %6135  ;;  %v7761_v16 = vpop.eup %7760 }
 0x5bf   :  { %v6144_v33 = vmul.f32 2.0, %v6136_v32  ;;  %v6623_v55 = vsub.f32 1.0, %v6616_v62  ;;  %v6704_v44 = vsel %vm6669_vm15, %v6703_v1, 0.0  ;;  %v7763_v9 = vpop.eup %7762  ;;  %v6809_v23 = vmul.f32 %v7761_v16, %v6806_v56 }
 0x5c0   :  { %v6705_v38 = vrot.slane %v6704_v44, 4  ;;  %v6805_v30 = vmul.f32 %v7763_v9, %v12982_v40 }
 0x5c1   :  { %v6608_v61 = vadd.f32 1.0, %v6144_v33  ;;  %v6627_v3 = vmul.f32 %v6925_v39, %v6623_v55 }
 0x5c2   :  { %v6706_v37 = vadd.f32 %v6705_v38, %v6704_v44  ;;  %v6810_v47 = vsub.f32 %v6805_v30, %v6809_v23  ;;  %v6634_v38 = vld [vmem:[#allocation2 + $0x18] sm:$0xff] }
 0x5c3   :  { %v6618_v41 = vmul.f32 %v7757_v52, %v6608_v61  ;;  %v6648_v57 = vadd.f32 %v6644_v59, %v6627_v3  ;;  %v6739_v61 = vsel %vm6738_vm6, %v6737_v21, 0.0  ;;  %v6647_v52 = vld [vmem:[#allocation3 + $0x18] sm:$0xff] }
 0x5c4   :  { %v6707_v27 = vrot.slane %v6706_v37, 2  ;;  %v6811_v19 = vsub.f32 1.0, %v6810_v47 }
 0x5c5   :  { %v6624_v51 = vsub.f32 1.0, %v6618_v41  ;;  %6652 = vst.msk [vmem:[#allocation3] sm:$0xff] %vm39_vm14, %v6648_v57 }
 0x5c6   :  { %v6139_v35 = vpop.xlane.xlu0 %6138  ;;  %v6708_v42 = vadd.f32 %v6707_v27, %v6706_v37  ;;  %v6813_v41 = vsel %vm6812_vm7, %v6811_v19, 0.0 }
 0x5c7   :  { %v6145_v13 = vmul.f32 2.0, %v6139_v35  ;;  %v6628_v34 = vmul.f32 %v6926_v46, %v6624_v51  ;;  %v7765_v33 = vpop.eup %7764 }
 0x5c8   :  { %v6709_v2 = vrot.slane %v6708_v42, 1 }
 0x5c9   :  { %v6609_v26 = vadd.f32 1.0, %v6145_v13  ;;  %v6649_v53 = vadd.f32 %v6645_v58, %v6628_v34 }
 0x5ca   :  { %v6710_v54 = vadd.f32 %v6709_v2, %v6708_v42 }
 0x5cb   :  { %v5664_v20 = vpop.xlane.xlu0 %5663  ;;  %v6620_v31 = vmul.f32 %v7759_v25, %v6609_v26  ;;  %6653 = vst.msk [vmem:[#allocation3 + $0x8] sm:$0xff] %vm39_vm14, %v6649_v53 }
 0x5cc   :  { %v5675_v49 = vmul.f32 0.0625, %v5664_v20  ;;  %v6712_v17 = vmul.f32 %v6711_v48, %v6710_v54  ;;  %v6724_v55 = vsel %vm6713_vm4, %v6710_v54, 0.0  ;;  %v6859_v25 = vld [vmem:[#allocation3] sm:$0xff] }
 0x5cd   :  { %v6625_v12 = vsub.f32 1.0, %v6620_v31 }
 0x5ce   :  { %v5679_v36 = vmul.f32 %v6925_v39, %v5675_v49  ;;  %v6714_v62 = vsel %vm6713_vm4, %v6712_v17, 0.0  ;;  %v6928_v39 = vsel %vm5260_vm5, 1.0, %v14660_v14 }
 0x5cf   :  { %v6629_v15 = vmul.f32 %v6927_v6, %v6625_v12  ;;  %6715 = vadd.xlane.f32.xlu0 %v6714_v62 }
 0x5d0   :  { %v5667_v29 = vpop.xlane.xlu0 %5666  ;;  %v6635_v18 = vadd.f32 %v6631_v10, %v5679_v36 }
 0x5d1   :  { %v5676_v11 = vmul.f32 0.0625, %v5667_v29  ;;  %v6650_v22 = vadd.f32 %v6646_v45, %v6629_v15 }
 0x5d2   :  { %6640 = vst.msk [vmem:[#allocation2] sm:$0xff] %vm39_vm14, %v6635_v18  ;;  %v6860_v51 = vld [vmem:[#allocation3 + $0x8] sm:$0xff] }
 0x5d3   :  { %v5680_v8 = vmul.f32 %v6926_v46, %v5676_v11  ;;  %6654 = vst.msk [vmem:[#allocation3 + $0x10] sm:$0xff] %vm39_vm14, %v6650_v22  ;;  %6725 = vadd.xlane.f32.xlu0 %v6724_v55  ;;  %v6864_v34 = vsel %vm39_vm14, %v6860_v51, 0.0 }
 0x5d5   :  { %v6636_v1 = vadd.f32 %v6632_v43, %v5680_v8 }
 0x5d6   :  { %v6142_v50 = vpop.xlane.xlu0 %6141 }
 0x5d7   :  { %v6146_v32 = vmul.f32 2.0, %v6142_v50  ;;  %6641 = vst.msk [vmem:[#allocation2 + $0x8] sm:$0xff] %vm39_vm14, %v6636_v1  ;;  %6740 = vadd.xlane.f32.xlu0 %v6739_v61 }
 0x5d9   :  { %v6610_v24 = vadd.f32 1.0, %v6146_v32  ;;  %v6839_v46 = vld [vmem:[#allocation2] sm:$0xff] }
 0x5da   :  { %v5673_v40 = vpop.xlane.xlu0 %5672  ;;  %v6843_v26 = vsel %vm39_vm14, %v6839_v46, 0.0  ;;  %v6861_v31 = vld [vmem:[#allocation3 + $0x10] sm:$0xff] }
 0x5db   :  { %v6622_v44 = vmul.f32 %v7765_v33, %v6610_v24  ;;  %v5678_v5 = vmul.f32 0.0625, %v5673_v40  ;;  %6814 = vadd.xlane.f32.xlu0 %v6813_v41  ;;  %v6866_v16 = vsel %vm39_vm14, %v6861_v31, 0.0 }
 0x5dd   :  { %v6626_v63 = vsub.f32 1.0, %v6622_v44  ;;  %v5682_v59 = vmul.f32 %v6928_v39, %v5678_v5 }
 0x5de   :  { %v6840_v28 = vld [vmem:[#allocation2 + $0x8] sm:$0xff] }
 0x5df   :  { %v6630_v35 = vmul.f32 %v6928_v39, %v6626_v63  ;;  %v6638_v3 = vadd.f32 %v6634_v38, %v5682_v59  ;;  %v6844_v27 = vsel %vm39_vm14, %v6840_v28, 0.0  ;;  %v14662_v28 = vld [vmem:[#allocation74_spill] sm:$0xff] }
 0x5e0   :  { %v6845_v42 = vadd.f32 %v6844_v27, %v6843_v26  ;;  %vm6826_vm8 = vcmp.eq.s32.totalorder %v14662_v28, 1  ;;  %vm6823_vm9 = vcmp.eq.s32.totalorder %v14662_v28, 0  ;;  %vm6830_vm10 = vcmp.eq.s32.totalorder %v14662_v28, 4 }
 0x5e1   :  { %6643 = vst.msk [vmem:[#allocation2 + $0x18] sm:$0xff] %vm39_vm14, %v6638_v3  ;;  %v6651_v37 = vadd.f32 %v6647_v52, %v6630_v35  ;;  %vm6834_vm11 = vcmp.eq.s32.totalorder %v14662_v28, 5  ;;  %vm6880_vm12 = vcmp.eq.s32.totalorder %v14662_v28, 2  ;;  %vm6884_vm13 = vcmp.eq.s32.totalorder %v14662_v28, 3 }
 0x5e3   :  { %6655 = vst.msk [vmem:[#allocation3 + $0x18] sm:$0xff] %vm39_vm14, %v6651_v37 }
 0x5e8   :  { %v6842_v58 = vld [vmem:[#allocation2 + $0x18] sm:$0xff] }
 0x5e9   :  { %v6848_v56 = vsel %vm39_vm14, %v6842_v58, 0.0 }
 0x5ea   :  { %v6862_v48 = vld [vmem:[#allocation3 + $0x18] sm:$0xff] }
 0x5eb   :  { %v6868_v36 = vsel %vm39_vm14, %v6862_v48, 0.0 }
 0x5ed   :  { %v5670_v14 = vpop.xlane.xlu1 %5669 }
 0x5ee   :  { %v5677_v13 = vmul.f32 0.0625, %v5670_v14 }
 0x5f0   :  { %v5681_v7 = vmul.f32 %v6927_v6, %v5677_v13  ;;  %v6863_v6 = vsel %vm39_vm14, %v6859_v25, 0.0 }
 0x5f1   :  { %v6865_v12 = vadd.f32 %v6864_v34, %v6863_v6 }
 0x5f2   :  { %v6637_v57 = vadd.f32 %v6633_v0, %v5681_v7 }
 0x5f3   :  { %v6867_v53 = vadd.f32 %v6866_v16, %v6865_v12 }
 0x5f4   :  { %6642 = vst.msk [vmem:[#allocation2 + $0x10] sm:$0xff] %vm39_vm14, %v6637_v57 }
 0x5f5   :  { %v6869_v9 = vadd.f32 %v6868_v36, %v6867_v53 }
 0x5fb   :  { %v6841_v20 = vld [vmem:[#allocation2 + $0x10] sm:$0xff] }
 0x5fc   :  { %v6846_v49 = vsel %vm39_vm14, %v6841_v20, 0.0 }
 0x5fd   :  { %v6847_v10 = vadd.f32 %v6846_v49, %v6845_v42 }
 0x5ff   :  { %v6849_v2 = vadd.f32 %v6848_v56, %v6847_v10 }
 0x601   :  { %6850 = vadd.xlane.f32.xlu0 %v6849_v2 }
 0x605   :  { %6870 = vadd.xlane.f32.xlu0 %v6869_v9 }
 0x65c   :  { %v6716_v29 = vpop.xlane.xlu0 %6715 }
 0x65d   :  { %v6717_v4 = vrot.slane %v6716_v29, 4 }
 0x65f   :  { %v6718_v45 = vadd.f32 %v6717_v4, %v6716_v29 }
 0x660   :  { %v6726_v18 = vpop.xlane.xlu0 %6725 }
 0x661   :  { %v6719_v54 = vrot.slane %v6718_v45, 2  ;;  %v6727_v11 = vrot.slane %v6726_v18, 4 }
 0x663   :  { %v6728_v15 = vadd.f32 %v6727_v11, %v6726_v18  ;;  %v6720_v43 = vadd.f32 %v6719_v54, %v6718_v45 }
 0x664   :  { %v6741_v60 = vpop.xlane.xlu0 %6740 }
 0x665   :  { %v6729_v23 = vrot.slane %v6728_v15, 2  ;;  %v6742_v17 = vrot.slane %v6741_v60, 4  ;;  %v6721_v8 = vrot.slane %v6720_v43, 1 }
 0x667   :  { %v6743_v30 = vadd.f32 %v6742_v17, %v6741_v60  ;;  %v6722_v22 = vadd.f32 %v6721_v8, %v6720_v43  ;;  %v6730_v50 = vadd.f32 %v6729_v23, %v6728_v15 }
 0x668   :  { %v6815_v62 = vpop.xlane.xlu0 %6814 }
 0x669   :  { %v6744_v1 = vrot.slane %v6743_v30, 2  ;;  %v6816_v32 = vrot.slane %v6815_v62, 4  ;;  %7187 = vpush %v6722_v22  ;;  %v6731_v24 = vrot.slane %v6730_v50, 1 }
 0x66b   :  { %v6817_v21 = vadd.f32 %v6816_v32, %v6815_v62  ;;  %v6732_v47 = vadd.f32 %v6731_v24, %v6730_v50  ;;  %v6745_v33 = vadd.f32 %v6744_v1, %v6743_v30 }
 0x66d   :  { %v6818_v40 = vrot.slane %v6817_v21, 2  ;;  %7189 = vpush %v6732_v47  ;;  %v6746_v39 = vrot.slane %v6745_v33, 1 }
 0x66f   :  { %v6747_v55 = vadd.f32 %v6746_v39, %v6745_v33  ;;  %v6819_v44 = vadd.f32 %v6818_v40, %v6817_v21 }
 0x671   :  { %7191 = vpush %v6747_v55  ;;  %v6820_v5 = vrot.slane %v6819_v44, 1 }
 0x673   :  { %v6821_v38 = vadd.f32 %v6820_v5, %v6819_v44 }
 0x675   :  { %7193 = vpush %v6821_v38 }
 0x68e   :  { %v6851_v63 = vpop.xlane.xlu0 %6850 }
 0x68f   :  { %v6852_v61 = vrot.slane %v6851_v63, 4 }
 0x691   :  { %v6853_v59 = vadd.f32 %v6852_v61, %v6851_v63 }
 0x692   :  { %v6871_v19 = vpop.xlane.xlu0 %6870 }
 0x693   :  { %v6854_v52 = vrot.slane %v6853_v59, 2  ;;  %v6872_v35 = vrot.slane %v6871_v19, 4 }
 0x695   :  { %v6873_v3 = vadd.f32 %v6872_v35, %v6871_v19  ;;  %v6855_v37 = vadd.f32 %v6854_v52, %v6853_v59 }
 0x697   :  { %v6874_v41 = vrot.slane %v6873_v3, 2  ;;  %v6856_v14 = vrot.slane %v6855_v37, 1 }
 0x699   :  { %v6875_v13 = vadd.f32 %v6874_v41, %v6873_v3  ;;  %v6857_v0 = vadd.f32 %v6856_v14, %v6855_v37 }
 0x69a   :  { %s7188_s0 = spop %7187 }
 0x69b   :  { %7195 = vpush %v6857_v0  ;;  %v6876_v7 = vrot.slane %v6875_v13, 1  ;;  %v6824_v27 = vstv %s7188_s0 }
 0x69c   :  { %v6825_v25 = vsel %vm6823_vm9, %v6824_v27, 0.0 }
 0x69d   :  { %v6877_v57 = vadd.f32 %v6876_v7, %v6875_v13 }
 0x69e   :  { %s7190_s17 = spop %7189 }
 0x69f   :  { %v6827_v46 = vstv %s7190_s17  ;;  %7197 = vpush %v6877_v57 }
 0x6a0   :  { %v6828_v51 = vsel %vm6826_vm8, %v6827_v46, 0.0 }
 0x6a1   :  { %v6829_v58 = vadd.f32 %v6828_v51, %v6825_v25 }
 0x6a2   :  { %s7192_s18 = spop %7191 }
 0x6a3   :  { %v6831_v26 = vstv %s7192_s18 }
 0x6a4   :  { %v6832_v20 = vsel %vm6830_vm10, %v6831_v26, 0.0 }
 0x6a5   :  { %v6833_v42 = vadd.f32 %v6832_v20, %v6829_v58 }
 0x6a6   :  { %s7194_s19 = spop %7193 }
 0x6a7   :  { %v6835_v31 = vstv %s7194_s19 }
 0x6a8   :  { %v6836_v49 = vsel %vm6834_vm11, %v6835_v31, 0.0 }
 0x6a9   :  { %v6837_v34 = vadd.f32 %v6836_v49, %v6833_v42 }
 0x6ab   :  { %6838 = vst [vmem:[#allocation4] sm:$0x1] %v6837_v34 }
 0x6b2   :  { %v6879_v56 = vld [vmem:[#allocation4] sm:$0x1] }
 0x6cc   :  { %s7196_s20 = spop %7195 }
 0x6cd   :  { %v6881_v10 = vstv %s7196_s20 }
 0x6ce   :  { %v6882_v48 = vsel %vm6880_vm12, %v6881_v10, 0.0 }
 0x6cf   :  { %v6883_v6 = vadd.f32 %v6882_v48, %v6879_v56 }
 0x6d0   :  { %s7198_s9 = spop %7197 }
 0x6d1   :  { %v6885_v16 = vstv %s7198_s9 }
 0x6d2   :  { %v6886_v2 = vsel %vm6884_vm13, %v6885_v16, 0.0 }
 0x6d3   :  { %v6887_v12 = vadd.f32 %v6886_v2, %v6883_v6 }
 0x6d5   :  { %6888 = vst [vmem:[%s13052_s10] sm:$0x1] %v6887_v12 }

</bundles_post_ra>
